<compile_context>
chip_gen: v5e
topology: v5e:2x2
jax: 0.10.0
libtpu: 0.0.40
codegen_flags: <defaults>
</compile_context>

<pallas_src>
import functools

import jax
import jax.numpy as jnp
from jax.experimental import pallas as pl
from jax.experimental.pallas import tpu as pltpu


def txtnet_kernel(x_ref, w1_ref, b1_ref, w2_ref, b2_ref, code_ref, *, alpha):
    # Grid: (batch tile i [parallel], hidden tile k [reduction, arbitrary]).
    # The output BlockSpec ignores k, so code_ref is the VMEM-resident f32
    # accumulator for the second matmul.
    k = pl.program_id(1)

    @pl.when(k == 0)
    def _():
        code_ref[...] = jnp.zeros_like(code_ref)

    # Layer 1 slice: relu(x @ W1[:, k_tile] + b1[k_tile])      (tb, th)
    h = jnp.dot(x_ref[...], w1_ref[...], preferred_element_type=jnp.float32)
    h = jnp.maximum(h + b1_ref[...], 0.0)
    # bf16 activations into the second matmul (native MXU input, half the
    # VMEM vst/vld traffic); accumulation stays f32.
    h = h.astype(jnp.bfloat16)

    # Layer-2 partial sum: code += h_k @ W2[k_tile, :]          (tb, C)
    code_ref[...] += jnp.dot(h, w2_ref[...], preferred_element_type=jnp.float32)

    @pl.when(k == pl.num_programs(1) - 1)
    def _():
        code_ref[...] = jnp.tanh(alpha * (code_ref[...] + b2_ref[...]))


def _tensorcores_per_chip():
    # v7x has 2 TensorCores per chip; v5e/v6e have 1.
    try:
        kind = jax.devices()[0].device_kind.lower()
    except Exception:
        return 1
    return 2 if "7" in kind else 1


def txtnet_forward(x, w1, b1, w2, b2, *, alpha=1.0, tb=None, th=2048,
                   max_tb=1024):
    """TxtNet forward.

    x : (B, F) float32        w1: (F, H)  b1: (H,)   w2: (H, C)  b2: (C,)
    Returns (x, code) with code: (B, C) float32, matching the PyTorch module.
    """
    B, F = x.shape
    F_w, H = w1.shape
    H_w, C = w2.shape
    assert F == F_w and H == H_w, "weight shapes inconsistent with x"

    # --- batch tiling: one batch tile per TensorCore (whole batch on
    # single-TC v5e/v6e, two tiles on dual-TC v7x), 16-aligned for bf16.
    if tb is None:
        n_tc = _tensorcores_per_chip()
        tb = min(-(-B // n_tc), max_tb)
    tb = max(16, ((tb + 15) // 16) * 16)
    n_b = pl.cdiv(B, tb)
    B_pad = n_b * tb
    # TODO(synk): for very wide txt_feat_len, mask the ragged batch tail
    # in-kernel instead of this host-side pad (extra HBM copy of x).
    x_in = jnp.pad(x, ((0, B_pad - B), (0, 0))) if B_pad != B else x

    # --- hidden (reduction) tiling: multiple of 128, divides H -------------
    th = min(th, H)
    while H % th != 0 and th > 128:
        th //= 2
    assert H % th == 0, "hidden width must be divisible by the hidden tile"
    n_k = H // th

    # bf16 streaming datapath; biases and accumulation stay f32.
    x_bf = x_in.astype(jnp.bfloat16)
    w1_bf = w1.astype(jnp.bfloat16)
    w2_bf = w2.astype(jnp.bfloat16)
    b1_2d = b1.reshape(1, H).astype(jnp.float32)
    b2_2d = b2.reshape(1, C).astype(jnp.float32)

    kernel = functools.partial(txtnet_kernel, alpha=float(alpha))

    flops = 2 * B_pad * F * H + 2 * B_pad * H * C
    bytes_accessed = (
        2 * B_pad * F                     # x (bf16), one pass
        + n_b * 2 * (F * H + H * C)       # W1/W2 (bf16), streamed per batch tile
        + n_b * 4 * (H + C)               # biases (f32)
        + 4 * B_pad * C                   # code output (f32)
    )

    code = pl.pallas_call(
        kernel,
        out_shape=jax.ShapeDtypeStruct((B_pad, C), jnp.float32),
        grid_spec=pltpu.PrefetchScalarGridSpec(
            num_scalar_prefetch=0,
            grid=(n_b, n_k),                                  # reduction last
            in_specs=[
                pl.BlockSpec((tb, F), lambda i, k: (i, 0)),   # x batch tile
                pl.BlockSpec((F, th), lambda i, k: (0, k)),   # W1 hidden slab
                pl.BlockSpec((1, th), lambda i, k: (0, k)),   # b1 hidden slice
                pl.BlockSpec((th, C), lambda i, k: (k, 0)),   # W2 hidden slab
                pl.BlockSpec((1, C), lambda i, k: (0, 0)),    # b2
            ],
            out_specs=pl.BlockSpec((tb, C), lambda i, k: (i, 0)),
        ),
        compiler_params=pltpu.CompilerParams(
            dimension_semantics=("parallel", "arbitrary"),
        ),
        cost_estimate=pl.CostEstimate(
            flops=flops,
            transcendentals=B_pad * C,
            bytes_accessed=bytes_accessed,
        ),
    )(x_bf, w1_bf, b1_2d, w2_bf, b2_2d)

    if B_pad != B:
        code = code[:B]
    return x, code


def reference_f32(x, w1, b1, w2, b2, alpha):
    hi = jax.lax.Precision.HIGHEST
    h = jnp.maximum(jnp.dot(x, w1, precision=hi) + b1, 0.0)
    return jnp.tanh(alpha * (jnp.dot(h, w2, precision=hi) + b2))


def reference_bf16(x, w1, b1, w2, b2, alpha):
    # Matches the kernel's bf16-input / f32-accumulate numerics.
    h = jnp.dot(x.astype(jnp.bfloat16), w1.astype(jnp.bfloat16),
                preferred_element_type=jnp.float32) + b1
    h = jnp.maximum(h, 0.0).astype(jnp.bfloat16)
    hid = jnp.dot(h, w2.astype(jnp.bfloat16),
                  preferred_element_type=jnp.float32) + b2
    return jnp.tanh(alpha * hid)


if __name__ == "__main__":
    key = jax.random.PRNGKey(0)
    kx, kw1, kb1, kw2, kb2 = jax.random.split(key, 5)

    B = 128    # batch
    F = 512    # txt_feat_len
    H = 4096   # hidden width fixed by the module (nn.Linear(txt_feat_len, 4096))
    C = 128    # code_len

    # PyTorch-Linear-style uniform init, deterministic.
    bound1 = 1.0 / (F ** 0.5)
    bound2 = 1.0 / (H ** 0.5)
    w1 = jax.random.uniform(kw1, (F, H), jnp.float32, -bound1, bound1)  # == W1.T
    b1 = jax.random.uniform(kb1, (H,), jnp.float32, -bound1, bound1)
    w2 = jax.random.uniform(kw2, (H, C), jnp.float32, -bound2, bound2)  # == W2.T
    b2 = jax.random.uniform(kb2, (C,), jnp.float32, -bound2, bound2)
    x = jax.random.normal(kx, (B, F), jnp.float32)

    alpha = 1.0  # self.alpha (set_alpha is a host-side static scalar)

    x_out, code = txtnet_forward(x, w1, b1, w2, b2, alpha=alpha)
    code = jax.block_until_ready(code)

    ref_match = reference_bf16(x, w1, b1, w2, b2, alpha)   # same numerics
    ref_f32 = reference_f32(x, w1, b1, w2, b2, alpha)      # full-precision

    assert x_out.shape == (B, F) and code.shape == (B, C)
    assert jnp.array_equal(x_out, x), "passthrough x mismatch"
    assert jnp.allclose(code, ref_match, atol=2e-3, rtol=2e-3), \
        "mismatch vs bf16-matched reference"
    assert jnp.allclose(code, ref_f32, atol=3e-2, rtol=3e-2), \
        "mismatch vs f32 reference"

    print("KERNEL_OK")
</pallas_src>

<mosaic_0001>
module attributes {stable_mosaic.version = 11 : i64} {
  func.func @txtnet_kernel(%arg0: i32, %arg1: i32, %arg2: memref<128x512xbf16, #tpu.memory_space<vmem>>, %arg3: memref<512x2048xbf16, #tpu.memory_space<vmem>>, %arg4: memref<1x2048xf32, #tpu.memory_space<vmem>>, %arg5: memref<2048x128xbf16, #tpu.memory_space<vmem>>, %arg6: memref<1x128xf32, #tpu.memory_space<vmem>>, %arg7: memref<128x128xf32, #tpu.memory_space<vmem>>) attributes {dimension_semantics = [#tpu.dimension_semantics<parallel>, #tpu.dimension_semantics<arbitrary>], iteration_bounds = array<i64: 1, 2>, scalar_prefetch = 0 : i64, scratch_operands = 0 : i64, tpu.core_type = #tpu.core_type<tc>, window_params = [{transform_indices = @transform_0, window_bounds = array<i64: 128, 512>}, {transform_indices = @transform_1, window_bounds = array<i64: 512, 2048>}, {transform_indices = @transform_2, window_bounds = array<i64: 1, 2048>}, {transform_indices = @transform_3, window_bounds = array<i64: 2048, 128>}, {pipeline_mode = #tpu.pipeline_mode<synchronous>, transform_indices = @transform_4, window_bounds = array<i64: 1, 128>}, {transform_indices = @transform_5, window_bounds = array<i64: 128, 128>}]} {
    %c0_i32 = arith.constant 0 : i32
    %0 = arith.cmpi eq, %arg1, %c0_i32 : i32
    %1 = arith.extui %0 : i1 to i32
    %c0_i32_0 = arith.constant 0 : i32
    %2 = arith.cmpi ne, %1, %c0_i32_0 : i32
    scf.if %2 {
      %cst_15 = arith.constant 0.000000e+00 : f32
      %20 = vector.broadcast %cst_15 : f32 to vector<128x128xf32>
      %c0_16 = arith.constant 0 : index
      %c0_17 = arith.constant 0 : index
      %21 = vector.load %arg7[%c0_16, %c0_17] : memref<128x128xf32, #tpu.memory_space<vmem>>, vector<128x128xf32>
      tpu.vector_store %arg7[%c0_16, %c0_17], %20 {strides = array<i32>} : memref<128x128xf32, #tpu.memory_space<vmem>>, vector<128x128xf32>,
    } else {
    }
    %c0 = arith.constant 0 : index
    %c0_1 = arith.constant 0 : index
    %3 = vector.load %arg2[%c0, %c0_1] : memref<128x512xbf16, #tpu.memory_space<vmem>>, vector<128x512xbf16>
    %c0_2 = arith.constant 0 : index
    %c0_3 = arith.constant 0 : index
    %4 = vector.load %arg3[%c0_2, %c0_3] : memref<512x2048xbf16, #tpu.memory_space<vmem>>, vector<512x2048xbf16>
    %cst = arith.constant dense<0.000000e+00> : vector<128x2048xf32>
    %5 = tpu.matmul %3, %4, %cst {dimension_numbers = #tpu.dot_dimension_numbers<[1], [0], [0], [1], [0, 0, 1, 1], [], []>} : vector<128x512xbf16>, vector<512x2048xbf16>, vector<128x2048xf32> -> vector<128x2048xf32>
    %c0_4 = arith.constant 0 : index
    %c0_5 = arith.constant 0 : index
    %6 = vector.load %arg4[%c0_4, %c0_5] : memref<1x2048xf32, #tpu.memory_space<vmem>>, vector<1x2048xf32>
    %7 = vector.broadcast %6 : vector<1x2048xf32> to vector<128x2048xf32>
    %8 = arith.addf %5, %7 : vector<128x2048xf32>
    %cst_6 = arith.constant 0.000000e+00 : f32
    %9 = vector.broadcast %cst_6 : f32 to vector<128x2048xf32>
    %10 = arith.maximumf %8, %9 : vector<128x2048xf32>
    %11 = arith.truncf %10 : vector<128x2048xf32> to vector<128x2048xbf16>
    %c0_7 = arith.constant 0 : index
    %c0_8 = arith.constant 0 : index
    %12 = vector.load %arg7[%c0_7, %c0_8] : memref<128x128xf32, #tpu.memory_space<vmem>>, vector<128x128xf32>
    %c0_9 = arith.constant 0 : index
    %c0_10 = arith.constant 0 : index
    %13 = vector.load %arg5[%c0_9, %c0_10] : memref<2048x128xbf16, #tpu.memory_space<vmem>>, vector<2048x128xbf16>
    %cst_11 = arith.constant dense<0.000000e+00> : vector<128x128xf32>
    %14 = tpu.matmul %11, %13, %cst_11 {dimension_numbers = #tpu.dot_dimension_numbers<[1], [0], [0], [1], [0, 0, 1, 1], [], []>} : vector<128x2048xbf16>, vector<2048x128xbf16>, vector<128x128xf32> -> vector<128x128xf32>
    %15 = arith.addf %12, %14 : vector<128x128xf32>
    %c0_12 = arith.constant 0 : index
    %c0_13 = arith.constant 0 : index
    %16 = vector.load %arg7[%c0_12, %c0_13] : memref<128x128xf32, #tpu.memory_space<vmem>>, vector<128x128xf32>
    tpu.vector_store %arg7[%c0_12, %c0_13], %15 {strides = array<i32>} : memref<128x128xf32, #tpu.memory_space<vmem>>, vector<128x128xf32>,
    %c1_i32 = arith.constant 1 : i32
    %17 = arith.cmpi eq, %arg1, %c1_i32 : i32
    %18 = arith.extui %17 : i1 to i32
    %c0_i32_14 = arith.constant 0 : i32
    %19 = arith.cmpi ne, %18, %c0_i32_14 : i32
    scf.if %19 {
      %c0_15 = arith.constant 0 : index
      %c0_16 = arith.constant 0 : index
      %20 = vector.load %arg7[%c0_15, %c0_16] : memref<128x128xf32, #tpu.memory_space<vmem>>, vector<128x128xf32>
      %c0_17 = arith.constant 0 : index
      %c0_18 = arith.constant 0 : index
      %21 = vector.load %arg6[%c0_17, %c0_18] : memref<1x128xf32, #tpu.memory_space<vmem>>, vector<1x128xf32>
      %22 = vector.broadcast %21 : vector<1x128xf32> to vector<128x128xf32>
      %23 = arith.addf %20, %22 : vector<128x128xf32>
      %cst_19 = arith.constant 1.000000e+00 : f32
      %24 = vector.broadcast %cst_19 : f32 to vector<128x128xf32>
      %25 = arith.mulf %24, %23 : vector<128x128xf32>
      %26 = math.tanh %25 : vector<128x128xf32>
      %c0_20 = arith.constant 0 : index
      %c0_21 = arith.constant 0 : index
      %27 = vector.load %arg7[%c0_20, %c0_21] : memref<128x128xf32, #tpu.memory_space<vmem>>, vector<128x128xf32>
      tpu.vector_store %arg7[%c0_20, %c0_21], %26 {strides = array<i32>} : memref<128x128xf32, #tpu.memory_space<vmem>>, vector<128x128xf32>,
    } else {
    }
    return
  }
  func.func @transform_0(%arg0: i32, %arg1: i32) -> (i32, i32) {
    %c0_i32 = arith.constant 0 : i32
    %c0_i32_0 = arith.constant 0 : i32
    return %arg0, %c0_i32 : i32, i32
  }
  func.func @transform_1(%arg0: i32, %arg1: i32) -> (i32, i32) {
    %c0_i32 = arith.constant 0 : i32
    %c0_i32_0 = arith.constant 0 : i32
    return %c0_i32, %arg1 : i32, i32
  }
  func.func @transform_2(%arg0: i32, %arg1: i32) -> (i32, i32) {
    %c0_i32 = arith.constant 0 : i32
    %c0_i32_0 = arith.constant 0 : i32
    return %c0_i32, %arg1 : i32, i32
  }
  func.func @transform_3(%arg0: i32, %arg1: i32) -> (i32, i32) {
    %c0_i32 = arith.constant 0 : i32
    %c0_i32_0 = arith.constant 0 : i32
    return %arg1, %c0_i32 : i32, i32
  }
  func.func @transform_4(%arg0: i32, %arg1: i32) -> (i32, i32) {
    %c0_i32 = arith.constant 0 : i32
    %c0_i32_0 = arith.constant 0 : i32
    %c0_i32_1 = arith.constant 0 : i32
    return %c0_i32, %c0_i32_0 : i32, i32
  }
  func.func @transform_5(%arg0: i32, %arg1: i32) -> (i32, i32) {
    %c0_i32 = arith.constant 0 : i32
    %c0_i32_0 = arith.constant 0 : i32
    return %arg0, %c0_i32 : i32, i32
  }
}

</mosaic_0001>

<bundles_post_ra>
// kernel: tpu_custom_call.1
= control target key start
LH: loop header
LB: loop body
LE: loop exit
PB: predicated region body
PF: predicated region fallthrough
CT: control target
= control target key end

     0   :  { %s15852_s0 = inlined_call_operand.hbm [shape: bf16[128,512], index: 0, kind: input, shape index: {}]   ;;  %s15853_s1 = inlined_call_operand.hbm [shape: bf16[512,4096], index: 1, kind: input, shape index: {}]   ;;  %s15854_s2 = inlined_call_operand.hbm [shape: f32[1,4096], index: 2, kind: input, shape index: {}]   ;;  %s15855_s3 = inlined_call_operand.hbm [shape: bf16[4096,128], index: 3, kind: input, shape index: {}]   ;;  %s15856_s4 = inlined_call_operand.hbm [shape: f32[1,128], index: 4, kind: input, shape index: {}]   ;;  %s15857_s5 = inlined_call_operand.hbm [shape: f32[128,128], index: 5, kind: output, shape index: {}]  }
   0x1   :  { %15862 = sst [smem:[#allocation119_spill]] %s15853_s1 }
   0x2   :  { %15863 = sst [smem:[#allocation120_spill]] %s15856_s4 }
   0x3   :  { %10 = vsyncpa [#allocation3], 0 }
   0x4   :  { %11 = vsyncpa [#allocation6], 0 }
   0x5   :  { %13 = vsyncpa [#allocation6 + $0x1], 0 }
   0x6   :  { %14 = vsyncpa [#allocation9], 0 }
   0x7   :  { %16 = vsyncpa [#allocation9 + $0x1], 0 }
   0x8   :  { %17 = vsyncpa [#allocation4], 0  ;;  %s13098_s18 = smov 0   ;;  %s13100_s19 = smov 0  }
   0x9   :  { %s13102_s20 = smov 0   ;;  %s13104_s21 = smov 0  }
   0xa   :  { %s13106_s22 = smov 0   ;;  %s13108_s23 = smov 0  }
   0xb LB: > { %15864 = sst [smem:[#allocation17_spill]] %s13042_s20  ;;  %s13127_s24 = sadd.s32 4294967295, %s13054_s23   ;;  %s13054_s23 = sphi %s13108_s23, %s23_s23   ;;  %s13050_s22 = sphi %s13106_s22, %s16080_s22   ;;  %s13046_s21 = sphi %s13104_s21, %s16079_s21   ;;  %s13042_s20 = sphi %s13102_s20, %s16075_s20   ;;  %s13038_s19 = sphi %s13100_s19, %s16078_s19   ;;  %s13034_s18 = sphi %s13098_s18, %s16077_s18  }
   0xc   : > { %s68_s25 = sadd.s32 1, %s13042_s20  ;;  %p75_p0 = scmp.ne.s32.totalorder %s13042_s20, %s13038_s19 }
   0xd   : > { %p76_p1 = scmp.eq.s32.totalorder %s13054_s23, 0  ;;  %p81_p2 = scmp.ne.s32.totalorder %s13038_s19, %s13034_s18 }
   0xe   : > { %p82_p3 = scmp.eq.s32.totalorder %s13127_s24, 0  ;;  %p9283_p5 = scmp.ge.s32.totalorder %s13054_s23, 1 }
   0xf   : > { %p13135_p4 = por %p76_p1, %p75_p0  ;;  %p191_p7 = scmp.lt.s32.totalorder %s13054_s23, 3 }
  0x10   : > { %p13142_p6 = por %p82_p3, %p81_p2  ;;  %s15867_s4 = sld [smem:[#allocation120_spill]] }
  0x11   : > { %p13150_p8 = pnand %p9283_p5, %p191_p7  ;;  %s13056_s7 = smov [#allocation10]  }
  0x12   : > { %s223_s8 = sshll.u32 %s13056_s7, 4  ;;  %p12706_p10 = scmp.lt.s32.totalorder %s13054_s23, 2  ;;  %s224_s8 = int_to_ptr.vmem [resolvable:$true] %s223_s8 }
  0x13   : > { %p12687_p9 = pneg %p13150_p8  ;;  %s32_s11 = sadd.s32 1, %s13050_s22 }
  0x14   : > { %p13165_p12 = pnand %p12706_p10, %p13135_p4  ;;  %p33_p13 = scmp.ge.s32.totalorder %s32_s11, 2 }
  0x15   : > { %p13159_p11 = pnand %p12687_p9, %p82_p3  ;;  %s15859_s12 = sand.u32 1, %s13054_s23  }
  0x16   : > { %s221_s30 = sshll.u32 %s15867_s4, 4  ;;  %s13174_s13 = sand.u32 1, %s13042_s20   ;;  %s222_s30 = int_to_ptr.hbm [resolvable:$true] %s221_s30 }
  0x17   : > { %12693 = dma.hbm_to_vmem [thread:$0]  (!%p13159_p11), %s222_s30, 16, %s224_s8, [#allocation9]  }
  0x18   : > { %s16082_s11 = smov (%p33_p13, %s32_s11), 0  ;;  %s9287_s14 = sshll.u32 %s13174_s13, 12 }
  0x19   : > { %15871 = sst [smem:[#allocation18_spill]] %s16082_s11  ;;  %s65_s15 = ssub.s32 %s13050_s22, %s16082_s11 }
  0x1a   : > { %p66_p0 = scmp.eq.s32.totalorder %s65_s15, 0  ;;  %s11995_s16 = sshll.u32 %s13050_s22, 6 }
  0x1b   : > { %s15872_s1 = sld [smem:[#allocation119_spill]]  ;;  %s238_s28 = scalar_lea.vmem [#allocation5], %s9287_s14 }
  0x1c   : > { %s246_s29 = sshll.u32 %s238_s28, 4  ;;  %s235_s8 = scalar_lea.sflag [#allocation6], %s15859_s12  ;;  %s247_s29 = int_to_ptr.vmem [resolvable:$true] %s246_s29 }
  0x1d   : > { %s13188_s30 = scalar_select %p66_p0, %s13042_s20, %s68_s25  }
  0x1e   : > { %s13057_s4 = smov 2048   ;;  %s13058_s15 = smov 1024  }
  0x1f   : > { %15873 = sst [smem:[#allocation19_spill]] %s13188_s30  ;;  %s15861_s11 = smov 64  }
  0x20   : > { %s206_s17 = sshll.u32 %s15852_s0, 4  ;;  %s13060_s25 = smov [#allocation2]   ;;  %s207_s17 = int_to_ptr.hbm [resolvable:$true] %s206_s17 }
  0x21   : > { %s243_s26 = scalar_lea.hbm %s15872_s1, %s11995_s16  ;;  %s208_s18 = sshll.u32 %s13060_s25, 4  ;;  %s209_s18 = int_to_ptr.vmem [resolvable:$true] %s208_s18 }
  0x22   : > { %s244_s7 = sshll.u32 %s243_s26, 4  ;;  %s9290_s26 = sshll.u32 %s13174_s13, 4  ;;  %s245_s7 = int_to_ptr.hbm [resolvable:$true] %s244_s7 }
  0x23   : > { %12697 = dma.hbm_to_vmem [thread:$0]  (!%p13165_p12), %s245_s7, 65536, %s247_s29, %s235_s8, %s13057_s4, %s13058_s15, %s15861_s11  }
  0x24   : > { %s13061_s28 = smov 256   ;;  %s13062_s12 = smov 16  }
  0x25   : > { %12690 = dma.hbm_to_vmem [thread:$0]  (!%p13159_p11), %s207_s17, 4096, %s209_s18, [#allocation3], %s13061_s28, %s13061_s28, %s13062_s12  }
  0x26   : > { %s9291_s1 = sshll.u32 %s13050_s22, 4  ;;  %s260_s29 = scalar_lea.vmem [#allocation7], %s9290_s26 }
  0x27   : > { %s264_s4 = scalar_lea.hbm %s15854_s2, %s9291_s1  ;;  %s268_s7 = sshll.u32 %s260_s29, 4  ;;  %s269_s7 = int_to_ptr.vmem [resolvable:$true] %s268_s7 }
  0x28   : > { %s266_s15 = sshll.u32 %s264_s4, 4  ;;  %s9292_s16 = sshll.u32 %s13174_s13, 10  ;;  %s267_s15 = int_to_ptr.hbm [resolvable:$true] %s266_s15 }
  0x29   : > { %12700 = dma.hbm_to_vmem [thread:$0]  (!%p13165_p12), %s267_s15, 256, %s269_s7, %s235_s8  }
  0x2a   : > { %s11996_s14 = sshll.u32 %s13050_s22, 10  ;;  %s279_s17 = scalar_lea.vmem [#allocation8], %s9292_s16 }
  0x2b   : > { %s284_s9 = scalar_lea.hbm %s15855_s3, %s11996_s14  ;;  %s287_s18 = sshll.u32 %s279_s17, 4  ;;  %s288_s18 = int_to_ptr.vmem [resolvable:$true] %s287_s18 }
  0x2c   : > { %s285_s12 = sshll.u32 %s284_s9, 4  ;;  %s15874_s1 = sand.u32 1, %s13054_s23   ;;  %s286_s12 = int_to_ptr.hbm [resolvable:$true] %s285_s12 }
  0x2d   : > { %s276_s20 = scalar_lea.sflag [#allocation9], %s15874_s1  ;;  %s13063_s30 = smov 4  }
  0x2e   : > { %s15875_s26 = smov 64   ;;  %299 = sbr.rel (%p13150_p8) target bundleno = 2876 (0xb3c), region = 40 }
  0x2f   : > { %12703 = dma.hbm_to_vmem [thread:$0]  (!%p13165_p12), %s286_s12, 16384, %s288_s18, %s276_s20, %s15875_s26, %s15875_s26, %s13063_s30  }
  0x33   : > { %13013 = dma.done.wait (%p82_p3), [#allocation3], 4096  }
  0x34   : > { %13015 = vsyncadd (%p82_p3), [#allocation3], 4294963200  ;;  %s306_s11 = sand.u32 1, %s13127_s24   ;;  %s308_s13 = sand.u32 1, %s13038_s19  }
  0x35   : > { %s9297_s8 = sshll.u32 %s308_s13, 12  ;;  %s307_s28 = scalar_lea.sflag [#allocation6], %s306_s11 }
  0x36   : > { %s13226_s10 = scalar_lea.vmem [#allocation5], %s9297_s8 }
  0x37   : > { %13017 = dma.done.wait (%p13142_p6), %s307_s28, 65792  }
  0x38   : > { %13019 = vsyncadd (%p13142_p6), %s307_s28, 4294901504  ;;  %s9298_s6 = sshll.u32 %s308_s13, 4  ;;  %s9299_s4 = sshll.u32 %s308_s13, 10 }
  0x39   : > { %s13232_s29 = scalar_lea.vmem [#allocation7], %s9298_s6  ;;  %s327_s7 = scalar_lea.sflag [#allocation9], %s306_s11 }
  0x3a   : > { %s13234_s15 = scalar_lea.vmem [#allocation8], %s9299_s4 }
  0x3b   : > { %13021 = dma.done.wait (%p13142_p6), %s327_s7, 16384  }
  0x3c   : > { %13023 = vsyncadd (%p13142_p6), %s327_s7, 4294950912 }
  0x3d   : > { %13025 = dma.done.wait (%p82_p3), [#allocation9], 16  }
  0x3e   : > { %13027 = vsyncadd (%p82_p3), [#allocation9], 4294967280  ;;  %p9301_p1 = scmp.ne.s32.totalorder %s13046_s21, 0 }
  0x40   : > { %376 = sbr.rel (%p9301_p1) target bundleno = 86 (0x56), region = 64 }
  0x45   : > { %v13064_v0 = vmov 0.0  }
  0x46   : > { %377 = vst [vmem:[#allocation11] sm:$0xff] %v13064_v0 }
  0x47   : > { %378 = vst [vmem:[#allocation11 + $0x8] sm:$0xff] %v13064_v0 }
  0x48   : > { %379 = vst [vmem:[#allocation11 + $0x10] sm:$0xff] %v13064_v0 }
  0x49   : > { %380 = vst [vmem:[#allocation11 + $0x18] sm:$0xff] %v13064_v0 }
  0x4a   : > { %381 = vst [vmem:[#allocation11 + $0x20] sm:$0xff] %v13064_v0 }
  0x4b   : > { %382 = vst [vmem:[#allocation11 + $0x28] sm:$0xff] %v13064_v0 }
  0x4c   : > { %383 = vst [vmem:[#allocation11 + $0x30] sm:$0xff] %v13064_v0 }
  0x4d   : > { %384 = vst [vmem:[#allocation11 + $0x38] sm:$0xff] %v13064_v0 }
  0x4e   : > { %385 = vst [vmem:[#allocation11 + $0x40] sm:$0xff] %v13064_v0 }
  0x4f   : > { %386 = vst [vmem:[#allocation11 + $0x48] sm:$0xff] %v13064_v0 }
  0x50   : > { %387 = vst [vmem:[#allocation11 + $0x50] sm:$0xff] %v13064_v0 }
  0x51   : > { %388 = vst [vmem:[#allocation11 + $0x58] sm:$0xff] %v13064_v0 }
  0x52   : > { %389 = vst [vmem:[#allocation11 + $0x60] sm:$0xff] %v13064_v0 }
  0x53   : > { %390 = vst [vmem:[#allocation11 + $0x68] sm:$0xff] %v13064_v0 }
  0x54   : > { %391 = vst [vmem:[#allocation11 + $0x70] sm:$0xff] %v13064_v0 }
  0x55   : > { %392 = vst [vmem:[#allocation11 + $0x78] sm:$0xff] %v13064_v0 }
  0x56 PF: > { %v9880_v1 = vld [vmem:[%s13226_s10 + $0x380] sm:$0xf]  ;;  %p11990_p2 = scmp.ne.s32.totalorder %s13046_s21, 1 }
  0x57   : > { %v12149_v2 = vld [vmem:[%s13226_s10 + $0x3bc] sm:$0xf0] }
  0x58   : > { %v10392_v3 = vld [vmem:[%s13226_s10 + $0x780] sm:$0xf]  ;;  %v9881_v4 = vor.u32 %v12149_v2, %v9880_v1 }
  0x59   : > { %v12277_v5 = vld [vmem:[%s13226_s10 + $0x7bc] sm:$0xf0] }
  0x5a   : > { %v10904_v6 = vld [vmem:[%s13226_s10 + $0xb80] sm:$0xf]  ;;  %v10393_v8 = vor.u32 %v12277_v5, %v10392_v3  ;;  %3693 = vmatpush.bf16.msra.mxu0 %v9881_v4 }
  0x5b   : > { %v12405_v7 = vld [vmem:[%s13226_s10 + $0xbbc] sm:$0xf0] }
  0x5c   : > { %v10905_v9 = vor.u32 %v12405_v7, %v10904_v6  ;;  %v11416_v10 = vld [vmem:[%s13226_s10 + $0xf80] sm:$0xf]  ;;  %3742 = vmatpush.bf16.msra.mxu1 %v10393_v8 }
  0x5d   : > { %v12533_v11 = vld [vmem:[%s13226_s10 + $0xfbc] sm:$0xf0] }
  0x5e   : > { %v9816_v12 = vld [vmem:[%s13226_s10 + $0x300] sm:$0xf]  ;;  %v11417_v13 = vor.u32 %v12533_v11, %v11416_v10  ;;  %3791 = vmatpush.bf16.msra.mxu2 %v10905_v9 }
  0x5f   : > { %v12133_v14 = vld [vmem:[%s13226_s10 + $0x33c] sm:$0xf0] }
  0x60   : > { %v10328_v15 = vld [vmem:[%s13226_s10 + $0x700] sm:$0xf]  ;;  %v9817_v17 = vor.u32 %v12133_v14, %v9816_v12  ;;  %3840 = vmatpush.bf16.msra.mxu3 %v11417_v13 }
  0x61   : > { %v12261_v16 = vld [vmem:[%s13226_s10 + $0x73c] sm:$0xf0] }
  0x62   : > { %v10329_v18 = vor.u32 %v12261_v16, %v10328_v15  ;;  %v10840_v19 = vld [vmem:[%s13226_s10 + $0xb00] sm:$0xf]  ;;  %3694 = vmatpush.bf16.msra.mxu0 %v9817_v17 }
  0x63   : > { %v12389_v20 = vld [vmem:[%s13226_s10 + $0xb3c] sm:$0xf0] }
  0x64   : > { %v11352_v21 = vld [vmem:[%s13226_s10 + $0xf00] sm:$0xf]  ;;  %v10841_v22 = vor.u32 %v12389_v20, %v10840_v19  ;;  %3743 = vmatpush.bf16.msra.mxu1 %v10329_v18 }
  0x65   : > { %v12517_v23 = vld [vmem:[%s13226_s10 + $0xf3c] sm:$0xf0] }
  0x66   : > { %v9752_v24 = vld [vmem:[%s13226_s10 + $0x280] sm:$0xf]  ;;  %v11353_v26 = vor.u32 %v12517_v23, %v11352_v21  ;;  %3792 = vmatpush.bf16.msra.mxu2 %v10841_v22 }
  0x67   : > { %v12117_v25 = vld [vmem:[%s13226_s10 + $0x2bc] sm:$0xf0] }
  0x68   : > { %v10264_v27 = vld [vmem:[%s13226_s10 + $0x680] sm:$0xf]  ;;  %v9753_v30 = vor.u32 %v12117_v25, %v9752_v24  ;;  %3841 = vmatpush.bf16.msra.mxu3 %v11353_v26 }
  0x69   : > { %v12245_v28 = vld [vmem:[%s13226_s10 + $0x6bc] sm:$0xf0] }
  0x6a   : > { %v10776_v29 = vld [vmem:[%s13226_s10 + $0xa80] sm:$0xf]  ;;  %v10265_v34 = vor.u32 %v12245_v28, %v10264_v27  ;;  %3695 = vmatpush.bf16.msra.mxu0 %v9753_v30  ;;  %v11999_v30 = vld [vmem:[#allocation2 + $0xc] sm:$0xf0] }
  0x6b   : > { %v12373_v31 = vld [vmem:[%s13226_s10 + $0xabc] sm:$0xf0] }
  0x6c   : > { %v11288_v32 = vld [vmem:[%s13226_s10 + $0xe80] sm:$0xf]  ;;  %v10777_v35 = vor.u32 %v12373_v31, %v10776_v29  ;;  %3744 = vmatpush.bf16.msra.mxu1 %v10265_v34  ;;  %v11997_v31 = vld [vmem:[#allocation2 + $0x4] sm:$0xf] }
  0x6d   : > { %v12501_v33 = vld [vmem:[%s13226_s10 + $0xebc] sm:$0xf0]  ;;  %v10906_v34 = vld [vmem:[%s13226_s10 + $0xbc0] sm:$0xf0] }
  0x6e   : > { %v9688_v36 = vld [vmem:[%s13226_s10 + $0x200] sm:$0xf]  ;;  %v11289_v39 = vor.u32 %v12501_v33, %v11288_v32  ;;  %3793 = vmatpush.bf16.msra.mxu2 %v10777_v35  ;;  %v9306_v32 = vld [vmem:[#allocation2 + $0x10] sm:$0xf0]  ;;  %v12397_v33 = vld [vmem:[%s13226_s10 + $0xb84] sm:$0xf] }
  0x6f   : > { %v12101_v37 = vld [vmem:[%s13226_s10 + $0x23c] sm:$0xf0] }
  0x70   : > { %v10200_v38 = vld [vmem:[%s13226_s10 + $0x600] sm:$0xf]  ;;  %v9689_v45 = vor.u32 %v12101_v37, %v9688_v36  ;;  %3842 = vmatpush.bf16.msra.mxu3 %v11289_v39  ;;  %v9312_v36 = vld [vmem:[#allocation2 + $0x8] sm:$0xf]  ;;  %v12525_v37 = vld [vmem:[%s13226_s10 + $0xf84] sm:$0xf] }
  0x71   : > { %v12229_v40 = vld [vmem:[%s13226_s10 + $0x63c] sm:$0xf0] }
  0x72   : > { %v10712_v41 = vld [vmem:[%s13226_s10 + $0xa00] sm:$0xf]  ;;  %v10201_v46 = vor.u32 %v12229_v40, %v10200_v38  ;;  %3696 = vmatpush.bf16.msra.mxu0 %v9689_v45  ;;  %v11418_v38 = vld [vmem:[%s13226_s10 + $0xfc0] sm:$0xf0]  ;;  %v10909_v45 = vor.u32 %v12397_v33, %v10906_v34 }
  0x73   : > { %v12357_v42 = vld [vmem:[%s13226_s10 + $0xa3c] sm:$0xf0]  ;;  %v9690_v33 = vld [vmem:[%s13226_s10 + $0x240] sm:$0xf0] }
  0x74   : > { %v11224_v43 = vld [vmem:[%s13226_s10 + $0xe00] sm:$0xf]  ;;  %v10713_v47 = vor.u32 %v12357_v42, %v10712_v41  ;;  %3745 = vmatpush.bf16.msra.mxu1 %v10201_v46  ;;  %v12000_v41 = vld [vmem:[#allocation2 + $0x14] sm:$0xf0]  ;;  %v11998_v42 = vld [vmem:[#allocation2 + $0xc] sm:$0xf] }
  0x75   : > { %v12485_v44 = vld [vmem:[%s13226_s10 + $0xe3c] sm:$0xf0]  ;;  %v12141_v46 = vld [vmem:[%s13226_s10 + $0x384] sm:$0xf] }
  0x76   : > { %v9624_v48 = vld [vmem:[%s13226_s10 + $0x180] sm:$0xf]  ;;  %v11225_v51 = vor.u32 %v12485_v44, %v11224_v43  ;;  %3794 = vmatpush.bf16.msra.mxu2 %v10713_v47  ;;  %v9314_v43 = vld [vmem:[#allocation2 + $0x18] sm:$0xf0]  ;;  %v9882_v47 = vld [vmem:[%s13226_s10 + $0x3c0] sm:$0xf0] }
  0x77   : > { %v12085_v49 = vld [vmem:[%s13226_s10 + $0x1bc] sm:$0xf0]  ;;  %v12477_v34 = vld [vmem:[%s13226_s10 + $0xe04] sm:$0xf] }
  0x78   : > { %v10136_v50 = vld [vmem:[%s13226_s10 + $0x580] sm:$0xf]  ;;  %v9625_v57 = vor.u32 %v12085_v49, %v9624_v48  ;;  %3843 = vmatpush.bf16.msra.mxu3 %v11225_v51  ;;  %v12269_v48 = vld [vmem:[%s13226_s10 + $0x784] sm:$0xf] }
  0x79   : > { %v12213_v52 = vld [vmem:[%s13226_s10 + $0x5bc] sm:$0xf0]  ;;  %v10394_v51 = vld [vmem:[%s13226_s10 + $0x7c0] sm:$0xf0] }
  0x7a   : > { %v10648_v53 = vld [vmem:[%s13226_s10 + $0x980] sm:$0xf]  ;;  %v10137_v58 = vor.u32 %v12213_v52, %v10136_v50  ;;  %3697 = vmatpush.bf16.msra.mxu0 %v9625_v57  ;;  %v11421_v50 = vor.u32 %v12525_v37, %v11418_v38  ;;  %v12381_v52 = vld [vmem:[%s13226_s10 + $0xb04] sm:$0xf] }
  0x7b   : > { %v12341_v54 = vld [vmem:[%s13226_s10 + $0x9bc] sm:$0xf0]  ;;  %v11354_v57 = vld [vmem:[%s13226_s10 + $0xf40] sm:$0xf0] }
  0x7c   : > { %v11160_v55 = vld [vmem:[%s13226_s10 + $0xd80] sm:$0xf]  ;;  %v10649_v59 = vor.u32 %v12341_v54, %v10648_v53  ;;  %3746 = vmatpush.bf16.msra.mxu1 %v10137_v58  ;;  %v10842_v53 = vld [vmem:[%s13226_s10 + $0xb40] sm:$0xf0]  ;;  %v13321_v54 = vor.u32 %v11997_v31, %v9306_v32  ;;  %v13327_v58 = vor.u32 %v11998_v42, %v9314_v43  ;;  %v12007_v42 = vld [vmem:[#allocation2 + $0x4c] sm:$0xf0] }
  0x7d   : > { %v12469_v56 = vld [vmem:[%s13226_s10 + $0xdbc] sm:$0xf0]  ;;  %v12093_v31 = vld [vmem:[%s13226_s10 + $0x204] sm:$0xf] }
  0x7e   : > { %v9560_v60 = vld [vmem:[%s13226_s10 + $0x100] sm:$0xf]  ;;  %v11161_v63 = vor.u32 %v12469_v56, %v11160_v55  ;;  %3795 = vmatpush.bf16.msra.mxu2 %v10649_v59  ;;  %v13323_v55 = vor.u32 %v12000_v41, %v9312_v36  ;;  %v12509_v56 = vld [vmem:[%s13226_s10 + $0xf04] sm:$0xf]  ;;  %v9885_v59 = vor.u32 %v12141_v46, %v9882_v47  ;;  %v9693_v36 = vor.u32 %v12093_v31, %v9690_v33  ;;  %v12008_v46 = vld [vmem:[#allocation2 + $0x54] sm:$0xf0] }
  0x7f   : > { %v12069_v61 = vld [vmem:[%s13226_s10 + $0x13c] sm:$0xf0]  ;;  %v12221_v38 = vld [vmem:[%s13226_s10 + $0x604] sm:$0xf]  ;;  %v12006_v47 = vld [vmem:[#allocation2 + $0x4c] sm:$0xf] }
  0x80   : > { %v10072_v62 = vld [vmem:[%s13226_s10 + $0x500] sm:$0xf]  ;;  %v9561_v5 = vor.u32 %v12069_v61, %v9560_v60  ;;  %3844 = vmatpush.bf16.msra.mxu3 %v11161_v63  ;;  %v10397_v60 = vor.u32 %v12269_v48, %v10394_v51  ;;  %v10845_v61 = vor.u32 %v12381_v52, %v10842_v53  ;;  %v9818_v63 = vld [vmem:[%s13226_s10 + $0x340] sm:$0xf0]  ;;  %v9346_v48 = vld [vmem:[#allocation2 + $0x58] sm:$0xf0] }
  0x81   : > { %v12197_v0 = vld [vmem:[%s13226_s10 + $0x53c] sm:$0xf0]  ;;  %v12005_v43 = vld [vmem:[#allocation2 + $0x44] sm:$0xf]  ;;  %v13371_v53 = vor.u32 %v12006_v47, %v9346_v48 }
  0x82   : > { %v10584_v1 = vld [vmem:[%s13226_s10 + $0x900] sm:$0xf]  ;;  %v10073_v6 = vor.u32 %v12197_v0, %v10072_v62  ;;  %3698 = vmatpush.bf16.msra.mxu0 %v9561_v5  ;;  %v12125_v62 = vld [vmem:[%s13226_s10 + $0x304] sm:$0xf]  ;;  %v11357_v0 = vor.u32 %v12509_v56, %v11354_v57 }
  0x83   : > { %v12325_v2 = vld [vmem:[%s13226_s10 + $0x93c] sm:$0xf0]  ;;  %v10778_v5 = vld [vmem:[%s13226_s10 + $0xac0] sm:$0xf0] }
  0x84   : > { %v11096_v3 = vld [vmem:[%s13226_s10 + $0xd00] sm:$0xf]  ;;  %v10585_v7 = vor.u32 %v12325_v2, %v10584_v1  ;;  %3747 = vmatpush.bf16.msra.mxu1 %v10073_v6  ;;  %v12253_v1 = vld [vmem:[%s13226_s10 + $0x704] sm:$0xf] }
  0x85   : > { %v12453_v4 = vld [vmem:[%s13226_s10 + $0xd3c] sm:$0xf0]  ;;  %v10330_v2 = vld [vmem:[%s13226_s10 + $0x740] sm:$0xf0] }
  0x86   : > { %v9496_v8 = vld [vmem:[%s13226_s10 + $0x80] sm:$0xf]  ;;  %v11097_v11 = vor.u32 %v12453_v4, %v11096_v3  ;;  %3796 = vmatpush.bf16.msra.mxu2 %v10585_v7  ;;  %v9821_v3 = vor.u32 %v12125_v62, %v9818_v63  ;;  %v12365_v4 = vld [vmem:[%s13226_s10 + $0xa84] sm:$0xf]  ;;  %v10333_v7 = vor.u32 %v12253_v1, %v10330_v2 }
  0x87   : > { %v12053_v9 = vld [vmem:[%s13226_s10 + $0xbc] sm:$0xf0]  ;;  %v12109_v6 = vld [vmem:[%s13226_s10 + $0x284] sm:$0xf] }
  0x88   : > { %v10008_v10 = vld [vmem:[%s13226_s10 + $0x480] sm:$0xf]  ;;  %v9497_v18 = vor.u32 %v12053_v9, %v9496_v8  ;;  %3845 = vmatpush.bf16.msra.mxu3 %v11097_v11  ;;  %v10781_v8 = vor.u32 %v12365_v4, %v10778_v5  ;;  %v9754_v9 = vld [vmem:[%s13226_s10 + $0x2c0] sm:$0xf0] }
  0x89   : > { %v12181_v12 = vld [vmem:[%s13226_s10 + $0x4bc] sm:$0xf0]  ;;  %v11290_v11 = vld [vmem:[%s13226_s10 + $0xec0] sm:$0xf0] }
  0x8a   : > { %v10520_v13 = vld [vmem:[%s13226_s10 + $0x880] sm:$0xf]  ;;  %v10009_v22 = vor.u32 %v12181_v12, %v10008_v10  ;;  %3699 = vmatpush.bf16.msra.mxu0 %v9497_v18  ;;  %v12493_v10 = vld [vmem:[%s13226_s10 + $0xe84] sm:$0xf]  ;;  %v12003_v18 = vld [vmem:[#allocation2 + $0x2c] sm:$0xf0] }
  0x8b   : > { %v12309_v14 = vld [vmem:[%s13226_s10 + $0x8bc] sm:$0xf0]  ;;  %v11293_v12 = vor.u32 %v12493_v10, %v11290_v11  ;;  %v12333_v56 = vld [vmem:[%s13226_s10 + $0x984] sm:$0xf]  ;;  %v12012_v10 = vld [vmem:[#allocation2 + $0x74] sm:$0xf0] }
  0x8c   : > { %v11032_v15 = vld [vmem:[%s13226_s10 + $0xc80] sm:$0xf]  ;;  %v10521_v23 = vor.u32 %v12309_v14, %v10520_v13  ;;  %3748 = vmatpush.bf16.msra.mxu1 %v10009_v22  ;;  %v12237_v13 = vld [vmem:[%s13226_s10 + $0x684] sm:$0xf]  ;;  %v12004_v22 = vld [vmem:[#allocation2 + $0x34] sm:$0xf0] }
  0x8d   : > { %v12437_v16 = vld [vmem:[%s13226_s10 + $0xcbc] sm:$0xf0]  ;;  %v10266_v14 = vld [vmem:[%s13226_s10 + $0x6c0] sm:$0xf0]  ;;  %v12010_v11 = vld [vmem:[#allocation2 + $0x6c] sm:$0xf] }
  0x8e   : > { %v9432_v17 = vld [vmem:[%s13226_s10] sm:$0xf]  ;;  %v11033_v27 = vor.u32 %v12437_v16, %v11032_v15  ;;  %3797 = vmatpush.bf16.msra.mxu2 %v10521_v23  ;;  %v9757_v15 = vor.u32 %v12109_v6, %v9754_v9  ;;  %v10269_v16 = vor.u32 %v12237_v13, %v10266_v14  ;;  %v12002_v23 = vld [vmem:[#allocation2 + $0x2c] sm:$0xf]  ;;  %v10650_v57 = vld [vmem:[%s13226_s10 + $0x9c0] sm:$0xf0] }
  0x8f   : > { %v12037_v19 = vld [vmem:[%s13226_s10 + $0x3c] sm:$0xf0]  ;;  %v12461_v62 = vld [vmem:[%s13226_s10 + $0xd84] sm:$0xf]  ;;  %v12011_v6 = vld [vmem:[#allocation2 + $0x6c] sm:$0xf0] }
  0x90   : > { %v9944_v20 = vld [vmem:[%s13226_s10 + $0x400] sm:$0xf]  ;;  %v9433_v35 = vor.u32 %v12037_v19, %v9432_v17  ;;  %3846 = vmatpush.bf16.msra.mxu3 %v11033_v27  ;;  %v12001_v19 = vld [vmem:[#allocation2 + $0x24] sm:$0xf]  ;;  %v9360_v9 = vld [vmem:[#allocation2 + $0x68] sm:$0xf] }
  0x91   : > { %v12165_v21 = vld [vmem:[%s13226_s10 + $0x43c] sm:$0xf0]  ;;  %v11162_v63 = vld [vmem:[%s13226_s10 + $0xdc0] sm:$0xf0] }
  0x92   : > { %v10456_v24 = vld [vmem:[%s13226_s10 + $0x800] sm:$0xf]  ;;  %v9945_v39 = vor.u32 %v12165_v21, %v9944_v20  ;;  %3700 = vmatpush.bf16.msra.mxu0 %v9433_v35  ;;  %v9322_v20 = vld [vmem:[#allocation2 + $0x30] sm:$0xf0]  ;;  %v9328_v21 = vld [vmem:[#allocation2 + $0x28] sm:$0xf]  ;;  %v11165_v1 = vor.u32 %v12461_v62, %v11162_v63 }
  0x93   : > { %v12293_v25 = vld [vmem:[%s13226_s10 + $0x83c] sm:$0xf0]  ;;  %v13349_v27 = vor.u32 %v12004_v22, %v9328_v21  ;;  %v11226_v35 = vld [vmem:[%s13226_s10 + $0xe40] sm:$0xf0] }
  0x94   : > { %v10968_v26 = vld [vmem:[%s13226_s10 + $0xc00] sm:$0xf]  ;;  %v10457_v40 = vor.u32 %v12293_v25, %v10456_v24  ;;  %3749 = vmatpush.bf16.msra.mxu1 %v9945_v39  ;;  %v9330_v24 = vld [vmem:[#allocation2 + $0x38] sm:$0xf0]  ;;  %v11229_v37 = vor.u32 %v12477_v34, %v11226_v35  ;;  %v10202_v39 = vld [vmem:[%s13226_s10 + $0x640] sm:$0xf0] }
  0x95   : > { %v12421_v28 = vld [vmem:[%s13226_s10 + $0xc3c] sm:$0xf0]  ;;  %v12205_v2 = vld [vmem:[%s13226_s10 + $0x584] sm:$0xf]  ;;  %v12015_v34 = vld [vmem:[#allocation2 + $0x8c] sm:$0xf0] }
  0x96   : > { %v9304_v29 = vld [vmem:[#allocation2] sm:$0xf]  ;;  %v10969_v44 = vor.u32 %v12421_v28, %v10968_v26  ;;  %3798 = vmatpush.bf16.msra.mxu2 %v10457_v40  ;;  %3889 = vmatpush.bf16.msrb.mxu0 %v9885_v59  ;;  %v13347_v26 = vor.u32 %v12001_v19, %v9322_v20  ;;  %v13351_v28 = vor.u32 %v12002_v23, %v9330_v24  ;;  %v12077_v59 = vld [vmem:[%s13226_s10 + $0x184] sm:$0xf] }
  0x97   : > { %v13316_v49 = vor.u32 %v11999_v30, %v9304_v29  ;;  %3750 = vmatmul.bf16.vlgmr.msra.gmra.mxu1 %v13321_v54  ;;  %v9320_v17 = vld [vmem:[#allocation2 + $0x20] sm:$0xf]  ;;  %v12349_v29 = vld [vmem:[%s13226_s10 + $0xa04] sm:$0xf]  ;;  %v10205_v40 = vor.u32 %v12221_v38, %v10202_v39  ;;  %v12016_v38 = vld [vmem:[#allocation2 + $0x94] sm:$0xf0] }
  0x98   : > { %3847 = vmatpush.bf16.msra.mxu3 %v10969_v44  ;;  %3938 = vmatpush.bf16.msrb.mxu1 %v10397_v60  ;;  %v13345_v25 = vor.u32 %v12003_v18, %v9320_v17  ;;  %v10714_v30 = vld [vmem:[%s13226_s10 + $0xa40] sm:$0xf0]  ;;  %v9336_v41 = vld [vmem:[#allocation2 + $0x40] sm:$0xf]  ;;  %v9338_v44 = vld [vmem:[#allocation2 + $0x50] sm:$0xf0]  ;;  %v10653_v60 = vor.u32 %v12333_v56, %v10650_v57 }
  0x99   : > { %3701 = vmatmul.bf16.vlgmr.msra.gmra.mxu0 %v13316_v49  ;;  %3799 = vmatmul.bf16.vlgmr.msra.gmra.mxu2 %v13323_v55  ;;  %v10717_v32 = vor.u32 %v12349_v29, %v10714_v30  ;;  %v13367_v51 = vor.u32 %v12005_v43, %v9338_v44  ;;  %v9352_v5 = vld [vmem:[#allocation2 + $0x60] sm:$0xf]  ;;  %v12317_v17 = vld [vmem:[%s13226_s10 + $0x904] sm:$0xf]  ;;  %v12014_v39 = vld [vmem:[#allocation2 + $0x8c] sm:$0xf] }
  0x9a   : > { %3987 = vmatpush.bf16.msrb.mxu2 %v10909_v45  ;;  %3890 = vmatpush.bf16.msrb.mxu0 %v9821_v3  ;;  %v9344_v45 = vld [vmem:[#allocation2 + $0x48] sm:$0xf]  ;;  %v10138_v3 = vld [vmem:[%s13226_s10 + $0x5c0] sm:$0xf0]  ;;  %v13385_v13 = vor.u32 %v12011_v6, %v9352_v5  ;;  %v9368_v33 = vld [vmem:[#allocation2 + $0x80] sm:$0xf] }
  0x9b   : > { %3848 = vmatmul.bf16.vlgmr.msra.gmra.mxu3 %v13327_v58  ;;  %v13369_v52 = vor.u32 %v12008_v46, %v9344_v45  ;;  %v10141_v4 = vor.u32 %v12205_v2, %v10138_v3  ;;  %v10586_v18 = vld [vmem:[%s13226_s10 + $0x940] sm:$0xf0]  ;;  %v12019_v2 = vld [vmem:[#allocation2 + $0xac] sm:$0xf0]  ;;  %v9392_v5 = vld [vmem:[#allocation2 + $0xa8] sm:$0xf] }
  0x9c   : > { %4036 = vmatpush.bf16.msrb.mxu3 %v11421_v50  ;;  %3939 = vmatpush.bf16.msrb.mxu1 %v10333_v7  ;;  %v13365_v50 = vor.u32 %v12007_v42, %v9336_v41  ;;  %v12009_v7 = vld [vmem:[#allocation2 + $0x64] sm:$0xf]  ;;  %v10589_v20 = vor.u32 %v12317_v17, %v10586_v18  ;;  %v13405_v41 = vor.u32 %v12015_v34, %v9368_v33  ;;  %v12020_v6 = vld [vmem:[#allocation2 + $0xb4] sm:$0xf0]  ;;  %v9400_v33 = vld [vmem:[#allocation2 + $0xc0] sm:$0xf] }
  0x9d   : > { %v12061_v19 = vld [vmem:[%s13226_s10 + $0x104] sm:$0xf]  ;;  %v12023_v34 = vld [vmem:[#allocation2 + $0xcc] sm:$0xf0] }
  0x9e   : > { %3988 = vmatpush.bf16.msrb.mxu2 %v10845_v61  ;;  %3891 = vmatpush.bf16.msrb.mxu0 %v9757_v15  ;;  %v9626_v61 = vld [vmem:[%s13226_s10 + $0x1c0] sm:$0xf0]  ;;  %v13389_v15 = vor.u32 %v12012_v10, %v9360_v9 }
  0x9f   : > { %v9562_v21 = vld [vmem:[%s13226_s10 + $0x140] sm:$0xf0] }
  0xa0   : > { %4037 = vmatpush.bf16.msrb.mxu3 %v11357_v0  ;;  %3940 = vmatpush.bf16.msrb.mxu1 %v10269_v16  ;;  %v9629_v0 = vor.u32 %v12077_v59, %v9626_v61  ;;  %v12445_v22 = vld [vmem:[%s13226_s10 + $0xd04] sm:$0xf]  ;;  %v9565_v24 = vor.u32 %v12061_v19, %v9562_v21 }
  0xa1   : > { %v11098_v23 = vld [vmem:[%s13226_s10 + $0xd40] sm:$0xf0] }
  0xa2   : > { %3989 = vmatpush.bf16.msrb.mxu2 %v10781_v8  ;;  %3892 = vmatpush.bf16.msrb.mxu0 %v9693_v36  ;;  %v9354_v8 = vld [vmem:[#allocation2 + $0x70] sm:$0xf0]  ;;  %v11101_v29 = vor.u32 %v12445_v22, %v11098_v23  ;;  %v12189_v30 = vld [vmem:[%s13226_s10 + $0x504] sm:$0xf] }
  0xa3   : > { %v13387_v14 = vor.u32 %v12009_v7, %v9354_v8  ;;  %v10074_v31 = vld [vmem:[%s13226_s10 + $0x540] sm:$0xf0]  ;;  %v9370_v36 = vld [vmem:[#allocation2 + $0x90] sm:$0xf0]  ;;  %v12018_v7 = vld [vmem:[#allocation2 + $0xac] sm:$0xf] }
  0xa4   : > { %4038 = vmatpush.bf16.msrb.mxu3 %v11293_v12  ;;  %3941 = vmatpush.bf16.msrb.mxu1 %v10205_v40  ;;  %v9362_v12 = vld [vmem:[#allocation2 + $0x78] sm:$0xf0]  ;;  %v12013_v35 = vld [vmem:[#allocation2 + $0x84] sm:$0xf] }
  0xa5   : > { %v13391_v16 = vor.u32 %v12010_v11, %v9362_v12  ;;  %v9378_v40 = vld [vmem:[#allocation2 + $0x98] sm:$0xf0]  ;;  %v13407_v42 = vor.u32 %v12013_v35, %v9370_v36  ;;  %v12301_v45 = vld [vmem:[%s13226_s10 + $0x884] sm:$0xf]  ;;  %v13429_v11 = vor.u32 %v12020_v6, %v9392_v5  ;;  %v9402_v36 = vld [vmem:[#allocation2 + $0xd0] sm:$0xf0] }
  0xa6   : > { %3990 = vmatpush.bf16.msrb.mxu2 %v10717_v32  ;;  %3893 = vmatpush.bf16.msrb.mxu0 %v9629_v0  ;;  %v10077_v32 = vor.u32 %v12189_v30, %v10074_v31  ;;  %v13411_v44 = vor.u32 %v12014_v39, %v9378_v40  ;;  %v10522_v46 = vld [vmem:[%s13226_s10 + $0x8c0] sm:$0xf0]  ;;  %v9394_v8 = vld [vmem:[#allocation2 + $0xb8] sm:$0xf0]  ;;  %v12022_v39 = vld [vmem:[#allocation2 + $0xcc] sm:$0xf] }
  0xa7   : > { %3755 = vmatmul.bf16.gmra.mxu1 %v13347_v26  ;;  %v12045_v47 = vld [vmem:[%s13226_s10 + $0x84] sm:$0xf]  ;;  %v10525_v48 = vor.u32 %v12301_v45, %v10522_v46  ;;  %v13431_v12 = vor.u32 %v12018_v7, %v9394_v8  ;;  %v9410_v40 = vld [vmem:[#allocation2 + $0xd8] sm:$0xf0]  ;;  %v13445_v45 = vor.u32 %v12023_v34, %v9400_v33  ;;  %v10400_v5 = vld [vmem:[%s13226_s10 + $0x788] sm:$0xf] }
  0xa8   : > { %4039 = vmatpush.bf16.msrb.mxu3 %v11229_v37  ;;  %3942 = vmatpush.bf16.msrb.mxu1 %v10141_v4  ;;  %v9376_v37 = vld [vmem:[#allocation2 + $0x88] sm:$0xf]  ;;  %v9498_v56 = vld [vmem:[%s13226_s10 + $0xc0] sm:$0xf0]  ;;  %v9386_v4 = vld [vmem:[#allocation2 + $0xb0] sm:$0xf0] }
  0xa9   : > { %3706 = vmatmul.bf16.gmra.mxu0 %v13345_v25  ;;  %3804 = vmatmul.bf16.gmra.mxu2 %v13349_v27  ;;  %v13409_v43 = vor.u32 %v12016_v38, %v9376_v37  ;;  %v12429_v57 = vld [vmem:[%s13226_s10 + $0xc84] sm:$0xf]  ;;  %v9408_v37 = vld [vmem:[#allocation2 + $0xc8] sm:$0xf]  ;;  %v12024_v38 = vld [vmem:[#allocation2 + $0xd4] sm:$0xf0] }
  0xaa   : > { %3991 = vmatpush.bf16.msrb.mxu2 %v10653_v60  ;;  %3894 = vmatpush.bf16.msrb.mxu0 %v9565_v24  ;;  %v11034_v59 = vld [vmem:[%s13226_s10 + $0xcc0] sm:$0xf0]  ;;  %v9501_v60 = vor.u32 %v12045_v47, %v9498_v56  ;;  %v13449_v47 = vor.u32 %v12024_v38, %v9408_v37  ;;  %v10912_v56 = vld [vmem:[%s13226_s10 + $0xb88] sm:$0xf]  ;;  %v9418_v7 = vld [vmem:[#allocation2 + $0xf0] sm:$0xf0] }
  0xab   : > { %3853 = vmatmul.bf16.gmra.mxu3 %v13351_v28  ;;  %v11037_v61 = vor.u32 %v12429_v57, %v11034_v59  ;;  %v12173_v62 = vld [vmem:[%s13226_s10 + $0x484] sm:$0xf]  ;;  %v12406_v57 = vld [vmem:[%s13226_s10 + $0xbc4] sm:$0xf0] }
  0xac   : > { %4040 = vmatpush.bf16.msrb.mxu3 %v11165_v1  ;;  %3943 = vmatpush.bf16.msrb.mxu1 %v10077_v32  ;;  %v10010_v63 = vld [vmem:[%s13226_s10 + $0x4c0] sm:$0xf0]  ;;  %v9384_v1 = vld [vmem:[#allocation2 + $0xa0] sm:$0xf]  ;;  %v9888_v59 = vld [vmem:[%s13226_s10 + $0x388] sm:$0xf] }
  0xad   : > { %v10013_v0 = vor.u32 %v12173_v62, %v10010_v63  ;;  %v12017_v3 = vld [vmem:[#allocation2 + $0xa4] sm:$0xf]  ;;  %v13425_v9 = vor.u32 %v12019_v2, %v9384_v1  ;;  %v11424_v62 = vld [vmem:[%s13226_s10 + $0xf88] sm:$0xf]  ;;  %v9416_v2 = vld [vmem:[#allocation2 + $0xe0] sm:$0xf] }
  0xae   : > { %3992 = vmatpush.bf16.msrb.mxu2 %v10589_v20  ;;  %3895 = vmatpush.bf16.msrb.mxu0 %v9501_v60  ;;  %v13427_v10 = vor.u32 %v12017_v3, %v9386_v4  ;;  %v12285_v17 = vld [vmem:[%s13226_s10 + $0x804] sm:$0xf]  ;;  %v10913_v60 = vor.u32 %v12406_v57, %v10912_v56  ;;  %v12534_v63 = vld [vmem:[%s13226_s10 + $0xfc4] sm:$0xf0]  ;;  %v12027_v3 = vld [vmem:[#allocation2 + $0xec] sm:$0xf0] }
  0xaf   : > { %v10458_v18 = vld [vmem:[%s13226_s10 + $0x840] sm:$0xf0]  ;;  %v11425_v1 = vor.u32 %v12534_v63, %v11424_v62  ;;  %v12278_v6 = vld [vmem:[%s13226_s10 + $0x7c4] sm:$0xf0] }
  0xb0   : > { %4041 = vmatpush.bf16.msrb.mxu3 %v11101_v29  ;;  %3944 = vmatpush.bf16.msrb.mxu1 %v10013_v0  ;;  %v12029_v19 = vld [vmem:[%s13226_s10 + $0x4] sm:$0xf]  ;;  %v10461_v20 = vor.u32 %v12285_v17, %v10458_v18  ;;  %v9424_v8 = vld [vmem:[#allocation2 + $0xe8] sm:$0xf]  ;;  %v12028_v17 = vld [vmem:[#allocation2 + $0xf4] sm:$0xf0]  ;;  %v10401_v18 = vor.u32 %v12278_v6, %v10400_v5 }
  0xb1   : > { %v9434_v21 = vld [vmem:[%s13226_s10 + $0x40] sm:$0xf0]  ;;  %v12134_v33 = vld [vmem:[%s13226_s10 + $0x344] sm:$0xf0] }
  0xb2   : > { %3993 = vmatpush.bf16.msrb.mxu2 %v10525_v48  ;;  %v12413_v22 = vld [vmem:[%s13226_s10 + $0xc04] sm:$0xf]  ;;  %v9437_v24 = vor.u32 %v12029_v19, %v9434_v21  ;;  %v13451_v48 = vor.u32 %v12022_v39, %v9410_v40  ;;  %v12026_v19 = vld [vmem:[#allocation2 + $0xec] sm:$0xf]  ;;  %v13465_v21 = vor.u32 %v12027_v3, %v9416_v2  ;;  %v11360_v34 = vld [vmem:[%s13226_s10 + $0xf08] sm:$0xf] }
  0xb3   : > { %v10970_v23 = vld [vmem:[%s13226_s10 + $0xc40] sm:$0xf0]  ;;  %v10336_v39 = vld [vmem:[%s13226_s10 + $0x708] sm:$0xf] }
  0xb4   : > { %4042 = vmatpush.bf16.msrb.mxu3 %v11037_v61  ;;  %v10973_v29 = vor.u32 %v12413_v22, %v10970_v23  ;;  %v12157_v30 = vld [vmem:[%s13226_s10 + $0x404] sm:$0xf]  ;;  %3896 = vmatpush.bf16.msrb.mxu0 %v9437_v24  ;;  %v12150_v61 = vld [vmem:[%s13226_s10 + $0x3c4] sm:$0xf0]  ;;  %v13469_v23 = vor.u32 %v12028_v17, %v9424_v8 }
  0xb5   : > { %v9946_v31 = vld [vmem:[%s13226_s10 + $0x440] sm:$0xf0]  ;;  %v9889_v0 = vor.u32 %v12150_v61, %v9888_v59  ;;  %v12262_v40 = vld [vmem:[%s13226_s10 + $0x744] sm:$0xf0] }
  0xb6   : > { %3994 = vmatpush.bf16.msrb.mxu2 %v10461_v20  ;;  %v9949_v32 = vor.u32 %v12157_v30, %v9946_v31  ;;  %v12021_v35 = vld [vmem:[#allocation2 + $0xc4] sm:$0xf]  ;;  %v9426_v20 = vld [vmem:[#allocation2 + $0xf8] sm:$0xf0]  ;;  %v12390_v30 = vld [vmem:[%s13226_s10 + $0xb44] sm:$0xf0]  ;;  %v10337_v57 = vor.u32 %v12262_v40, %v10336_v39 }
  0xb7   : > { %3760 = vmatmul.bf16.gmra.mxu1 %v13367_v51  ;;  %v13447_v46 = vor.u32 %v12021_v35, %v9402_v36  ;;  %v12025_v4 = vld [vmem:[#allocation2 + $0xe4] sm:$0xf]  ;;  %v13471_v24 = vor.u32 %v12026_v19, %v9426_v20  ;;  %v9824_v31 = vld [vmem:[%s13226_s10 + $0x308] sm:$0xf] }
  0xb8   : > { %4043 = vmatpush.bf16.msrb.mxu3 %v10973_v29  ;;  %3945 = vmatpush.bf16.msrb.mxu1 %v9949_v32  ;;  %v13467_v22 = vor.u32 %v12025_v4, %v9418_v7  ;;  %v10848_v29 = vld [vmem:[%s13226_s10 + $0xb08] sm:$0xf]  ;;  %v9825_v36 = vor.u32 %v12134_v33, %v9824_v31  ;;  %v13484_v38 = vld [vmem:[%s13232_s29] sm:$0xff] }
  0xb9   : > { %3711 = vmatmul.bf16.gmra.mxu0 %v13365_v50  ;;  %3809 = vmatmul.bf16.gmra.mxu2 %v13369_v52  ;;  %v10849_v32 = vor.u32 %v12390_v30, %v10848_v29  ;;  %v12518_v35 = vld [vmem:[%s13226_s10 + $0xf44] sm:$0xf0]  ;;  %v13489_v56 = vperm.slane %v13484_v38, 0 }
  0xba   : > { %4183 = vmatpush.bf16.msra.mxu2 %v10913_v60  ;;  %4085 = vmatpush.bf16.msra.mxu0 %v9889_v0  ;;  %v11361_v37 = vor.u32 %v12518_v35, %v11360_v34  ;;  %v10784_v63 = vld [vmem:[%s13226_s10 + $0xa88] sm:$0xf] }
  0xbb   : > { %3858 = vmatmul.bf16.gmra.mxu3 %v13371_v53  ;;  %v12374_v0 = vld [vmem:[%s13226_s10 + $0xac4] sm:$0xf0] }
  0xbc   : > { %4232 = vmatpush.bf16.msra.mxu3 %v11425_v1  ;;  %4134 = vmatpush.bf16.msra.mxu1 %v10401_v18  ;;  %v9760_v1 = vld [vmem:[%s13226_s10 + $0x288] sm:$0xf]  ;;  %v10785_v2 = vor.u32 %v12374_v0, %v10784_v63 }
  0xbd   : > { %v12118_v3 = vld [vmem:[%s13226_s10 + $0x2c4] sm:$0xf0] }
  0xbe   : > { %4184 = vmatpush.bf16.msra.mxu2 %v10849_v32  ;;  %4086 = vmatpush.bf16.msra.mxu0 %v9825_v36  ;;  %v11296_v4 = vld [vmem:[%s13226_s10 + $0xe88] sm:$0xf]  ;;  %v9761_v7 = vor.u32 %v12118_v3, %v9760_v1 }
  0xbf   : > { %v12502_v5 = vld [vmem:[%s13226_s10 + $0xec4] sm:$0xf0] }
  0xc0   : > { %4233 = vmatpush.bf16.msra.mxu3 %v11361_v37  ;;  %4135 = vmatpush.bf16.msra.mxu1 %v10337_v57  ;;  %v11297_v8 = vor.u32 %v12502_v5, %v11296_v4  ;;  %v10272_v32 = vld [vmem:[%s13226_s10 + $0x688] sm:$0xf] }
  0xc1   : > { %v12246_v33 = vld [vmem:[%s13226_s10 + $0x6c4] sm:$0xf0] }
  0xc2   : > { %4185 = vmatpush.bf16.msra.mxu2 %v10785_v2  ;;  %4087 = vmatpush.bf16.msra.mxu0 %v9761_v7  ;;  %v10273_v34 = vor.u32 %v12246_v33, %v10272_v32  ;;  %v10720_v63 = vld [vmem:[%s13226_s10 + $0xa08] sm:$0xf] }
  0xc3   : > { %v12358_v0 = vld [vmem:[%s13226_s10 + $0xa44] sm:$0xf0] }
  0xc4   : > { %4234 = vmatpush.bf16.msra.mxu3 %v11297_v8  ;;  %4136 = vmatpush.bf16.msra.mxu1 %v10273_v34  ;;  %v9696_v1 = vld [vmem:[%s13226_s10 + $0x208] sm:$0xf]  ;;  %v10721_v3 = vor.u32 %v12358_v0, %v10720_v63 }
  0xc5   : > { %v12102_v4 = vld [vmem:[%s13226_s10 + $0x244] sm:$0xf0] }
  0xc6   : > { %v11232_v5 = vld [vmem:[%s13226_s10 + $0xe08] sm:$0xf]  ;;  %v9697_v8 = vor.u32 %v12102_v4, %v9696_v1  ;;  %4186 = vmatpush.bf16.msra.mxu2 %v10721_v3 }
  0xc7   : > { %3765 = vmatmul.bf16.gmra.mxu1 %v13387_v14  ;;  %v10208_v33 = vld [vmem:[%s13226_s10 + $0x608] sm:$0xf] }
  0xc8   : > { %4088 = vmatpush.bf16.msra.mxu0 %v9697_v8  ;;  %v12230_v34 = vld [vmem:[%s13226_s10 + $0x644] sm:$0xf0] }
  0xc9   : > { %3716 = vmatmul.bf16.gmra.mxu0 %v13385_v13  ;;  %3814 = vmatmul.bf16.gmra.mxu2 %v13389_v15  ;;  %v10656_v0 = vld [vmem:[%s13226_s10 + $0x988] sm:$0xf] }
  0xca   : > { %v12342_v1 = vld [vmem:[%s13226_s10 + $0x9c4] sm:$0xf0] }
  0xcb   : > { %3863 = vmatmul.bf16.gmra.mxu3 %v13391_v16  ;;  %v9632_v3 = vld [vmem:[%s13226_s10 + $0x188] sm:$0xf]  ;;  %v10657_v4 = vor.u32 %v12342_v1, %v10656_v0 }
  0xcd   : > { %4187 = vmatpush.bf16.msra.mxu2 %v10657_v4  ;;  %v12326_v4 = vld [vmem:[%s13226_s10 + $0x944] sm:$0xf0] }
  0xd7   : > { %3770 = vmatmul.bf16.gmra.mxu1 %v13407_v42 }
  0xd9   : > { %3721 = vmatmul.bf16.gmra.mxu0 %v13405_v41  ;;  %3819 = vmatmul.bf16.gmra.mxu2 %v13409_v43 }
  0xdb   : > { %3868 = vmatmul.bf16.gmra.mxu3 %v13411_v44 }
  0xe7   : > { %3775 = vmatmul.bf16.gmra.mxu1 %v13427_v10 }
  0xe9   : > { %3726 = vmatmul.bf16.gmra.mxu0 %v13425_v9  ;;  %3824 = vmatmul.bf16.gmra.mxu2 %v13429_v11 }
  0xeb   : > { %3873 = vmatmul.bf16.gmra.mxu3 %v13431_v12 }
  0xf7   : > { %3780 = vmatmul.bf16.gmra.mxu1 %v13447_v46 }
  0xf9   : > { %3731 = vmatmul.bf16.gmra.mxu0 %v13445_v45  ;;  %3829 = vmatmul.bf16.gmra.mxu2 %v13449_v47 }
  0xfb   : > { %3878 = vmatmul.bf16.gmra.mxu3 %v13451_v48 }
 0x107   : > { %3785 = vmatmul.bf16.gmra.mxu1 %v13467_v22 }
 0x109   : > { %3736 = vmatmul.bf16.gmra.mxu0 %v13465_v21  ;;  %3834 = vmatmul.bf16.gmra.mxu2 %v13469_v23 }
 0x10b   : > { %3883 = vmatmul.bf16.gmra.mxu3 %v13471_v24 }
 0x114   : > { %v3751_v61 = vpop.f32.mrf.mxu1 }
 0x116   : > { %v3702_v59 = vpop.f32.mrf.mxu0 }
 0x117   : > { %v3703_v60 = vadd.f32 %v3702_v59, %v13489_v56  ;;  %3946 = vmatmul.bf16.vlgmr.msrb.gmra.mxu1 %v13321_v54 }
 0x119   : > { %v3752_v62 = vadd.f32 %v3751_v61, %v3703_v60  ;;  %3897 = vmatmul.bf16.vlgmr.msrb.gmra.mxu0 %v13316_v49  ;;  %3995 = vmatmul.bf16.vlgmr.msrb.gmra.mxu2 %v13323_v55 }
 0x11b   : > { %4044 = vmatmul.bf16.vlgmr.msrb.gmra.mxu3 %v13327_v58 }
 0x11c   : > { %v3800_v6 = vpop.f32.mrf.mxu2  ;;  %v3753_v29 = vpop.f32.mrf.mxu1 }
 0x11d   : > { %v3801_v17 = vadd.f32 %v3800_v6, %v3752_v62  ;;  %v12486_v6 = vld [vmem:[%s13226_s10 + $0xe44] sm:$0xf0] }
 0x11e   : > { %v3849_v18 = vpop.f32.mrf.mxu3  ;;  %v3704_v19 = vpop.f32.mrf.mxu0 }
 0x11f   : > { %v3705_v20 = vadd.f32 %v3704_v19, %v13489_v56  ;;  %v3850_v30 = vadd.f32 %v3849_v18, %v3801_v17  ;;  %v11233_v17 = vor.u32 %v12486_v6, %v11232_v5  ;;  %v12086_v5 = vld [vmem:[%s13226_s10 + $0x1c4] sm:$0xf0] }
 0x120   : > { %v11168_v6 = vld [vmem:[%s13226_s10 + $0xd88] sm:$0xf] }
 0x121   : > { %v3754_v31 = vadd.f32 %v3753_v29, %v3705_v20  ;;  %v6829_v61 = vmax.f32 %v3850_v30, 0.0  ;;  %4235 = vmatpush.bf16.msra.mxu3 %v11233_v17 }
 0x124   : > { %v3802_v35 = vpop.f32.mrf.mxu2  ;;  %v3756_v57 = vpop.f32.mrf.mxu1 }
 0x125   : > { %v3803_v36 = vadd.f32 %v3802_v35, %v3754_v31  ;;  %v10209_v35 = vor.u32 %v12230_v34, %v10208_v33 }
 0x126   : > { %v3851_v37 = vpop.f32.mrf.mxu3  ;;  %v3707_v39 = vpop.f32.mrf.mxu0 }
 0x127   : > { %v3708_v40 = vadd.f32 %v3707_v39, %v13489_v56  ;;  %v3852_v59 = vadd.f32 %v3851_v37, %v3803_v36  ;;  %3951 = vmatmul.bf16.gmra.mxu1 %v13347_v26 }
 0x128   : > { %4137 = vmatpush.bf16.msra.mxu1 %v10209_v35  ;;  %v10144_v35 = vld [vmem:[%s13226_s10 + $0x588] sm:$0xf] }
 0x129   : > { %v3757_v60 = vadd.f32 %v3756_v57, %v3708_v40  ;;  %3902 = vmatmul.bf16.gmra.mxu0 %v13345_v25  ;;  %v6845_v62 = vmax.f32 %v3852_v59, 0.0  ;;  %4000 = vmatmul.bf16.gmra.mxu2 %v13349_v27 }
 0x12b   : > { %4049 = vmatmul.bf16.gmra.mxu3 %v13351_v28  ;;  %v13513_v2 = vpack.c.bf16 %v6845_v62, %v6829_v61 }
 0x12c   : > { %v3805_v7 = vpop.f32.mrf.mxu2  ;;  %v3758_v30 = vpop.f32.mrf.mxu1 }
 0x12d   : > { %v3806_v18 = vadd.f32 %v3805_v7, %v3757_v60  ;;  %v12470_v7 = vld [vmem:[%s13226_s10 + $0xdc4] sm:$0xf0] }
 0x12e   : > { %v3854_v19 = vpop.f32.mrf.mxu3  ;;  %v3709_v20 = vpop.f32.mrf.mxu0 }
 0x12f   : > { %v3710_v29 = vadd.f32 %v3709_v20, %v13489_v56  ;;  %v3855_v31 = vadd.f32 %v3854_v19, %v3806_v18  ;;  %v9633_v18 = vor.u32 %v12086_v5, %v9632_v3  ;;  %v11169_v19 = vor.u32 %v12470_v7, %v11168_v6  ;;  %v10592_v3 = vld [vmem:[%s13226_s10 + $0x908] sm:$0xf] }
 0x130   : > { %v9568_v5 = vld [vmem:[%s13226_s10 + $0x108] sm:$0xf]  ;;  %v10593_v6 = vor.u32 %v12326_v4, %v10592_v3 }
 0x131   : > { %v3759_v32 = vadd.f32 %v3758_v30, %v3710_v29  ;;  %v6861_v62 = vmax.f32 %v3855_v31, 0.0  ;;  %4089 = vmatpush.bf16.msra.mxu0 %v9633_v18  ;;  %4236 = vmatpush.bf16.msra.mxu3 %v11169_v19  ;;  %v12070_v7 = vld [vmem:[%s13226_s10 + $0x144] sm:$0xf0] }
 0x132   : > { %v12454_v18 = vld [vmem:[%s13226_s10 + $0xd44] sm:$0xf0]  ;;  %4188 = vmatpush.bf16.msra.mxu2 %v10593_v6 }
 0x133   : > { %v10528_v6 = vld [vmem:[%s13226_s10 + $0x888] sm:$0xf] }
 0x134   : > { %v3807_v36 = vpop.f32.mrf.mxu2  ;;  %v3761_v59 = vpop.f32.mrf.mxu1 }
 0x135   : > { %v3808_v37 = vadd.f32 %v3807_v36, %v3759_v32  ;;  %v12214_v36 = vld [vmem:[%s13226_s10 + $0x5c4] sm:$0xf0] }
 0x136   : > { %v3856_v39 = vpop.f32.mrf.mxu3  ;;  %v3712_v40 = vpop.f32.mrf.mxu0 }
 0x137   : > { %v3713_v57 = vadd.f32 %v3712_v40, %v13489_v56  ;;  %v3857_v60 = vadd.f32 %v3856_v39, %v3808_v37  ;;  %3956 = vmatmul.bf16.gmra.mxu1 %v13367_v51  ;;  %v10145_v37 = vor.u32 %v12214_v36, %v10144_v35 }
 0x139   : > { %v3762_v61 = vadd.f32 %v3761_v59, %v3713_v57  ;;  %3907 = vmatmul.bf16.gmra.mxu0 %v13365_v50  ;;  %v6877_v63 = vmax.f32 %v3857_v60, 0.0  ;;  %4005 = vmatmul.bf16.gmra.mxu2 %v13369_v52 }
 0x13a   : > { %4138 = vmatpush.bf16.msra.mxu1 %v10145_v37 }
 0x13b   : > { %4054 = vmatmul.bf16.gmra.mxu3 %v13371_v53  ;;  %v13532_v8 = vpack.c.bf16 %v6877_v63, %v6861_v62 }
 0x13c   : > { %v3810_v17 = vpop.f32.mrf.mxu2  ;;  %v3763_v32 = vpop.f32.mrf.mxu1 }
 0x13d   : > { %v3811_v20 = vadd.f32 %v3810_v17, %v3762_v61  ;;  %v11104_v17 = vld [vmem:[%s13226_s10 + $0xd08] sm:$0xf] }
 0x13e   : > { %v3859_v29 = vpop.f32.mrf.mxu3  ;;  %v3714_v30 = vpop.f32.mrf.mxu0 }
 0x13f   : > { %v3715_v31 = vadd.f32 %v3714_v30, %v13489_v56  ;;  %v3860_v33 = vadd.f32 %v3859_v29, %v3811_v20  ;;  %v9569_v29 = vor.u32 %v12070_v7, %v9568_v5  ;;  %v11105_v30 = vor.u32 %v12454_v18, %v11104_v17  ;;  %v12310_v7 = vld [vmem:[%s13226_s10 + $0x8c4] sm:$0xf0] }
 0x140   : > { %v9504_v17 = vld [vmem:[%s13226_s10 + $0x88] sm:$0xf]  ;;  %v10529_v18 = vor.u32 %v12310_v7, %v10528_v6 }
 0x141   : > { %v3764_v34 = vadd.f32 %v3763_v32, %v3715_v31  ;;  %v6893_v0 = vmax.f32 %v3860_v33, 0.0  ;;  %4090 = vmatpush.bf16.msra.mxu0 %v9569_v29  ;;  %4237 = vmatpush.bf16.msra.mxu3 %v11105_v30  ;;  %v11040_v29 = vld [vmem:[%s13226_s10 + $0xc88] sm:$0xf] }
 0x142   : > { %v12438_v30 = vld [vmem:[%s13226_s10 + $0xcc4] sm:$0xf0]  ;;  %4189 = vmatpush.bf16.msra.mxu2 %v10529_v18 }
 0x144   : > { %v3812_v39 = vpop.f32.mrf.mxu2  ;;  %v3766_v61 = vpop.f32.mrf.mxu1 }
 0x145   : > { %v3813_v40 = vadd.f32 %v3812_v39, %v3764_v34  ;;  %v10080_v39 = vld [vmem:[%s13226_s10 + $0x508] sm:$0xf] }
 0x146   : > { %v3861_v57 = vpop.f32.mrf.mxu3  ;;  %v3717_v59 = vpop.f32.mrf.mxu0 }
 0x147   : > { %v3718_v60 = vadd.f32 %v3717_v59, %v13489_v56  ;;  %v3862_v62 = vadd.f32 %v3861_v57, %v3813_v40  ;;  %3961 = vmatmul.bf16.gmra.mxu1 %v13387_v14  ;;  %v12198_v40 = vld [vmem:[%s13226_s10 + $0x544] sm:$0xf0] }
 0x148   : > { %v10081_v57 = vor.u32 %v12198_v40, %v10080_v39 }
 0x149   : > { %v3767_v63 = vadd.f32 %v3766_v61, %v3718_v60  ;;  %3912 = vmatmul.bf16.gmra.mxu0 %v13385_v13  ;;  %v6909_v1 = vmax.f32 %v3862_v62, 0.0  ;;  %4010 = vmatmul.bf16.gmra.mxu2 %v13389_v15 }
 0x14a   : > { %4139 = vmatpush.bf16.msra.mxu1 %v10081_v57 }
 0x14b   : > { %4059 = vmatmul.bf16.gmra.mxu3 %v13391_v16  ;;  %v13548_v19 = vpack.c.bf16 %v6909_v1, %v6893_v0 }
 0x14c   : > { %v3815_v20 = vpop.f32.mrf.mxu2  ;;  %v3768_v35 = vpop.f32.mrf.mxu1 }
 0x14d   : > { %15876 = vst [vmem:[#allocation20_spill] sm:$0xff] %v13548_v19  ;;  %v3816_v31 = vadd.f32 %v3815_v20, %v3767_v63  ;;  %v12054_v20 = vld [vmem:[%s13226_s10 + $0xc4] sm:$0xf0] }
 0x14e   : > { %v3864_v32 = vpop.f32.mrf.mxu3  ;;  %v3719_v33 = vpop.f32.mrf.mxu0 }
 0x14f   : > { %v3720_v34 = vadd.f32 %v3719_v33, %v13489_v56  ;;  %v3865_v36 = vadd.f32 %v3864_v32, %v3816_v31  ;;  %v9505_v33 = vor.u32 %v12054_v20, %v9504_v17  ;;  %v10464_v20 = vld [vmem:[%s13226_s10 + $0x808] sm:$0xf] }
 0x151   : > { %v3769_v37 = vadd.f32 %v3768_v35, %v3720_v34  ;;  %v6925_v4 = vmax.f32 %v3865_v36, 0.0  ;;  %v11041_v34 = vor.u32 %v12438_v30, %v11040_v29  ;;  %4091 = vmatpush.bf16.msra.mxu0 %v9505_v33  ;;  %v12294_v29 = vld [vmem:[%s13226_s10 + $0x844] sm:$0xf0] }
 0x152   : > { %v9440_v30 = vld [vmem:[%s13226_s10 + $0x8] sm:$0xf] }
 0x153   : > { %4238 = vmatpush.bf16.msra.mxu3 %v11041_v34  ;;  %v12038_v33 = vld [vmem:[%s13226_s10 + $0x44] sm:$0xf0] }
 0x154   : > { %v3817_v59 = vpop.f32.mrf.mxu2  ;;  %v3771_v0 = vpop.f32.mrf.mxu1  ;;  %v10976_v34 = vld [vmem:[%s13226_s10 + $0xc08] sm:$0xf] }
 0x155   : > { %v3818_v60 = vadd.f32 %v3817_v59, %v3769_v37 }
 0x156   : > { %v3866_v61 = vpop.f32.mrf.mxu3  ;;  %v3722_v62 = vpop.f32.mrf.mxu0 }
 0x157   : > { %v3723_v63 = vadd.f32 %v3722_v62, %v13489_v56  ;;  %v3867_v1 = vadd.f32 %v3866_v61, %v3818_v60  ;;  %3966 = vmatmul.bf16.gmra.mxu1 %v13407_v42  ;;  %v10016_v60 = vld [vmem:[%s13226_s10 + $0x488] sm:$0xf] }
 0x158   : > { %v12182_v61 = vld [vmem:[%s13226_s10 + $0x4c4] sm:$0xf0] }
 0x159   : > { %v3772_v3 = vadd.f32 %v3771_v0, %v3723_v63  ;;  %3917 = vmatmul.bf16.gmra.mxu0 %v13405_v41  ;;  %v6941_v5 = vmax.f32 %v3867_v1, 0.0  ;;  %4015 = vmatmul.bf16.gmra.mxu2 %v13409_v43  ;;  %v10017_v62 = vor.u32 %v12182_v61, %v10016_v60 }
 0x15b   : > { %4064 = vmatmul.bf16.gmra.mxu3 %v13411_v44  ;;  %v13564_v31 = vpack.c.bf16 %v6941_v5, %v6925_v4  ;;  %4140 = vmatpush.bf16.msra.mxu1 %v10017_v62 }
 0x15c   : > { %v3820_v32 = vpop.f32.mrf.mxu2  ;;  %v3773_v40 = vpop.f32.mrf.mxu1 }
 0x15d   : > { %15877 = vst [vmem:[#allocation21_spill] sm:$0xff] %v13564_v31  ;;  %v3821_v35 = vadd.f32 %v3820_v32, %v3772_v3  ;;  %v10465_v32 = vor.u32 %v12294_v29, %v10464_v20 }
 0x15e   : > { %v3869_v36 = vpop.f32.mrf.mxu3  ;;  %v3724_v37 = vpop.f32.mrf.mxu0 }
 0x15f   : > { %v3725_v39 = vadd.f32 %v3724_v37, %v13489_v56  ;;  %v3870_v57 = vadd.f32 %v3869_v36, %v3821_v35  ;;  %v12422_v35 = vld [vmem:[%s13226_s10 + $0xc44] sm:$0xf0]  ;;  %4190 = vmatpush.bf16.msra.mxu2 %v10465_v32 }
 0x161   : > { %v3774_v59 = vadd.f32 %v3773_v40, %v3725_v39  ;;  %v6957_v17 = vmax.f32 %v3870_v57, 0.0  ;;  %v9441_v39 = vor.u32 %v12038_v33, %v9440_v30  ;;  %v10977_v40 = vor.u32 %v12422_v35, %v10976_v34  ;;  %v12398_v34 = vld [vmem:[%s13226_s10 + $0xb8c] sm:$0xf] }
 0x162   : > { %v10914_v35 = vld [vmem:[%s13226_s10 + $0xbc8] sm:$0xf0] }
 0x163   : > { %4092 = vmatpush.bf16.msra.mxu0 %v9441_v39  ;;  %4239 = vmatpush.bf16.msra.mxu3 %v10977_v40  ;;  %v10917_v39 = vor.u32 %v12398_v34, %v10914_v35  ;;  %v9890_v40 = vld [vmem:[%s13226_s10 + $0x3c8] sm:$0xf0] }
 0x164   : > { %v3822_v63 = vpop.f32.mrf.mxu2  ;;  %v3776_v5 = vpop.f32.mrf.mxu1 }
 0x165   : > { %v3823_v0 = vadd.f32 %v3822_v63, %v3774_v59  ;;  %4379 = vmatpush.bf16.msrb.mxu2 %v10917_v39 }
 0x166   : > { %v3871_v1 = vpop.f32.mrf.mxu3  ;;  %v3727_v3 = vpop.f32.mrf.mxu0 }
 0x167   : > { %v3728_v4 = vadd.f32 %v3727_v3, %v13489_v56  ;;  %v3872_v6 = vadd.f32 %v3871_v1, %v3823_v0  ;;  %3971 = vmatmul.bf16.gmra.mxu1 %v13427_v10  ;;  %v9952_v1 = vld [vmem:[%s13226_s10 + $0x408] sm:$0xf] }
 0x168   : > { %v12166_v3 = vld [vmem:[%s13226_s10 + $0x444] sm:$0xf0] }
 0x169   : > { %v3777_v7 = vadd.f32 %v3776_v5, %v3728_v4  ;;  %3922 = vmatmul.bf16.gmra.mxu0 %v13425_v9  ;;  %v6973_v18 = vmax.f32 %v3872_v6, 0.0  ;;  %4020 = vmatmul.bf16.gmra.mxu2 %v13429_v11  ;;  %v9953_v4 = vor.u32 %v12166_v3, %v9952_v1 }
 0x16b   : > { %4069 = vmatmul.bf16.gmra.mxu3 %v13431_v12  ;;  %v13580_v36 = vpack.c.bf16 %v6973_v18, %v6957_v17  ;;  %4141 = vmatpush.bf16.msra.mxu1 %v9953_v4 }
 0x16c   : > { %v3825_v37 = vpop.f32.mrf.mxu2  ;;  %v3778_v62 = vpop.f32.mrf.mxu1 }
 0x16d   : > { %15878 = vst [vmem:[#allocation22_spill] sm:$0xff] %v13580_v36  ;;  %v3826_v57 = vadd.f32 %v3825_v37, %v3777_v7  ;;  %v12142_v37 = vld [vmem:[%s13226_s10 + $0x38c] sm:$0xf] }
 0x16e   : > { %v3874_v59 = vpop.f32.mrf.mxu3  ;;  %v3729_v60 = vpop.f32.mrf.mxu0 }
 0x16f   : > { %v3730_v61 = vadd.f32 %v3729_v60, %v13489_v56  ;;  %v3875_v63 = vadd.f32 %v3874_v59, %v3826_v57  ;;  %v12526_v57 = vld [vmem:[%s13226_s10 + $0xf8c] sm:$0xf] }
 0x170   : > { %v11426_v59 = vld [vmem:[%s13226_s10 + $0xfc8] sm:$0xf0] }
 0x171   : > { %v3779_v0 = vadd.f32 %v3778_v62, %v3730_v61  ;;  %v6989_v32 = vmax.f32 %v3875_v63, 0.0  ;;  %v9893_v62 = vor.u32 %v12142_v37, %v9890_v40  ;;  %v11429_v63 = vor.u32 %v12526_v57, %v11426_v59  ;;  %v12382_v59 = vld [vmem:[%s13226_s10 + $0xb0c] sm:$0xf] }
 0x173   : > { %4281 = vmatpush.bf16.msrb.mxu0 %v9893_v62  ;;  %4428 = vmatpush.bf16.msrb.mxu3 %v11429_v63  ;;  %v12126_v62 = vld [vmem:[%s13226_s10 + $0x30c] sm:$0xf] }
 0x174   : > { %v3827_v5 = vpop.f32.mrf.mxu2  ;;  %v3781_v20 = vpop.f32.mrf.mxu1 }
 0x175   : > { %v3828_v6 = vadd.f32 %v3827_v5, %v3779_v0 }
 0x176   : > { %v3876_v7 = vpop.f32.mrf.mxu3  ;;  %v3732_v17 = vpop.f32.mrf.mxu0 }
 0x177   : > { %v3733_v18 = vadd.f32 %v3732_v17, %v13489_v56  ;;  %v3877_v29 = vadd.f32 %v3876_v7, %v3828_v6  ;;  %3976 = vmatmul.bf16.gmra.mxu1 %v13447_v46  ;;  %v12270_v17 = vld [vmem:[%s13226_s10 + $0x78c] sm:$0xf] }
 0x179   : > { %v3782_v30 = vadd.f32 %v3781_v20, %v3733_v18  ;;  %3927 = vmatmul.bf16.gmra.mxu0 %v13445_v45  ;;  %v7005_v33 = vmax.f32 %v3877_v29, 0.0  ;;  %4025 = vmatmul.bf16.gmra.mxu2 %v13449_v47  ;;  %v10402_v18 = vld [vmem:[%s13226_s10 + $0x7c8] sm:$0xf0] }
 0x17a   : > { %v10405_v20 = vor.u32 %v12270_v17, %v10402_v18 }
 0x17b   : > { %4074 = vmatmul.bf16.gmra.mxu3 %v13451_v48  ;;  %v13596_v60 = vpack.c.bf16 %v7005_v33, %v6989_v32 }
 0x17c   : > { %v3830_v61 = vpop.f32.mrf.mxu2  ;;  %v3783_v5 = vpop.f32.mrf.mxu1  ;;  %4330 = vmatpush.bf16.msrb.mxu1 %v10405_v20 }
 0x17d   : > { %15879 = vst [vmem:[#allocation23_spill] sm:$0xff] %v13596_v60  ;;  %v3831_v0 = vadd.f32 %v3830_v61, %v3782_v30  ;;  %v10850_v61 = vld [vmem:[%s13226_s10 + $0xb48] sm:$0xf0] }
 0x17e   : > { %v3879_v1 = vpop.f32.mrf.mxu3  ;;  %v3734_v3 = vpop.f32.mrf.mxu0 }
 0x17f   : > { %v3735_v4 = vadd.f32 %v3734_v3, %v13489_v56  ;;  %v3880_v6 = vadd.f32 %v3879_v1, %v3831_v0  ;;  %v10853_v1 = vor.u32 %v12382_v59, %v10850_v61  ;;  %v9826_v3 = vld [vmem:[%s13226_s10 + $0x348] sm:$0xf0] }
 0x180   : > { %v9829_v18 = vor.u32 %v12126_v62, %v9826_v3 }
 0x181   : > { %v3784_v7 = vadd.f32 %v3783_v5, %v3735_v4  ;;  %v7021_v40 = vmax.f32 %v3880_v6, 0.0  ;;  %v12510_v4 = vld [vmem:[%s13226_s10 + $0xf0c] sm:$0xf]  ;;  %4380 = vmatpush.bf16.msrb.mxu2 %v10853_v1 }
 0x182   : > { %v11362_v5 = vld [vmem:[%s13226_s10 + $0xf48] sm:$0xf0]  ;;  %4282 = vmatpush.bf16.msrb.mxu0 %v9829_v18 }
 0x183   : > { %v11365_v20 = vor.u32 %v12510_v4, %v11362_v5  ;;  %v12366_v4 = vld [vmem:[%s13226_s10 + $0xa8c] sm:$0xf] }
 0x184   : > { %v3832_v29 = vpop.f32.mrf.mxu2  ;;  %v3786_v35 = vpop.f32.mrf.mxu1  ;;  %v10786_v5 = vld [vmem:[%s13226_s10 + $0xac8] sm:$0xf0] }
 0x185   : > { %v3833_v32 = vadd.f32 %v3832_v29, %v3784_v7  ;;  %4429 = vmatpush.bf16.msrb.mxu3 %v11365_v20  ;;  %v12494_v18 = vld [vmem:[%s13226_s10 + $0xe8c] sm:$0xf] }
 0x186   : > { %v3881_v30 = vpop.f32.mrf.mxu3  ;;  %v3737_v33 = vpop.f32.mrf.mxu0  ;;  %v11298_v20 = vld [vmem:[%s13226_s10 + $0xec8] sm:$0xf0] }
 0x187   : > { %v3738_v34 = vadd.f32 %v3737_v33, %v13489_v56  ;;  %v3882_v37 = vadd.f32 %v3881_v30, %v3833_v32  ;;  %3981 = vmatmul.bf16.gmra.mxu1 %v13467_v22 }
 0x189   : > { %v3787_v39 = vadd.f32 %v3786_v35, %v3738_v34  ;;  %3932 = vmatmul.bf16.gmra.mxu0 %v13465_v21  ;;  %v7037_v57 = vmax.f32 %v3882_v37, 0.0  ;;  %4030 = vmatmul.bf16.gmra.mxu2 %v13469_v23  ;;  %v12254_v34 = vld [vmem:[%s13226_s10 + $0x70c] sm:$0xf]  ;;  %v13618_v37 = vperm.slane %v13484_v38, 1 }
 0x18a   : > { %v10338_v35 = vld [vmem:[%s13226_s10 + $0x748] sm:$0xf0] }
 0x18b   : > { %4079 = vmatmul.bf16.gmra.mxu3 %v13471_v24  ;;  %v13609_v63 = vpack.c.bf16 %v7037_v57, %v7021_v40  ;;  %v10341_v40 = vor.u32 %v12254_v34, %v10338_v35 }
 0x18c   : > { %v3835_v0 = vpop.f32.mrf.mxu2  ;;  %v3788_v32 = vpop.f32.mrf.mxu1 }
 0x18d   : > { %15880 = vst [vmem:[#allocation24_spill] sm:$0xff] %v13609_v63  ;;  %v3836_v6 = vadd.f32 %v3835_v0, %v3787_v39  ;;  %4331 = vmatpush.bf16.msrb.mxu1 %v10341_v40 }
 0x18e   : > { %v3884_v7 = vpop.f32.mrf.mxu3  ;;  %v3739_v17 = vpop.f32.mrf.mxu0 }
 0x18f   : > { %v3740_v29 = vadd.f32 %v3739_v17, %v13489_v56  ;;  %v3885_v30 = vadd.f32 %v3884_v7, %v3836_v6  ;;  %v12110_v6 = vld [vmem:[%s13226_s10 + $0x28c] sm:$0xf]  ;;  %v10789_v7 = vor.u32 %v12366_v4, %v10786_v5 }
 0x190   : > { %v9762_v17 = vld [vmem:[%s13226_s10 + $0x2c8] sm:$0xf0] }
 0x191   : > { %v3789_v33 = vadd.f32 %v3788_v32, %v3740_v29  ;;  %v7053_v38 = vmax.f32 %v3885_v30, 0.0  ;;  %v9765_v30 = vor.u32 %v12110_v6, %v9762_v17  ;;  %4381 = vmatpush.bf16.msrb.mxu2 %v10789_v7 }
 0x193   : > { %4283 = vmatpush.bf16.msrb.mxu0 %v9765_v30  ;;  %v10722_v30 = vld [vmem:[%s13226_s10 + $0xa48] sm:$0xf0] }
 0x194   : > { %v3837_v39 = vpop.f32.mrf.mxu2  ;;  %v3947_v62 = vpop.f32.mrf.mxu1 }
 0x195   : > { %v3838_v57 = vadd.f32 %v3837_v39, %v3789_v33  ;;  %v11301_v33 = vor.u32 %v12494_v18, %v11298_v20 }
 0x196   : > { %v3886_v59 = vpop.f32.mrf.mxu3  ;;  %v3898_v56 = vpop.f32.mrf.mxu0 }
 0x197   : > { %v3899_v61 = vadd.f32 %v3898_v56, %v13618_v37  ;;  %v3887_v0 = vadd.f32 %v3886_v59, %v3838_v57  ;;  %4142 = vmatmul.bf16.vlgmr.msra.gmra.mxu1 %v13321_v54  ;;  %4430 = vmatpush.bf16.msrb.mxu3 %v11301_v33  ;;  %v12094_v33 = vld [vmem:[%s13226_s10 + $0x20c] sm:$0xf] }
 0x199   : > { %v3948_v1 = vadd.f32 %v3947_v62, %v3899_v61  ;;  %4093 = vmatmul.bf16.vlgmr.msra.gmra.mxu0 %v13316_v49  ;;  %v7069_v3 = vmax.f32 %v3887_v0, 0.0  ;;  %4191 = vmatmul.bf16.vlgmr.msra.gmra.mxu2 %v13323_v55  ;;  %v12238_v61 = vld [vmem:[%s13226_s10 + $0x68c] sm:$0xf] }
 0x19a   : > { %v10274_v62 = vld [vmem:[%s13226_s10 + $0x6c8] sm:$0xf0] }
 0x19b   : > { %4240 = vmatmul.bf16.vlgmr.msra.gmra.mxu3 %v13327_v58  ;;  %v13631_v29 = vpack.c.bf16 %v7069_v3, %v7053_v38  ;;  %v10277_v0 = vor.u32 %v12238_v61, %v10274_v62 }
 0x19c   : > { %v3996_v32 = vpop.f32.mrf.mxu2  ;;  %v3949_v57 = vpop.f32.mrf.mxu1 }
 0x19d   : > { %15881 = vst [vmem:[#allocation25_spill] sm:$0xff] %v13631_v29  ;;  %v3997_v34 = vadd.f32 %v3996_v32, %v3948_v1  ;;  %4332 = vmatpush.bf16.msrb.mxu1 %v10277_v0  ;;  %v12350_v32 = vld [vmem:[%s13226_s10 + $0xa0c] sm:$0xf] }
 0x19e   : > { %v4045_v35 = vpop.f32.mrf.mxu3  ;;  %v3900_v40 = vpop.f32.mrf.mxu0 }
 0x19f   : > { %v3901_v39 = vadd.f32 %v3900_v40, %v13618_v37  ;;  %v4046_v59 = vadd.f32 %v4045_v35, %v3997_v34  ;;  %v10725_v35 = vor.u32 %v12350_v32, %v10722_v30  ;;  %v9698_v40 = vld [vmem:[%s13226_s10 + $0x248] sm:$0xf0] }
 0x1a1   : > { %v3950_v56 = vadd.f32 %v3949_v57, %v3901_v39  ;;  %v6830_v18 = vmax.f32 %v4046_v59, 0.0  ;;  %v12478_v39 = vld [vmem:[%s13226_s10 + $0xe0c] sm:$0xf]  ;;  %v9701_v59 = vor.u32 %v12094_v33, %v9698_v40  ;;  %4382 = vmatpush.bf16.msrb.mxu2 %v10725_v35 }
 0x1a2   : > { %v11234_v57 = vld [vmem:[%s13226_s10 + $0xe48] sm:$0xf0] }
 0x1a3   : > { %v11237_v61 = vor.u32 %v12478_v39, %v11234_v57  ;;  %4284 = vmatpush.bf16.msrb.mxu0 %v9701_v59  ;;  %v12334_v59 = vld [vmem:[%s13226_s10 + $0x98c] sm:$0xf] }
 0x1a4   : > { %v3998_v38 = vpop.f32.mrf.mxu2  ;;  %v3952_v6 = vpop.f32.mrf.mxu1 }
 0x1a5   : > { %v3999_v3 = vadd.f32 %v3998_v38, %v3950_v56  ;;  %4431 = vmatpush.bf16.msrb.mxu3 %v11237_v61  ;;  %v10658_v61 = vld [vmem:[%s13226_s10 + $0x9c8] sm:$0xf0] }
 0x1a6   : > { %v4047_v1 = vpop.f32.mrf.mxu3  ;;  %v3903_v4 = vpop.f32.mrf.mxu0 }
 0x1a7   : > { %v3904_v5 = vadd.f32 %v3903_v4, %v13618_v37  ;;  %v4048_v7 = vadd.f32 %v4047_v1, %v3999_v3  ;;  %4147 = vmatmul.bf16.gmra.mxu1 %v13347_v26 }
 0x1a9   : > { %v3953_v17 = vadd.f32 %v3952_v6, %v3904_v5  ;;  %4098 = vmatmul.bf16.gmra.mxu0 %v13345_v25  ;;  %v6846_v20 = vmax.f32 %v4048_v7, 0.0  ;;  %4196 = vmatmul.bf16.gmra.mxu2 %v13349_v27  ;;  %v12222_v6 = vld [vmem:[%s13226_s10 + $0x60c] sm:$0xf] }
 0x1aa   : > { %v10210_v7 = vld [vmem:[%s13226_s10 + $0x648] sm:$0xf0] }
 0x1ab   : > { %4245 = vmatmul.bf16.gmra.mxu3 %v13351_v28  ;;  %v13644_v34 = vpack.c.bf16 %v6846_v20, %v6830_v18  ;;  %v10213_v18 = vor.u32 %v12222_v6, %v10210_v7 }
 0x1ac   : > { %v4001_v56 = vpop.f32.mrf.mxu2  ;;  %v3954_v1 = vpop.f32.mrf.mxu1 }
 0x1ad   : > { %v4002_v62 = vadd.f32 %v4001_v56, %v3953_v17  ;;  %4333 = vmatpush.bf16.msrb.mxu1 %v10213_v18 }
 0x1ae   : > { %v4050_v0 = vpop.f32.mrf.mxu3  ;;  %v3905_v38 = vpop.f32.mrf.mxu0 }
 0x1af   : > { %v3906_v3 = vadd.f32 %v3905_v38, %v13618_v37  ;;  %v4051_v4 = vadd.f32 %v4050_v0, %v4002_v62  ;;  %v12078_v62 = vld [vmem:[%s13226_s10 + $0x18c] sm:$0xf]  ;;  %v10661_v0 = vor.u32 %v12334_v59, %v10658_v61 }
 0x1b0   : > { %v9634_v38 = vld [vmem:[%s13226_s10 + $0x1c8] sm:$0xf0] }
 0x1b1   : > { %v3955_v5 = vadd.f32 %v3954_v1, %v3906_v3  ;;  %v6862_v57 = vmax.f32 %v4051_v4, 0.0  ;;  %v12462_v3 = vld [vmem:[%s13226_s10 + $0xd8c] sm:$0xf]  ;;  %v9637_v4 = vor.u32 %v12078_v62, %v9634_v38  ;;  %4383 = vmatpush.bf16.msrb.mxu2 %v10661_v0 }
 0x1b2   : > { %v11170_v1 = vld [vmem:[%s13226_s10 + $0xdc8] sm:$0xf0] }
 0x1b3   : > { %v11173_v7 = vor.u32 %v12462_v3, %v11170_v1  ;;  %4285 = vmatpush.bf16.msrb.mxu0 %v9637_v4  ;;  %v10146_v59 = vld [vmem:[%s13226_s10 + $0x5c8] sm:$0xf0] }
 0x1b4   : > { %v4003_v20 = vpop.f32.mrf.mxu2  ;;  %v3957_v35 = vpop.f32.mrf.mxu1 }
 0x1b5   : > { %v4004_v32 = vadd.f32 %v4003_v20, %v3955_v5  ;;  %4432 = vmatpush.bf16.msrb.mxu3 %v11173_v7  ;;  %v12318_v7 = vld [vmem:[%s13226_s10 + $0x90c] sm:$0xf] }
 0x1b6   : > { %v4052_v17 = vpop.f32.mrf.mxu3  ;;  %v3908_v30 = vpop.f32.mrf.mxu0 }
 0x1b7   : > { %v3909_v33 = vadd.f32 %v3908_v30, %v13618_v37  ;;  %v4053_v40 = vadd.f32 %v4052_v17, %v4004_v32  ;;  %4152 = vmatmul.bf16.gmra.mxu1 %v13367_v51 }
 0x1b9   : > { %v3958_v39 = vadd.f32 %v3957_v35, %v3909_v33  ;;  %4103 = vmatmul.bf16.gmra.mxu0 %v13365_v50  ;;  %v6878_v56 = vmax.f32 %v4053_v40, 0.0  ;;  %4201 = vmatmul.bf16.gmra.mxu2 %v13369_v52  ;;  %v12206_v40 = vld [vmem:[%s13226_s10 + $0x58c] sm:$0xf] }
 0x1ba   : > { %v10149_v61 = vor.u32 %v12206_v40, %v10146_v59 }
 0x1bb   : > { %4250 = vmatmul.bf16.gmra.mxu3 %v13371_v53  ;;  %v13663_v5 = vpack.c.bf16 %v6878_v56, %v6862_v57 }
 0x1bc   : > { %v4006_v6 = vpop.f32.mrf.mxu2  ;;  %v3959_v30 = vpop.f32.mrf.mxu1  ;;  %4334 = vmatpush.bf16.msrb.mxu1 %v10149_v61 }
 0x1bd   : > { %v4007_v18 = vadd.f32 %v4006_v6, %v3958_v39 }
 0x1be   : > { %v4055_v20 = vpop.f32.mrf.mxu3  ;;  %v3910_v32 = vpop.f32.mrf.mxu0 }
 0x1bf   : > { %v3911_v17 = vadd.f32 %v3910_v32, %v13618_v37  ;;  %v4056_v33 = vadd.f32 %v4055_v20, %v4007_v18  ;;  %v10594_v18 = vld [vmem:[%s13226_s10 + $0x948] sm:$0xf0] }
 0x1c0   : > { %v12062_v20 = vld [vmem:[%s13226_s10 + $0x10c] sm:$0xf]  ;;  %v10597_v32 = vor.u32 %v12318_v7, %v10594_v18 }
 0x1c1   : > { %v3960_v35 = vadd.f32 %v3959_v30, %v3911_v17  ;;  %v6894_v6 = vmax.f32 %v4056_v33, 0.0  ;;  %v9570_v17 = vld [vmem:[%s13226_s10 + $0x148] sm:$0xf0] }
 0x1c2   : > { %v12446_v30 = vld [vmem:[%s13226_s10 + $0xd0c] sm:$0xf]  ;;  %v9573_v33 = vor.u32 %v12062_v20, %v9570_v17  ;;  %4384 = vmatpush.bf16.msrb.mxu2 %v10597_v32 }
 0x1c3   : > { %v12190_v7 = vld [vmem:[%s13226_s10 + $0x50c] sm:$0xf] }
 0x1c4   : > { %v4008_v57 = vpop.f32.mrf.mxu2  ;;  %v3962_v38 = vpop.f32.mrf.mxu1  ;;  %4286 = vmatpush.bf16.msrb.mxu0 %v9573_v33  ;;  %v10082_v18 = vld [vmem:[%s13226_s10 + $0x548] sm:$0xf0] }
 0x1c5   : > { %v4009_v56 = vadd.f32 %v4008_v57, %v3960_v35  ;;  %v11106_v35 = vld [vmem:[%s13226_s10 + $0xd48] sm:$0xf0]  ;;  %v10085_v29 = vor.u32 %v12190_v7, %v10082_v18 }
 0x1c6   : > { %v4057_v39 = vpop.f32.mrf.mxu3  ;;  %v3913_v62 = vpop.f32.mrf.mxu0  ;;  %v11109_v61 = vor.u32 %v12446_v30, %v11106_v35 }
 0x1c7   : > { %v3914_v0 = vadd.f32 %v3913_v62, %v13618_v37  ;;  %v4058_v3 = vadd.f32 %v4057_v39, %v4009_v56  ;;  %4157 = vmatmul.bf16.gmra.mxu1 %v13387_v14 }
 0x1c8   : > { %4433 = vmatpush.bf16.msrb.mxu3 %v11109_v61  ;;  %4335 = vmatpush.bf16.msrb.mxu1 %v10085_v29  ;;  %v12302_v29 = vld [vmem:[%s13226_s10 + $0x88c] sm:$0xf] }
 0x1c9   : > { %v3963_v1 = vadd.f32 %v3962_v38, %v3914_v0  ;;  %4108 = vmatmul.bf16.gmra.mxu0 %v13385_v13  ;;  %v6910_v4 = vmax.f32 %v4058_v3, 0.0  ;;  %4206 = vmatmul.bf16.gmra.mxu2 %v13389_v15  ;;  %v10530_v61 = vld [vmem:[%s13226_s10 + $0x8c8] sm:$0xf0] }
 0x1cb   : > { %4255 = vmatmul.bf16.gmra.mxu3 %v13391_v16  ;;  %v13679_v40 = vpack.c.bf16 %v6910_v4, %v6894_v6 }
 0x1cc   : > { %v4011_v59 = vpop.f32.mrf.mxu2  ;;  %v3964_v0 = vpop.f32.mrf.mxu1 }
 0x1cd   : > { %15882 = vst [vmem:[#allocation26_spill] sm:$0xff] %v13679_v40  ;;  %v4012_v57 = vadd.f32 %v4011_v59, %v3963_v1 }
 0x1ce   : > { %v4060_v56 = vpop.f32.mrf.mxu3  ;;  %v3915_v39 = vpop.f32.mrf.mxu0 }
 0x1cf   : > { %v3916_v62 = vadd.f32 %v3915_v39, %v13618_v37  ;;  %v4061_v38 = vadd.f32 %v4060_v56, %v4012_v57  ;;  %v12046_v57 = vld [vmem:[%s13226_s10 + $0x8c] sm:$0xf]  ;;  %v10533_v56 = vor.u32 %v12302_v29, %v10530_v61 }
 0x1d0   : > { %v9506_v39 = vld [vmem:[%s13226_s10 + $0xc8] sm:$0xf0] }
 0x1d1   : > { %v3965_v3 = vadd.f32 %v3964_v0, %v3916_v62  ;;  %v6926_v59 = vmax.f32 %v4061_v38, 0.0  ;;  %v12430_v62 = vld [vmem:[%s13226_s10 + $0xc8c] sm:$0xf]  ;;  %v9509_v38 = vor.u32 %v12046_v57, %v9506_v39  ;;  %4385 = vmatpush.bf16.msrb.mxu2 %v10533_v56 }
 0x1d2   : > { %v11042_v0 = vld [vmem:[%s13226_s10 + $0xcc8] sm:$0xf0] }
 0x1d3   : > { %v11045_v18 = vor.u32 %v12430_v62, %v11042_v0  ;;  %4287 = vmatpush.bf16.msrb.mxu0 %v9509_v38  ;;  %v12174_v29 = vld [vmem:[%s13226_s10 + $0x48c] sm:$0xf] }
 0x1d4   : > { %v4013_v6 = vpop.f32.mrf.mxu2  ;;  %v3967_v17 = vpop.f32.mrf.mxu1  ;;  %v10018_v61 = vld [vmem:[%s13226_s10 + $0x4c8] sm:$0xf0] }
 0x1d5   : > { %v4014_v4 = vadd.f32 %v4013_v6, %v3965_v3  ;;  %4434 = vmatpush.bf16.msrb.mxu3 %v11045_v18  ;;  %v10021_v63 = vor.u32 %v12174_v29, %v10018_v61  ;;  %v10466_v18 = vld [vmem:[%s13226_s10 + $0x848] sm:$0xf0] }
 0x1d6   : > { %v4062_v1 = vpop.f32.mrf.mxu3  ;;  %v3918_v20 = vpop.f32.mrf.mxu0 }
 0x1d7   : > { %v3919_v32 = vadd.f32 %v3918_v20, %v13618_v37  ;;  %v4063_v30 = vadd.f32 %v4062_v1, %v4014_v4  ;;  %4162 = vmatmul.bf16.gmra.mxu1 %v13407_v42 }
 0x1d8   : > { %4336 = vmatpush.bf16.msrb.mxu1 %v10021_v63  ;;  %v12286_v63 = vld [vmem:[%s13226_s10 + $0x80c] sm:$0xf] }
 0x1d9   : > { %v3968_v35 = vadd.f32 %v3967_v17, %v3919_v32  ;;  %4113 = vmatmul.bf16.gmra.mxu0 %v13405_v41  ;;  %v6942_v33 = vmax.f32 %v4063_v30, 0.0  ;;  %4211 = vmatmul.bf16.gmra.mxu2 %v13409_v43 }
 0x1db   : > { %4260 = vmatmul.bf16.gmra.mxu3 %v13411_v44  ;;  %v13695_v3 = vpack.c.bf16 %v6942_v33, %v6926_v59 }
 0x1dc   : > { %v4016_v7 = vpop.f32.mrf.mxu2  ;;  %v3969_v32 = vpop.f32.mrf.mxu1 }
 0x1dd   : > { %15883 = vst [vmem:[#allocation27_spill] sm:$0xff] %v13695_v3  ;;  %v4017_v6 = vadd.f32 %v4016_v7, %v3968_v35 }
 0x1de   : > { %v4065_v4 = vpop.f32.mrf.mxu3  ;;  %v3920_v1 = vpop.f32.mrf.mxu0 }
 0x1df   : > { %v3921_v20 = vadd.f32 %v3920_v1, %v13618_v37  ;;  %v4066_v17 = vadd.f32 %v4065_v4, %v4017_v6  ;;  %v12030_v6 = vld [vmem:[%s13226_s10 + $0xc] sm:$0xf]  ;;  %v10469_v4 = vor.u32 %v12286_v63, %v10466_v18 }
 0x1e0   : > { %v9442_v1 = vld [vmem:[%s13226_s10 + $0x48] sm:$0xf0] }
 0x1e1   : > { %v3970_v30 = vadd.f32 %v3969_v32, %v3921_v20  ;;  %v6958_v7 = vmax.f32 %v4066_v17, 0.0  ;;  %v12414_v20 = vld [vmem:[%s13226_s10 + $0xc0c] sm:$0xf]  ;;  %v9445_v17 = vor.u32 %v12030_v6, %v9442_v1  ;;  %4386 = vmatpush.bf16.msrb.mxu2 %v10469_v4 }
 0x1e2   : > { %v10978_v32 = vld [vmem:[%s13226_s10 + $0xc48] sm:$0xf0] }
 0x1e3   : > { %v10981_v61 = vor.u32 %v12414_v20, %v10978_v32  ;;  %4288 = vmatpush.bf16.msrb.mxu0 %v9445_v17  ;;  %v12158_v63 = vld [vmem:[%s13226_s10 + $0x40c] sm:$0xf] }
 0x1e4   : > { %v4018_v59 = vpop.f32.mrf.mxu2  ;;  %v3972_v39 = vpop.f32.mrf.mxu1  ;;  %v9954_v18 = vld [vmem:[%s13226_s10 + $0x448] sm:$0xf0] }
 0x1e5   : > { %v4019_v33 = vadd.f32 %v4018_v59, %v3970_v30  ;;  %4435 = vmatpush.bf16.msrb.mxu3 %v10981_v61  ;;  %v9957_v60 = vor.u32 %v12158_v63, %v9954_v18  ;;  %v12407_v61 = vld [vmem:[%s13226_s10 + $0xbcc] sm:$0xf0] }
 0x1e6   : > { %v4067_v35 = vpop.f32.mrf.mxu3  ;;  %v3923_v57 = vpop.f32.mrf.mxu0 }
 0x1e7   : > { %v3924_v56 = vadd.f32 %v3923_v57, %v13618_v37  ;;  %v4068_v62 = vadd.f32 %v4067_v35, %v4019_v33  ;;  %4167 = vmatmul.bf16.gmra.mxu1 %v13427_v10 }
 0x1e8   : > { %4337 = vmatpush.bf16.msrb.mxu1 %v9957_v60  ;;  %v10920_v60 = vld [vmem:[%s13226_s10 + $0xb90] sm:$0xf] }
 0x1e9   : > { %v3973_v0 = vadd.f32 %v3972_v39, %v3924_v56  ;;  %4118 = vmatmul.bf16.gmra.mxu0 %v13425_v9  ;;  %v6974_v38 = vmax.f32 %v4068_v62, 0.0  ;;  %4216 = vmatmul.bf16.gmra.mxu2 %v13429_v11 }
 0x1eb   : > { %4265 = vmatmul.bf16.gmra.mxu3 %v13431_v12  ;;  %v13711_v30 = vpack.c.bf16 %v6974_v38, %v6958_v7 }
 0x1ec   : > { %v4021_v29 = vpop.f32.mrf.mxu2  ;;  %v3974_v56 = vpop.f32.mrf.mxu1 }
 0x1ed   : > { %15884 = vst [vmem:[#allocation28_spill] sm:$0xff] %v13711_v30  ;;  %v4022_v59 = vadd.f32 %v4021_v29, %v3973_v0 }
 0x1ee   : > { %v4070_v33 = vpop.f32.mrf.mxu3  ;;  %v3925_v35 = vpop.f32.mrf.mxu0 }
 0x1ef   : > { %v3926_v57 = vadd.f32 %v3925_v35, %v13618_v37  ;;  %v4071_v39 = vadd.f32 %v4070_v33, %v4022_v59  ;;  %v9896_v59 = vld [vmem:[%s13226_s10 + $0x390] sm:$0xf]  ;;  %v10921_v33 = vor.u32 %v12407_v61, %v10920_v60 }
 0x1f0   : > { %v12151_v35 = vld [vmem:[%s13226_s10 + $0x3cc] sm:$0xf0] }
 0x1f1   : > { %v3975_v62 = vadd.f32 %v3974_v56, %v3926_v57  ;;  %v6990_v29 = vmax.f32 %v4071_v39, 0.0  ;;  %v11432_v57 = vld [vmem:[%s13226_s10 + $0xf90] sm:$0xf]  ;;  %v9897_v39 = vor.u32 %v12151_v35, %v9896_v59  ;;  %4575 = vmatpush.bf16.msra.mxu2 %v10921_v33 }
 0x1f2   : > { %v12535_v56 = vld [vmem:[%s13226_s10 + $0xfcc] sm:$0xf0] }
 0x1f3   : > { %v11433_v18 = vor.u32 %v12535_v56, %v11432_v57  ;;  %4477 = vmatpush.bf16.msra.mxu0 %v9897_v39  ;;  %v10408_v60 = vld [vmem:[%s13226_s10 + $0x790] sm:$0xf] }
 0x1f4   : > { %v4023_v7 = vpop.f32.mrf.mxu2  ;;  %v3977_v1 = vpop.f32.mrf.mxu1  ;;  %v12279_v61 = vld [vmem:[%s13226_s10 + $0x7cc] sm:$0xf0] }
 0x1f5   : > { %v4024_v38 = vadd.f32 %v4023_v7, %v3975_v62  ;;  %4624 = vmatpush.bf16.msra.mxu3 %v11433_v18  ;;  %v10409_v30 = vor.u32 %v12279_v61, %v10408_v60  ;;  %v12391_v18 = vld [vmem:[%s13226_s10 + $0xb4c] sm:$0xf0] }
 0x1f6   : > { %v4072_v0 = vpop.f32.mrf.mxu3  ;;  %v3928_v6 = vpop.f32.mrf.mxu0 }
 0x1f7   : > { %v3929_v4 = vadd.f32 %v3928_v6, %v13618_v37  ;;  %v4073_v20 = vadd.f32 %v4072_v0, %v4024_v38  ;;  %4172 = vmatmul.bf16.gmra.mxu1 %v13447_v46 }
 0x1f8   : > { %4526 = vmatpush.bf16.msra.mxu1 %v10409_v30  ;;  %v10856_v30 = vld [vmem:[%s13226_s10 + $0xb10] sm:$0xf] }
 0x1f9   : > { %v3978_v32 = vadd.f32 %v3977_v1, %v3929_v4  ;;  %4123 = vmatmul.bf16.gmra.mxu0 %v13445_v45  ;;  %v7006_v17 = vmax.f32 %v4073_v20, 0.0  ;;  %4221 = vmatmul.bf16.gmra.mxu2 %v13449_v47 }
 0x1fb   : > { %4270 = vmatmul.bf16.gmra.mxu3 %v13451_v48  ;;  %v13727_v62 = vpack.c.bf16 %v7006_v17, %v6990_v29 }
 0x1fc   : > { %v4026_v63 = vpop.f32.mrf.mxu2  ;;  %v3979_v4 = vpop.f32.mrf.mxu1 }
 0x1fd   : > { %15885 = vst [vmem:[#allocation29_spill] sm:$0xff] %v13727_v62  ;;  %v4027_v7 = vadd.f32 %v4026_v63, %v3978_v32  ;;  %v12247_v62 = vld [vmem:[%s13226_s10 + $0x6cc] sm:$0xf0] }
 0x1fe   : > { %v4075_v38 = vpop.f32.mrf.mxu3  ;;  %v3930_v0 = vpop.f32.mrf.mxu0 }
 0x1ff   : > { %v3931_v6 = vadd.f32 %v3930_v0, %v13618_v37  ;;  %v4076_v1 = vadd.f32 %v4075_v38, %v4027_v7  ;;  %v9832_v7 = vld [vmem:[%s13226_s10 + $0x310] sm:$0xf] }
 0x201   : > { %v3980_v20 = vadd.f32 %v3979_v4, %v3931_v6  ;;  %v7022_v63 = vmax.f32 %v4076_v1, 0.0  ;;  %v10857_v6 = vor.u32 %v12391_v18, %v10856_v30  ;;  %v12135_v4 = vld [vmem:[%s13226_s10 + $0x34c] sm:$0xf0] }
 0x202   : > { %v12519_v1 = vld [vmem:[%s13226_s10 + $0xf4c] sm:$0xf0] }
 0x203   : > { %4576 = vmatpush.bf16.msra.mxu2 %v10857_v6  ;;  %v13749_v30 = vld [vmem:[%s13232_s29] sm:$0xff] }
 0x204   : > { %v4028_v29 = vpop.f32.mrf.mxu2  ;;  %v3982_v35 = vpop.f32.mrf.mxu1  ;;  %v13752_v18 = vperm.slane %v13749_v30, 2 }
 0x205   : > { %v4029_v17 = vadd.f32 %v4028_v29, %v3980_v20  ;;  %v11368_v20 = vld [vmem:[%s13226_s10 + $0xf10] sm:$0xf] }
 0x206   : > { %v4077_v32 = vpop.f32.mrf.mxu3  ;;  %v3933_v59 = vpop.f32.mrf.mxu0 }
 0x207   : > { %v3934_v33 = vadd.f32 %v3933_v59, %v13618_v37  ;;  %v4078_v57 = vadd.f32 %v4077_v32, %v4029_v17  ;;  %4177 = vmatmul.bf16.gmra.mxu1 %v13467_v22  ;;  %v9833_v17 = vor.u32 %v12135_v4, %v9832_v7  ;;  %v11369_v32 = vor.u32 %v12519_v1, %v11368_v20 }
 0x209   : > { %v3983_v56 = vadd.f32 %v3982_v35, %v3934_v33  ;;  %4128 = vmatmul.bf16.gmra.mxu0 %v13465_v21  ;;  %v7038_v39 = vmax.f32 %v4078_v57, 0.0  ;;  %4226 = vmatmul.bf16.gmra.mxu2 %v13469_v23 }
 0x20a   : > { %4478 = vmatpush.bf16.msra.mxu0 %v9833_v17  ;;  %4625 = vmatpush.bf16.msra.mxu3 %v11369_v32  ;;  %v10792_v17 = vld [vmem:[%s13226_s10 + $0xa90] sm:$0xf] }
 0x20b   : > { %4275 = vmatmul.bf16.gmra.mxu3 %v13471_v24  ;;  %v13740_v38 = vpack.c.bf16 %v7038_v39, %v7022_v63  ;;  %v10344_v63 = vld [vmem:[%s13226_s10 + $0x710] sm:$0xf] }
 0x20c   : > { %v4031_v0 = vpop.f32.mrf.mxu2  ;;  %v3984_v33 = vpop.f32.mrf.mxu1  ;;  %v12263_v39 = vld [vmem:[%s13226_s10 + $0x74c] sm:$0xf0] }
 0x20d   : > { %15886 = vst [vmem:[#allocation30_spill] sm:$0xff] %v13740_v38  ;;  %v4032_v60 = vadd.f32 %v4031_v0, %v3983_v56  ;;  %v10345_v56 = vor.u32 %v12263_v39, %v10344_v63  ;;  %v12375_v32 = vld [vmem:[%s13226_s10 + $0xacc] sm:$0xf0] }
 0x20e   : > { %v4080_v61 = vpop.f32.mrf.mxu3  ;;  %v3935_v29 = vpop.f32.mrf.mxu0  ;;  %v11304_v63 = vld [vmem:[%s13226_s10 + $0xe90] sm:$0xf] }
 0x20f   : > { %v3936_v59 = vadd.f32 %v3935_v29, %v13618_v37  ;;  %v4081_v35 = vadd.f32 %v4080_v61, %v4032_v60  ;;  %4527 = vmatpush.bf16.msra.mxu1 %v10345_v56  ;;  %v12503_v39 = vld [vmem:[%s13226_s10 + $0xecc] sm:$0xf0] }
 0x210   : > { %v10280_v38 = vld [vmem:[%s13226_s10 + $0x690] sm:$0xf] }
 0x211   : > { %v3985_v57 = vadd.f32 %v3984_v33, %v3936_v59  ;;  %v7054_v61 = vmax.f32 %v4081_v35, 0.0  ;;  %v9768_v59 = vld [vmem:[%s13226_s10 + $0x290] sm:$0xf]  ;;  %v10793_v33 = vor.u32 %v12375_v32, %v10792_v17  ;;  %v10281_v36 = vor.u32 %v12247_v62, %v10280_v38 }
 0x212   : > { %v12359_v38 = vld [vmem:[%s13226_s10 + $0xa4c] sm:$0xf0] }
 0x213   : > { %4577 = vmatpush.bf16.msra.mxu2 %v10793_v33  ;;  %4528 = vmatpush.bf16.msra.mxu1 %v10281_v36  ;;  %v10728_v36 = vld [vmem:[%s13226_s10 + $0xa10] sm:$0xf] }
 0x214   : > { %v4033_v0 = vpop.f32.mrf.mxu2  ;;  %v4143_v20 = vpop.f32.mrf.mxu1 }
 0x215   : > { %v4034_v37 = vadd.f32 %v4033_v0, %v3985_v57  ;;  %v12119_v57 = vld [vmem:[%s13226_s10 + $0x2cc] sm:$0xf0] }
 0x216   : > { %v4082_v7 = vpop.f32.mrf.mxu3  ;;  %v4094_v6 = vpop.f32.mrf.mxu0  ;;  %v9769_v35 = vor.u32 %v12119_v57, %v9768_v59 }
 0x217   : > { %v4095_v4 = vadd.f32 %v4094_v6, %v13752_v18  ;;  %v4083_v1 = vadd.f32 %v4082_v7, %v4034_v37  ;;  %4338 = vmatmul.bf16.vlgmr.msrb.gmra.mxu1 %v13321_v54  ;;  %v11305_v37 = vor.u32 %v12503_v39, %v11304_v63 }
 0x218   : > { %4479 = vmatpush.bf16.msra.mxu0 %v9769_v35  ;;  %v9704_v35 = vld [vmem:[%s13226_s10 + $0x210] sm:$0xf] }
 0x219   : > { %v4144_v60 = vadd.f32 %v4143_v20, %v4095_v4  ;;  %4289 = vmatmul.bf16.vlgmr.msrb.gmra.mxu0 %v13316_v49  ;;  %v7070_v29 = vmax.f32 %v4083_v1, 0.0  ;;  %4387 = vmatmul.bf16.vlgmr.msrb.gmra.mxu2 %v13323_v55 }
 0x21a   : > { %4626 = vmatpush.bf16.msra.mxu3 %v11305_v37 }
 0x21b   : > { %4436 = vmatmul.bf16.vlgmr.msrb.gmra.mxu3 %v13327_v58  ;;  %v13765_v56 = vpack.c.bf16 %v7070_v29, %v7054_v61 }
 0x21c   : > { %v4192_v0 = vpop.f32.mrf.mxu2  ;;  %v4145_v1 = vpop.f32.mrf.mxu1 }
 0x21d   : > { %15887 = vst [vmem:[#allocation31_spill] sm:$0xff] %v13765_v56  ;;  %v4193_v7 = vadd.f32 %v4192_v0, %v4144_v60  ;;  %v12215_v56 = vld [vmem:[%s13226_s10 + $0x5cc] sm:$0xf0] }
 0x21e   : > { %v4241_v6 = vpop.f32.mrf.mxu3  ;;  %v4096_v4 = vpop.f32.mrf.mxu0 }
 0x21f   : > { %v4097_v20 = vadd.f32 %v4096_v4, %v13752_v18  ;;  %v4242_v17 = vadd.f32 %v4241_v6, %v4193_v7  ;;  %v10729_v7 = vor.u32 %v12359_v38, %v10728_v36  ;;  %v12103_v6 = vld [vmem:[%s13226_s10 + $0x24c] sm:$0xf0] }
 0x220   : > { %v11240_v4 = vld [vmem:[%s13226_s10 + $0xe10] sm:$0xf] }
 0x221   : > { %v4146_v32 = vadd.f32 %v4145_v1, %v4097_v20  ;;  %v6831_v0 = vmax.f32 %v4242_v17, 0.0  ;;  %v12487_v20 = vld [vmem:[%s13226_s10 + $0xe4c] sm:$0xf0]  ;;  %v9705_v17 = vor.u32 %v12103_v6, %v9704_v35  ;;  %4578 = vmatpush.bf16.msra.mxu2 %v10729_v7 }
 0x223   : > { %4480 = vmatpush.bf16.msra.mxu0 %v9705_v17 }
 0x224   : > { %v4194_v61 = vpop.f32.mrf.mxu2  ;;  %v4148_v57 = vpop.f32.mrf.mxu1 }
 0x225   : > { %v4195_v29 = vadd.f32 %v4194_v61, %v4146_v32  ;;  %v11241_v32 = vor.u32 %v12487_v20, %v11240_v4 }
 0x226   : > { %v4243_v60 = vpop.f32.mrf.mxu3  ;;  %v4099_v59 = vpop.f32.mrf.mxu0 }
 0x227   : > { %v4100_v33 = vadd.f32 %v4099_v59, %v13752_v18  ;;  %v4244_v63 = vadd.f32 %v4243_v60, %v4195_v29  ;;  %4343 = vmatmul.bf16.gmra.mxu1 %v13347_v26  ;;  %4627 = vmatpush.bf16.msra.mxu3 %v11241_v32 }
 0x229   : > { %v4149_v39 = vadd.f32 %v4148_v57, %v4100_v33  ;;  %4294 = vmatmul.bf16.gmra.mxu0 %v13345_v25  ;;  %v6847_v62 = vmax.f32 %v4244_v63, 0.0  ;;  %4392 = vmatmul.bf16.gmra.mxu2 %v13349_v27 }
 0x22b   : > { %4441 = vmatmul.bf16.gmra.mxu3 %v13351_v28  ;;  %v13778_v37 = vpack.c.bf16 %v6847_v62, %v6831_v0  ;;  %v10216_v0 = vld [vmem:[%s13226_s10 + $0x610] sm:$0xf] }
 0x22c   : > { %v4197_v1 = vpop.f32.mrf.mxu2  ;;  %v4150_v33 = vpop.f32.mrf.mxu1  ;;  %v12231_v62 = vld [vmem:[%s13226_s10 + $0x64c] sm:$0xf0] }
 0x22d   : > { %v4198_v61 = vadd.f32 %v4197_v1, %v4149_v39  ;;  %v10217_v36 = vor.u32 %v12231_v62, %v10216_v0  ;;  %v12471_v0 = vld [vmem:[%s13226_s10 + $0xdcc] sm:$0xf0] }
 0x22e   : > { %v4246_v29 = vpop.f32.mrf.mxu3  ;;  %v4101_v60 = vpop.f32.mrf.mxu0 }
 0x22f   : > { %v4102_v59 = vadd.f32 %v4101_v60, %v13752_v18  ;;  %v4247_v57 = vadd.f32 %v4246_v29, %v4198_v61  ;;  %4529 = vmatpush.bf16.msra.mxu1 %v10217_v36  ;;  %v10664_v61 = vld [vmem:[%s13226_s10 + $0x990] sm:$0xf] }
 0x230   : > { %v12343_v29 = vld [vmem:[%s13226_s10 + $0x9cc] sm:$0xf0] }
 0x231   : > { %v4151_v63 = vadd.f32 %v4150_v33, %v4102_v59  ;;  %v6863_v17 = vmax.f32 %v4247_v57, 0.0  ;;  %v9640_v60 = vld [vmem:[%s13226_s10 + $0x190] sm:$0xf]  ;;  %v10665_v59 = vor.u32 %v12343_v29, %v10664_v61 }
 0x232   : > { %v12087_v33 = vld [vmem:[%s13226_s10 + $0x1cc] sm:$0xf0] }
 0x233   : > { %v9641_v57 = vor.u32 %v12087_v33, %v9640_v60  ;;  %4579 = vmatpush.bf16.msra.mxu2 %v10665_v59  ;;  %v10152_v29 = vld [vmem:[%s13226_s10 + $0x590] sm:$0xf] }
 0x234   : > { %v4199_v38 = vpop.f32.mrf.mxu2  ;;  %v4153_v4 = vpop.f32.mrf.mxu1  ;;  %v10153_v3 = vor.u32 %v12215_v56, %v10152_v29 }
 0x235   : > { %v4200_v35 = vadd.f32 %v4199_v38, %v4151_v63  ;;  %v11176_v63 = vld [vmem:[%s13226_s10 + $0xd90] sm:$0xf]  ;;  %4481 = vmatpush.bf16.msra.mxu0 %v9641_v57 }
 0x236   : > { %v4248_v39 = vpop.f32.mrf.mxu3  ;;  %v4104_v6 = vpop.f32.mrf.mxu0  ;;  %v11177_v38 = vor.u32 %v12471_v0, %v11176_v63  ;;  %4530 = vmatpush.bf16.msra.mxu1 %v10153_v3  ;;  %v10600_v3 = vld [vmem:[%s13226_s10 + $0x910] sm:$0xf] }
 0x237   : > { %v4105_v7 = vadd.f32 %v4104_v6, %v13752_v18  ;;  %v4249_v20 = vadd.f32 %v4248_v39, %v4200_v35  ;;  %4348 = vmatmul.bf16.gmra.mxu1 %v13367_v51  ;;  %v12327_v57 = vld [vmem:[%s13226_s10 + $0x94c] sm:$0xf0] }
 0x238   : > { %4628 = vmatpush.bf16.msra.mxu3 %v11177_v38  ;;  %v9576_v38 = vld [vmem:[%s13226_s10 + $0x110] sm:$0xf] }
 0x239   : > { %v4154_v1 = vadd.f32 %v4153_v4, %v4105_v7  ;;  %4299 = vmatmul.bf16.gmra.mxu0 %v13365_v50  ;;  %v6879_v32 = vmax.f32 %v4249_v20, 0.0  ;;  %4397 = vmatmul.bf16.gmra.mxu2 %v13369_v52 }
 0x23b   : > { %4446 = vmatmul.bf16.gmra.mxu3 %v13371_v53  ;;  %v13797_v62 = vpack.c.bf16 %v6879_v32, %v6863_v17 }
 0x23c   : > { %v4202_v36 = vpop.f32.mrf.mxu2  ;;  %v4155_v4 = vpop.f32.mrf.mxu1 }
 0x23d   : > { %v4203_v35 = vadd.f32 %v4202_v36, %v4154_v1 }
 0x23e   : > { %v4251_v39 = vpop.f32.mrf.mxu3  ;;  %v4106_v6 = vpop.f32.mrf.mxu0 }
 0x23f   : > { %v4107_v7 = vadd.f32 %v4106_v6, %v13752_v18  ;;  %v4252_v20 = vadd.f32 %v4251_v39, %v4203_v35  ;;  %v10601_v35 = vor.u32 %v12327_v57, %v10600_v3  ;;  %v12071_v39 = vld [vmem:[%s13226_s10 + $0x14c] sm:$0xf0] }
 0x240   : > { %v11112_v6 = vld [vmem:[%s13226_s10 + $0xd10] sm:$0xf] }
 0x241   : > { %v4156_v61 = vadd.f32 %v4155_v4, %v4107_v7  ;;  %v6895_v36 = vmax.f32 %v4252_v20, 0.0  ;;  %v12455_v7 = vld [vmem:[%s13226_s10 + $0xd4c] sm:$0xf0]  ;;  %v9577_v20 = vor.u32 %v12071_v39, %v9576_v38  ;;  %4580 = vmatpush.bf16.msra.mxu2 %v10601_v35 }
 0x242   : > { %v11113_v29 = vor.u32 %v12455_v7, %v11112_v6  ;;  %v10088_v3 = vld [vmem:[%s13226_s10 + $0x510] sm:$0xf] }
 0x243   : > { %4482 = vmatpush.bf16.msra.mxu0 %v9577_v20  ;;  %v12199_v57 = vld [vmem:[%s13226_s10 + $0x54c] sm:$0xf0] }
 0x244   : > { %v4204_v17 = vpop.f32.mrf.mxu2  ;;  %v4158_v33 = vpop.f32.mrf.mxu1  ;;  %4629 = vmatpush.bf16.msra.mxu3 %v11113_v29  ;;  %v10089_v31 = vor.u32 %v12199_v57, %v10088_v3  ;;  %v12311_v29 = vld [vmem:[%s13226_s10 + $0x8cc] sm:$0xf0] }
 0x245   : > { %v4205_v32 = vadd.f32 %v4204_v17, %v4156_v61 }
 0x246   : > { %v4253_v1 = vpop.f32.mrf.mxu3  ;;  %v4109_v60 = vpop.f32.mrf.mxu0  ;;  %4531 = vmatpush.bf16.msra.mxu1 %v10089_v31  ;;  %v10536_v31 = vld [vmem:[%s13226_s10 + $0x890] sm:$0xf] }
 0x247   : > { %v4110_v59 = vadd.f32 %v4109_v60, %v13752_v18  ;;  %v4254_v63 = vadd.f32 %v4253_v1, %v4205_v32  ;;  %4353 = vmatmul.bf16.gmra.mxu1 %v13387_v14 }
 0x249   : > { %v4159_v0 = vadd.f32 %v4158_v33, %v4110_v59  ;;  %4304 = vmatmul.bf16.gmra.mxu0 %v13385_v13  ;;  %v6911_v56 = vmax.f32 %v4254_v63, 0.0  ;;  %4402 = vmatmul.bf16.gmra.mxu2 %v13389_v15 }
 0x24b   : > { %4451 = vmatmul.bf16.gmra.mxu3 %v13391_v16  ;;  %v13813_v4 = vpack.c.bf16 %v6911_v56, %v6895_v36 }
 0x24c   : > { %v4207_v61 = vpop.f32.mrf.mxu2  ;;  %v4160_v59 = vpop.f32.mrf.mxu1 }
 0x24d   : > { %15888 = vst [vmem:[#allocation32_spill] sm:$0xff] %v13813_v4  ;;  %v4208_v17 = vadd.f32 %v4207_v61, %v4159_v0 }
 0x24e   : > { %v4256_v32 = vpop.f32.mrf.mxu3  ;;  %v4111_v1 = vpop.f32.mrf.mxu0 }
 0x24f   : > { %v4112_v60 = vadd.f32 %v4111_v1, %v13752_v18  ;;  %v4257_v33 = vadd.f32 %v4256_v32, %v4208_v17  ;;  %v9512_v17 = vld [vmem:[%s13226_s10 + $0x90] sm:$0xf]  ;;  %v10537_v32 = vor.u32 %v12311_v29, %v10536_v31 }
 0x250   : > { %v12055_v1 = vld [vmem:[%s13226_s10 + $0xcc] sm:$0xf0] }
 0x251   : > { %v4161_v63 = vadd.f32 %v4160_v59, %v4112_v60  ;;  %v6927_v61 = vmax.f32 %v4257_v33, 0.0  ;;  %v11048_v60 = vld [vmem:[%s13226_s10 + $0xc90] sm:$0xf]  ;;  %v9513_v33 = vor.u32 %v12055_v1, %v9512_v17  ;;  %4581 = vmatpush.bf16.msra.mxu2 %v10537_v32 }
 0x252   : > { %v12439_v59 = vld [vmem:[%s13226_s10 + $0xccc] sm:$0xf0] }
 0x253   : > { %v11049_v57 = vor.u32 %v12439_v59, %v11048_v60  ;;  %4483 = vmatpush.bf16.msra.mxu0 %v9513_v33  ;;  %v10024_v31 = vld [vmem:[%s13226_s10 + $0x490] sm:$0xf] }
 0x254   : > { %v4209_v36 = vpop.f32.mrf.mxu2  ;;  %v4163_v39 = vpop.f32.mrf.mxu1  ;;  %v12183_v29 = vld [vmem:[%s13226_s10 + $0x4cc] sm:$0xf0] }
 0x255   : > { %v4210_v56 = vadd.f32 %v4209_v36, %v4161_v63  ;;  %4630 = vmatpush.bf16.msra.mxu3 %v11049_v57  ;;  %v10025_v4 = vor.u32 %v12183_v29, %v10024_v31  ;;  %v12295_v57 = vld [vmem:[%s13226_s10 + $0x84c] sm:$0xf0] }
 0x256   : > { %v4258_v0 = vpop.f32.mrf.mxu3  ;;  %v4114_v38 = vpop.f32.mrf.mxu0 }
 0x257   : > { %v4115_v35 = vadd.f32 %v4114_v38, %v13752_v18  ;;  %v4259_v6 = vadd.f32 %v4258_v0, %v4210_v56  ;;  %4358 = vmatmul.bf16.gmra.mxu1 %v13407_v42 }
 0x258   : > { %4532 = vmatpush.bf16.msra.mxu1 %v10025_v4  ;;  %v10472_v4 = vld [vmem:[%s13226_s10 + $0x810] sm:$0xf] }
 0x259   : > { %v4164_v7 = vadd.f32 %v4163_v39, %v4115_v35  ;;  %4309 = vmatmul.bf16.gmra.mxu0 %v13405_v41  ;;  %v6943_v20 = vmax.f32 %v4259_v6, 0.0  ;;  %4407 = vmatmul.bf16.gmra.mxu2 %v13409_v43 }
 0x25b   : > { %4456 = vmatmul.bf16.gmra.mxu3 %v13411_v44  ;;  %v13829_v63 = vpack.c.bf16 %v6943_v20, %v6927_v61 }
 0x25c   : > { %v4212_v3 = vpop.f32.mrf.mxu2  ;;  %v4165_v35 = vpop.f32.mrf.mxu1 }
 0x25d   : > { %15889 = vst [vmem:[#allocation33_spill] sm:$0xff] %v13829_v63  ;;  %v4213_v36 = vadd.f32 %v4212_v3, %v4164_v7 }
 0x25e   : > { %v4261_v56 = vpop.f32.mrf.mxu3  ;;  %v4116_v0 = vpop.f32.mrf.mxu0 }
 0x25f   : > { %v4117_v38 = vadd.f32 %v4116_v0, %v13752_v18  ;;  %v4262_v39 = vadd.f32 %v4261_v56, %v4213_v36  ;;  %v9448_v36 = vld [vmem:[%s13226_s10 + $0x10] sm:$0xf]  ;;  %v10473_v56 = vor.u32 %v12295_v57, %v10472_v4 }
 0x260   : > { %v12039_v0 = vld [vmem:[%s13226_s10 + $0x4c] sm:$0xf0] }
 0x261   : > { %v4166_v6 = vadd.f32 %v4165_v35, %v4117_v38  ;;  %v6959_v3 = vmax.f32 %v4262_v39, 0.0  ;;  %v10984_v38 = vld [vmem:[%s13226_s10 + $0xc10] sm:$0xf]  ;;  %v9449_v39 = vor.u32 %v12039_v0, %v9448_v36  ;;  %4582 = vmatpush.bf16.msra.mxu2 %v10473_v56 }
 0x262   : > { %v12423_v35 = vld [vmem:[%s13226_s10 + $0xc4c] sm:$0xf0] }
 0x263   : > { %v10985_v29 = vor.u32 %v12423_v35, %v10984_v38  ;;  %4484 = vmatpush.bf16.msra.mxu0 %v9449_v39  ;;  %v9960_v4 = vld [vmem:[%s13226_s10 + $0x410] sm:$0xf] }
 0x264   : > { %v4214_v61 = vpop.f32.mrf.mxu2  ;;  %v4168_v1 = vpop.f32.mrf.mxu1  ;;  %v12167_v57 = vld [vmem:[%s13226_s10 + $0x44c] sm:$0xf0] }
 0x265   : > { %v4215_v20 = vadd.f32 %v4214_v61, %v4166_v6  ;;  %4631 = vmatpush.bf16.msra.mxu3 %v10985_v29  ;;  %v9961_v63 = vor.u32 %v12167_v57, %v9960_v4  ;;  %v10922_v29 = vld [vmem:[%s13226_s10 + $0xbd0] sm:$0xf0] }
 0x266   : > { %v4263_v7 = vpop.f32.mrf.mxu3  ;;  %v4119_v17 = vpop.f32.mrf.mxu0 }
 0x267   : > { %v4120_v32 = vadd.f32 %v4119_v17, %v13752_v18  ;;  %v4264_v60 = vadd.f32 %v4263_v7, %v4215_v20  ;;  %4363 = vmatmul.bf16.gmra.mxu1 %v13427_v10 }
 0x268   : > { %4533 = vmatpush.bf16.msra.mxu1 %v9961_v63  ;;  %v12399_v63 = vld [vmem:[%s13226_s10 + $0xb94] sm:$0xf] }
 0x269   : > { %v4169_v59 = vadd.f32 %v4168_v1, %v4120_v32  ;;  %4314 = vmatmul.bf16.gmra.mxu0 %v13425_v9  ;;  %v6975_v33 = vmax.f32 %v4264_v60, 0.0  ;;  %4412 = vmatmul.bf16.gmra.mxu2 %v13429_v11 }
 0x26b   : > { %4461 = vmatmul.bf16.gmra.mxu3 %v13431_v12  ;;  %v13845_v6 = vpack.c.bf16 %v6975_v33, %v6959_v3 }
 0x26c   : > { %v4217_v31 = vpop.f32.mrf.mxu2  ;;  %v4170_v32 = vpop.f32.mrf.mxu1 }
 0x26d   : > { %15890 = vst [vmem:[#allocation34_spill] sm:$0xff] %v13845_v6  ;;  %v4218_v61 = vadd.f32 %v4217_v31, %v4169_v59 }
 0x26e   : > { %v4266_v20 = vpop.f32.mrf.mxu3  ;;  %v4121_v7 = vpop.f32.mrf.mxu0 }
 0x26f   : > { %v4122_v17 = vadd.f32 %v4121_v7, %v13752_v18  ;;  %v4267_v1 = vadd.f32 %v4266_v20, %v4218_v61  ;;  %v12143_v61 = vld [vmem:[%s13226_s10 + $0x394] sm:$0xf]  ;;  %v10925_v20 = vor.u32 %v12399_v63, %v10922_v29 }
 0x270   : > { %v9898_v7 = vld [vmem:[%s13226_s10 + $0x3d0] sm:$0xf0] }
 0x271   : > { %v4171_v60 = vadd.f32 %v4170_v32, %v4122_v17  ;;  %v6991_v31 = vmax.f32 %v4267_v1, 0.0  ;;  %v12527_v17 = vld [vmem:[%s13226_s10 + $0xf94] sm:$0xf]  ;;  %v9901_v1 = vor.u32 %v12143_v61, %v9898_v7  ;;  %4771 = vmatpush.bf16.msrb.mxu2 %v10925_v20 }
 0x272   : > { %v11434_v32 = vld [vmem:[%s13226_s10 + $0xfd0] sm:$0xf0] }
 0x273   : > { %v11437_v57 = vor.u32 %v12527_v17, %v11434_v32  ;;  %4673 = vmatpush.bf16.msrb.mxu0 %v9901_v1  ;;  %v12271_v63 = vld [vmem:[%s13226_s10 + $0x794] sm:$0xf] }
 0x274   : > { %v4219_v3 = vpop.f32.mrf.mxu2  ;;  %v4173_v0 = vpop.f32.mrf.mxu1  ;;  %v10410_v29 = vld [vmem:[%s13226_s10 + $0x7d0] sm:$0xf0] }
 0x275   : > { %v4220_v33 = vadd.f32 %v4219_v3, %v4171_v60  ;;  %4820 = vmatpush.bf16.msrb.mxu3 %v11437_v57  ;;  %v10413_v6 = vor.u32 %v12271_v63, %v10410_v29  ;;  %v10858_v57 = vld [vmem:[%s13226_s10 + $0xb50] sm:$0xf0] }
 0x276   : > { %v4268_v59 = vpop.f32.mrf.mxu3  ;;  %v4124_v36 = vpop.f32.mrf.mxu0  ;;  %v11370_v63 = vld [vmem:[%s13226_s10 + $0xf50] sm:$0xf0] }
 0x277   : > { %v4125_v56 = vadd.f32 %v4124_v36, %v13752_v18  ;;  %v4269_v38 = vadd.f32 %v4268_v59, %v4220_v33  ;;  %4368 = vmatmul.bf16.gmra.mxu1 %v13447_v46 }
 0x278   : > { %4722 = vmatpush.bf16.msrb.mxu1 %v10413_v6  ;;  %v12383_v6 = vld [vmem:[%s13226_s10 + $0xb14] sm:$0xf] }
 0x279   : > { %v4174_v35 = vadd.f32 %v4173_v0, %v4125_v56  ;;  %4319 = vmatmul.bf16.gmra.mxu0 %v13445_v45  ;;  %v7007_v39 = vmax.f32 %v4269_v38, 0.0  ;;  %4417 = vmatmul.bf16.gmra.mxu2 %v13449_v47 }
 0x27b   : > { %4466 = vmatmul.bf16.gmra.mxu3 %v13451_v48  ;;  %v13861_v60 = vpack.c.bf16 %v7007_v39, %v6991_v31 }
 0x27c   : > { %v4222_v4 = vpop.f32.mrf.mxu2  ;;  %v4175_v56 = vpop.f32.mrf.mxu1 }
 0x27d   : > { %15891 = vst [vmem:[#allocation35_spill] sm:$0xff] %v13861_v60  ;;  %v4223_v3 = vadd.f32 %v4222_v4, %v4174_v35 }
 0x27e   : > { %v4271_v33 = vpop.f32.mrf.mxu3  ;;  %v4126_v59 = vpop.f32.mrf.mxu0 }
 0x27f   : > { %v4127_v36 = vadd.f32 %v4126_v59, %v13752_v18  ;;  %v4272_v0 = vadd.f32 %v4271_v33, %v4223_v3  ;;  %v12127_v3 = vld [vmem:[%s13226_s10 + $0x314] sm:$0xf] }
 0x281   : > { %v4176_v38 = vadd.f32 %v4175_v56, %v4127_v36  ;;  %v7023_v4 = vmax.f32 %v4272_v0, 0.0  ;;  %v10861_v36 = vor.u32 %v12383_v6, %v10858_v57  ;;  %v9834_v56 = vld [vmem:[%s13226_s10 + $0x350] sm:$0xf0]  ;;  %v13883_v6 = vperm.slane %v13749_v30, 3 }
 0x283   : > { %4772 = vmatpush.bf16.msrb.mxu2 %v10861_v36 }
 0x284   : > { %v4224_v31 = vpop.f32.mrf.mxu2  ;;  %v4178_v7 = vpop.f32.mrf.mxu1 }
 0x285   : > { %v4225_v39 = vadd.f32 %v4224_v31, %v4176_v38  ;;  %v12511_v38 = vld [vmem:[%s13226_s10 + $0xf14] sm:$0xf] }
 0x286   : > { %v4273_v35 = vpop.f32.mrf.mxu3  ;;  %v4129_v61 = vpop.f32.mrf.mxu0 }
 0x287   : > { %v4130_v20 = vadd.f32 %v4129_v61, %v13752_v18  ;;  %v4274_v17 = vadd.f32 %v4273_v35, %v4225_v39  ;;  %4373 = vmatmul.bf16.gmra.mxu1 %v13467_v22  ;;  %v9837_v39 = vor.u32 %v12127_v3, %v9834_v56  ;;  %v11373_v35 = vor.u32 %v12511_v38, %v11370_v63 }
 0x289   : > { %v4179_v32 = vadd.f32 %v4178_v7, %v4130_v20  ;;  %4324 = vmatmul.bf16.gmra.mxu0 %v13465_v21  ;;  %v7039_v1 = vmax.f32 %v4274_v17, 0.0  ;;  %4422 = vmatmul.bf16.gmra.mxu2 %v13469_v23 }
 0x28a   : > { %4674 = vmatpush.bf16.msrb.mxu0 %v9837_v39  ;;  %4821 = vmatpush.bf16.msrb.mxu3 %v11373_v35  ;;  %v12111_v39 = vld [vmem:[%s13226_s10 + $0x294] sm:$0xf] }
 0x28b   : > { %4471 = vmatmul.bf16.gmra.mxu3 %v13471_v24  ;;  %v13874_v33 = vpack.c.bf16 %v7039_v1, %v7023_v4  ;;  %v12255_v4 = vld [vmem:[%s13226_s10 + $0x714] sm:$0xf] }
 0x28c   : > { %v4227_v59 = vpop.f32.mrf.mxu2  ;;  %v4180_v20 = vpop.f32.mrf.mxu1  ;;  %v10346_v1 = vld [vmem:[%s13226_s10 + $0x750] sm:$0xf0] }
 0x28d   : > { %15892 = vst [vmem:[#allocation36_spill] sm:$0xff] %v13874_v33  ;;  %v4228_v0 = vadd.f32 %v4227_v59, %v4179_v32  ;;  %v10349_v57 = vor.u32 %v12255_v4, %v10346_v1 }
 0x28e   : > { %v4276_v29 = vpop.f32.mrf.mxu3  ;;  %v4131_v31 = vpop.f32.mrf.mxu0 }
 0x28f   : > { %v4132_v61 = vadd.f32 %v4131_v31, %v13752_v18  ;;  %v4277_v7 = vadd.f32 %v4276_v29, %v4228_v0  ;;  %4723 = vmatpush.bf16.msrb.mxu1 %v10349_v57  ;;  %v12367_v29 = vld [vmem:[%s13226_s10 + $0xa94] sm:$0xf] }
 0x290   : > { %v10794_v31 = vld [vmem:[%s13226_s10 + $0xad0] sm:$0xf0] }
 0x291   : > { %v4181_v17 = vadd.f32 %v4180_v20, %v4132_v61  ;;  %v7055_v30 = vmax.f32 %v4277_v7, 0.0  ;;  %v10797_v35 = vor.u32 %v12367_v29, %v10794_v31  ;;  %v9770_v61 = vld [vmem:[%s13226_s10 + $0x2d0] sm:$0xf0] }
 0x292   : > { %v12495_v20 = vld [vmem:[%s13226_s10 + $0xe94] sm:$0xf]  ;;  %v9773_v7 = vor.u32 %v12111_v39, %v9770_v61 }
 0x293   : > { %4773 = vmatpush.bf16.msrb.mxu2 %v10797_v35  ;;  %v12239_v29 = vld [vmem:[%s13226_s10 + $0x694] sm:$0xf] }
 0x294   : > { %v4229_v32 = vpop.f32.mrf.mxu2  ;;  %v4339_v56 = vpop.f32.mrf.mxu1  ;;  %4675 = vmatpush.bf16.msrb.mxu0 %v9773_v7  ;;  %v10282_v31 = vld [vmem:[%s13226_s10 + $0x6d0] sm:$0xf0] }
 0x295   : > { %v4230_v3 = vadd.f32 %v4229_v32, %v4181_v17  ;;  %v11306_v17 = vld [vmem:[%s13226_s10 + $0xed0] sm:$0xf0]  ;;  %v10285_v33 = vor.u32 %v12239_v29, %v10282_v31 }
 0x296   : > { %v4278_v59 = vpop.f32.mrf.mxu3  ;;  %v4290_v18 = vpop.f32.mrf.mxu0  ;;  %v11309_v57 = vor.u32 %v12495_v20, %v11306_v17 }
 0x297   : > { %v4291_v36 = vadd.f32 %v4290_v18, %v13883_v6  ;;  %v4279_v38 = vadd.f32 %v4278_v59, %v4230_v3  ;;  %4534 = vmatmul.bf16.vlgmr.msra.gmra.mxu1 %v13321_v54 }
 0x298   : > { %4822 = vmatpush.bf16.msrb.mxu3 %v11309_v57  ;;  %4724 = vmatpush.bf16.msrb.mxu1 %v10285_v33  ;;  %v12351_v33 = vld [vmem:[%s13226_s10 + $0xa14] sm:$0xf] }
 0x299   : > { %v4340_v63 = vadd.f32 %v4339_v56, %v4291_v36  ;;  %4485 = vmatmul.bf16.vlgmr.msra.gmra.mxu0 %v13316_v49  ;;  %v7071_v0 = vmax.f32 %v4279_v38, 0.0  ;;  %4583 = vmatmul.bf16.vlgmr.msra.gmra.mxu2 %v13323_v55  ;;  %v10730_v57 = vld [vmem:[%s13226_s10 + $0xa50] sm:$0xf0] }
 0x29b   : > { %4632 = vmatmul.bf16.vlgmr.msra.gmra.mxu3 %v13327_v58  ;;  %v13896_v4 = vpack.c.bf16 %v7071_v0, %v7055_v30 }
 0x29c   : > { %v4388_v1 = vpop.f32.mrf.mxu2  ;;  %v4341_v36 = vpop.f32.mrf.mxu1 }
 0x29d   : > { %15893 = vst [vmem:[#allocation37_spill] sm:$0xff] %v13896_v4  ;;  %v4389_v32 = vadd.f32 %v4388_v1, %v4340_v63  ;;  %v10154_v4 = vld [vmem:[%s13226_s10 + $0x5d0] sm:$0xf0] }
 0x29e   : > { %v4437_v3 = vpop.f32.mrf.mxu3  ;;  %v4292_v59 = vpop.f32.mrf.mxu0 }
 0x29f   : > { %v4293_v18 = vadd.f32 %v4292_v59, %v13883_v6  ;;  %v4438_v56 = vadd.f32 %v4437_v3, %v4389_v32  ;;  %v12095_v32 = vld [vmem:[%s13226_s10 + $0x214] sm:$0xf]  ;;  %v10733_v59 = vor.u32 %v12351_v33, %v10730_v57 }
 0x2a1   : > { %v4342_v38 = vadd.f32 %v4341_v36, %v4293_v18  ;;  %v6832_v1 = vmax.f32 %v4438_v56, 0.0  ;;  %v9706_v18 = vld [vmem:[%s13226_s10 + $0x250] sm:$0xf0]  ;;  %4774 = vmatpush.bf16.msrb.mxu2 %v10733_v59 }
 0x2a2   : > { %v12479_v36 = vld [vmem:[%s13226_s10 + $0xe14] sm:$0xf]  ;;  %v9709_v56 = vor.u32 %v12095_v32, %v9706_v18 }
 0x2a4   : > { %v4390_v30 = vpop.f32.mrf.mxu2  ;;  %v4344_v61 = vpop.f32.mrf.mxu1  ;;  %4676 = vmatpush.bf16.msrb.mxu0 %v9709_v56 }
 0x2a5   : > { %v4391_v0 = vadd.f32 %v4390_v30, %v4342_v38  ;;  %v11242_v38 = vld [vmem:[%s13226_s10 + $0xe50] sm:$0xf0] }
 0x2a6   : > { %v4439_v63 = vpop.f32.mrf.mxu3  ;;  %v4295_v39 = vpop.f32.mrf.mxu0  ;;  %v11245_v31 = vor.u32 %v12479_v36, %v11242_v38 }
 0x2a7   : > { %v4296_v35 = vadd.f32 %v4295_v39, %v13883_v6  ;;  %v4440_v20 = vadd.f32 %v4439_v63, %v4391_v0  ;;  %4539 = vmatmul.bf16.gmra.mxu1 %v13347_v26 }
 0x2a8   : > { %4823 = vmatpush.bf16.msrb.mxu3 %v11245_v31 }
 0x2a9   : > { %v4345_v17 = vadd.f32 %v4344_v61, %v4296_v35  ;;  %4490 = vmatmul.bf16.gmra.mxu0 %v13345_v25  ;;  %v6848_v7 = vmax.f32 %v4440_v20, 0.0  ;;  %4588 = vmatmul.bf16.gmra.mxu2 %v13349_v27 }
 0x2ab   : > { %4637 = vmatmul.bf16.gmra.mxu3 %v13351_v28  ;;  %v13909_v3 = vpack.c.bf16 %v6848_v7, %v6832_v1  ;;  %v12223_v1 = vld [vmem:[%s13226_s10 + $0x614] sm:$0xf] }
 0x2ac   : > { %v4393_v29 = vpop.f32.mrf.mxu2  ;;  %v4346_v35 = vpop.f32.mrf.mxu1  ;;  %v10218_v7 = vld [vmem:[%s13226_s10 + $0x650] sm:$0xf0] }
 0x2ad   : > { %v4394_v30 = vadd.f32 %v4393_v29, %v4345_v17  ;;  %v10221_v33 = vor.u32 %v12223_v1, %v10218_v7  ;;  %v11178_v1 = vld [vmem:[%s13226_s10 + $0xdd0] sm:$0xf0] }
 0x2ae   : > { %v4442_v0 = vpop.f32.mrf.mxu3  ;;  %v4297_v63 = vpop.f32.mrf.mxu0 }
 0x2af   : > { %v4298_v39 = vadd.f32 %v4297_v63, %v13883_v6  ;;  %v4443_v61 = vadd.f32 %v4442_v0, %v4394_v30  ;;  %4725 = vmatpush.bf16.msrb.mxu1 %v10221_v33  ;;  %v12335_v30 = vld [vmem:[%s13226_s10 + $0x994] sm:$0xf] }
 0x2b0   : > { %v10666_v0 = vld [vmem:[%s13226_s10 + $0x9d0] sm:$0xf0] }
 0x2b1   : > { %v4347_v20 = vadd.f32 %v4346_v35, %v4298_v39  ;;  %v6864_v56 = vmax.f32 %v4443_v61, 0.0  ;;  %v12079_v63 = vld [vmem:[%s13226_s10 + $0x194] sm:$0xf]  ;;  %v10669_v39 = vor.u32 %v12335_v30, %v10666_v0 }
 0x2b2   : > { %v9642_v35 = vld [vmem:[%s13226_s10 + $0x1d0] sm:$0xf0] }
 0x2b3   : > { %v9645_v61 = vor.u32 %v12079_v63, %v9642_v35  ;;  %4775 = vmatpush.bf16.msrb.mxu2 %v10669_v39  ;;  %v12207_v0 = vld [vmem:[%s13226_s10 + $0x594] sm:$0xf] }
 0x2b4   : > { %v4395_v57 = vpop.f32.mrf.mxu2  ;;  %v4349_v36 = vpop.f32.mrf.mxu1  ;;  %v10157_v60 = vor.u32 %v12207_v0, %v10154_v4 }
 0x2b5   : > { %v4396_v32 = vadd.f32 %v4395_v57, %v4347_v20  ;;  %v12463_v20 = vld [vmem:[%s13226_s10 + $0xd94] sm:$0xf]  ;;  %4677 = vmatpush.bf16.msrb.mxu0 %v9645_v61 }
 0x2b6   : > { %v4444_v17 = vpop.f32.mrf.mxu3  ;;  %v4300_v18 = vpop.f32.mrf.mxu0  ;;  %v11181_v57 = vor.u32 %v12463_v20, %v11178_v1  ;;  %4726 = vmatpush.bf16.msrb.mxu1 %v10157_v60  ;;  %v12319_v60 = vld [vmem:[%s13226_s10 + $0x914] sm:$0xf] }
 0x2b7   : > { %v4301_v59 = vadd.f32 %v4300_v18, %v13883_v6  ;;  %v4445_v38 = vadd.f32 %v4444_v17, %v4396_v32  ;;  %4544 = vmatmul.bf16.gmra.mxu1 %v13367_v51  ;;  %v10602_v61 = vld [vmem:[%s13226_s10 + $0x950] sm:$0xf0] }
 0x2b8   : > { %4824 = vmatpush.bf16.msrb.mxu3 %v11181_v57  ;;  %v12063_v57 = vld [vmem:[%s13226_s10 + $0x114] sm:$0xf] }
 0x2b9   : > { %v4350_v29 = vadd.f32 %v4349_v36, %v4301_v59  ;;  %4495 = vmatmul.bf16.gmra.mxu0 %v13365_v50  ;;  %v6880_v31 = vmax.f32 %v4445_v38, 0.0  ;;  %4593 = vmatmul.bf16.gmra.mxu2 %v13369_v52 }
 0x2bb   : > { %4642 = vmatmul.bf16.gmra.mxu3 %v13371_v53  ;;  %v13928_v7 = vpack.c.bf16 %v6880_v31, %v6864_v56 }
 0x2bc   : > { %v4398_v33 = vpop.f32.mrf.mxu2  ;;  %v4351_v36 = vpop.f32.mrf.mxu1 }
 0x2bd   : > { %v4399_v32 = vadd.f32 %v4398_v33, %v4350_v29 }
 0x2be   : > { %v4447_v17 = vpop.f32.mrf.mxu3  ;;  %v4302_v18 = vpop.f32.mrf.mxu0 }
 0x2bf   : > { %v4303_v59 = vadd.f32 %v4302_v18, %v13883_v6  ;;  %v4448_v38 = vadd.f32 %v4447_v17, %v4399_v32  ;;  %v10605_v32 = vor.u32 %v12319_v60, %v10602_v61  ;;  %v9578_v17 = vld [vmem:[%s13226_s10 + $0x150] sm:$0xf0] }
 0x2c0   : > { %v12447_v18 = vld [vmem:[%s13226_s10 + $0xd14] sm:$0xf] }
 0x2c1   : > { %v4352_v30 = vadd.f32 %v4351_v36, %v4303_v59  ;;  %v6896_v33 = vmax.f32 %v4448_v38, 0.0  ;;  %v11114_v59 = vld [vmem:[%s13226_s10 + $0xd50] sm:$0xf0]  ;;  %v9581_v38 = vor.u32 %v12063_v57, %v9578_v17  ;;  %4776 = vmatpush.bf16.msrb.mxu2 %v10605_v32 }
 0x2c2   : > { %v11117_v0 = vor.u32 %v12447_v18, %v11114_v59  ;;  %v12191_v60 = vld [vmem:[%s13226_s10 + $0x514] sm:$0xf] }
 0x2c3   : > { %4678 = vmatpush.bf16.msrb.mxu0 %v9581_v38  ;;  %v10090_v61 = vld [vmem:[%s13226_s10 + $0x550] sm:$0xf0] }
 0x2c4   : > { %v4400_v56 = vpop.f32.mrf.mxu2  ;;  %v4354_v35 = vpop.f32.mrf.mxu1  ;;  %4825 = vmatpush.bf16.msrb.mxu3 %v11117_v0  ;;  %v10093_v40 = vor.u32 %v12191_v60, %v10090_v61  ;;  %v10538_v0 = vld [vmem:[%s13226_s10 + $0x8d0] sm:$0xf0] }
 0x2c5   : > { %v4401_v31 = vadd.f32 %v4400_v56, %v4352_v30 }
 0x2c6   : > { %v4449_v29 = vpop.f32.mrf.mxu3  ;;  %v4305_v63 = vpop.f32.mrf.mxu0  ;;  %4727 = vmatpush.bf16.msrb.mxu1 %v10093_v40  ;;  %v12303_v40 = vld [vmem:[%s13226_s10 + $0x894] sm:$0xf] }
 0x2c7   : > { %v4306_v39 = vadd.f32 %v4305_v63, %v13883_v6  ;;  %v4450_v20 = vadd.f32 %v4449_v29, %v4401_v31  ;;  %4549 = vmatmul.bf16.gmra.mxu1 %v13387_v14 }
 0x2c9   : > { %v4355_v1 = vadd.f32 %v4354_v35, %v4306_v39  ;;  %4500 = vmatmul.bf16.gmra.mxu0 %v13385_v13  ;;  %v6912_v4 = vmax.f32 %v4450_v20, 0.0  ;;  %4598 = vmatmul.bf16.gmra.mxu2 %v13389_v15 }
 0x2cb   : > { %4647 = vmatmul.bf16.gmra.mxu3 %v13391_v16  ;;  %v13944_v36 = vpack.c.bf16 %v6912_v4, %v6896_v33 }
 0x2cc   : > { %v4403_v30 = vpop.f32.mrf.mxu2  ;;  %v4356_v39 = vpop.f32.mrf.mxu1 }
 0x2cd   : > { %15894 = vst [vmem:[#allocation38_spill] sm:$0xff] %v13944_v36  ;;  %v4404_v56 = vadd.f32 %v4403_v30, %v4355_v1 }
 0x2ce   : > { %v4452_v31 = vpop.f32.mrf.mxu3  ;;  %v4307_v29 = vpop.f32.mrf.mxu0 }
 0x2cf   : > { %v4308_v63 = vadd.f32 %v4307_v29, %v13883_v6  ;;  %v4453_v35 = vadd.f32 %v4452_v31, %v4404_v56  ;;  %v12047_v56 = vld [vmem:[%s13226_s10 + $0x94] sm:$0xf]  ;;  %v10541_v31 = vor.u32 %v12303_v40, %v10538_v0 }
 0x2d0   : > { %v9514_v29 = vld [vmem:[%s13226_s10 + $0xd0] sm:$0xf0] }
 0x2d1   : > { %v4357_v20 = vadd.f32 %v4356_v39, %v4308_v63  ;;  %v6928_v30 = vmax.f32 %v4453_v35, 0.0  ;;  %v12431_v63 = vld [vmem:[%s13226_s10 + $0xc94] sm:$0xf]  ;;  %v9517_v35 = vor.u32 %v12047_v56, %v9514_v29  ;;  %4777 = vmatpush.bf16.msrb.mxu2 %v10541_v31 }
 0x2d2   : > { %v11050_v39 = vld [vmem:[%s13226_s10 + $0xcd0] sm:$0xf0] }
 0x2d3   : > { %v11053_v61 = vor.u32 %v12431_v63, %v11050_v39  ;;  %4679 = vmatpush.bf16.msrb.mxu0 %v9517_v35  ;;  %v12175_v40 = vld [vmem:[%s13226_s10 + $0x494] sm:$0xf] }
 0x2d4   : > { %v4405_v33 = vpop.f32.mrf.mxu2  ;;  %v4359_v17 = vpop.f32.mrf.mxu1  ;;  %v10026_v0 = vld [vmem:[%s13226_s10 + $0x4d0] sm:$0xf0] }
 0x2d5   : > { %v4406_v4 = vadd.f32 %v4405_v33, %v4357_v20  ;;  %4826 = vmatpush.bf16.msrb.mxu3 %v11053_v61  ;;  %v10029_v36 = vor.u32 %v12175_v40, %v10026_v0  ;;  %v10474_v61 = vld [vmem:[%s13226_s10 + $0x850] sm:$0xf0] }
 0x2d6   : > { %v4454_v1 = vpop.f32.mrf.mxu3  ;;  %v4310_v57 = vpop.f32.mrf.mxu0 }
 0x2d7   : > { %v4311_v32 = vadd.f32 %v4310_v57, %v13883_v6  ;;  %v4455_v18 = vadd.f32 %v4454_v1, %v4406_v4  ;;  %4554 = vmatmul.bf16.gmra.mxu1 %v13407_v42 }
 0x2d8   : > { %4728 = vmatpush.bf16.msrb.mxu1 %v10029_v36  ;;  %v12287_v36 = vld [vmem:[%s13226_s10 + $0x814] sm:$0xf] }
 0x2d9   : > { %v4360_v59 = vadd.f32 %v4359_v17, %v4311_v32  ;;  %4505 = vmatmul.bf16.gmra.mxu0 %v13405_v41  ;;  %v6944_v38 = vmax.f32 %v4455_v18, 0.0  ;;  %4603 = vmatmul.bf16.gmra.mxu2 %v13409_v43 }
 0x2db   : > { %4652 = vmatmul.bf16.gmra.mxu3 %v13411_v44  ;;  %v13960_v20 = vpack.c.bf16 %v6944_v38, %v6928_v30 }
 0x2dc   : > { %v4408_v60 = vpop.f32.mrf.mxu2  ;;  %v4361_v32 = vpop.f32.mrf.mxu1 }
 0x2dd   : > { %15895 = vst [vmem:[#allocation39_spill] sm:$0xff] %v13960_v20  ;;  %v4409_v33 = vadd.f32 %v4408_v60, %v4360_v59 }
 0x2de   : > { %v4457_v4 = vpop.f32.mrf.mxu3  ;;  %v4312_v1 = vpop.f32.mrf.mxu0 }
 0x2df   : > { %v4313_v57 = vadd.f32 %v4312_v1, %v13883_v6  ;;  %v4458_v17 = vadd.f32 %v4457_v4, %v4409_v33  ;;  %v12031_v33 = vld [vmem:[%s13226_s10 + $0x14] sm:$0xf]  ;;  %v10477_v4 = vor.u32 %v12287_v36, %v10474_v61 }
 0x2e0   : > { %v9450_v1 = vld [vmem:[%s13226_s10 + $0x50] sm:$0xf0] }
 0x2e1   : > { %v4362_v18 = vadd.f32 %v4361_v32, %v4313_v57  ;;  %v6960_v60 = vmax.f32 %v4458_v17, 0.0  ;;  %v12415_v57 = vld [vmem:[%s13226_s10 + $0xc14] sm:$0xf]  ;;  %v9453_v17 = vor.u32 %v12031_v33, %v9450_v1  ;;  %4778 = vmatpush.bf16.msrb.mxu2 %v10477_v4 }
 0x2e2   : > { %v10986_v32 = vld [vmem:[%s13226_s10 + $0xc50] sm:$0xf0] }
 0x2e3   : > { %v10989_v0 = vor.u32 %v12415_v57, %v10986_v32  ;;  %4680 = vmatpush.bf16.msrb.mxu0 %v9453_v17  ;;  %v12159_v36 = vld [vmem:[%s13226_s10 + $0x414] sm:$0xf] }
 0x2e4   : > { %v4410_v30 = vpop.f32.mrf.mxu2  ;;  %v4364_v29 = vpop.f32.mrf.mxu1  ;;  %v9962_v61 = vld [vmem:[%s13226_s10 + $0x450] sm:$0xf0] }
 0x2e5   : > { %v4411_v38 = vadd.f32 %v4410_v30, %v4362_v18  ;;  %4827 = vmatpush.bf16.msrb.mxu3 %v10989_v0  ;;  %v9965_v20 = vor.u32 %v12159_v36, %v9962_v61  ;;  %v12408_v0 = vld [vmem:[%s13226_s10 + $0xbd4] sm:$0xf0] }
 0x2e6   : > { %v4459_v59 = vpop.f32.mrf.mxu3  ;;  %v4315_v56 = vpop.f32.mrf.mxu0 }
 0x2e7   : > { %v4316_v31 = vadd.f32 %v4315_v56, %v13883_v6  ;;  %v4460_v63 = vadd.f32 %v4459_v59, %v4411_v38  ;;  %4559 = vmatmul.bf16.gmra.mxu1 %v13427_v10 }
 0x2e8   : > { %4729 = vmatpush.bf16.msrb.mxu1 %v9965_v20  ;;  %v10928_v20 = vld [vmem:[%s13226_s10 + $0xb98] sm:$0xf] }
 0x2e9   : > { %v4365_v39 = vadd.f32 %v4364_v29, %v4316_v31  ;;  %4510 = vmatmul.bf16.gmra.mxu0 %v13425_v9  ;;  %v6976_v35 = vmax.f32 %v4460_v63, 0.0  ;;  %4608 = vmatmul.bf16.gmra.mxu2 %v13429_v11 }
 0x2eb   : > { %4657 = vmatmul.bf16.gmra.mxu3 %v13431_v12  ;;  %v13976_v18 = vpack.c.bf16 %v6976_v35, %v6960_v60 }
 0x2ec   : > { %v4413_v40 = vpop.f32.mrf.mxu2  ;;  %v4366_v31 = vpop.f32.mrf.mxu1 }
 0x2ed   : > { %15896 = vst [vmem:[#allocation40_spill] sm:$0xff] %v13976_v18  ;;  %v4414_v30 = vadd.f32 %v4413_v40, %v4365_v39 }
 0x2ee   : > { %v4462_v38 = vpop.f32.mrf.mxu3  ;;  %v4317_v59 = vpop.f32.mrf.mxu0 }
 0x2ef   : > { %v4318_v56 = vadd.f32 %v4317_v59, %v13883_v6  ;;  %v4463_v29 = vadd.f32 %v4462_v38, %v4414_v30  ;;  %v9904_v30 = vld [vmem:[%s13226_s10 + $0x398] sm:$0xf]  ;;  %v10929_v38 = vor.u32 %v12408_v0, %v10928_v20 }
 0x2f0   : > { %v12152_v59 = vld [vmem:[%s13226_s10 + $0x3d4] sm:$0xf0] }
 0x2f1   : > { %v4367_v63 = vadd.f32 %v4366_v31, %v4318_v56  ;;  %v6992_v40 = vmax.f32 %v4463_v29, 0.0  ;;  %v11440_v56 = vld [vmem:[%s13226_s10 + $0xf98] sm:$0xf]  ;;  %v9905_v29 = vor.u32 %v12152_v59, %v9904_v30  ;;  %4967 = vmatpush.bf16.msra.mxu2 %v10929_v38 }
 0x2f2   : > { %v12536_v31 = vld [vmem:[%s13226_s10 + $0xfd4] sm:$0xf0] }
 0x2f3   : > { %v11441_v61 = vor.u32 %v12536_v31, %v11440_v56  ;;  %4869 = vmatpush.bf16.msra.mxu0 %v9905_v29  ;;  %v10416_v20 = vld [vmem:[%s13226_s10 + $0x798] sm:$0xf] }
 0x2f4   : > { %v4415_v60 = vpop.f32.mrf.mxu2  ;;  %v4369_v1 = vpop.f32.mrf.mxu1  ;;  %v12280_v0 = vld [vmem:[%s13226_s10 + $0x7d4] sm:$0xf0] }
 0x2f5   : > { %v4416_v35 = vadd.f32 %v4415_v60, %v4367_v63  ;;  %5016 = vmatpush.bf16.msra.mxu3 %v11441_v61  ;;  %v10417_v18 = vor.u32 %v12280_v0, %v10416_v20  ;;  %v12392_v61 = vld [vmem:[%s13226_s10 + $0xb54] sm:$0xf0] }
 0x2f6   : > { %v4464_v39 = vpop.f32.mrf.mxu3  ;;  %v4320_v33 = vpop.f32.mrf.mxu0 }
 0x2f7   : > { %v4321_v4 = vadd.f32 %v4320_v33, %v13883_v6  ;;  %v4465_v57 = vadd.f32 %v4464_v39, %v4416_v35  ;;  %4564 = vmatmul.bf16.gmra.mxu1 %v13447_v46 }
 0x2f8   : > { %4918 = vmatpush.bf16.msra.mxu1 %v10417_v18  ;;  %v10864_v18 = vld [vmem:[%s13226_s10 + $0xb18] sm:$0xf] }
 0x2f9   : > { %v4370_v32 = vadd.f32 %v4369_v1, %v4321_v4  ;;  %4515 = vmatmul.bf16.gmra.mxu0 %v13445_v45  ;;  %v7008_v17 = vmax.f32 %v4465_v57, 0.0  ;;  %4613 = vmatmul.bf16.gmra.mxu2 %v13449_v47 }
 0x2fb   : > { %4662 = vmatmul.bf16.gmra.mxu3 %v13451_v48  ;;  %v13992_v63 = vpack.c.bf16 %v7008_v17, %v6992_v40 }
 0x2fc   : > { %v4418_v36 = vpop.f32.mrf.mxu2  ;;  %v4371_v4 = vpop.f32.mrf.mxu1 }
 0x2fd   : > { %15897 = vst [vmem:[#allocation41_spill] sm:$0xff] %v13992_v63  ;;  %v4419_v60 = vadd.f32 %v4418_v36, %v4370_v32  ;;  %v12248_v63 = vld [vmem:[%s13226_s10 + $0x6d4] sm:$0xf0] }
 0x2fe   : > { %v4467_v35 = vpop.f32.mrf.mxu3  ;;  %v4322_v39 = vpop.f32.mrf.mxu0 }
 0x2ff   : > { %v4323_v33 = vadd.f32 %v4322_v39, %v13883_v6  ;;  %v4468_v1 = vadd.f32 %v4467_v35, %v4419_v60  ;;  %v9840_v60 = vld [vmem:[%s13226_s10 + $0x318] sm:$0xf] }
 0x301   : > { %v4372_v57 = vadd.f32 %v4371_v4, %v4323_v33  ;;  %v7024_v36 = vmax.f32 %v4468_v1, 0.0  ;;  %v10865_v33 = vor.u32 %v12392_v61, %v10864_v18  ;;  %v12136_v4 = vld [vmem:[%s13226_s10 + $0x354] sm:$0xf0]  ;;  %v14014_v18 = vld [vmem:[%s13232_s29] sm:$0xff] }
 0x302   : > { %v12520_v1 = vld [vmem:[%s13226_s10 + $0xf54] sm:$0xf0]  ;;  %v14017_v61 = vperm.slane %v14014_v18, 4 }
 0x303   : > { %4968 = vmatpush.bf16.msra.mxu2 %v10865_v33 }
 0x304   : > { %v4420_v40 = vpop.f32.mrf.mxu2  ;;  %v4374_v59 = vpop.f32.mrf.mxu1 }
 0x305   : > { %v4421_v17 = vadd.f32 %v4420_v40, %v4372_v57  ;;  %v11376_v57 = vld [vmem:[%s13226_s10 + $0xf18] sm:$0xf] }
 0x306   : > { %v4469_v32 = vpop.f32.mrf.mxu3  ;;  %v4325_v30 = vpop.f32.mrf.mxu0 }
 0x307   : > { %v4326_v38 = vadd.f32 %v4325_v30, %v13883_v6  ;;  %v4470_v56 = vadd.f32 %v4469_v32, %v4421_v17  ;;  %4569 = vmatmul.bf16.gmra.mxu1 %v13467_v22  ;;  %v9841_v17 = vor.u32 %v12136_v4, %v9840_v60  ;;  %v11377_v32 = vor.u32 %v12520_v1, %v11376_v57 }
 0x309   : > { %v4375_v31 = vadd.f32 %v4374_v59, %v4326_v38  ;;  %4520 = vmatmul.bf16.gmra.mxu0 %v13465_v21  ;;  %v7040_v29 = vmax.f32 %v4470_v56, 0.0  ;;  %4618 = vmatmul.bf16.gmra.mxu2 %v13469_v23 }
 0x30a   : > { %4870 = vmatpush.bf16.msra.mxu0 %v9841_v17  ;;  %5017 = vmatpush.bf16.msra.mxu3 %v11377_v32  ;;  %v10800_v17 = vld [vmem:[%s13226_s10 + $0xa98] sm:$0xf] }
 0x30b   : > { %4667 = vmatmul.bf16.gmra.mxu3 %v13471_v24  ;;  %v14005_v35 = vpack.c.bf16 %v7040_v29, %v7024_v36  ;;  %v10352_v36 = vld [vmem:[%s13226_s10 + $0x718] sm:$0xf] }
 0x30c   : > { %v4423_v39 = vpop.f32.mrf.mxu2  ;;  %v4376_v38 = vpop.f32.mrf.mxu1  ;;  %v12264_v29 = vld [vmem:[%s13226_s10 + $0x754] sm:$0xf0] }
 0x30d   : > { %15898 = vst [vmem:[#allocation42_spill] sm:$0xff] %v14005_v35  ;;  %v4424_v20 = vadd.f32 %v4423_v39, %v4375_v31  ;;  %v10353_v31 = vor.u32 %v12264_v29, %v10352_v36  ;;  %v12376_v32 = vld [vmem:[%s13226_s10 + $0xad4] sm:$0xf0] }
 0x30e   : > { %v4472_v0 = vpop.f32.mrf.mxu3  ;;  %v4327_v40 = vpop.f32.mrf.mxu0  ;;  %v11312_v36 = vld [vmem:[%s13226_s10 + $0xe98] sm:$0xf] }
 0x30f   : > { %v4328_v30 = vadd.f32 %v4327_v40, %v13883_v6  ;;  %v4473_v59 = vadd.f32 %v4472_v0, %v4424_v20  ;;  %4919 = vmatpush.bf16.msra.mxu1 %v10353_v31  ;;  %v12504_v29 = vld [vmem:[%s13226_s10 + $0xed4] sm:$0xf0] }
 0x310   : > { %v10288_v35 = vld [vmem:[%s13226_s10 + $0x698] sm:$0xf] }
 0x311   : > { %v4377_v56 = vadd.f32 %v4376_v38, %v4328_v30  ;;  %v7056_v0 = vmax.f32 %v4473_v59, 0.0  ;;  %v9776_v30 = vld [vmem:[%s13226_s10 + $0x298] sm:$0xf]  ;;  %v10801_v38 = vor.u32 %v12376_v32, %v10800_v17  ;;  %v10289_v19 = vor.u32 %v12248_v63, %v10288_v35 }
 0x312   : > { %v12360_v35 = vld [vmem:[%s13226_s10 + $0xa54] sm:$0xf0] }
 0x313   : > { %4969 = vmatpush.bf16.msra.mxu2 %v10801_v38  ;;  %4920 = vmatpush.bf16.msra.mxu1 %v10289_v19  ;;  %v10736_v19 = vld [vmem:[%s13226_s10 + $0xa18] sm:$0xf] }
 0x314   : > { %v4425_v39 = vpop.f32.mrf.mxu2  ;;  %v4535_v57 = vpop.f32.mrf.mxu1 }
 0x315   : > { %v4426_v6 = vadd.f32 %v4425_v39, %v4377_v56  ;;  %v12120_v56 = vld [vmem:[%s13226_s10 + $0x2d4] sm:$0xf0] }
 0x316   : > { %v4474_v60 = vpop.f32.mrf.mxu3  ;;  %v4486_v33 = vpop.f32.mrf.mxu0  ;;  %v9777_v59 = vor.u32 %v12120_v56, %v9776_v30 }
 0x317   : > { %v4487_v4 = vadd.f32 %v4486_v33, %v14017_v61  ;;  %v4475_v1 = vadd.f32 %v4474_v60, %v4426_v6  ;;  %4730 = vmatmul.bf16.vlgmr.msrb.gmra.mxu1 %v13321_v54  ;;  %v11313_v6 = vor.u32 %v12504_v29, %v11312_v36 }
 0x318   : > { %4871 = vmatpush.bf16.msra.mxu0 %v9777_v59  ;;  %v9712_v59 = vld [vmem:[%s13226_s10 + $0x218] sm:$0xf] }
 0x319   : > { %v4536_v20 = vadd.f32 %v4535_v57, %v4487_v4  ;;  %4681 = vmatmul.bf16.vlgmr.msrb.gmra.mxu0 %v13316_v49  ;;  %v7072_v40 = vmax.f32 %v4475_v1, 0.0  ;;  %4779 = vmatmul.bf16.vlgmr.msrb.gmra.mxu2 %v13323_v55 }
 0x31a   : > { %5018 = vmatpush.bf16.msra.mxu3 %v11313_v6 }
 0x31b   : > { %4828 = vmatmul.bf16.vlgmr.msrb.gmra.mxu3 %v13327_v58  ;;  %v14030_v31 = vpack.c.bf16 %v7072_v40, %v7056_v0 }
 0x31c   : > { %v4584_v39 = vpop.f32.mrf.mxu2  ;;  %v4537_v1 = vpop.f32.mrf.mxu1 }
 0x31d   : > { %15899 = vst [vmem:[#allocation43_spill] sm:$0xff] %v14030_v31  ;;  %v4585_v60 = vadd.f32 %v4584_v39, %v4536_v20 }
 0x31e   : > { %v4633_v33 = vpop.f32.mrf.mxu3  ;;  %v4488_v4 = vpop.f32.mrf.mxu0 }
 0x31f   : > { %v4489_v57 = vadd.f32 %v4488_v4, %v14017_v61  ;;  %v4634_v17 = vadd.f32 %v4633_v33, %v4585_v60  ;;  %v10737_v60 = vor.u32 %v12360_v35, %v10736_v19  ;;  %v12104_v33 = vld [vmem:[%s13226_s10 + $0x254] sm:$0xf0] }
 0x320   : > { %v11248_v4 = vld [vmem:[%s13226_s10 + $0xe18] sm:$0xf] }
 0x321   : > { %v4538_v32 = vadd.f32 %v4537_v1, %v4489_v57  ;;  %v6833_v39 = vmax.f32 %v4634_v17, 0.0  ;;  %v12488_v57 = vld [vmem:[%s13226_s10 + $0xe54] sm:$0xf0]  ;;  %v9713_v17 = vor.u32 %v12104_v33, %v9712_v59  ;;  %4970 = vmatpush.bf16.msra.mxu2 %v10737_v60 }
 0x323   : > { %4872 = vmatpush.bf16.msra.mxu0 %v9713_v17 }
 0x324   : > { %v4586_v0 = vpop.f32.mrf.mxu2  ;;  %v4540_v56 = vpop.f32.mrf.mxu1 }
 0x325   : > { %v4587_v40 = vadd.f32 %v4586_v0, %v4538_v32  ;;  %v11249_v32 = vor.u32 %v12488_v57, %v11248_v4 }
 0x326   : > { %v4635_v20 = vpop.f32.mrf.mxu3  ;;  %v4491_v30 = vpop.f32.mrf.mxu0 }
 0x327   : > { %v4492_v38 = vadd.f32 %v4491_v30, %v14017_v61  ;;  %v4636_v36 = vadd.f32 %v4635_v20, %v4587_v40  ;;  %4735 = vmatmul.bf16.gmra.mxu1 %v13347_v26  ;;  %5019 = vmatpush.bf16.msra.mxu3 %v11249_v32 }
 0x329   : > { %v4541_v29 = vadd.f32 %v4540_v56, %v4492_v38  ;;  %4686 = vmatmul.bf16.gmra.mxu0 %v13345_v25  ;;  %v6849_v63 = vmax.f32 %v4636_v36, 0.0  ;;  %4784 = vmatmul.bf16.gmra.mxu2 %v13349_v27 }
 0x32b   : > { %4833 = vmatmul.bf16.gmra.mxu3 %v13351_v28  ;;  %v14043_v6 = vpack.c.bf16 %v6849_v63, %v6833_v39  ;;  %v10224_v39 = vld [vmem:[%s13226_s10 + $0x618] sm:$0xf] }
 0x32c   : > { %v4589_v1 = vpop.f32.mrf.mxu2  ;;  %v4542_v38 = vpop.f32.mrf.mxu1  ;;  %v12232_v63 = vld [vmem:[%s13226_s10 + $0x654] sm:$0xf0] }
 0x32d   : > { %15900 = vst [vmem:[#allocation44_spill] sm:$0xff] %v14043_v6  ;;  %v4590_v0 = vadd.f32 %v4589_v1, %v4541_v29  ;;  %v10225_v19 = vor.u32 %v12232_v63, %v10224_v39  ;;  %v12472_v39 = vld [vmem:[%s13226_s10 + $0xdd4] sm:$0xf0] }
 0x32e   : > { %v4638_v40 = vpop.f32.mrf.mxu3  ;;  %v4493_v20 = vpop.f32.mrf.mxu0  ;;  %v12216_v6 = vld [vmem:[%s13226_s10 + $0x5d4] sm:$0xf0] }
 0x32f   : > { %v4494_v30 = vadd.f32 %v4493_v20, %v14017_v61  ;;  %v4639_v56 = vadd.f32 %v4638_v40, %v4590_v0  ;;  %4921 = vmatpush.bf16.msra.mxu1 %v10225_v19  ;;  %v10672_v0 = vld [vmem:[%s13226_s10 + $0x998] sm:$0xf] }
 0x330   : > { %v12344_v40 = vld [vmem:[%s13226_s10 + $0x9d4] sm:$0xf0] }
 0x331   : > { %v4543_v36 = vadd.f32 %v4542_v38, %v4494_v30  ;;  %v6865_v17 = vmax.f32 %v4639_v56, 0.0  ;;  %v9648_v20 = vld [vmem:[%s13226_s10 + $0x198] sm:$0xf]  ;;  %v10673_v30 = vor.u32 %v12344_v40, %v10672_v0 }
 0x332   : > { %v12088_v38 = vld [vmem:[%s13226_s10 + $0x1d4] sm:$0xf0] }
 0x333   : > { %v9649_v56 = vor.u32 %v12088_v38, %v9648_v20  ;;  %4971 = vmatpush.bf16.msra.mxu2 %v10673_v30  ;;  %v10160_v40 = vld [vmem:[%s13226_s10 + $0x598] sm:$0xf] }
 0x334   : > { %v4591_v35 = vpop.f32.mrf.mxu2  ;;  %v4545_v4 = vpop.f32.mrf.mxu1  ;;  %v10161_v31 = vor.u32 %v12216_v6, %v10160_v40 }
 0x335   : > { %v4592_v59 = vadd.f32 %v4591_v35, %v4543_v36  ;;  %v11184_v36 = vld [vmem:[%s13226_s10 + $0xd98] sm:$0xf]  ;;  %4873 = vmatpush.bf16.msra.mxu0 %v9649_v56 }
 0x336   : > { %v4640_v29 = vpop.f32.mrf.mxu3  ;;  %v4496_v33 = vpop.f32.mrf.mxu0  ;;  %v11185_v35 = vor.u32 %v12472_v39, %v11184_v36  ;;  %4922 = vmatpush.bf16.msra.mxu1 %v10161_v31  ;;  %v10608_v31 = vld [vmem:[%s13226_s10 + $0x918] sm:$0xf] }
 0x337   : > { %v4497_v60 = vadd.f32 %v4496_v33, %v14017_v61  ;;  %v4641_v57 = vadd.f32 %v4640_v29, %v4592_v59  ;;  %4740 = vmatmul.bf16.gmra.mxu1 %v13367_v51  ;;  %v12328_v56 = vld [vmem:[%s13226_s10 + $0x954] sm:$0xf0] }
 0x338   : > { %5020 = vmatpush.bf16.msra.mxu3 %v11185_v35  ;;  %v9584_v35 = vld [vmem:[%s13226_s10 + $0x118] sm:$0xf] }
 0x339   : > { %v4546_v1 = vadd.f32 %v4545_v4, %v4497_v60  ;;  %4691 = vmatmul.bf16.gmra.mxu0 %v13365_v50  ;;  %v6881_v32 = vmax.f32 %v4641_v57, 0.0  ;;  %4789 = vmatmul.bf16.gmra.mxu2 %v13369_v52 }
 0x33b   : > { %4838 = vmatmul.bf16.gmra.mxu3 %v13371_v53  ;;  %v14062_v63 = vpack.c.bf16 %v6881_v32, %v6865_v17 }
 0x33c   : > { %v4594_v19 = vpop.f32.mrf.mxu2  ;;  %v4547_v4 = vpop.f32.mrf.mxu1 }
 0x33d   : > { %15901 = vst [vmem:[#allocation45_spill] sm:$0xff] %v14062_v63  ;;  %v4595_v59 = vadd.f32 %v4594_v19, %v4546_v1 }
 0x33e   : > { %v4643_v29 = vpop.f32.mrf.mxu3  ;;  %v4498_v33 = vpop.f32.mrf.mxu0 }
 0x33f   : > { %v4499_v60 = vadd.f32 %v4498_v33, %v14017_v61  ;;  %v4644_v57 = vadd.f32 %v4643_v29, %v4595_v59  ;;  %v10609_v59 = vor.u32 %v12328_v56, %v10608_v31  ;;  %v12072_v29 = vld [vmem:[%s13226_s10 + $0x154] sm:$0xf0] }
 0x340   : > { %v11120_v33 = vld [vmem:[%s13226_s10 + $0xd18] sm:$0xf] }
 0x341   : > { %v4548_v0 = vadd.f32 %v4547_v4, %v4499_v60  ;;  %v6897_v19 = vmax.f32 %v4644_v57, 0.0  ;;  %v12456_v60 = vld [vmem:[%s13226_s10 + $0xd54] sm:$0xf0]  ;;  %v9585_v57 = vor.u32 %v12072_v29, %v9584_v35  ;;  %4972 = vmatpush.bf16.msra.mxu2 %v10609_v59 }
 0x342   : > { %v11121_v40 = vor.u32 %v12456_v60, %v11120_v33  ;;  %v10096_v31 = vld [vmem:[%s13226_s10 + $0x518] sm:$0xf] }
 0x343   : > { %4874 = vmatpush.bf16.msra.mxu0 %v9585_v57  ;;  %v12200_v56 = vld [vmem:[%s13226_s10 + $0x554] sm:$0xf0] }
 0x344   : > { %v4596_v17 = vpop.f32.mrf.mxu2  ;;  %v4550_v38 = vpop.f32.mrf.mxu1  ;;  %5021 = vmatpush.bf16.msra.mxu3 %v11121_v40  ;;  %v10097_v63 = vor.u32 %v12200_v56, %v10096_v31  ;;  %v12312_v40 = vld [vmem:[%s13226_s10 + $0x8d4] sm:$0xf0] }
 0x345   : > { %v4597_v32 = vadd.f32 %v4596_v17, %v4548_v0 }
 0x346   : > { %v4645_v1 = vpop.f32.mrf.mxu3  ;;  %v4501_v20 = vpop.f32.mrf.mxu0  ;;  %4923 = vmatpush.bf16.msra.mxu1 %v10097_v63  ;;  %v10544_v63 = vld [vmem:[%s13226_s10 + $0x898] sm:$0xf] }
 0x347   : > { %v4502_v30 = vadd.f32 %v4501_v20, %v14017_v61  ;;  %v4646_v36 = vadd.f32 %v4645_v1, %v4597_v32  ;;  %4745 = vmatmul.bf16.gmra.mxu1 %v13387_v14 }
 0x349   : > { %v4551_v39 = vadd.f32 %v4550_v38, %v4502_v30  ;;  %4696 = vmatmul.bf16.gmra.mxu0 %v13385_v13  ;;  %v6913_v6 = vmax.f32 %v4646_v36, 0.0  ;;  %4794 = vmatmul.bf16.gmra.mxu2 %v13389_v15 }
 0x34b   : > { %4843 = vmatmul.bf16.gmra.mxu3 %v13391_v16  ;;  %v14078_v4 = vpack.c.bf16 %v6913_v6, %v6897_v19 }
 0x34c   : > { %v4599_v0 = vpop.f32.mrf.mxu2  ;;  %v4552_v30 = vpop.f32.mrf.mxu1 }
 0x34d   : > { %15902 = vst [vmem:[#allocation46_spill] sm:$0xff] %v14078_v4  ;;  %v4600_v17 = vadd.f32 %v4599_v0, %v4551_v39 }
 0x34e   : > { %v4648_v32 = vpop.f32.mrf.mxu3  ;;  %v4503_v1 = vpop.f32.mrf.mxu0 }
 0x34f   : > { %v4504_v20 = vadd.f32 %v4503_v1, %v14017_v61  ;;  %v4649_v38 = vadd.f32 %v4648_v32, %v4600_v17  ;;  %v9520_v17 = vld [vmem:[%s13226_s10 + $0x98] sm:$0xf]  ;;  %v10545_v32 = vor.u32 %v12312_v40, %v10544_v63 }
 0x350   : > { %v12056_v1 = vld [vmem:[%s13226_s10 + $0xd4] sm:$0xf0] }
 0x351   : > { %v4553_v36 = vadd.f32 %v4552_v30, %v4504_v20  ;;  %v6929_v0 = vmax.f32 %v4649_v38, 0.0  ;;  %v11056_v20 = vld [vmem:[%s13226_s10 + $0xc98] sm:$0xf]  ;;  %v9521_v38 = vor.u32 %v12056_v1, %v9520_v17  ;;  %4973 = vmatpush.bf16.msra.mxu2 %v10545_v32 }
 0x352   : > { %v12440_v30 = vld [vmem:[%s13226_s10 + $0xcd4] sm:$0xf0] }
 0x353   : > { %v11057_v56 = vor.u32 %v12440_v30, %v11056_v20  ;;  %4875 = vmatpush.bf16.msra.mxu0 %v9521_v38  ;;  %v10032_v63 = vld [vmem:[%s13226_s10 + $0x498] sm:$0xf] }
 0x354   : > { %v4601_v19 = vpop.f32.mrf.mxu2  ;;  %v4555_v29 = vpop.f32.mrf.mxu1  ;;  %v12184_v40 = vld [vmem:[%s13226_s10 + $0x4d4] sm:$0xf0] }
 0x355   : > { %v4602_v6 = vadd.f32 %v4601_v19, %v4553_v36  ;;  %5022 = vmatpush.bf16.msra.mxu3 %v11057_v56  ;;  %v10033_v4 = vor.u32 %v12184_v40, %v10032_v63  ;;  %v12296_v56 = vld [vmem:[%s13226_s10 + $0x854] sm:$0xf0] }
 0x356   : > { %v4650_v39 = vpop.f32.mrf.mxu3  ;;  %v4506_v35 = vpop.f32.mrf.mxu0 }
 0x357   : > { %v4507_v59 = vadd.f32 %v4506_v35, %v14017_v61  ;;  %v4651_v33 = vadd.f32 %v4650_v39, %v4602_v6  ;;  %4750 = vmatmul.bf16.gmra.mxu1 %v13407_v42 }
 0x358   : > { %4924 = vmatpush.bf16.msra.mxu1 %v10033_v4  ;;  %v10480_v4 = vld [vmem:[%s13226_s10 + $0x818] sm:$0xf] }
 0x359   : > { %v4556_v60 = vadd.f32 %v4555_v29, %v4507_v59  ;;  %4701 = vmatmul.bf16.gmra.mxu0 %v13405_v41  ;;  %v6945_v57 = vmax.f32 %v4651_v33, 0.0  ;;  %4799 = vmatmul.bf16.gmra.mxu2 %v13409_v43 }
 0x35b   : > { %4848 = vmatmul.bf16.gmra.mxu3 %v13411_v44  ;;  %v14094_v36 = vpack.c.bf16 %v6945_v57, %v6929_v0 }
 0x35c   : > { %v4604_v31 = vpop.f32.mrf.mxu2  ;;  %v4557_v59 = vpop.f32.mrf.mxu1 }
 0x35d   : > { %15903 = vst [vmem:[#allocation47_spill] sm:$0xff] %v14094_v36  ;;  %v4605_v19 = vadd.f32 %v4604_v31, %v4556_v60 }
 0x35e   : > { %v4653_v6 = vpop.f32.mrf.mxu3  ;;  %v4508_v39 = vpop.f32.mrf.mxu0 }
 0x35f   : > { %v4509_v35 = vadd.f32 %v4508_v39, %v14017_v61  ;;  %v4654_v29 = vadd.f32 %v4653_v6, %v4605_v19  ;;  %v9456_v19 = vld [vmem:[%s13226_s10 + $0x18] sm:$0xf]  ;;  %v10481_v6 = vor.u32 %v12296_v56, %v10480_v4 }
 0x360   : > { %v12040_v39 = vld [vmem:[%s13226_s10 + $0x54] sm:$0xf0] }
 0x361   : > { %v4558_v33 = vadd.f32 %v4557_v59, %v4509_v35  ;;  %v6961_v31 = vmax.f32 %v4654_v29, 0.0  ;;  %v10992_v35 = vld [vmem:[%s13226_s10 + $0xc18] sm:$0xf]  ;;  %v9457_v29 = vor.u32 %v12040_v39, %v9456_v19  ;;  %4974 = vmatpush.bf16.msra.mxu2 %v10481_v6 }
 0x362   : > { %v12424_v59 = vld [vmem:[%s13226_s10 + $0xc54] sm:$0xf0] }
 0x363   : > { %v10993_v40 = vor.u32 %v12424_v59, %v10992_v35  ;;  %4876 = vmatpush.bf16.msra.mxu0 %v9457_v29  ;;  %v9968_v4 = vld [vmem:[%s13226_s10 + $0x418] sm:$0xf] }
 0x364   : > { %v4606_v0 = vpop.f32.mrf.mxu2  ;;  %v4560_v1 = vpop.f32.mrf.mxu1  ;;  %v12168_v56 = vld [vmem:[%s13226_s10 + $0x454] sm:$0xf0] }
 0x365   : > { %v4607_v57 = vadd.f32 %v4606_v0, %v4558_v33  ;;  %5023 = vmatpush.bf16.msra.mxu3 %v10993_v40  ;;  %v9969_v36 = vor.u32 %v12168_v56, %v9968_v4  ;;  %v10930_v40 = vld [vmem:[%s13226_s10 + $0xbd8] sm:$0xf0] }
 0x366   : > { %v4655_v60 = vpop.f32.mrf.mxu3  ;;  %v4511_v17 = vpop.f32.mrf.mxu0 }
 0x367   : > { %v4512_v32 = vadd.f32 %v4511_v17, %v14017_v61  ;;  %v4656_v20 = vadd.f32 %v4655_v60, %v4607_v57  ;;  %4755 = vmatmul.bf16.gmra.mxu1 %v13427_v10 }
 0x368   : > { %4925 = vmatpush.bf16.msra.mxu1 %v9969_v36  ;;  %v12400_v36 = vld [vmem:[%s13226_s10 + $0xb9c] sm:$0xf] }
 0x369   : > { %v4561_v30 = vadd.f32 %v4560_v1, %v4512_v32  ;;  %4706 = vmatmul.bf16.gmra.mxu0 %v13425_v9  ;;  %v6977_v38 = vmax.f32 %v4656_v20, 0.0  ;;  %4804 = vmatmul.bf16.gmra.mxu2 %v13429_v11 }
 0x36b   : > { %4853 = vmatmul.bf16.gmra.mxu3 %v13431_v12  ;;  %v14110_v33 = vpack.c.bf16 %v6977_v38, %v6961_v31 }
 0x36c   : > { %v4609_v63 = vpop.f32.mrf.mxu2  ;;  %v4562_v32 = vpop.f32.mrf.mxu1 }
 0x36d   : > { %15904 = vst [vmem:[#allocation48_spill] sm:$0xff] %v14110_v33  ;;  %v4610_v0 = vadd.f32 %v4609_v63, %v4561_v30 }
 0x36e   : > { %v4658_v57 = vpop.f32.mrf.mxu3  ;;  %v4513_v60 = vpop.f32.mrf.mxu0 }
 0x36f   : > { %v4514_v17 = vadd.f32 %v4513_v60, %v14017_v61  ;;  %v4659_v1 = vadd.f32 %v4658_v57, %v4610_v0  ;;  %v12144_v0 = vld [vmem:[%s13226_s10 + $0x39c] sm:$0xf]  ;;  %v10933_v57 = vor.u32 %v12400_v36, %v10930_v40 }
 0x370   : > { %v9906_v60 = vld [vmem:[%s13226_s10 + $0x3d8] sm:$0xf0] }
 0x371   : > { %v4563_v20 = vadd.f32 %v4562_v32, %v4514_v17  ;;  %v6993_v63 = vmax.f32 %v4659_v1, 0.0  ;;  %v12528_v17 = vld [vmem:[%s13226_s10 + $0xf9c] sm:$0xf]  ;;  %v9909_v1 = vor.u32 %v12144_v0, %v9906_v60  ;;  %5163 = vmatpush.bf16.msrb.mxu2 %v10933_v57 }
 0x372   : > { %v11442_v32 = vld [vmem:[%s13226_s10 + $0xfd8] sm:$0xf0] }
 0x373   : > { %v11445_v56 = vor.u32 %v12528_v17, %v11442_v32  ;;  %5065 = vmatpush.bf16.msrb.mxu0 %v9909_v1  ;;  %v12272_v36 = vld [vmem:[%s13226_s10 + $0x79c] sm:$0xf] }
 0x374   : > { %v4611_v31 = vpop.f32.mrf.mxu2  ;;  %v4565_v39 = vpop.f32.mrf.mxu1  ;;  %v10418_v40 = vld [vmem:[%s13226_s10 + $0x7d8] sm:$0xf0] }
 0x375   : > { %v4612_v38 = vadd.f32 %v4611_v31, %v4563_v20  ;;  %5212 = vmatpush.bf16.msrb.mxu3 %v11445_v56  ;;  %v10421_v33 = vor.u32 %v12272_v36, %v10418_v40  ;;  %v10866_v56 = vld [vmem:[%s13226_s10 + $0xb58] sm:$0xf0] }
 0x376   : > { %v4660_v30 = vpop.f32.mrf.mxu3  ;;  %v4516_v19 = vpop.f32.mrf.mxu0  ;;  %v11378_v36 = vld [vmem:[%s13226_s10 + $0xf58] sm:$0xf0] }
 0x377   : > { %v4517_v6 = vadd.f32 %v4516_v19, %v14017_v61  ;;  %v4661_v35 = vadd.f32 %v4660_v30, %v4612_v38  ;;  %4760 = vmatmul.bf16.gmra.mxu1 %v13447_v46 }
 0x378   : > { %5114 = vmatpush.bf16.msrb.mxu1 %v10421_v33  ;;  %v12384_v33 = vld [vmem:[%s13226_s10 + $0xb1c] sm:$0xf] }
 0x379   : > { %v4566_v59 = vadd.f32 %v4565_v39, %v4517_v6  ;;  %4711 = vmatmul.bf16.gmra.mxu0 %v13445_v45  ;;  %v7009_v29 = vmax.f32 %v4661_v35, 0.0  ;;  %4809 = vmatmul.bf16.gmra.mxu2 %v13449_v47 }
 0x37b   : > { %4858 = vmatmul.bf16.gmra.mxu3 %v13451_v48  ;;  %v14126_v20 = vpack.c.bf16 %v7009_v29, %v6993_v63 }
 0x37c   : > { %v4614_v4 = vpop.f32.mrf.mxu2  ;;  %v4567_v6 = vpop.f32.mrf.mxu1 }
 0x37d   : > { %15905 = vst [vmem:[#allocation49_spill] sm:$0xff] %v14126_v20  ;;  %v4615_v31 = vadd.f32 %v4614_v4, %v4566_v59 }
 0x37e   : > { %v4663_v38 = vpop.f32.mrf.mxu3  ;;  %v4518_v30 = vpop.f32.mrf.mxu0 }
 0x37f   : > { %v4519_v19 = vadd.f32 %v4518_v30, %v14017_v61  ;;  %v4664_v39 = vadd.f32 %v4663_v38, %v4615_v31  ;;  %v12128_v31 = vld [vmem:[%s13226_s10 + $0x31c] sm:$0xf] }
 0x381   : > { %v4568_v35 = vadd.f32 %v4567_v6, %v4519_v19  ;;  %v7025_v4 = vmax.f32 %v4664_v39, 0.0  ;;  %v10869_v19 = vor.u32 %v12384_v33, %v10866_v56  ;;  %v9842_v6 = vld [vmem:[%s13226_s10 + $0x358] sm:$0xf0]  ;;  %v14148_v33 = vperm.slane %v14014_v18, 5 }
 0x383   : > { %5164 = vmatpush.bf16.msrb.mxu2 %v10869_v19 }
 0x384   : > { %v4616_v63 = vpop.f32.mrf.mxu2  ;;  %v4570_v60 = vpop.f32.mrf.mxu1 }
 0x385   : > { %v4617_v29 = vadd.f32 %v4616_v63, %v4568_v35  ;;  %v12512_v35 = vld [vmem:[%s13226_s10 + $0xf1c] sm:$0xf] }
 0x386   : > { %v4665_v59 = vpop.f32.mrf.mxu3  ;;  %v4521_v0 = vpop.f32.mrf.mxu0 }
 0x387   : > { %v4522_v57 = vadd.f32 %v4521_v0, %v14017_v61  ;;  %v4666_v17 = vadd.f32 %v4665_v59, %v4617_v29  ;;  %4765 = vmatmul.bf16.gmra.mxu1 %v13467_v22  ;;  %v9845_v29 = vor.u32 %v12128_v31, %v9842_v6  ;;  %v11381_v59 = vor.u32 %v12512_v35, %v11378_v36 }
 0x389   : > { %v4571_v32 = vadd.f32 %v4570_v60, %v4522_v57  ;;  %4716 = vmatmul.bf16.gmra.mxu0 %v13465_v21  ;;  %v7041_v1 = vmax.f32 %v4666_v17, 0.0  ;;  %4814 = vmatmul.bf16.gmra.mxu2 %v13469_v23 }
 0x38a   : > { %5066 = vmatpush.bf16.msrb.mxu0 %v9845_v29  ;;  %5213 = vmatpush.bf16.msrb.mxu3 %v11381_v59  ;;  %v12112_v29 = vld [vmem:[%s13226_s10 + $0x29c] sm:$0xf] }
 0x38b   : > { %4863 = vmatmul.bf16.gmra.mxu3 %v13471_v24  ;;  %v14139_v38 = vpack.c.bf16 %v7041_v1, %v7025_v4  ;;  %v12256_v4 = vld [vmem:[%s13226_s10 + $0x71c] sm:$0xf] }
 0x38c   : > { %v4619_v30 = vpop.f32.mrf.mxu2  ;;  %v4572_v57 = vpop.f32.mrf.mxu1  ;;  %v10354_v1 = vld [vmem:[%s13226_s10 + $0x758] sm:$0xf0] }
 0x38d   : > { %15906 = vst [vmem:[#allocation50_spill] sm:$0xff] %v14139_v38  ;;  %v4620_v39 = vadd.f32 %v4619_v30, %v4571_v32  ;;  %v10357_v56 = vor.u32 %v12256_v4, %v10354_v1 }
 0x38e   : > { %v4668_v40 = vpop.f32.mrf.mxu3  ;;  %v4523_v63 = vpop.f32.mrf.mxu0 }
 0x38f   : > { %v4524_v0 = vadd.f32 %v4523_v63, %v14017_v61  ;;  %v4669_v60 = vadd.f32 %v4668_v40, %v4620_v39  ;;  %5115 = vmatpush.bf16.msrb.mxu1 %v10357_v56  ;;  %v12368_v40 = vld [vmem:[%s13226_s10 + $0xa9c] sm:$0xf] }
 0x390   : > { %v10802_v63 = vld [vmem:[%s13226_s10 + $0xad8] sm:$0xf0] }
 0x391   : > { %v4573_v17 = vadd.f32 %v4572_v57, %v4524_v0  ;;  %v7057_v18 = vmax.f32 %v4669_v60, 0.0  ;;  %v10805_v59 = vor.u32 %v12368_v40, %v10802_v63  ;;  %v9778_v0 = vld [vmem:[%s13226_s10 + $0x2d8] sm:$0xf0] }
 0x392   : > { %v12496_v57 = vld [vmem:[%s13226_s10 + $0xe9c] sm:$0xf]  ;;  %v9781_v60 = vor.u32 %v12112_v29, %v9778_v0 }
 0x393   : > { %5165 = vmatpush.bf16.msrb.mxu2 %v10805_v59  ;;  %v12240_v40 = vld [vmem:[%s13226_s10 + $0x69c] sm:$0xf] }
 0x394   : > { %v4621_v32 = vpop.f32.mrf.mxu2  ;;  %v4731_v6 = vpop.f32.mrf.mxu1  ;;  %5067 = vmatpush.bf16.msrb.mxu0 %v9781_v60  ;;  %v10290_v63 = vld [vmem:[%s13226_s10 + $0x6d8] sm:$0xf0] }
 0x395   : > { %v4622_v31 = vadd.f32 %v4621_v32, %v4573_v17  ;;  %v11314_v17 = vld [vmem:[%s13226_s10 + $0xed8] sm:$0xf0]  ;;  %v10293_v38 = vor.u32 %v12240_v40, %v10290_v63 }
 0x396   : > { %v4670_v30 = vpop.f32.mrf.mxu3  ;;  %v4682_v61 = vpop.f32.mrf.mxu0  ;;  %v11317_v56 = vor.u32 %v12496_v57, %v11314_v17 }
 0x397   : > { %v4683_v19 = vadd.f32 %v4682_v61, %v14148_v33  ;;  %v4671_v35 = vadd.f32 %v4670_v30, %v4622_v31  ;;  %4926 = vmatmul.bf16.vlgmr.msra.gmra.mxu1 %v13321_v54 }
 0x398   : > { %5214 = vmatpush.bf16.msrb.mxu3 %v11317_v56  ;;  %5116 = vmatpush.bf16.msrb.mxu1 %v10293_v38  ;;  %v12352_v38 = vld [vmem:[%s13226_s10 + $0xa1c] sm:$0xf] }
 0x399   : > { %v4732_v36 = vadd.f32 %v4731_v6, %v4683_v19  ;;  %4877 = vmatmul.bf16.vlgmr.msra.gmra.mxu0 %v13316_v49  ;;  %v7073_v39 = vmax.f32 %v4671_v35, 0.0  ;;  %4975 = vmatmul.bf16.vlgmr.msra.gmra.mxu2 %v13323_v55  ;;  %v10738_v56 = vld [vmem:[%s13226_s10 + $0xa58] sm:$0xf0] }
 0x39b   : > { %5024 = vmatmul.bf16.vlgmr.msra.gmra.mxu3 %v13327_v58  ;;  %v14161_v4 = vpack.c.bf16 %v7073_v39, %v7057_v18 }
 0x39c   : > { %v4780_v1 = vpop.f32.mrf.mxu2  ;;  %v4733_v19 = vpop.f32.mrf.mxu1 }
 0x39d   : > { %15907 = vst [vmem:[#allocation51_spill] sm:$0xff] %v14161_v4  ;;  %v4781_v32 = vadd.f32 %v4780_v1, %v4732_v36  ;;  %v10162_v4 = vld [vmem:[%s13226_s10 + $0x5d8] sm:$0xf0] }
 0x39e   : > { %v4829_v31 = vpop.f32.mrf.mxu3  ;;  %v4684_v30 = vpop.f32.mrf.mxu0 }
 0x39f   : > { %v4685_v61 = vadd.f32 %v4684_v30, %v14148_v33  ;;  %v4830_v6 = vadd.f32 %v4829_v31, %v4781_v32  ;;  %v12096_v32 = vld [vmem:[%s13226_s10 + $0x21c] sm:$0xf]  ;;  %v10741_v30 = vor.u32 %v12352_v38, %v10738_v56 }
 0x3a1   : > { %v4734_v35 = vadd.f32 %v4733_v19, %v4685_v61  ;;  %v6834_v1 = vmax.f32 %v4830_v6, 0.0  ;;  %v9714_v61 = vld [vmem:[%s13226_s10 + $0x258] sm:$0xf0]  ;;  %5166 = vmatpush.bf16.msrb.mxu2 %v10741_v30 }
 0x3a2   : > { %v12480_v19 = vld [vmem:[%s13226_s10 + $0xe1c] sm:$0xf]  ;;  %v9717_v6 = vor.u32 %v12096_v32, %v9714_v61 }
 0x3a4   : > { %v4782_v18 = vpop.f32.mrf.mxu2  ;;  %v4736_v0 = vpop.f32.mrf.mxu1  ;;  %5068 = vmatpush.bf16.msrb.mxu0 %v9717_v6 }
 0x3a5   : > { %v4783_v39 = vadd.f32 %v4782_v18, %v4734_v35  ;;  %v11250_v35 = vld [vmem:[%s13226_s10 + $0xe58] sm:$0xf0] }
 0x3a6   : > { %v4831_v36 = vpop.f32.mrf.mxu3  ;;  %v4687_v29 = vpop.f32.mrf.mxu0  ;;  %v11253_v63 = vor.u32 %v12480_v19, %v11250_v35 }
 0x3a7   : > { %v4688_v59 = vadd.f32 %v4687_v29, %v14148_v33  ;;  %v4832_v57 = vadd.f32 %v4831_v36, %v4783_v39  ;;  %4931 = vmatmul.bf16.gmra.mxu1 %v13347_v26 }
 0x3a8   : > { %5215 = vmatpush.bf16.msrb.mxu3 %v11253_v63 }
 0x3a9   : > { %v4737_v17 = vadd.f32 %v4736_v0, %v4688_v59  ;;  %4882 = vmatmul.bf16.gmra.mxu0 %v13345_v25  ;;  %v6850_v60 = vmax.f32 %v4832_v57, 0.0  ;;  %4980 = vmatmul.bf16.gmra.mxu2 %v13349_v27 }
 0x3ab   : > { %5029 = vmatmul.bf16.gmra.mxu3 %v13351_v28  ;;  %v14174_v31 = vpack.c.bf16 %v6850_v60, %v6834_v1  ;;  %v12224_v1 = vld [vmem:[%s13226_s10 + $0x61c] sm:$0xf] }
 0x3ac   : > { %v4785_v40 = vpop.f32.mrf.mxu2  ;;  %v4738_v59 = vpop.f32.mrf.mxu1  ;;  %v10226_v60 = vld [vmem:[%s13226_s10 + $0x658] sm:$0xf0] }
 0x3ad   : > { %15908 = vst [vmem:[#allocation52_spill] sm:$0xff] %v14174_v31  ;;  %v4786_v18 = vadd.f32 %v4785_v40, %v4737_v17  ;;  %v10229_v38 = vor.u32 %v12224_v1, %v10226_v60  ;;  %v11186_v1 = vld [vmem:[%s13226_s10 + $0xdd8] sm:$0xf0] }
 0x3ae   : > { %v4834_v39 = vpop.f32.mrf.mxu3  ;;  %v4689_v36 = vpop.f32.mrf.mxu0 }
 0x3af   : > { %v4690_v29 = vadd.f32 %v4689_v36, %v14148_v33  ;;  %v4835_v0 = vadd.f32 %v4834_v39, %v4786_v18  ;;  %5117 = vmatpush.bf16.msrb.mxu1 %v10229_v38  ;;  %v12336_v18 = vld [vmem:[%s13226_s10 + $0x99c] sm:$0xf] }
 0x3b0   : > { %v10674_v39 = vld [vmem:[%s13226_s10 + $0x9d8] sm:$0xf0] }
 0x3b1   : > { %v4739_v57 = vadd.f32 %v4738_v59, %v4690_v29  ;;  %v6866_v6 = vmax.f32 %v4835_v0, 0.0  ;;  %v12080_v36 = vld [vmem:[%s13226_s10 + $0x19c] sm:$0xf]  ;;  %v10677_v29 = vor.u32 %v12336_v18, %v10674_v39 }
 0x3b2   : > { %v9650_v59 = vld [vmem:[%s13226_s10 + $0x1d8] sm:$0xf0] }
 0x3b3   : > { %v9653_v0 = vor.u32 %v12080_v36, %v9650_v59  ;;  %5167 = vmatpush.bf16.msrb.mxu2 %v10677_v29  ;;  %v12208_v39 = vld [vmem:[%s13226_s10 + $0x59c] sm:$0xf] }
 0x3b4   : > { %v4787_v56 = vpop.f32.mrf.mxu2  ;;  %v4741_v19 = vpop.f32.mrf.mxu1  ;;  %v10165_v20 = vor.u32 %v12208_v39, %v10162_v4 }
 0x3b5   : > { %v4788_v32 = vadd.f32 %v4787_v56, %v4739_v57  ;;  %v12464_v57 = vld [vmem:[%s13226_s10 + $0xd9c] sm:$0xf]  ;;  %5069 = vmatpush.bf16.msrb.mxu0 %v9653_v0 }
 0x3b6   : > { %v4836_v17 = vpop.f32.mrf.mxu3  ;;  %v4692_v61 = vpop.f32.mrf.mxu0  ;;  %v11189_v56 = vor.u32 %v12464_v57, %v11186_v1  ;;  %5118 = vmatpush.bf16.msrb.mxu1 %v10165_v20  ;;  %v12320_v20 = vld [vmem:[%s13226_s10 + $0x91c] sm:$0xf] }
 0x3b7   : > { %v4693_v30 = vadd.f32 %v4692_v61, %v14148_v33  ;;  %v4837_v35 = vadd.f32 %v4836_v17, %v4788_v32  ;;  %4936 = vmatmul.bf16.gmra.mxu1 %v13367_v51  ;;  %v10610_v0 = vld [vmem:[%s13226_s10 + $0x958] sm:$0xf0] }
 0x3b8   : > { %5216 = vmatpush.bf16.msrb.mxu3 %v11189_v56  ;;  %v12064_v56 = vld [vmem:[%s13226_s10 + $0x11c] sm:$0xf] }
 0x3b9   : > { %v4742_v40 = vadd.f32 %v4741_v19, %v4693_v30  ;;  %4887 = vmatmul.bf16.gmra.mxu0 %v13365_v50  ;;  %v6882_v63 = vmax.f32 %v4837_v35, 0.0  ;;  %4985 = vmatmul.bf16.gmra.mxu2 %v13369_v52 }
 0x3bb   : > { %5034 = vmatmul.bf16.gmra.mxu3 %v13371_v53  ;;  %v14193_v60 = vpack.c.bf16 %v6882_v63, %v6866_v6 }
 0x3bc   : > { %v4790_v38 = vpop.f32.mrf.mxu2  ;;  %v4743_v19 = vpop.f32.mrf.mxu1 }
 0x3bd   : > { %15909 = vst [vmem:[#allocation53_spill] sm:$0xff] %v14193_v60  ;;  %v4791_v32 = vadd.f32 %v4790_v38, %v4742_v40 }
 0x3be   : > { %v4839_v17 = vpop.f32.mrf.mxu3  ;;  %v4694_v61 = vpop.f32.mrf.mxu0 }
 0x3bf   : > { %v4695_v30 = vadd.f32 %v4694_v61, %v14148_v33  ;;  %v4840_v35 = vadd.f32 %v4839_v17, %v4791_v32  ;;  %v10613_v32 = vor.u32 %v12320_v20, %v10610_v0  ;;  %v9586_v17 = vld [vmem:[%s13226_s10 + $0x158] sm:$0xf0] }
 0x3c0   : > { %v12448_v61 = vld [vmem:[%s13226_s10 + $0xd1c] sm:$0xf] }
 0x3c1   : > { %v4744_v18 = vadd.f32 %v4743_v19, %v4695_v30  ;;  %v6898_v38 = vmax.f32 %v4840_v35, 0.0  ;;  %v11122_v30 = vld [vmem:[%s13226_s10 + $0xd58] sm:$0xf0]  ;;  %v9589_v35 = vor.u32 %v12064_v56, %v9586_v17  ;;  %5168 = vmatpush.bf16.msrb.mxu2 %v10613_v32 }
 0x3c2   : > { %v11125_v39 = vor.u32 %v12448_v61, %v11122_v30  ;;  %v12192_v20 = vld [vmem:[%s13226_s10 + $0x51c] sm:$0xf] }
 0x3c3   : > { %5070 = vmatpush.bf16.msrb.mxu0 %v9589_v35  ;;  %v10098_v0 = vld [vmem:[%s13226_s10 + $0x558] sm:$0xf0] }
 0x3c4   : > { %v4792_v6 = vpop.f32.mrf.mxu2  ;;  %v4746_v59 = vpop.f32.mrf.mxu1  ;;  %5217 = vmatpush.bf16.msrb.mxu3 %v11125_v39  ;;  %v10101_v60 = vor.u32 %v12192_v20, %v10098_v0  ;;  %v10546_v39 = vld [vmem:[%s13226_s10 + $0x8d8] sm:$0xf0] }
 0x3c5   : > { %v4793_v63 = vadd.f32 %v4792_v6, %v4744_v18 }
 0x3c6   : > { %v4841_v40 = vpop.f32.mrf.mxu3  ;;  %v4697_v36 = vpop.f32.mrf.mxu0  ;;  %5119 = vmatpush.bf16.msrb.mxu1 %v10101_v60  ;;  %v12304_v60 = vld [vmem:[%s13226_s10 + $0x89c] sm:$0xf] }
 0x3c7   : > { %v4698_v29 = vadd.f32 %v4697_v36, %v14148_v33  ;;  %v4842_v57 = vadd.f32 %v4841_v40, %v4793_v63  ;;  %4941 = vmatmul.bf16.gmra.mxu1 %v13387_v14 }
 0x3c9   : > { %v4747_v1 = vadd.f32 %v4746_v59, %v4698_v29  ;;  %4892 = vmatmul.bf16.gmra.mxu0 %v13385_v13  ;;  %v6914_v4 = vmax.f32 %v4842_v57, 0.0  ;;  %4990 = vmatmul.bf16.gmra.mxu2 %v13389_v15 }
 0x3cb   : > { %5039 = vmatmul.bf16.gmra.mxu3 %v13391_v16  ;;  %v14209_v19 = vpack.c.bf16 %v6914_v4, %v6898_v38 }
 0x3cc   : > { %v4795_v18 = vpop.f32.mrf.mxu2  ;;  %v4748_v29 = vpop.f32.mrf.mxu1 }
 0x3cd   : > { %15910 = vst [vmem:[#allocation54_spill] sm:$0xff] %v14209_v19  ;;  %v4796_v6 = vadd.f32 %v4795_v18, %v4747_v1 }
 0x3ce   : > { %v4844_v63 = vpop.f32.mrf.mxu3  ;;  %v4699_v40 = vpop.f32.mrf.mxu0 }
 0x3cf   : > { %v4700_v36 = vadd.f32 %v4699_v40, %v14148_v33  ;;  %v4845_v59 = vadd.f32 %v4844_v63, %v4796_v6  ;;  %v12048_v6 = vld [vmem:[%s13226_s10 + $0x9c] sm:$0xf]  ;;  %v10549_v63 = vor.u32 %v12304_v60, %v10546_v39 }
 0x3d0   : > { %v9522_v40 = vld [vmem:[%s13226_s10 + $0xd8] sm:$0xf0] }
 0x3d1   : > { %v4749_v57 = vadd.f32 %v4748_v29, %v4700_v36  ;;  %v6930_v18 = vmax.f32 %v4845_v59, 0.0  ;;  %v12432_v36 = vld [vmem:[%s13226_s10 + $0xc9c] sm:$0xf]  ;;  %v9525_v59 = vor.u32 %v12048_v6, %v9522_v40  ;;  %5169 = vmatpush.bf16.msrb.mxu2 %v10549_v63 }
 0x3d2   : > { %v11058_v29 = vld [vmem:[%s13226_s10 + $0xcd8] sm:$0xf0] }
 0x3d3   : > { %v11061_v0 = vor.u32 %v12432_v36, %v11058_v29  ;;  %5071 = vmatpush.bf16.msrb.mxu0 %v9525_v59  ;;  %v12176_v60 = vld [vmem:[%s13226_s10 + $0x49c] sm:$0xf] }
 0x3d4   : > { %v4797_v38 = vpop.f32.mrf.mxu2  ;;  %v4751_v17 = vpop.f32.mrf.mxu1  ;;  %v10034_v39 = vld [vmem:[%s13226_s10 + $0x4d8] sm:$0xf0] }
 0x3d5   : > { %v4798_v4 = vadd.f32 %v4797_v38, %v4749_v57  ;;  %5218 = vmatpush.bf16.msrb.mxu3 %v11061_v0  ;;  %v10037_v19 = vor.u32 %v12176_v60, %v10034_v39  ;;  %v10482_v0 = vld [vmem:[%s13226_s10 + $0x858] sm:$0xf0] }
 0x3d6   : > { %v4846_v1 = vpop.f32.mrf.mxu3  ;;  %v4702_v56 = vpop.f32.mrf.mxu0 }
 0x3d7   : > { %v4703_v32 = vadd.f32 %v4702_v56, %v14148_v33  ;;  %v4847_v61 = vadd.f32 %v4846_v1, %v4798_v4  ;;  %4946 = vmatmul.bf16.gmra.mxu1 %v13407_v42 }
 0x3d8   : > { %5120 = vmatpush.bf16.msrb.mxu1 %v10037_v19  ;;  %v12288_v19 = vld [vmem:[%s13226_s10 + $0x81c] sm:$0xf] }
 0x3d9   : > { %v4752_v30 = vadd.f32 %v4751_v17, %v4703_v32  ;;  %4897 = vmatmul.bf16.gmra.mxu0 %v13405_v41  ;;  %v6946_v35 = vmax.f32 %v4847_v61, 0.0  ;;  %4995 = vmatmul.bf16.gmra.mxu2 %v13409_v43 }
 0x3db   : > { %5044 = vmatmul.bf16.gmra.mxu3 %v13411_v44  ;;  %v14225_v57 = vpack.c.bf16 %v6946_v35, %v6930_v18 }
 0x3dc   : > { %v4800_v20 = vpop.f32.mrf.mxu2  ;;  %v4753_v32 = vpop.f32.mrf.mxu1 }
 0x3dd   : > { %15911 = vst [vmem:[#allocation55_spill] sm:$0xff] %v14225_v57  ;;  %v4801_v38 = vadd.f32 %v4800_v20, %v4752_v30 }
 0x3de   : > { %v4849_v4 = vpop.f32.mrf.mxu3  ;;  %v4704_v1 = vpop.f32.mrf.mxu0 }
 0x3df   : > { %v4705_v56 = vadd.f32 %v4704_v1, %v14148_v33  ;;  %v4850_v17 = vadd.f32 %v4849_v4, %v4801_v38  ;;  %v12032_v38 = vld [vmem:[%s13226_s10 + $0x1c] sm:$0xf]  ;;  %v10485_v4 = vor.u32 %v12288_v19, %v10482_v0 }
 0x3e0   : > { %v9458_v1 = vld [vmem:[%s13226_s10 + $0x58] sm:$0xf0] }
 0x3e1   : > { %v4754_v61 = vadd.f32 %v4753_v32, %v4705_v56  ;;  %v6962_v20 = vmax.f32 %v4850_v17, 0.0  ;;  %v12416_v56 = vld [vmem:[%s13226_s10 + $0xc1c] sm:$0xf]  ;;  %v9461_v17 = vor.u32 %v12032_v38, %v9458_v1  ;;  %5170 = vmatpush.bf16.msrb.mxu2 %v10485_v4 }
 0x3e2   : > { %v10994_v32 = vld [vmem:[%s13226_s10 + $0xc58] sm:$0xf0] }
 0x3e3   : > { %v10997_v39 = vor.u32 %v12416_v56, %v10994_v32  ;;  %5072 = vmatpush.bf16.msrb.mxu0 %v9461_v17  ;;  %v12160_v19 = vld [vmem:[%s13226_s10 + $0x41c] sm:$0xf] }
 0x3e4   : > { %v4802_v18 = vpop.f32.mrf.mxu2  ;;  %v4756_v40 = vpop.f32.mrf.mxu1  ;;  %v9970_v0 = vld [vmem:[%s13226_s10 + $0x458] sm:$0xf0] }
 0x3e5   : > { %v4803_v35 = vadd.f32 %v4802_v18, %v4754_v61  ;;  %5219 = vmatpush.bf16.msrb.mxu3 %v10997_v39  ;;  %v9973_v57 = vor.u32 %v12160_v19, %v9970_v0  ;;  %v12409_v39 = vld [vmem:[%s13226_s10 + $0xbdc] sm:$0xf0] }
 0x3e6   : > { %v4851_v30 = vpop.f32.mrf.mxu3  ;;  %v4707_v6 = vpop.f32.mrf.mxu0 }
 0x3e7   : > { %v4708_v63 = vadd.f32 %v4707_v6, %v14148_v33  ;;  %v4852_v36 = vadd.f32 %v4851_v30, %v4803_v35  ;;  %4951 = vmatmul.bf16.gmra.mxu1 %v13427_v10 }
 0x3e8   : > { %5121 = vmatpush.bf16.msrb.mxu1 %v9973_v57  ;;  %v10936_v57 = vld [vmem:[%s13226_s10 + $0xba0] sm:$0xf] }
 0x3e9   : > { %v4757_v29 = vadd.f32 %v4756_v40, %v4708_v63  ;;  %4902 = vmatmul.bf16.gmra.mxu0 %v13425_v9  ;;  %v6978_v59 = vmax.f32 %v4852_v36, 0.0  ;;  %5000 = vmatmul.bf16.gmra.mxu2 %v13429_v11 }
 0x3eb   : > { %5049 = vmatmul.bf16.gmra.mxu3 %v13431_v12  ;;  %v14241_v61 = vpack.c.bf16 %v6978_v59, %v6962_v20 }
 0x3ec   : > { %v4805_v60 = vpop.f32.mrf.mxu2  ;;  %v4758_v63 = vpop.f32.mrf.mxu1 }
 0x3ed   : > { %15912 = vst [vmem:[#allocation56_spill] sm:$0xff] %v14241_v61  ;;  %v4806_v18 = vadd.f32 %v4805_v60, %v4757_v29 }
 0x3ee   : > { %v4854_v35 = vpop.f32.mrf.mxu3  ;;  %v4709_v30 = vpop.f32.mrf.mxu0 }
 0x3ef   : > { %v4710_v6 = vadd.f32 %v4709_v30, %v14148_v33  ;;  %v4855_v40 = vadd.f32 %v4854_v35, %v4806_v18  ;;  %v9912_v18 = vld [vmem:[%s13226_s10 + $0x3a0] sm:$0xf]  ;;  %v10937_v35 = vor.u32 %v12409_v39, %v10936_v57 }
 0x3f0   : > { %v12153_v30 = vld [vmem:[%s13226_s10 + $0x3dc] sm:$0xf0] }
 0x3f1   : > { %v4759_v36 = vadd.f32 %v4758_v63, %v4710_v6  ;;  %v6994_v60 = vmax.f32 %v4855_v40, 0.0  ;;  %v11448_v6 = vld [vmem:[%s13226_s10 + $0xfa0] sm:$0xf]  ;;  %v9913_v40 = vor.u32 %v12153_v30, %v9912_v18  ;;  %5359 = vmatpush.bf16.msra.mxu2 %v10937_v35 }
 0x3f2   : > { %v12537_v63 = vld [vmem:[%s13226_s10 + $0xfdc] sm:$0xf0] }
 0x3f3   : > { %v11449_v0 = vor.u32 %v12537_v63, %v11448_v6  ;;  %5261 = vmatpush.bf16.msra.mxu0 %v9913_v40  ;;  %v10424_v57 = vld [vmem:[%s13226_s10 + $0x7a0] sm:$0xf] }
 0x3f4   : > { %v4807_v20 = vpop.f32.mrf.mxu2  ;;  %v4761_v1 = vpop.f32.mrf.mxu1  ;;  %v12281_v39 = vld [vmem:[%s13226_s10 + $0x7dc] sm:$0xf0] }
 0x3f5   : > { %v4808_v59 = vadd.f32 %v4807_v20, %v4759_v36  ;;  %5408 = vmatpush.bf16.msra.mxu3 %v11449_v0  ;;  %v10425_v61 = vor.u32 %v12281_v39, %v10424_v57  ;;  %v12393_v0 = vld [vmem:[%s13226_s10 + $0xb5c] sm:$0xf0] }
 0x3f6   : > { %v4856_v29 = vpop.f32.mrf.mxu3  ;;  %v4712_v38 = vpop.f32.mrf.mxu0 }
 0x3f7   : > { %v4713_v4 = vadd.f32 %v4712_v38, %v14148_v33  ;;  %v4857_v56 = vadd.f32 %v4856_v29, %v4808_v59  ;;  %4956 = vmatmul.bf16.gmra.mxu1 %v13447_v46 }
 0x3f8   : > { %5310 = vmatpush.bf16.msra.mxu1 %v10425_v61  ;;  %v10872_v61 = vld [vmem:[%s13226_s10 + $0xb20] sm:$0xf] }
 0x3f9   : > { %v4762_v32 = vadd.f32 %v4761_v1, %v4713_v4  ;;  %4907 = vmatmul.bf16.gmra.mxu0 %v13445_v45  ;;  %v7010_v17 = vmax.f32 %v4857_v56, 0.0  ;;  %5005 = vmatmul.bf16.gmra.mxu2 %v13449_v47 }
 0x3fb   : > { %5054 = vmatmul.bf16.gmra.mxu3 %v13451_v48  ;;  %v14257_v36 = vpack.c.bf16 %v7010_v17, %v6994_v60 }
 0x3fc   : > { %v4810_v19 = vpop.f32.mrf.mxu2  ;;  %v4763_v4 = vpop.f32.mrf.mxu1 }
 0x3fd   : > { %15913 = vst [vmem:[#allocation57_spill] sm:$0xff] %v14257_v36  ;;  %v4811_v20 = vadd.f32 %v4810_v19, %v4762_v32  ;;  %v12249_v36 = vld [vmem:[%s13226_s10 + $0x6dc] sm:$0xf0] }
 0x3fe   : > { %v4859_v59 = vpop.f32.mrf.mxu3  ;;  %v4714_v29 = vpop.f32.mrf.mxu0 }
 0x3ff   : > { %v4715_v38 = vadd.f32 %v4714_v29, %v14148_v33  ;;  %v4860_v1 = vadd.f32 %v4859_v59, %v4811_v20  ;;  %v9848_v20 = vld [vmem:[%s13226_s10 + $0x320] sm:$0xf] }
 0x401   : > { %v4764_v56 = vadd.f32 %v4763_v4, %v4715_v38  ;;  %v7026_v19 = vmax.f32 %v4860_v1, 0.0  ;;  %v10873_v38 = vor.u32 %v12393_v0, %v10872_v61  ;;  %v12137_v4 = vld [vmem:[%s13226_s10 + $0x35c] sm:$0xf0] }
 0x402   : > { %v12521_v1 = vld [vmem:[%s13226_s10 + $0xf5c] sm:$0xf0] }
 0x403   : > { %5360 = vmatpush.bf16.msra.mxu2 %v10873_v38  ;;  %v14279_v61 = vld [vmem:[%s13232_s29] sm:$0xff] }
 0x404   : > { %v4812_v60 = vpop.f32.mrf.mxu2  ;;  %v4766_v30 = vpop.f32.mrf.mxu1  ;;  %v14282_v0 = vperm.slane %v14279_v61, 6 }
 0x405   : > { %v4813_v17 = vadd.f32 %v4812_v60, %v4764_v56  ;;  %v11384_v56 = vld [vmem:[%s13226_s10 + $0xf20] sm:$0xf] }
 0x406   : > { %v4861_v32 = vpop.f32.mrf.mxu3  ;;  %v4717_v18 = vpop.f32.mrf.mxu0 }
 0x407   : > { %v4718_v35 = vadd.f32 %v4717_v18, %v14148_v33  ;;  %v4862_v6 = vadd.f32 %v4861_v32, %v4813_v17  ;;  %4961 = vmatmul.bf16.gmra.mxu1 %v13467_v22  ;;  %v9849_v17 = vor.u32 %v12137_v4, %v9848_v20  ;;  %v11385_v32 = vor.u32 %v12521_v1, %v11384_v56 }
 0x409   : > { %v4767_v63 = vadd.f32 %v4766_v30, %v4718_v35  ;;  %4912 = vmatmul.bf16.gmra.mxu0 %v13465_v21  ;;  %v7042_v40 = vmax.f32 %v4862_v6, 0.0  ;;  %5010 = vmatmul.bf16.gmra.mxu2 %v13469_v23 }
 0x40a   : > { %5262 = vmatpush.bf16.msra.mxu0 %v9849_v17  ;;  %5409 = vmatpush.bf16.msra.mxu3 %v11385_v32  ;;  %v10808_v17 = vld [vmem:[%s13226_s10 + $0xaa0] sm:$0xf] }
 0x40b   : > { %5059 = vmatmul.bf16.gmra.mxu3 %v13471_v24  ;;  %v14270_v59 = vpack.c.bf16 %v7042_v40, %v7026_v19  ;;  %v10360_v19 = vld [vmem:[%s13226_s10 + $0x720] sm:$0xf] }
 0x40c   : > { %v4815_v29 = vpop.f32.mrf.mxu2  ;;  %v4768_v35 = vpop.f32.mrf.mxu1  ;;  %v12265_v40 = vld [vmem:[%s13226_s10 + $0x75c] sm:$0xf0] }
 0x40d   : > { %15914 = vst [vmem:[#allocation58_spill] sm:$0xff] %v14270_v59  ;;  %v4816_v57 = vadd.f32 %v4815_v29, %v4767_v63  ;;  %v10361_v63 = vor.u32 %v12265_v40, %v10360_v19  ;;  %v12377_v32 = vld [vmem:[%s13226_s10 + $0xadc] sm:$0xf0] }
 0x40e   : > { %v4864_v39 = vpop.f32.mrf.mxu3  ;;  %v4719_v60 = vpop.f32.mrf.mxu0  ;;  %v11320_v19 = vld [vmem:[%s13226_s10 + $0xea0] sm:$0xf] }
 0x40f   : > { %v4720_v18 = vadd.f32 %v4719_v60, %v14148_v33  ;;  %v4865_v30 = vadd.f32 %v4864_v39, %v4816_v57  ;;  %5311 = vmatpush.bf16.msra.mxu1 %v10361_v63  ;;  %v12505_v40 = vld [vmem:[%s13226_s10 + $0xedc] sm:$0xf0] }
 0x410   : > { %v10296_v59 = vld [vmem:[%s13226_s10 + $0x6a0] sm:$0xf] }
 0x411   : > { %v4769_v6 = vadd.f32 %v4768_v35, %v4720_v18  ;;  %v7058_v39 = vmax.f32 %v4865_v30, 0.0  ;;  %v9784_v18 = vld [vmem:[%s13226_s10 + $0x2a0] sm:$0xf]  ;;  %v10809_v35 = vor.u32 %v12377_v32, %v10808_v17  ;;  %v10297_v31 = vor.u32 %v12249_v36, %v10296_v59 }
 0x412   : > { %v12361_v59 = vld [vmem:[%s13226_s10 + $0xa5c] sm:$0xf0] }
 0x413   : > { %5361 = vmatpush.bf16.msra.mxu2 %v10809_v35  ;;  %5312 = vmatpush.bf16.msra.mxu1 %v10297_v31  ;;  %v10744_v31 = vld [vmem:[%s13226_s10 + $0xa20] sm:$0xf] }
 0x414   : > { %v4817_v29 = vpop.f32.mrf.mxu2  ;;  %v4927_v56 = vpop.f32.mrf.mxu1 }
 0x415   : > { %v4818_v33 = vadd.f32 %v4817_v29, %v4769_v6  ;;  %v12121_v6 = vld [vmem:[%s13226_s10 + $0x2dc] sm:$0xf0] }
 0x416   : > { %v4866_v20 = vpop.f32.mrf.mxu3  ;;  %v4878_v38 = vpop.f32.mrf.mxu0  ;;  %v9785_v30 = vor.u32 %v12121_v6, %v9784_v18 }
 0x417   : > { %v4879_v4 = vadd.f32 %v4878_v38, %v14282_v0  ;;  %v4867_v1 = vadd.f32 %v4866_v20, %v4818_v33  ;;  %5122 = vmatmul.bf16.vlgmr.msrb.gmra.mxu1 %v13321_v54  ;;  %v11321_v33 = vor.u32 %v12505_v40, %v11320_v19 }
 0x418   : > { %5263 = vmatpush.bf16.msra.mxu0 %v9785_v30  ;;  %v9720_v30 = vld [vmem:[%s13226_s10 + $0x220] sm:$0xf] }
 0x419   : > { %v4928_v57 = vadd.f32 %v4927_v56, %v4879_v4  ;;  %5073 = vmatmul.bf16.vlgmr.msrb.gmra.mxu0 %v13316_v49  ;;  %v7074_v60 = vmax.f32 %v4867_v1, 0.0  ;;  %5171 = vmatmul.bf16.vlgmr.msrb.gmra.mxu2 %v13323_v55 }
 0x41a   : > { %5410 = vmatpush.bf16.msra.mxu3 %v11321_v33 }
 0x41b   : > { %5220 = vmatmul.bf16.vlgmr.msrb.gmra.mxu3 %v13327_v58  ;;  %v14295_v63 = vpack.c.bf16 %v7074_v60, %v7058_v39 }
 0x41c   : > { %v4976_v29 = vpop.f32.mrf.mxu2  ;;  %v4929_v1 = vpop.f32.mrf.mxu1 }
 0x41d   : > { %15915 = vst [vmem:[#allocation59_spill] sm:$0xff] %v14295_v63  ;;  %v4977_v20 = vadd.f32 %v4976_v29, %v4928_v57  ;;  %v12217_v63 = vld [vmem:[%s13226_s10 + $0x5dc] sm:$0xf0] }
 0x41e   : > { %v5025_v38 = vpop.f32.mrf.mxu3  ;;  %v4880_v4 = vpop.f32.mrf.mxu0 }
 0x41f   : > { %v4881_v56 = vadd.f32 %v4880_v4, %v14282_v0  ;;  %v5026_v17 = vadd.f32 %v5025_v38, %v4977_v20  ;;  %v10745_v20 = vor.u32 %v12361_v59, %v10744_v31  ;;  %v12105_v38 = vld [vmem:[%s13226_s10 + $0x25c] sm:$0xf0] }
 0x420   : > { %v11256_v4 = vld [vmem:[%s13226_s10 + $0xe20] sm:$0xf] }
 0x421   : > { %v4930_v32 = vadd.f32 %v4929_v1, %v4881_v56  ;;  %v6835_v29 = vmax.f32 %v5026_v17, 0.0  ;;  %v12489_v56 = vld [vmem:[%s13226_s10 + $0xe5c] sm:$0xf0]  ;;  %v9721_v17 = vor.u32 %v12105_v38, %v9720_v30  ;;  %5362 = vmatpush.bf16.msra.mxu2 %v10745_v20 }
 0x423   : > { %5264 = vmatpush.bf16.msra.mxu0 %v9721_v17 }
 0x424   : > { %v4978_v39 = vpop.f32.mrf.mxu2  ;;  %v4932_v6 = vpop.f32.mrf.mxu1 }
 0x425   : > { %v4979_v60 = vadd.f32 %v4978_v39, %v4930_v32  ;;  %v11257_v32 = vor.u32 %v12489_v56, %v11256_v4 }
 0x426   : > { %v5027_v57 = vpop.f32.mrf.mxu3  ;;  %v4883_v18 = vpop.f32.mrf.mxu0 }
 0x427   : > { %v4884_v35 = vadd.f32 %v4883_v18, %v14282_v0  ;;  %v5028_v19 = vadd.f32 %v5027_v57, %v4979_v60  ;;  %5127 = vmatmul.bf16.gmra.mxu1 %v13347_v26  ;;  %5411 = vmatpush.bf16.msra.mxu3 %v11257_v32 }
 0x429   : > { %v4933_v40 = vadd.f32 %v4932_v6, %v4884_v35  ;;  %5078 = vmatmul.bf16.gmra.mxu0 %v13345_v25  ;;  %v6851_v36 = vmax.f32 %v5028_v19, 0.0  ;;  %5176 = vmatmul.bf16.gmra.mxu2 %v13349_v27 }
 0x42b   : > { %5225 = vmatmul.bf16.gmra.mxu3 %v13351_v28  ;;  %v14308_v33 = vpack.c.bf16 %v6851_v36, %v6835_v29  ;;  %v10232_v29 = vld [vmem:[%s13226_s10 + $0x620] sm:$0xf] }
 0x42c   : > { %v4981_v1 = vpop.f32.mrf.mxu2  ;;  %v4934_v35 = vpop.f32.mrf.mxu1  ;;  %v12233_v36 = vld [vmem:[%s13226_s10 + $0x65c] sm:$0xf0] }
 0x42d   : > { %15916 = vst [vmem:[#allocation60_spill] sm:$0xff] %v14308_v33  ;;  %v4982_v39 = vadd.f32 %v4981_v1, %v4933_v40  ;;  %v10233_v31 = vor.u32 %v12233_v36, %v10232_v29  ;;  %v12473_v29 = vld [vmem:[%s13226_s10 + $0xddc] sm:$0xf0] }
 0x42e   : > { %v5030_v60 = vpop.f32.mrf.mxu3  ;;  %v4885_v57 = vpop.f32.mrf.mxu0 }
 0x42f   : > { %v4886_v18 = vadd.f32 %v4885_v57, %v14282_v0  ;;  %v5031_v6 = vadd.f32 %v5030_v60, %v4982_v39  ;;  %5313 = vmatpush.bf16.msra.mxu1 %v10233_v31  ;;  %v10680_v39 = vld [vmem:[%s13226_s10 + $0x9a0] sm:$0xf] }
 0x430   : > { %v12345_v60 = vld [vmem:[%s13226_s10 + $0x9dc] sm:$0xf0] }
 0x431   : > { %v4935_v19 = vadd.f32 %v4934_v35, %v4886_v18  ;;  %v6867_v17 = vmax.f32 %v5031_v6, 0.0  ;;  %v9656_v57 = vld [vmem:[%s13226_s10 + $0x1a0] sm:$0xf]  ;;  %v10681_v18 = vor.u32 %v12345_v60, %v10680_v39 }
 0x432   : > { %v12089_v35 = vld [vmem:[%s13226_s10 + $0x1dc] sm:$0xf0] }
 0x433   : > { %v9657_v6 = vor.u32 %v12089_v35, %v9656_v57  ;;  %5363 = vmatpush.bf16.msra.mxu2 %v10681_v18  ;;  %v10168_v60 = vld [vmem:[%s13226_s10 + $0x5a0] sm:$0xf] }
 0x434   : > { %v4983_v59 = vpop.f32.mrf.mxu2  ;;  %v4937_v4 = vpop.f32.mrf.mxu1  ;;  %v10169_v33 = vor.u32 %v12217_v63, %v10168_v60 }
 0x435   : > { %v4984_v30 = vadd.f32 %v4983_v59, %v4935_v19  ;;  %v11192_v19 = vld [vmem:[%s13226_s10 + $0xda0] sm:$0xf]  ;;  %5265 = vmatpush.bf16.msra.mxu0 %v9657_v6 }
 0x436   : > { %v5032_v40 = vpop.f32.mrf.mxu3  ;;  %v4888_v38 = vpop.f32.mrf.mxu0  ;;  %v11193_v59 = vor.u32 %v12473_v29, %v11192_v19  ;;  %5314 = vmatpush.bf16.msra.mxu1 %v10169_v33  ;;  %v10616_v33 = vld [vmem:[%s13226_s10 + $0x920] sm:$0xf] }
 0x437   : > { %v4889_v20 = vadd.f32 %v4888_v38, %v14282_v0  ;;  %v5033_v56 = vadd.f32 %v5032_v40, %v4984_v30  ;;  %5132 = vmatmul.bf16.gmra.mxu1 %v13367_v51  ;;  %v12329_v6 = vld [vmem:[%s13226_s10 + $0x95c] sm:$0xf0] }
 0x438   : > { %5412 = vmatpush.bf16.msra.mxu3 %v11193_v59  ;;  %v9592_v59 = vld [vmem:[%s13226_s10 + $0x120] sm:$0xf] }
 0x439   : > { %v4938_v1 = vadd.f32 %v4937_v4, %v4889_v20  ;;  %5083 = vmatmul.bf16.gmra.mxu0 %v13365_v50  ;;  %v6883_v32 = vmax.f32 %v5033_v56, 0.0  ;;  %5181 = vmatmul.bf16.gmra.mxu2 %v13369_v52 }
 0x43b   : > { %5230 = vmatmul.bf16.gmra.mxu3 %v13371_v53  ;;  %v14327_v36 = vpack.c.bf16 %v6883_v32, %v6867_v17 }
 0x43c   : > { %v4986_v31 = vpop.f32.mrf.mxu2  ;;  %v4939_v4 = vpop.f32.mrf.mxu1 }
 0x43d   : > { %15917 = vst [vmem:[#allocation61_spill] sm:$0xff] %v14327_v36  ;;  %v4987_v30 = vadd.f32 %v4986_v31, %v4938_v1 }
 0x43e   : > { %v5035_v40 = vpop.f32.mrf.mxu3  ;;  %v4890_v38 = vpop.f32.mrf.mxu0 }
 0x43f   : > { %v4891_v20 = vadd.f32 %v4890_v38, %v14282_v0  ;;  %v5036_v56 = vadd.f32 %v5035_v40, %v4987_v30  ;;  %v10617_v30 = vor.u32 %v12329_v6, %v10616_v33  ;;  %v12073_v40 = vld [vmem:[%s13226_s10 + $0x15c] sm:$0xf0] }
 0x440   : > { %v11128_v38 = vld [vmem:[%s13226_s10 + $0xd20] sm:$0xf] }
 0x441   : > { %v4940_v39 = vadd.f32 %v4939_v4, %v4891_v20  ;;  %v6899_v31 = vmax.f32 %v5036_v56, 0.0  ;;  %v12457_v20 = vld [vmem:[%s13226_s10 + $0xd5c] sm:$0xf0]  ;;  %v9593_v56 = vor.u32 %v12073_v40, %v9592_v59  ;;  %5364 = vmatpush.bf16.msra.mxu2 %v10617_v30 }
 0x442   : > { %v11129_v60 = vor.u32 %v12457_v20, %v11128_v38  ;;  %v10104_v33 = vld [vmem:[%s13226_s10 + $0x520] sm:$0xf] }
 0x443   : > { %5266 = vmatpush.bf16.msra.mxu0 %v9593_v56  ;;  %v12201_v6 = vld [vmem:[%s13226_s10 + $0x55c] sm:$0xf0] }
 0x444   : > { %v4988_v17 = vpop.f32.mrf.mxu2  ;;  %v4942_v35 = vpop.f32.mrf.mxu1  ;;  %5413 = vmatpush.bf16.msra.mxu3 %v11129_v60  ;;  %v10105_v36 = vor.u32 %v12201_v6, %v10104_v33  ;;  %v12313_v60 = vld [vmem:[%s13226_s10 + $0x8dc] sm:$0xf0] }
 0x445   : > { %v4989_v32 = vadd.f32 %v4988_v17, %v4940_v39 }
 0x446   : > { %v5037_v1 = vpop.f32.mrf.mxu3  ;;  %v4893_v57 = vpop.f32.mrf.mxu0  ;;  %5315 = vmatpush.bf16.msra.mxu1 %v10105_v36  ;;  %v10552_v36 = vld [vmem:[%s13226_s10 + $0x8a0] sm:$0xf] }
 0x447   : > { %v4894_v18 = vadd.f32 %v4893_v57, %v14282_v0  ;;  %v5038_v19 = vadd.f32 %v5037_v1, %v4989_v32  ;;  %5137 = vmatmul.bf16.gmra.mxu1 %v13387_v14 }
 0x449   : > { %v4943_v29 = vadd.f32 %v4942_v35, %v4894_v18  ;;  %5088 = vmatmul.bf16.gmra.mxu0 %v13385_v13  ;;  %v6915_v63 = vmax.f32 %v5038_v19, 0.0  ;;  %5186 = vmatmul.bf16.gmra.mxu2 %v13389_v15 }
 0x44b   : > { %5235 = vmatmul.bf16.gmra.mxu3 %v13391_v16  ;;  %v14343_v4 = vpack.c.bf16 %v6915_v63, %v6899_v31 }
 0x44c   : > { %v4991_v39 = vpop.f32.mrf.mxu2  ;;  %v4944_v18 = vpop.f32.mrf.mxu1 }
 0x44d   : > { %15918 = vst [vmem:[#allocation62_spill] sm:$0xff] %v14343_v4  ;;  %v4992_v17 = vadd.f32 %v4991_v39, %v4943_v29 }
 0x44e   : > { %v5040_v32 = vpop.f32.mrf.mxu3  ;;  %v4895_v1 = vpop.f32.mrf.mxu0 }
 0x44f   : > { %v4896_v57 = vadd.f32 %v4895_v1, %v14282_v0  ;;  %v5041_v35 = vadd.f32 %v5040_v32, %v4992_v17  ;;  %v9528_v17 = vld [vmem:[%s13226_s10 + $0xa0] sm:$0xf]  ;;  %v10553_v32 = vor.u32 %v12313_v60, %v10552_v36 }
 0x450   : > { %v12057_v1 = vld [vmem:[%s13226_s10 + $0xdc] sm:$0xf0] }
 0x451   : > { %v4945_v19 = vadd.f32 %v4944_v18, %v4896_v57  ;;  %v6931_v39 = vmax.f32 %v5041_v35, 0.0  ;;  %v11064_v57 = vld [vmem:[%s13226_s10 + $0xca0] sm:$0xf]  ;;  %v9529_v35 = vor.u32 %v12057_v1, %v9528_v17  ;;  %5365 = vmatpush.bf16.msra.mxu2 %v10553_v32 }
 0x452   : > { %v12441_v18 = vld [vmem:[%s13226_s10 + $0xcdc] sm:$0xf0] }
 0x453   : > { %v11065_v6 = vor.u32 %v12441_v18, %v11064_v57  ;;  %5267 = vmatpush.bf16.msra.mxu0 %v9529_v35  ;;  %v10040_v36 = vld [vmem:[%s13226_s10 + $0x4a0] sm:$0xf] }
 0x454   : > { %v4993_v31 = vpop.f32.mrf.mxu2  ;;  %v4947_v40 = vpop.f32.mrf.mxu1  ;;  %v12185_v60 = vld [vmem:[%s13226_s10 + $0x4dc] sm:$0xf0] }
 0x455   : > { %v4994_v63 = vadd.f32 %v4993_v31, %v4945_v19  ;;  %5414 = vmatpush.bf16.msra.mxu3 %v11065_v6  ;;  %v10041_v4 = vor.u32 %v12185_v60, %v10040_v36  ;;  %v12297_v6 = vld [vmem:[%s13226_s10 + $0x85c] sm:$0xf0] }
 0x456   : > { %v5042_v29 = vpop.f32.mrf.mxu3  ;;  %v4898_v59 = vpop.f32.mrf.mxu0 }
 0x457   : > { %v4899_v30 = vadd.f32 %v4898_v59, %v14282_v0  ;;  %v5043_v38 = vadd.f32 %v5042_v29, %v4994_v63  ;;  %5142 = vmatmul.bf16.gmra.mxu1 %v13407_v42 }
 0x458   : > { %5316 = vmatpush.bf16.msra.mxu1 %v10041_v4  ;;  %v10488_v4 = vld [vmem:[%s13226_s10 + $0x820] sm:$0xf] }
 0x459   : > { %v4948_v20 = vadd.f32 %v4947_v40, %v4899_v30  ;;  %5093 = vmatmul.bf16.gmra.mxu0 %v13405_v41  ;;  %v6947_v56 = vmax.f32 %v5043_v38, 0.0  ;;  %5191 = vmatmul.bf16.gmra.mxu2 %v13409_v43 }
 0x45b   : > { %5240 = vmatmul.bf16.gmra.mxu3 %v13411_v44  ;;  %v14359_v19 = vpack.c.bf16 %v6947_v56, %v6931_v39 }
 0x45c   : > { %v4996_v33 = vpop.f32.mrf.mxu2  ;;  %v4949_v30 = vpop.f32.mrf.mxu1 }
 0x45d   : > { %15919 = vst [vmem:[#allocation63_spill] sm:$0xff] %v14359_v19  ;;  %v4997_v31 = vadd.f32 %v4996_v33, %v4948_v20 }
 0x45e   : > { %v5045_v63 = vpop.f32.mrf.mxu3  ;;  %v4900_v29 = vpop.f32.mrf.mxu0 }
 0x45f   : > { %v4901_v59 = vadd.f32 %v4900_v29, %v14282_v0  ;;  %v5046_v40 = vadd.f32 %v5045_v63, %v4997_v31  ;;  %v9464_v31 = vld [vmem:[%s13226_s10 + $0x20] sm:$0xf]  ;;  %v10489_v63 = vor.u32 %v12297_v6, %v10488_v4 }
 0x460   : > { %v12041_v29 = vld [vmem:[%s13226_s10 + $0x5c] sm:$0xf0] }
 0x461   : > { %v4950_v38 = vadd.f32 %v4949_v30, %v4901_v59  ;;  %v6963_v33 = vmax.f32 %v5046_v40, 0.0  ;;  %v11000_v59 = vld [vmem:[%s13226_s10 + $0xc20] sm:$0xf]  ;;  %v9465_v40 = vor.u32 %v12041_v29, %v9464_v31  ;;  %5366 = vmatpush.bf16.msra.mxu2 %v10489_v63 }
 0x462   : > { %v12425_v30 = vld [vmem:[%s13226_s10 + $0xc5c] sm:$0xf0] }
 0x463   : > { %v11001_v60 = vor.u32 %v12425_v30, %v11000_v59  ;;  %5268 = vmatpush.bf16.msra.mxu0 %v9465_v40  ;;  %v9976_v4 = vld [vmem:[%s13226_s10 + $0x420] sm:$0xf] }
 0x464   : > { %v4998_v39 = vpop.f32.mrf.mxu2  ;;  %v4952_v1 = vpop.f32.mrf.mxu1  ;;  %v12169_v6 = vld [vmem:[%s13226_s10 + $0x45c] sm:$0xf0] }
 0x465   : > { %v4999_v56 = vadd.f32 %v4998_v39, %v4950_v38  ;;  %5415 = vmatpush.bf16.msra.mxu3 %v11001_v60  ;;  %v9977_v19 = vor.u32 %v12169_v6, %v9976_v4  ;;  %v10938_v60 = vld [vmem:[%s13226_s10 + $0xbe0] sm:$0xf0] }
 0x466   : > { %v5047_v20 = vpop.f32.mrf.mxu3  ;;  %v4903_v17 = vpop.f32.mrf.mxu0 }
 0x467   : > { %v4904_v32 = vadd.f32 %v4903_v17, %v14282_v0  ;;  %v5048_v57 = vadd.f32 %v5047_v20, %v4999_v56  ;;  %5147 = vmatmul.bf16.gmra.mxu1 %v13427_v10 }
 0x468   : > { %5317 = vmatpush.bf16.msra.mxu1 %v9977_v19  ;;  %v12401_v19 = vld [vmem:[%s13226_s10 + $0xba4] sm:$0xf] }
 0x469   : > { %v4953_v18 = vadd.f32 %v4952_v1, %v4904_v32  ;;  %5098 = vmatmul.bf16.gmra.mxu0 %v13425_v9  ;;  %v6979_v35 = vmax.f32 %v5048_v57, 0.0  ;;  %5196 = vmatmul.bf16.gmra.mxu2 %v13429_v11 }
 0x46b   : > { %5245 = vmatmul.bf16.gmra.mxu3 %v13431_v12  ;;  %v14375_v38 = vpack.c.bf16 %v6979_v35, %v6963_v33 }
 0x46c   : > { %v5001_v36 = vpop.f32.mrf.mxu2  ;;  %v4954_v32 = vpop.f32.mrf.mxu1 }
 0x46d   : > { %15920 = vst [vmem:[#allocation64_spill] sm:$0xff] %v14375_v38  ;;  %v5002_v39 = vadd.f32 %v5001_v36, %v4953_v18 }
 0x46e   : > { %v5050_v56 = vpop.f32.mrf.mxu3  ;;  %v4905_v20 = vpop.f32.mrf.mxu0 }
 0x46f   : > { %v4906_v17 = vadd.f32 %v4905_v20, %v14282_v0  ;;  %v5051_v1 = vadd.f32 %v5050_v56, %v5002_v39  ;;  %v12145_v39 = vld [vmem:[%s13226_s10 + $0x3a4] sm:$0xf]  ;;  %v10941_v56 = vor.u32 %v12401_v19, %v10938_v60 }
 0x470   : > { %v9914_v20 = vld [vmem:[%s13226_s10 + $0x3e0] sm:$0xf0] }
 0x471   : > { %v4955_v57 = vadd.f32 %v4954_v32, %v4906_v17  ;;  %v6995_v36 = vmax.f32 %v5051_v1, 0.0  ;;  %v12529_v17 = vld [vmem:[%s13226_s10 + $0xfa4] sm:$0xf]  ;;  %v9917_v1 = vor.u32 %v12145_v39, %v9914_v20  ;;  %5555 = vmatpush.bf16.msrb.mxu2 %v10941_v56 }
 0x472   : > { %v11450_v32 = vld [vmem:[%s13226_s10 + $0xfe0] sm:$0xf0] }
 0x473   : > { %v11453_v6 = vor.u32 %v12529_v17, %v11450_v32  ;;  %5457 = vmatpush.bf16.msrb.mxu0 %v9917_v1  ;;  %v12273_v19 = vld [vmem:[%s13226_s10 + $0x7a4] sm:$0xf] }
 0x474   : > { %v5003_v33 = vpop.f32.mrf.mxu2  ;;  %v4957_v29 = vpop.f32.mrf.mxu1  ;;  %v10426_v60 = vld [vmem:[%s13226_s10 + $0x7e0] sm:$0xf0] }
 0x475   : > { %v5004_v35 = vadd.f32 %v5003_v33, %v4955_v57  ;;  %5604 = vmatpush.bf16.msrb.mxu3 %v11453_v6  ;;  %v10429_v38 = vor.u32 %v12273_v19, %v10426_v60  ;;  %v10874_v6 = vld [vmem:[%s13226_s10 + $0xb60] sm:$0xf0] }
 0x476   : > { %v5052_v18 = vpop.f32.mrf.mxu3  ;;  %v4908_v31 = vpop.f32.mrf.mxu0  ;;  %v11386_v19 = vld [vmem:[%s13226_s10 + $0xf60] sm:$0xf0] }
 0x477   : > { %v4909_v63 = vadd.f32 %v4908_v31, %v14282_v0  ;;  %v5053_v59 = vadd.f32 %v5052_v18, %v5004_v35  ;;  %5152 = vmatmul.bf16.gmra.mxu1 %v13447_v46 }
 0x478   : > { %5506 = vmatpush.bf16.msrb.mxu1 %v10429_v38  ;;  %v12385_v38 = vld [vmem:[%s13226_s10 + $0xb24] sm:$0xf] }
 0x479   : > { %v4958_v30 = vadd.f32 %v4957_v29, %v4909_v63  ;;  %5103 = vmatmul.bf16.gmra.mxu0 %v13445_v45  ;;  %v7011_v40 = vmax.f32 %v5053_v59, 0.0  ;;  %5201 = vmatmul.bf16.gmra.mxu2 %v13449_v47 }
 0x47b   : > { %5250 = vmatmul.bf16.gmra.mxu3 %v13451_v48  ;;  %v14391_v57 = vpack.c.bf16 %v7011_v40, %v6995_v36 }
 0x47c   : > { %v5006_v4 = vpop.f32.mrf.mxu2  ;;  %v4959_v63 = vpop.f32.mrf.mxu1 }
 0x47d   : > { %15921 = vst [vmem:[#allocation65_spill] sm:$0xff] %v14391_v57  ;;  %v5007_v33 = vadd.f32 %v5006_v4, %v4958_v30 }
 0x47e   : > { %v5055_v35 = vpop.f32.mrf.mxu3  ;;  %v4910_v18 = vpop.f32.mrf.mxu0 }
 0x47f   : > { %v4911_v31 = vadd.f32 %v4910_v18, %v14282_v0  ;;  %v5056_v29 = vadd.f32 %v5055_v35, %v5007_v33  ;;  %v12129_v33 = vld [vmem:[%s13226_s10 + $0x324] sm:$0xf] }
 0x481   : > { %v4960_v59 = vadd.f32 %v4959_v63, %v4911_v31  ;;  %v7027_v4 = vmax.f32 %v5056_v29, 0.0  ;;  %v10877_v31 = vor.u32 %v12385_v38, %v10874_v6  ;;  %v9850_v63 = vld [vmem:[%s13226_s10 + $0x360] sm:$0xf0]  ;;  %v14413_v38 = vperm.slane %v14279_v61, 7 }
 0x483   : > { %5556 = vmatpush.bf16.msrb.mxu2 %v10877_v31 }
 0x484   : > { %v5008_v36 = vpop.f32.mrf.mxu2  ;;  %v4962_v20 = vpop.f32.mrf.mxu1 }
 0x485   : > { %v5009_v40 = vadd.f32 %v5008_v36, %v4960_v59  ;;  %v12513_v59 = vld [vmem:[%s13226_s10 + $0xf24] sm:$0xf] }
 0x486   : > { %v5057_v30 = vpop.f32.mrf.mxu3  ;;  %v4913_v39 = vpop.f32.mrf.mxu0 }
 0x487   : > { %v4914_v56 = vadd.f32 %v4913_v39, %v14282_v0  ;;  %v5058_v17 = vadd.f32 %v5057_v30, %v5009_v40  ;;  %5157 = vmatmul.bf16.gmra.mxu1 %v13467_v22  ;;  %v9853_v40 = vor.u32 %v12129_v33, %v9850_v63  ;;  %v11389_v30 = vor.u32 %v12513_v59, %v11386_v19 }
 0x489   : > { %v4963_v32 = vadd.f32 %v4962_v20, %v4914_v56  ;;  %5108 = vmatmul.bf16.gmra.mxu0 %v13465_v21  ;;  %v7043_v1 = vmax.f32 %v5058_v17, 0.0  ;;  %5206 = vmatmul.bf16.gmra.mxu2 %v13469_v23 }
 0x48a   : > { %5458 = vmatpush.bf16.msrb.mxu0 %v9853_v40  ;;  %5605 = vmatpush.bf16.msrb.mxu3 %v11389_v30  ;;  %v12113_v40 = vld [vmem:[%s13226_s10 + $0x2a4] sm:$0xf] }
 0x48b   : > { %5255 = vmatmul.bf16.gmra.mxu3 %v13471_v24  ;;  %v14404_v35 = vpack.c.bf16 %v7043_v1, %v7027_v4  ;;  %v12257_v4 = vld [vmem:[%s13226_s10 + $0x724] sm:$0xf] }
 0x48c   : > { %v5011_v18 = vpop.f32.mrf.mxu2  ;;  %v4964_v56 = vpop.f32.mrf.mxu1  ;;  %v10362_v1 = vld [vmem:[%s13226_s10 + $0x760] sm:$0xf0] }
 0x48d   : > { %15922 = vst [vmem:[#allocation66_spill] sm:$0xff] %v14404_v35  ;;  %v5012_v29 = vadd.f32 %v5011_v18, %v4963_v32  ;;  %v10365_v6 = vor.u32 %v12257_v4, %v10362_v1 }
 0x48e   : > { %v5060_v60 = vpop.f32.mrf.mxu3  ;;  %v4915_v36 = vpop.f32.mrf.mxu0 }
 0x48f   : > { %v4916_v39 = vadd.f32 %v4915_v36, %v14282_v0  ;;  %v5061_v20 = vadd.f32 %v5060_v60, %v5012_v29  ;;  %5507 = vmatpush.bf16.msrb.mxu1 %v10365_v6  ;;  %v12369_v60 = vld [vmem:[%s13226_s10 + $0xaa4] sm:$0xf] }
 0x490   : > { %v10810_v36 = vld [vmem:[%s13226_s10 + $0xae0] sm:$0xf0] }
 0x491   : > { %v4965_v17 = vadd.f32 %v4964_v56, %v4916_v39  ;;  %v7059_v61 = vmax.f32 %v5061_v20, 0.0  ;;  %v10813_v30 = vor.u32 %v12369_v60, %v10810_v36  ;;  %v9786_v39 = vld [vmem:[%s13226_s10 + $0x2e0] sm:$0xf0] }
 0x492   : > { %v12497_v56 = vld [vmem:[%s13226_s10 + $0xea4] sm:$0xf]  ;;  %v9789_v20 = vor.u32 %v12113_v40, %v9786_v39 }
 0x493   : > { %5557 = vmatpush.bf16.msrb.mxu2 %v10813_v30  ;;  %v12241_v60 = vld [vmem:[%s13226_s10 + $0x6a4] sm:$0xf] }
 0x494   : > { %v5013_v32 = vpop.f32.mrf.mxu2  ;;  %v5123_v63 = vpop.f32.mrf.mxu1  ;;  %5459 = vmatpush.bf16.msrb.mxu0 %v9789_v20  ;;  %v10298_v36 = vld [vmem:[%s13226_s10 + $0x6e0] sm:$0xf0] }
 0x495   : > { %v5014_v33 = vadd.f32 %v5013_v32, %v4965_v17  ;;  %v11322_v17 = vld [vmem:[%s13226_s10 + $0xee0] sm:$0xf0]  ;;  %v10301_v35 = vor.u32 %v12241_v60, %v10298_v36 }
 0x496   : > { %v5062_v18 = vpop.f32.mrf.mxu3  ;;  %v5074_v0 = vpop.f32.mrf.mxu0  ;;  %v11325_v6 = vor.u32 %v12497_v56, %v11322_v17 }
 0x497   : > { %v5075_v31 = vadd.f32 %v5074_v0, %v14413_v38  ;;  %v5063_v59 = vadd.f32 %v5062_v18, %v5014_v33  ;;  %5318 = vmatmul.bf16.vlgmr.msra.gmra.mxu1 %v13321_v54 }
 0x498   : > { %5606 = vmatpush.bf16.msrb.mxu3 %v11325_v6  ;;  %5508 = vmatpush.bf16.msrb.mxu1 %v10301_v35  ;;  %v12353_v35 = vld [vmem:[%s13226_s10 + $0xa24] sm:$0xf] }
 0x499   : > { %v5124_v19 = vadd.f32 %v5123_v63, %v5075_v31  ;;  %5269 = vmatmul.bf16.vlgmr.msra.gmra.mxu0 %v13316_v49  ;;  %v7075_v29 = vmax.f32 %v5063_v59, 0.0  ;;  %5367 = vmatmul.bf16.vlgmr.msra.gmra.mxu2 %v13323_v55  ;;  %v10746_v6 = vld [vmem:[%s13226_s10 + $0xa60] sm:$0xf0] }
 0x49b   : > { %5416 = vmatmul.bf16.vlgmr.msra.gmra.mxu3 %v13327_v58  ;;  %v14426_v4 = vpack.c.bf16 %v7075_v29, %v7059_v61 }
 0x49c   : > { %v5172_v1 = vpop.f32.mrf.mxu2  ;;  %v5125_v31 = vpop.f32.mrf.mxu1 }
 0x49d   : > { %15923 = vst [vmem:[#allocation67_spill] sm:$0xff] %v14426_v4  ;;  %v5173_v32 = vadd.f32 %v5172_v1, %v5124_v19  ;;  %v10170_v4 = vld [vmem:[%s13226_s10 + $0x5e0] sm:$0xf0] }
 0x49e   : > { %v5221_v33 = vpop.f32.mrf.mxu3  ;;  %v5076_v18 = vpop.f32.mrf.mxu0 }
 0x49f   : > { %v5077_v0 = vadd.f32 %v5076_v18, %v14413_v38  ;;  %v5222_v63 = vadd.f32 %v5221_v33, %v5173_v32  ;;  %v12097_v32 = vld [vmem:[%s13226_s10 + $0x224] sm:$0xf]  ;;  %v10749_v18 = vor.u32 %v12353_v35, %v10746_v6 }
 0x4a1   : > { %v5126_v59 = vadd.f32 %v5125_v31, %v5077_v0  ;;  %v6836_v1 = vmax.f32 %v5222_v63, 0.0  ;;  %v9722_v0 = vld [vmem:[%s13226_s10 + $0x260] sm:$0xf0]  ;;  %5558 = vmatpush.bf16.msrb.mxu2 %v10749_v18 }
 0x4a2   : > { %v12481_v31 = vld [vmem:[%s13226_s10 + $0xe24] sm:$0xf]  ;;  %v9725_v63 = vor.u32 %v12097_v32, %v9722_v0 }
 0x4a4   : > { %v5174_v61 = vpop.f32.mrf.mxu2  ;;  %v5128_v39 = vpop.f32.mrf.mxu1  ;;  %5460 = vmatpush.bf16.msrb.mxu0 %v9725_v63 }
 0x4a5   : > { %v5175_v29 = vadd.f32 %v5174_v61, %v5126_v59  ;;  %v11258_v59 = vld [vmem:[%s13226_s10 + $0xe60] sm:$0xf0] }
 0x4a6   : > { %v5223_v19 = vpop.f32.mrf.mxu3  ;;  %v5079_v40 = vpop.f32.mrf.mxu0  ;;  %v11261_v36 = vor.u32 %v12481_v31, %v11258_v59 }
 0x4a7   : > { %v5080_v30 = vadd.f32 %v5079_v40, %v14413_v38  ;;  %v5224_v56 = vadd.f32 %v5223_v19, %v5175_v29  ;;  %5323 = vmatmul.bf16.gmra.mxu1 %v13347_v26 }
 0x4a8   : > { %5607 = vmatpush.bf16.msrb.mxu3 %v11261_v36 }
 0x4a9   : > { %v5129_v17 = vadd.f32 %v5128_v39, %v5080_v30  ;;  %5274 = vmatmul.bf16.gmra.mxu0 %v13345_v25  ;;  %v6852_v20 = vmax.f32 %v5224_v56, 0.0  ;;  %5372 = vmatmul.bf16.gmra.mxu2 %v13349_v27 }
 0x4ab   : > { %5421 = vmatmul.bf16.gmra.mxu3 %v13351_v28  ;;  %v14439_v33 = vpack.c.bf16 %v6852_v20, %v6836_v1  ;;  %v12225_v1 = vld [vmem:[%s13226_s10 + $0x624] sm:$0xf] }
 0x4ac   : > { %v5177_v60 = vpop.f32.mrf.mxu2  ;;  %v5130_v30 = vpop.f32.mrf.mxu1  ;;  %v10234_v20 = vld [vmem:[%s13226_s10 + $0x660] sm:$0xf0] }
 0x4ad   : > { %15924 = vst [vmem:[#allocation68_spill] sm:$0xff] %v14439_v33  ;;  %v5178_v61 = vadd.f32 %v5177_v60, %v5129_v17  ;;  %v10237_v35 = vor.u32 %v12225_v1, %v10234_v20  ;;  %v11194_v1 = vld [vmem:[%s13226_s10 + $0xde0] sm:$0xf0] }
 0x4ae   : > { %v5226_v29 = vpop.f32.mrf.mxu3  ;;  %v5081_v19 = vpop.f32.mrf.mxu0 }
 0x4af   : > { %v5082_v40 = vadd.f32 %v5081_v19, %v14413_v38  ;;  %v5227_v39 = vadd.f32 %v5226_v29, %v5178_v61  ;;  %5509 = vmatpush.bf16.msrb.mxu1 %v10237_v35  ;;  %v12337_v61 = vld [vmem:[%s13226_s10 + $0x9a4] sm:$0xf] }
 0x4b0   : > { %v10682_v29 = vld [vmem:[%s13226_s10 + $0x9e0] sm:$0xf0] }
 0x4b1   : > { %v5131_v56 = vadd.f32 %v5130_v30, %v5082_v40  ;;  %v6868_v63 = vmax.f32 %v5227_v39, 0.0  ;;  %v12081_v19 = vld [vmem:[%s13226_s10 + $0x1a4] sm:$0xf]  ;;  %v10685_v40 = vor.u32 %v12337_v61, %v10682_v29 }
 0x4b2   : > { %v9658_v30 = vld [vmem:[%s13226_s10 + $0x1e0] sm:$0xf0] }
 0x4b3   : > { %v9661_v39 = vor.u32 %v12081_v19, %v9658_v30  ;;  %5559 = vmatpush.bf16.msrb.mxu2 %v10685_v40  ;;  %v12209_v29 = vld [vmem:[%s13226_s10 + $0x5a4] sm:$0xf] }
 0x4b4   : > { %v5179_v6 = vpop.f32.mrf.mxu2  ;;  %v5133_v31 = vpop.f32.mrf.mxu1  ;;  %v10173_v57 = vor.u32 %v12209_v29, %v10170_v4 }
 0x4b5   : > { %v5180_v32 = vadd.f32 %v5179_v6, %v5131_v56  ;;  %v12465_v56 = vld [vmem:[%s13226_s10 + $0xda4] sm:$0xf]  ;;  %5461 = vmatpush.bf16.msrb.mxu0 %v9661_v39 }
 0x4b6   : > { %v5228_v17 = vpop.f32.mrf.mxu3  ;;  %v5084_v0 = vpop.f32.mrf.mxu0  ;;  %v11197_v6 = vor.u32 %v12465_v56, %v11194_v1  ;;  %5510 = vmatpush.bf16.msrb.mxu1 %v10173_v57  ;;  %v12321_v57 = vld [vmem:[%s13226_s10 + $0x924] sm:$0xf] }
 0x4b7   : > { %v5085_v18 = vadd.f32 %v5084_v0, %v14413_v38  ;;  %v5229_v59 = vadd.f32 %v5228_v17, %v5180_v32  ;;  %5328 = vmatmul.bf16.gmra.mxu1 %v13367_v51  ;;  %v10618_v39 = vld [vmem:[%s13226_s10 + $0x960] sm:$0xf0] }
 0x4b8   : > { %5608 = vmatpush.bf16.msrb.mxu3 %v11197_v6  ;;  %v12065_v6 = vld [vmem:[%s13226_s10 + $0x124] sm:$0xf] }
 0x4b9   : > { %v5134_v60 = vadd.f32 %v5133_v31, %v5085_v18  ;;  %5279 = vmatmul.bf16.gmra.mxu0 %v13365_v50  ;;  %v6884_v36 = vmax.f32 %v5229_v59, 0.0  ;;  %5377 = vmatmul.bf16.gmra.mxu2 %v13369_v52 }
 0x4bb   : > { %5426 = vmatmul.bf16.gmra.mxu3 %v13371_v53  ;;  %v14458_v20 = vpack.c.bf16 %v6884_v36, %v6868_v63 }
 0x4bc   : > { %v5182_v35 = vpop.f32.mrf.mxu2  ;;  %v5135_v31 = vpop.f32.mrf.mxu1 }
 0x4bd   : > { %15925 = vst [vmem:[#allocation69_spill] sm:$0xff] %v14458_v20  ;;  %v5183_v32 = vadd.f32 %v5182_v35, %v5134_v60 }
 0x4be   : > { %v5231_v17 = vpop.f32.mrf.mxu3  ;;  %v5086_v0 = vpop.f32.mrf.mxu0 }
 0x4bf   : > { %v5087_v18 = vadd.f32 %v5086_v0, %v14413_v38  ;;  %v5232_v59 = vadd.f32 %v5231_v17, %v5183_v32  ;;  %v10621_v32 = vor.u32 %v12321_v57, %v10618_v39  ;;  %v9594_v17 = vld [vmem:[%s13226_s10 + $0x160] sm:$0xf0] }
 0x4c0   : > { %v12449_v0 = vld [vmem:[%s13226_s10 + $0xd24] sm:$0xf] }
 0x4c1   : > { %v5136_v61 = vadd.f32 %v5135_v31, %v5087_v18  ;;  %v6900_v35 = vmax.f32 %v5232_v59, 0.0  ;;  %v11130_v18 = vld [vmem:[%s13226_s10 + $0xd60] sm:$0xf0]  ;;  %v9597_v59 = vor.u32 %v12065_v6, %v9594_v17  ;;  %5560 = vmatpush.bf16.msrb.mxu2 %v10621_v32 }
 0x4c2   : > { %v11133_v29 = vor.u32 %v12449_v0, %v11130_v18  ;;  %v12193_v57 = vld [vmem:[%s13226_s10 + $0x524] sm:$0xf] }
 0x4c3   : > { %5462 = vmatpush.bf16.msrb.mxu0 %v9597_v59  ;;  %v10106_v39 = vld [vmem:[%s13226_s10 + $0x560] sm:$0xf0] }
 0x4c4   : > { %v5184_v63 = vpop.f32.mrf.mxu2  ;;  %v5138_v30 = vpop.f32.mrf.mxu1  ;;  %5609 = vmatpush.bf16.msrb.mxu3 %v11133_v29  ;;  %v10109_v20 = vor.u32 %v12193_v57, %v10106_v39  ;;  %v10554_v29 = vld [vmem:[%s13226_s10 + $0x8e0] sm:$0xf0] }
 0x4c5   : > { %v5185_v36 = vadd.f32 %v5184_v63, %v5136_v61 }
 0x4c6   : > { %v5233_v60 = vpop.f32.mrf.mxu3  ;;  %v5089_v19 = vpop.f32.mrf.mxu0  ;;  %5511 = vmatpush.bf16.msrb.mxu1 %v10109_v20  ;;  %v12305_v20 = vld [vmem:[%s13226_s10 + $0x8a4] sm:$0xf] }
 0x4c7   : > { %v5090_v40 = vadd.f32 %v5089_v19, %v14413_v38  ;;  %v5234_v56 = vadd.f32 %v5233_v60, %v5185_v36  ;;  %5333 = vmatmul.bf16.gmra.mxu1 %v13387_v14 }
 0x4c9   : > { %v5139_v1 = vadd.f32 %v5138_v30, %v5090_v40  ;;  %5284 = vmatmul.bf16.gmra.mxu0 %v13385_v13  ;;  %v6916_v4 = vmax.f32 %v5234_v56, 0.0  ;;  %5382 = vmatmul.bf16.gmra.mxu2 %v13389_v15 }
 0x4cb   : > { %5431 = vmatmul.bf16.gmra.mxu3 %v13391_v16  ;;  %v14474_v31 = vpack.c.bf16 %v6916_v4, %v6900_v35 }
 0x4cc   : > { %v5187_v61 = vpop.f32.mrf.mxu2  ;;  %v5140_v40 = vpop.f32.mrf.mxu1 }
 0x4cd   : > { %15926 = vst [vmem:[#allocation70_spill] sm:$0xff] %v14474_v31  ;;  %v5188_v63 = vadd.f32 %v5187_v61, %v5139_v1 }
 0x4ce   : > { %v5236_v36 = vpop.f32.mrf.mxu3  ;;  %v5091_v60 = vpop.f32.mrf.mxu0 }
 0x4cf   : > { %v5092_v19 = vadd.f32 %v5091_v60, %v14413_v38  ;;  %v5237_v30 = vadd.f32 %v5236_v36, %v5188_v63  ;;  %v12049_v63 = vld [vmem:[%s13226_s10 + $0xa4] sm:$0xf]  ;;  %v10557_v36 = vor.u32 %v12305_v20, %v10554_v29 }
 0x4d0   : > { %v9530_v60 = vld [vmem:[%s13226_s10 + $0xe0] sm:$0xf0] }
 0x4d1   : > { %v5141_v56 = vadd.f32 %v5140_v40, %v5092_v19  ;;  %v6932_v61 = vmax.f32 %v5237_v30, 0.0  ;;  %v12433_v19 = vld [vmem:[%s13226_s10 + $0xca4] sm:$0xf]  ;;  %v9533_v30 = vor.u32 %v12049_v63, %v9530_v60  ;;  %5561 = vmatpush.bf16.msrb.mxu2 %v10557_v36 }
 0x4d2   : > { %v11066_v40 = vld [vmem:[%s13226_s10 + $0xce0] sm:$0xf0] }
 0x4d3   : > { %v11069_v39 = vor.u32 %v12433_v19, %v11066_v40  ;;  %5463 = vmatpush.bf16.msrb.mxu0 %v9533_v30  ;;  %v12177_v20 = vld [vmem:[%s13226_s10 + $0x4a4] sm:$0xf] }
 0x4d4   : > { %v5189_v35 = vpop.f32.mrf.mxu2  ;;  %v5143_v17 = vpop.f32.mrf.mxu1  ;;  %v10042_v29 = vld [vmem:[%s13226_s10 + $0x4e0] sm:$0xf0] }
 0x4d5   : > { %v5190_v4 = vadd.f32 %v5189_v35, %v5141_v56  ;;  %5610 = vmatpush.bf16.msrb.mxu3 %v11069_v39  ;;  %v10045_v31 = vor.u32 %v12177_v20, %v10042_v29  ;;  %v10490_v39 = vld [vmem:[%s13226_s10 + $0x860] sm:$0xf0] }
 0x4d6   : > { %v5238_v1 = vpop.f32.mrf.mxu3  ;;  %v5094_v6 = vpop.f32.mrf.mxu0 }
 0x4d7   : > { %v5095_v32 = vadd.f32 %v5094_v6, %v14413_v38  ;;  %v5239_v0 = vadd.f32 %v5238_v1, %v5190_v4  ;;  %5338 = vmatmul.bf16.gmra.mxu1 %v13407_v42 }
 0x4d8   : > { %5512 = vmatpush.bf16.msrb.mxu1 %v10045_v31  ;;  %v12289_v31 = vld [vmem:[%s13226_s10 + $0x824] sm:$0xf] }
 0x4d9   : > { %v5144_v18 = vadd.f32 %v5143_v17, %v5095_v32  ;;  %5289 = vmatmul.bf16.gmra.mxu0 %v13405_v41  ;;  %v6948_v59 = vmax.f32 %v5239_v0, 0.0  ;;  %5387 = vmatmul.bf16.gmra.mxu2 %v13409_v43 }
 0x4db   : > { %5436 = vmatmul.bf16.gmra.mxu3 %v13411_v44  ;;  %v14490_v56 = vpack.c.bf16 %v6948_v59, %v6932_v61 }
 0x4dc   : > { %v5192_v57 = vpop.f32.mrf.mxu2  ;;  %v5145_v32 = vpop.f32.mrf.mxu1 }
 0x4dd   : > { %15927 = vst [vmem:[#allocation71_spill] sm:$0xff] %v14490_v56  ;;  %v5193_v35 = vadd.f32 %v5192_v57, %v5144_v18 }
 0x4de   : > { %v5241_v4 = vpop.f32.mrf.mxu3  ;;  %v5096_v1 = vpop.f32.mrf.mxu0 }
 0x4df   : > { %v5097_v6 = vadd.f32 %v5096_v1, %v14413_v38  ;;  %v5242_v17 = vadd.f32 %v5241_v4, %v5193_v35  ;;  %v12033_v35 = vld [vmem:[%s13226_s10 + $0x24] sm:$0xf]  ;;  %v10493_v4 = vor.u32 %v12289_v31, %v10490_v39 }
 0x4e0   : > { %v9466_v1 = vld [vmem:[%s13226_s10 + $0x60] sm:$0xf0] }
 0x4e1   : > { %v5146_v0 = vadd.f32 %v5145_v32, %v5097_v6  ;;  %v6964_v57 = vmax.f32 %v5242_v17, 0.0  ;;  %v12417_v6 = vld [vmem:[%s13226_s10 + $0xc24] sm:$0xf]  ;;  %v9469_v17 = vor.u32 %v12033_v35, %v9466_v1  ;;  %5562 = vmatpush.bf16.msrb.mxu2 %v10493_v4 }
 0x4e2   : > { %v11002_v32 = vld [vmem:[%s13226_s10 + $0xc60] sm:$0xf0] }
 0x4e3   : > { %v11005_v29 = vor.u32 %v12417_v6, %v11002_v32  ;;  %5464 = vmatpush.bf16.msrb.mxu0 %v9469_v17  ;;  %v12161_v31 = vld [vmem:[%s13226_s10 + $0x424] sm:$0xf] }
 0x4e4   : > { %v5194_v61 = vpop.f32.mrf.mxu2  ;;  %v5148_v60 = vpop.f32.mrf.mxu1  ;;  %v9978_v39 = vld [vmem:[%s13226_s10 + $0x460] sm:$0xf0] }
 0x4e5   : > { %v5195_v59 = vadd.f32 %v5194_v61, %v5146_v0  ;;  %5611 = vmatpush.bf16.msrb.mxu3 %v11005_v29  ;;  %v9981_v56 = vor.u32 %v12161_v31, %v9978_v39  ;;  %v12410_v29 = vld [vmem:[%s13226_s10 + $0xbe4] sm:$0xf0] }
 0x4e6   : > { %v5243_v18 = vpop.f32.mrf.mxu3  ;;  %v5099_v63 = vpop.f32.mrf.mxu0 }
 0x4e7   : > { %v5100_v36 = vadd.f32 %v5099_v63, %v14413_v38  ;;  %v5244_v19 = vadd.f32 %v5243_v18, %v5195_v59  ;;  %5343 = vmatmul.bf16.gmra.mxu1 %v13427_v10 }
 0x4e8   : > { %5513 = vmatpush.bf16.msrb.mxu1 %v9981_v56  ;;  %v10944_v56 = vld [vmem:[%s13226_s10 + $0xba8] sm:$0xf] }
 0x4e9   : > { %v5149_v40 = vadd.f32 %v5148_v60, %v5100_v36  ;;  %5294 = vmatmul.bf16.gmra.mxu0 %v13425_v9  ;;  %v6980_v30 = vmax.f32 %v5244_v19, 0.0  ;;  %5392 = vmatmul.bf16.gmra.mxu2 %v13429_v11 }
 0x4eb   : > { %5441 = vmatmul.bf16.gmra.mxu3 %v13431_v12  ;;  %v14506_v0 = vpack.c.bf16 %v6980_v30, %v6964_v57 }
 0x4ec   : > { %v5197_v20 = vpop.f32.mrf.mxu2  ;;  %v5150_v36 = vpop.f32.mrf.mxu1 }
 0x4ed   : > { %15928 = vst [vmem:[#allocation72_spill] sm:$0xff] %v14506_v0  ;;  %v5198_v61 = vadd.f32 %v5197_v20, %v5149_v40 }
 0x4ee   : > { %v5246_v59 = vpop.f32.mrf.mxu3  ;;  %v5101_v18 = vpop.f32.mrf.mxu0 }
 0x4ef   : > { %v5102_v63 = vadd.f32 %v5101_v18, %v14413_v38  ;;  %v5247_v60 = vadd.f32 %v5246_v59, %v5198_v61  ;;  %v9920_v61 = vld [vmem:[%s13226_s10 + $0x3a8] sm:$0xf]  ;;  %v10945_v59 = vor.u32 %v12410_v29, %v10944_v56 }
 0x4f0   : > { %v12154_v18 = vld [vmem:[%s13226_s10 + $0x3e4] sm:$0xf0] }
 0x4f1   : > { %v5151_v19 = vadd.f32 %v5150_v36, %v5102_v63  ;;  %v6996_v20 = vmax.f32 %v5247_v60, 0.0  ;;  %v11456_v63 = vld [vmem:[%s13226_s10 + $0xfa8] sm:$0xf]  ;;  %v9921_v60 = vor.u32 %v12154_v18, %v9920_v61  ;;  %5751 = vmatpush.bf16.msra.mxu2 %v10945_v59 }
 0x4f2   : > { %v12538_v36 = vld [vmem:[%s13226_s10 + $0xfe4] sm:$0xf0] }
 0x4f3   : > { %v11457_v39 = vor.u32 %v12538_v36, %v11456_v63  ;;  %5653 = vmatpush.bf16.msra.mxu0 %v9921_v60  ;;  %v10432_v56 = vld [vmem:[%s13226_s10 + $0x7a8] sm:$0xf] }
 0x4f4   : > { %v5199_v57 = vpop.f32.mrf.mxu2  ;;  %v5153_v1 = vpop.f32.mrf.mxu1  ;;  %v12282_v29 = vld [vmem:[%s13226_s10 + $0x7e4] sm:$0xf0] }
 0x4f5   : > { %v5200_v30 = vadd.f32 %v5199_v57, %v5151_v19  ;;  %5800 = vmatpush.bf16.msra.mxu3 %v11457_v39  ;;  %v10433_v0 = vor.u32 %v12282_v29, %v10432_v56  ;;  %v12394_v39 = vld [vmem:[%s13226_s10 + $0xb64] sm:$0xf0] }
 0x4f6   : > { %v5248_v40 = vpop.f32.mrf.mxu3  ;;  %v5104_v35 = vpop.f32.mrf.mxu0 }
 0x4f7   : > { %v5105_v4 = vadd.f32 %v5104_v35, %v14413_v38  ;;  %v5249_v6 = vadd.f32 %v5248_v40, %v5200_v30  ;;  %5348 = vmatmul.bf16.gmra.mxu1 %v13447_v46 }
 0x4f8   : > { %5702 = vmatpush.bf16.msra.mxu1 %v10433_v0  ;;  %v10880_v0 = vld [vmem:[%s13226_s10 + $0xb28] sm:$0xf] }
 0x4f9   : > { %v5154_v32 = vadd.f32 %v5153_v1, %v5105_v4  ;;  %5299 = vmatmul.bf16.gmra.mxu0 %v13445_v45  ;;  %v7012_v17 = vmax.f32 %v5249_v6, 0.0  ;;  %5397 = vmatmul.bf16.gmra.mxu2 %v13449_v47 }
 0x4fb   : > { %5446 = vmatmul.bf16.gmra.mxu3 %v13451_v48  ;;  %v14522_v19 = vpack.c.bf16 %v7012_v17, %v6996_v20 }
 0x4fc   : > { %v5202_v31 = vpop.f32.mrf.mxu2  ;;  %v5155_v4 = vpop.f32.mrf.mxu1 }
 0x4fd   : > { %15929 = vst [vmem:[#allocation73_spill] sm:$0xff] %v14522_v19  ;;  %v5203_v57 = vadd.f32 %v5202_v31, %v5154_v32  ;;  %v12250_v19 = vld [vmem:[%s13226_s10 + $0x6e4] sm:$0xf0] }
 0x4fe   : > { %v5251_v30 = vpop.f32.mrf.mxu3  ;;  %v5106_v40 = vpop.f32.mrf.mxu0 }
 0x4ff   : > { %v5107_v35 = vadd.f32 %v5106_v40, %v14413_v38  ;;  %v5252_v1 = vadd.f32 %v5251_v30, %v5203_v57  ;;  %v9856_v57 = vld [vmem:[%s13226_s10 + $0x328] sm:$0xf] }
 0x501   : > { %v5156_v6 = vadd.f32 %v5155_v4, %v5107_v35  ;;  %v7028_v31 = vmax.f32 %v5252_v1, 0.0  ;;  %v10881_v35 = vor.u32 %v12394_v39, %v10880_v0  ;;  %v12138_v4 = vld [vmem:[%s13226_s10 + $0x364] sm:$0xf0] }
 0x502   : > { %v12522_v1 = vld [vmem:[%s13226_s10 + $0xf64] sm:$0xf0] }
 0x503   : > { %5752 = vmatpush.bf16.msra.mxu2 %v10881_v35  ;;  %v12266_v0 = vld [vmem:[%s13226_s10 + $0x764] sm:$0xf0] }
 0x504   : > { %v5204_v20 = vpop.f32.mrf.mxu2  ;;  %v5158_v18 = vpop.f32.mrf.mxu1 }
 0x505   : > { %v5205_v17 = vadd.f32 %v5204_v20, %v5156_v6  ;;  %v11392_v6 = vld [vmem:[%s13226_s10 + $0xf28] sm:$0xf] }
 0x506   : > { %v5253_v32 = vpop.f32.mrf.mxu3  ;;  %v5109_v61 = vpop.f32.mrf.mxu0 }
 0x507   : > { %v5110_v59 = vadd.f32 %v5109_v61, %v14413_v38  ;;  %v5254_v63 = vadd.f32 %v5253_v32, %v5205_v17  ;;  %5353 = vmatmul.bf16.gmra.mxu1 %v13467_v22  ;;  %v9857_v17 = vor.u32 %v12138_v4, %v9856_v57  ;;  %v11393_v32 = vor.u32 %v12522_v1, %v11392_v6 }
 0x509   : > { %v5159_v36 = vadd.f32 %v5158_v18, %v5110_v59  ;;  %5304 = vmatmul.bf16.gmra.mxu0 %v13465_v21  ;;  %v7044_v60 = vmax.f32 %v5254_v63, 0.0  ;;  %5402 = vmatmul.bf16.gmra.mxu2 %v13469_v23  ;;  %v14542_v63 = vld [vmem:[%s13232_s29 + $0x8] sm:$0xff] }
 0x50a   : > { %5654 = vmatpush.bf16.msra.mxu0 %v9857_v17  ;;  %5801 = vmatpush.bf16.msra.mxu3 %v11393_v32  ;;  %v14547_v39 = vperm.slane %v14542_v63, 0  ;;  %v10816_v17 = vld [vmem:[%s13226_s10 + $0xaa8] sm:$0xf] }
 0x50b   : > { %5451 = vmatmul.bf16.gmra.mxu3 %v13471_v24  ;;  %v14535_v30 = vpack.c.bf16 %v7044_v60, %v7028_v31  ;;  %v10368_v60 = vld [vmem:[%s13226_s10 + $0x728] sm:$0xf] }
 0x50c   : > { %v5207_v40 = vpop.f32.mrf.mxu2  ;;  %v5160_v59 = vpop.f32.mrf.mxu1  ;;  %v12378_v32 = vld [vmem:[%s13226_s10 + $0xae4] sm:$0xf0] }
 0x50d   : > { %15930 = vst [vmem:[#allocation74_spill] sm:$0xff] %v14535_v30  ;;  %v5208_v56 = vadd.f32 %v5207_v40, %v5159_v36  ;;  %v10369_v36 = vor.u32 %v12266_v0, %v10368_v60  ;;  %v11328_v60 = vld [vmem:[%s13226_s10 + $0xea8] sm:$0xf] }
 0x50e   : > { %v5256_v29 = vpop.f32.mrf.mxu3  ;;  %v5111_v20 = vpop.f32.mrf.mxu0  ;;  %v12506_v0 = vld [vmem:[%s13226_s10 + $0xee4] sm:$0xf0] }
 0x50f   : > { %v5112_v61 = vadd.f32 %v5111_v20, %v14413_v38  ;;  %v5257_v18 = vadd.f32 %v5256_v29, %v5208_v56  ;;  %5703 = vmatpush.bf16.msra.mxu1 %v10369_v36  ;;  %v10304_v30 = vld [vmem:[%s13226_s10 + $0x6a8] sm:$0xf] }
 0x510   : > { %v10305_v33 = vor.u32 %v12250_v19, %v10304_v30  ;;  %v12362_v30 = vld [vmem:[%s13226_s10 + $0xa64] sm:$0xf0] }
 0x511   : > { %v5161_v31 = vadd.f32 %v5160_v59, %v5112_v61  ;;  %v7060_v29 = vmax.f32 %v5257_v18, 0.0  ;;  %v9792_v61 = vld [vmem:[%s13226_s10 + $0x2a8] sm:$0xf]  ;;  %v10817_v59 = vor.u32 %v12378_v32, %v10816_v17 }
 0x513   : > { %5753 = vmatpush.bf16.msra.mxu2 %v10817_v59  ;;  %5704 = vmatpush.bf16.msra.mxu1 %v10305_v33  ;;  %v10752_v33 = vld [vmem:[%s13226_s10 + $0xa28] sm:$0xf] }
 0x514   : > { %v5209_v40 = vpop.f32.mrf.mxu2  ;;  %v5319_v6 = vpop.f32.mrf.mxu1 }
 0x515   : > { %v5210_v38 = vadd.f32 %v5209_v40, %v5161_v31  ;;  %v12122_v31 = vld [vmem:[%s13226_s10 + $0x2e4] sm:$0xf0] }
 0x516   : > { %v5258_v57 = vpop.f32.mrf.mxu3  ;;  %v5270_v35 = vpop.f32.mrf.mxu0  ;;  %v9793_v18 = vor.u32 %v12122_v31, %v9792_v61 }
 0x517   : > { %v5271_v4 = vadd.f32 %v5270_v35, %v14547_v39  ;;  %v5259_v1 = vadd.f32 %v5258_v57, %v5210_v38  ;;  %5514 = vmatmul.bf16.vlgmr.msrb.gmra.mxu1 %v13321_v54  ;;  %v11329_v38 = vor.u32 %v12506_v0, %v11328_v60 }
 0x518   : > { %5655 = vmatpush.bf16.msra.mxu0 %v9793_v18  ;;  %v9728_v18 = vld [vmem:[%s13226_s10 + $0x228] sm:$0xf] }
 0x519   : > { %v5320_v56 = vadd.f32 %v5319_v6, %v5271_v4  ;;  %5465 = vmatmul.bf16.vlgmr.msrb.gmra.mxu0 %v13316_v49  ;;  %v7076_v20 = vmax.f32 %v5259_v1, 0.0  ;;  %5563 = vmatmul.bf16.vlgmr.msrb.gmra.mxu2 %v13323_v55 }
 0x51a   : > { %5802 = vmatpush.bf16.msra.mxu3 %v11329_v38 }
 0x51b   : > { %5612 = vmatmul.bf16.vlgmr.msrb.gmra.mxu3 %v13327_v58  ;;  %v14560_v36 = vpack.c.bf16 %v7076_v20, %v7060_v29 }
 0x51c   : > { %v5368_v40 = vpop.f32.mrf.mxu2  ;;  %v5321_v1 = vpop.f32.mrf.mxu1 }
 0x51d   : > { %15931 = vst [vmem:[#allocation75_spill] sm:$0xff] %v14560_v36  ;;  %v5369_v57 = vadd.f32 %v5368_v40, %v5320_v56 }
 0x51e   : > { %v5417_v35 = vpop.f32.mrf.mxu3  ;;  %v5272_v4 = vpop.f32.mrf.mxu0 }
 0x51f   : > { %v5273_v6 = vadd.f32 %v5272_v4, %v14547_v39  ;;  %v5418_v17 = vadd.f32 %v5417_v35, %v5369_v57  ;;  %v10753_v57 = vor.u32 %v12362_v30, %v10752_v33  ;;  %v12106_v35 = vld [vmem:[%s13226_s10 + $0x264] sm:$0xf0] }
 0x520   : > { %v11264_v4 = vld [vmem:[%s13226_s10 + $0xe28] sm:$0xf] }
 0x521   : > { %v5322_v32 = vadd.f32 %v5321_v1, %v5273_v6  ;;  %v6837_v40 = vmax.f32 %v5418_v17, 0.0  ;;  %v12490_v6 = vld [vmem:[%s13226_s10 + $0xe64] sm:$0xf0]  ;;  %v9729_v17 = vor.u32 %v12106_v35, %v9728_v18  ;;  %5754 = vmatpush.bf16.msra.mxu2 %v10753_v57 }
 0x523   : > { %5656 = vmatpush.bf16.msra.mxu0 %v9729_v17 }
 0x524   : > { %v5370_v29 = vpop.f32.mrf.mxu2  ;;  %v5324_v31 = vpop.f32.mrf.mxu1 }
 0x525   : > { %v5371_v20 = vadd.f32 %v5370_v29, %v5322_v32  ;;  %v11265_v32 = vor.u32 %v12490_v6, %v11264_v4 }
 0x526   : > { %v5419_v56 = vpop.f32.mrf.mxu3  ;;  %v5275_v61 = vpop.f32.mrf.mxu0 }
 0x527   : > { %v5276_v59 = vadd.f32 %v5275_v61, %v14547_v39  ;;  %v5420_v60 = vadd.f32 %v5419_v56, %v5371_v20  ;;  %5519 = vmatmul.bf16.gmra.mxu1 %v13347_v26  ;;  %5803 = vmatpush.bf16.msra.mxu3 %v11265_v32 }
 0x529   : > { %v5325_v0 = vadd.f32 %v5324_v31, %v5276_v59  ;;  %5470 = vmatmul.bf16.gmra.mxu0 %v13345_v25  ;;  %v6853_v19 = vmax.f32 %v5420_v60, 0.0  ;;  %5568 = vmatmul.bf16.gmra.mxu2 %v13349_v27 }
 0x52b   : > { %5617 = vmatmul.bf16.gmra.mxu3 %v13351_v28  ;;  %v14573_v38 = vpack.c.bf16 %v6853_v19, %v6837_v40  ;;  %v10240_v40 = vld [vmem:[%s13226_s10 + $0x628] sm:$0xf] }
 0x52c   : > { %v5373_v1 = vpop.f32.mrf.mxu2  ;;  %v5326_v59 = vpop.f32.mrf.mxu1  ;;  %v12234_v19 = vld [vmem:[%s13226_s10 + $0x664] sm:$0xf0] }
 0x52d   : > { %15932 = vst [vmem:[#allocation76_spill] sm:$0xff] %v14573_v38  ;;  %v5374_v29 = vadd.f32 %v5373_v1, %v5325_v0  ;;  %v10241_v33 = vor.u32 %v12234_v19, %v10240_v40  ;;  %v12474_v40 = vld [vmem:[%s13226_s10 + $0xde4] sm:$0xf0] }
 0x52e   : > { %v5422_v20 = vpop.f32.mrf.mxu3  ;;  %v5277_v56 = vpop.f32.mrf.mxu0  ;;  %v12218_v38 = vld [vmem:[%s13226_s10 + $0x5e4] sm:$0xf0] }
 0x52f   : > { %v5278_v61 = vadd.f32 %v5277_v56, %v14547_v39  ;;  %v5423_v31 = vadd.f32 %v5422_v20, %v5374_v29  ;;  %5705 = vmatpush.bf16.msra.mxu1 %v10241_v33  ;;  %v10688_v29 = vld [vmem:[%s13226_s10 + $0x9a8] sm:$0xf] }
 0x530   : > { %v12346_v20 = vld [vmem:[%s13226_s10 + $0x9e4] sm:$0xf0] }
 0x531   : > { %v5327_v60 = vadd.f32 %v5326_v59, %v5278_v61  ;;  %v6869_v17 = vmax.f32 %v5423_v31, 0.0  ;;  %v9664_v56 = vld [vmem:[%s13226_s10 + $0x1a8] sm:$0xf]  ;;  %v10689_v61 = vor.u32 %v12346_v20, %v10688_v29 }
 0x532   : > { %v12090_v59 = vld [vmem:[%s13226_s10 + $0x1e4] sm:$0xf0] }
 0x533   : > { %v9665_v31 = vor.u32 %v12090_v59, %v9664_v56  ;;  %5755 = vmatpush.bf16.msra.mxu2 %v10689_v61  ;;  %v10176_v20 = vld [vmem:[%s13226_s10 + $0x5a8] sm:$0xf] }
 0x534   : > { %v5375_v30 = vpop.f32.mrf.mxu2  ;;  %v5329_v4 = vpop.f32.mrf.mxu1  ;;  %v10177_v36 = vor.u32 %v12218_v38, %v10176_v20 }
 0x535   : > { %v5376_v18 = vadd.f32 %v5375_v30, %v5327_v60  ;;  %v11200_v60 = vld [vmem:[%s13226_s10 + $0xda8] sm:$0xf]  ;;  %5657 = vmatpush.bf16.msra.mxu0 %v9665_v31 }
 0x536   : > { %v5424_v0 = vpop.f32.mrf.mxu3  ;;  %v5280_v35 = vpop.f32.mrf.mxu0  ;;  %v11201_v30 = vor.u32 %v12474_v40, %v11200_v60  ;;  %5706 = vmatpush.bf16.msra.mxu1 %v10177_v36  ;;  %v10624_v36 = vld [vmem:[%s13226_s10 + $0x928] sm:$0xf] }
 0x537   : > { %v5281_v57 = vadd.f32 %v5280_v35, %v14547_v39  ;;  %v5425_v6 = vadd.f32 %v5424_v0, %v5376_v18  ;;  %5524 = vmatmul.bf16.gmra.mxu1 %v13367_v51  ;;  %v12330_v31 = vld [vmem:[%s13226_s10 + $0x964] sm:$0xf0] }
 0x538   : > { %5804 = vmatpush.bf16.msra.mxu3 %v11201_v30  ;;  %v9600_v30 = vld [vmem:[%s13226_s10 + $0x128] sm:$0xf] }
 0x539   : > { %v5330_v1 = vadd.f32 %v5329_v4, %v5281_v57  ;;  %5475 = vmatmul.bf16.gmra.mxu0 %v13365_v50  ;;  %v6885_v32 = vmax.f32 %v5425_v6, 0.0  ;;  %5573 = vmatmul.bf16.gmra.mxu2 %v13369_v52 }
 0x53b   : > { %5622 = vmatmul.bf16.gmra.mxu3 %v13371_v53  ;;  %v14592_v19 = vpack.c.bf16 %v6885_v32, %v6869_v17 }
 0x53c   : > { %v5378_v33 = vpop.f32.mrf.mxu2  ;;  %v5331_v4 = vpop.f32.mrf.mxu1 }
 0x53d   : > { %15933 = vst [vmem:[#allocation77_spill] sm:$0xff] %v14592_v19  ;;  %v5379_v18 = vadd.f32 %v5378_v33, %v5330_v1 }
 0x53e   : > { %v5427_v0 = vpop.f32.mrf.mxu3  ;;  %v5282_v35 = vpop.f32.mrf.mxu0 }
 0x53f   : > { %v5283_v57 = vadd.f32 %v5282_v35, %v14547_v39  ;;  %v5428_v6 = vadd.f32 %v5427_v0, %v5379_v18  ;;  %v10625_v18 = vor.u32 %v12330_v31, %v10624_v36  ;;  %v12074_v0 = vld [vmem:[%s13226_s10 + $0x164] sm:$0xf0] }
 0x540   : > { %v11136_v35 = vld [vmem:[%s13226_s10 + $0xd28] sm:$0xf] }
 0x541   : > { %v5332_v29 = vadd.f32 %v5331_v4, %v5283_v57  ;;  %v6901_v33 = vmax.f32 %v5428_v6, 0.0  ;;  %v12458_v57 = vld [vmem:[%s13226_s10 + $0xd64] sm:$0xf0]  ;;  %v9601_v6 = vor.u32 %v12074_v0, %v9600_v30  ;;  %5756 = vmatpush.bf16.msra.mxu2 %v10625_v18 }
 0x542   : > { %v11137_v20 = vor.u32 %v12458_v57, %v11136_v35  ;;  %v10112_v36 = vld [vmem:[%s13226_s10 + $0x528] sm:$0xf] }
 0x543   : > { %5658 = vmatpush.bf16.msra.mxu0 %v9601_v6  ;;  %v12202_v31 = vld [vmem:[%s13226_s10 + $0x564] sm:$0xf0] }
 0x544   : > { %v5380_v17 = vpop.f32.mrf.mxu2  ;;  %v5334_v59 = vpop.f32.mrf.mxu1  ;;  %5805 = vmatpush.bf16.msra.mxu3 %v11137_v20  ;;  %v10113_v19 = vor.u32 %v12202_v31, %v10112_v36  ;;  %v12314_v20 = vld [vmem:[%s13226_s10 + $0x8e4] sm:$0xf0] }
 0x545   : > { %v5381_v32 = vadd.f32 %v5380_v17, %v5332_v29 }
 0x546   : > { %v5429_v1 = vpop.f32.mrf.mxu3  ;;  %v5285_v56 = vpop.f32.mrf.mxu0  ;;  %5707 = vmatpush.bf16.msra.mxu1 %v10113_v19  ;;  %v10560_v19 = vld [vmem:[%s13226_s10 + $0x8a8] sm:$0xf] }
 0x547   : > { %v5286_v61 = vadd.f32 %v5285_v56, %v14547_v39  ;;  %v5430_v60 = vadd.f32 %v5429_v1, %v5381_v32  ;;  %5529 = vmatmul.bf16.gmra.mxu1 %v13387_v14 }
 0x549   : > { %v5335_v40 = vadd.f32 %v5334_v59, %v5286_v61  ;;  %5480 = vmatmul.bf16.gmra.mxu0 %v13385_v13  ;;  %v6917_v38 = vmax.f32 %v5430_v60, 0.0  ;;  %5578 = vmatmul.bf16.gmra.mxu2 %v13389_v15 }
 0x54b   : > { %5627 = vmatmul.bf16.gmra.mxu3 %v13391_v16  ;;  %v14608_v4 = vpack.c.bf16 %v6917_v38, %v6901_v33 }
 0x54c   : > { %v5383_v29 = vpop.f32.mrf.mxu2  ;;  %v5336_v61 = vpop.f32.mrf.mxu1 }
 0x54d   : > { %15934 = vst [vmem:[#allocation78_spill] sm:$0xff] %v14608_v4  ;;  %v5384_v17 = vadd.f32 %v5383_v29, %v5335_v40 }
 0x54e   : > { %v5432_v32 = vpop.f32.mrf.mxu3  ;;  %v5287_v1 = vpop.f32.mrf.mxu0 }
 0x54f   : > { %v5288_v56 = vadd.f32 %v5287_v1, %v14547_v39  ;;  %v5433_v59 = vadd.f32 %v5432_v32, %v5384_v17  ;;  %v9536_v17 = vld [vmem:[%s13226_s10 + $0xa8] sm:$0xf]  ;;  %v10561_v32 = vor.u32 %v12314_v20, %v10560_v19 }
 0x550   : > { %v12058_v1 = vld [vmem:[%s13226_s10 + $0xe4] sm:$0xf0] }
 0x551   : > { %v5337_v60 = vadd.f32 %v5336_v61, %v5288_v56  ;;  %v6933_v29 = vmax.f32 %v5433_v59, 0.0  ;;  %v11072_v56 = vld [vmem:[%s13226_s10 + $0xca8] sm:$0xf]  ;;  %v9537_v59 = vor.u32 %v12058_v1, %v9536_v17  ;;  %5757 = vmatpush.bf16.msra.mxu2 %v10561_v32 }
 0x552   : > { %v12442_v61 = vld [vmem:[%s13226_s10 + $0xce4] sm:$0xf0] }
 0x553   : > { %v11073_v31 = vor.u32 %v12442_v61, %v11072_v56  ;;  %5659 = vmatpush.bf16.msra.mxu0 %v9537_v59  ;;  %v10048_v19 = vld [vmem:[%s13226_s10 + $0x4a8] sm:$0xf] }
 0x554   : > { %v5385_v33 = vpop.f32.mrf.mxu2  ;;  %v5339_v0 = vpop.f32.mrf.mxu1  ;;  %v12186_v20 = vld [vmem:[%s13226_s10 + $0x4e4] sm:$0xf0] }
 0x555   : > { %v5386_v38 = vadd.f32 %v5385_v33, %v5337_v60  ;;  %5806 = vmatpush.bf16.msra.mxu3 %v11073_v31  ;;  %v10049_v4 = vor.u32 %v12186_v20, %v10048_v19  ;;  %v12298_v31 = vld [vmem:[%s13226_s10 + $0x864] sm:$0xf0] }
 0x556   : > { %v5434_v40 = vpop.f32.mrf.mxu3  ;;  %v5290_v30 = vpop.f32.mrf.mxu0 }
 0x557   : > { %v5291_v18 = vadd.f32 %v5290_v30, %v14547_v39  ;;  %v5435_v35 = vadd.f32 %v5434_v40, %v5386_v38  ;;  %5534 = vmatmul.bf16.gmra.mxu1 %v13407_v42 }
 0x558   : > { %5708 = vmatpush.bf16.msra.mxu1 %v10049_v4  ;;  %v10496_v4 = vld [vmem:[%s13226_s10 + $0x828] sm:$0xf] }
 0x559   : > { %v5340_v57 = vadd.f32 %v5339_v0, %v5291_v18  ;;  %5485 = vmatmul.bf16.gmra.mxu0 %v13405_v41  ;;  %v6949_v6 = vmax.f32 %v5435_v35, 0.0  ;;  %5583 = vmatmul.bf16.gmra.mxu2 %v13409_v43 }
 0x55b   : > { %5632 = vmatmul.bf16.gmra.mxu3 %v13411_v44  ;;  %v14624_v60 = vpack.c.bf16 %v6949_v6, %v6933_v29 }
 0x55c   : > { %v5388_v36 = vpop.f32.mrf.mxu2  ;;  %v5341_v18 = vpop.f32.mrf.mxu1 }
 0x55d   : > { %15935 = vst [vmem:[#allocation79_spill] sm:$0xff] %v14624_v60  ;;  %v5389_v33 = vadd.f32 %v5388_v36, %v5340_v57 }
 0x55e   : > { %v5437_v38 = vpop.f32.mrf.mxu3  ;;  %v5292_v40 = vpop.f32.mrf.mxu0 }
 0x55f   : > { %v5293_v30 = vadd.f32 %v5292_v40, %v14547_v39  ;;  %v5438_v0 = vadd.f32 %v5437_v38, %v5389_v33  ;;  %v9472_v33 = vld [vmem:[%s13226_s10 + $0x28] sm:$0xf]  ;;  %v10497_v38 = vor.u32 %v12298_v31, %v10496_v4 }
 0x560   : > { %v12042_v40 = vld [vmem:[%s13226_s10 + $0x64] sm:$0xf0] }
 0x561   : > { %v5342_v35 = vadd.f32 %v5341_v18, %v5293_v30  ;;  %v6965_v36 = vmax.f32 %v5438_v0, 0.0  ;;  %v11008_v30 = vld [vmem:[%s13226_s10 + $0xc28] sm:$0xf]  ;;  %v9473_v0 = vor.u32 %v12042_v40, %v9472_v33  ;;  %5758 = vmatpush.bf16.msra.mxu2 %v10497_v38 }
 0x562   : > { %v12426_v18 = vld [vmem:[%s13226_s10 + $0xc64] sm:$0xf0] }
 0x563   : > { %v11009_v20 = vor.u32 %v12426_v18, %v11008_v30  ;;  %5660 = vmatpush.bf16.msra.mxu0 %v9473_v0  ;;  %v9984_v4 = vld [vmem:[%s13226_s10 + $0x428] sm:$0xf] }
 0x564   : > { %v5390_v29 = vpop.f32.mrf.mxu2  ;;  %v5344_v1 = vpop.f32.mrf.mxu1  ;;  %v12170_v31 = vld [vmem:[%s13226_s10 + $0x464] sm:$0xf0] }
 0x565   : > { %v5391_v6 = vadd.f32 %v5390_v29, %v5342_v35  ;;  %5807 = vmatpush.bf16.msra.mxu3 %v11009_v20  ;;  %v9985_v60 = vor.u32 %v12170_v31, %v9984_v4  ;;  %v10946_v20 = vld [vmem:[%s13226_s10 + $0xbe8] sm:$0xf0] }
 0x566   : > { %v5439_v57 = vpop.f32.mrf.mxu3  ;;  %v5295_v17 = vpop.f32.mrf.mxu0 }
 0x567   : > { %v5296_v32 = vadd.f32 %v5295_v17, %v14547_v39  ;;  %v5440_v56 = vadd.f32 %v5439_v57, %v5391_v6  ;;  %5539 = vmatmul.bf16.gmra.mxu1 %v13427_v10 }
 0x568   : > { %5709 = vmatpush.bf16.msra.mxu1 %v9985_v60  ;;  %v12402_v60 = vld [vmem:[%s13226_s10 + $0xbac] sm:$0xf] }
 0x569   : > { %v5345_v61 = vadd.f32 %v5344_v1, %v5296_v32  ;;  %5490 = vmatmul.bf16.gmra.mxu0 %v13425_v9  ;;  %v6981_v59 = vmax.f32 %v5440_v56, 0.0  ;;  %5588 = vmatmul.bf16.gmra.mxu2 %v13429_v11 }
 0x56b   : > { %5637 = vmatmul.bf16.gmra.mxu3 %v13431_v12  ;;  %v14640_v35 = vpack.c.bf16 %v6981_v59, %v6965_v36 }
 0x56c   : > { %v5393_v19 = vpop.f32.mrf.mxu2  ;;  %v5346_v32 = vpop.f32.mrf.mxu1 }
 0x56d   : > { %15936 = vst [vmem:[#allocation80_spill] sm:$0xff] %v14640_v35  ;;  %v5394_v29 = vadd.f32 %v5393_v19, %v5345_v61 }
 0x56e   : > { %v5442_v6 = vpop.f32.mrf.mxu3  ;;  %v5297_v57 = vpop.f32.mrf.mxu0 }
 0x56f   : > { %v5298_v17 = vadd.f32 %v5297_v57, %v14547_v39  ;;  %v5443_v1 = vadd.f32 %v5442_v6, %v5394_v29  ;;  %v12146_v29 = vld [vmem:[%s13226_s10 + $0x3ac] sm:$0xf]  ;;  %v10949_v6 = vor.u32 %v12402_v60, %v10946_v20 }
 0x570   : > { %v9922_v57 = vld [vmem:[%s13226_s10 + $0x3e8] sm:$0xf0] }
 0x571   : > { %v5347_v56 = vadd.f32 %v5346_v32, %v5298_v17  ;;  %v6997_v19 = vmax.f32 %v5443_v1, 0.0  ;;  %v12530_v17 = vld [vmem:[%s13226_s10 + $0xfac] sm:$0xf]  ;;  %v9925_v1 = vor.u32 %v12146_v29, %v9922_v57  ;;  %5947 = vmatpush.bf16.msrb.mxu2 %v10949_v6 }
 0x572   : > { %v11458_v32 = vld [vmem:[%s13226_s10 + $0xfe8] sm:$0xf0] }
 0x573   : > { %v11461_v31 = vor.u32 %v12530_v17, %v11458_v32  ;;  %5849 = vmatpush.bf16.msrb.mxu0 %v9925_v1  ;;  %v12274_v60 = vld [vmem:[%s13226_s10 + $0x7ac] sm:$0xf] }
 0x574   : > { %v5395_v36 = vpop.f32.mrf.mxu2  ;;  %v5349_v40 = vpop.f32.mrf.mxu1  ;;  %v10434_v20 = vld [vmem:[%s13226_s10 + $0x7e8] sm:$0xf0] }
 0x575   : > { %v5396_v59 = vadd.f32 %v5395_v36, %v5347_v56  ;;  %5996 = vmatpush.bf16.msrb.mxu3 %v11461_v31  ;;  %v10437_v35 = vor.u32 %v12274_v60, %v10434_v20  ;;  %v10882_v31 = vld [vmem:[%s13226_s10 + $0xb68] sm:$0xf0] }
 0x576   : > { %v5444_v61 = vpop.f32.mrf.mxu3  ;;  %v5300_v33 = vpop.f32.mrf.mxu0  ;;  %v11394_v60 = vld [vmem:[%s13226_s10 + $0xf68] sm:$0xf0] }
 0x577   : > { %v5301_v38 = vadd.f32 %v5300_v33, %v14547_v39  ;;  %v5445_v30 = vadd.f32 %v5444_v61, %v5396_v59  ;;  %5544 = vmatmul.bf16.gmra.mxu1 %v13447_v46 }
 0x578   : > { %5898 = vmatpush.bf16.msrb.mxu1 %v10437_v35  ;;  %v12386_v35 = vld [vmem:[%s13226_s10 + $0xb2c] sm:$0xf] }
 0x579   : > { %v5350_v18 = vadd.f32 %v5349_v40, %v5301_v38  ;;  %5495 = vmatmul.bf16.gmra.mxu0 %v13445_v45  ;;  %v7013_v0 = vmax.f32 %v5445_v30, 0.0  ;;  %5593 = vmatmul.bf16.gmra.mxu2 %v13449_v47 }
 0x57b   : > { %5642 = vmatmul.bf16.gmra.mxu3 %v13451_v48  ;;  %v14656_v56 = vpack.c.bf16 %v7013_v0, %v6997_v19 }
 0x57c   : > { %v5398_v4 = vpop.f32.mrf.mxu2  ;;  %v5351_v38 = vpop.f32.mrf.mxu1 }
 0x57d   : > { %15937 = vst [vmem:[#allocation81_spill] sm:$0xff] %v14656_v56  ;;  %v5399_v36 = vadd.f32 %v5398_v4, %v5350_v18 }
 0x57e   : > { %v5447_v59 = vpop.f32.mrf.mxu3  ;;  %v5302_v61 = vpop.f32.mrf.mxu0 }
 0x57f   : > { %v5303_v33 = vadd.f32 %v5302_v61, %v14547_v39  ;;  %v5448_v40 = vadd.f32 %v5447_v59, %v5399_v36  ;;  %v12130_v36 = vld [vmem:[%s13226_s10 + $0x32c] sm:$0xf] }
 0x581   : > { %v5352_v30 = vadd.f32 %v5351_v38, %v5303_v33  ;;  %v7029_v4 = vmax.f32 %v5448_v40, 0.0  ;;  %v10885_v33 = vor.u32 %v12386_v35, %v10882_v31  ;;  %v9858_v38 = vld [vmem:[%s13226_s10 + $0x368] sm:$0xf0]  ;;  %v14678_v35 = vperm.slane %v14542_v63, 1 }
 0x583   : > { %5948 = vmatpush.bf16.msrb.mxu2 %v10885_v33 }
 0x584   : > { %v5400_v19 = vpop.f32.mrf.mxu2  ;;  %v5354_v57 = vpop.f32.mrf.mxu1 }
 0x585   : > { %v5401_v0 = vadd.f32 %v5400_v19, %v5352_v30  ;;  %v12514_v30 = vld [vmem:[%s13226_s10 + $0xf2c] sm:$0xf] }
 0x586   : > { %v5449_v18 = vpop.f32.mrf.mxu3  ;;  %v5305_v29 = vpop.f32.mrf.mxu0 }
 0x587   : > { %v5306_v6 = vadd.f32 %v5305_v29, %v14547_v39  ;;  %v5450_v17 = vadd.f32 %v5449_v18, %v5401_v0  ;;  %5549 = vmatmul.bf16.gmra.mxu1 %v13467_v22  ;;  %v9861_v0 = vor.u32 %v12130_v36, %v9858_v38  ;;  %v11397_v18 = vor.u32 %v12514_v30, %v11394_v60 }
 0x589   : > { %v5355_v32 = vadd.f32 %v5354_v57, %v5306_v6  ;;  %5500 = vmatmul.bf16.gmra.mxu0 %v13465_v21  ;;  %v7045_v1 = vmax.f32 %v5450_v17, 0.0  ;;  %5598 = vmatmul.bf16.gmra.mxu2 %v13469_v23 }
 0x58a   : > { %5850 = vmatpush.bf16.msrb.mxu0 %v9861_v0  ;;  %5997 = vmatpush.bf16.msrb.mxu3 %v11397_v18  ;;  %v12114_v0 = vld [vmem:[%s13226_s10 + $0x2ac] sm:$0xf] }
 0x58b   : > { %5647 = vmatmul.bf16.gmra.mxu3 %v13471_v24  ;;  %v14669_v59 = vpack.c.bf16 %v7045_v1, %v7029_v4  ;;  %v12258_v4 = vld [vmem:[%s13226_s10 + $0x72c] sm:$0xf] }
 0x58c   : > { %v5403_v61 = vpop.f32.mrf.mxu2  ;;  %v5356_v6 = vpop.f32.mrf.mxu1  ;;  %v10370_v1 = vld [vmem:[%s13226_s10 + $0x768] sm:$0xf0] }
 0x58d   : > { %15938 = vst [vmem:[#allocation82_spill] sm:$0xff] %v14669_v59  ;;  %v5404_v40 = vadd.f32 %v5403_v61, %v5355_v32  ;;  %v10373_v31 = vor.u32 %v12258_v4, %v10370_v1 }
 0x58e   : > { %v5452_v20 = vpop.f32.mrf.mxu3  ;;  %v5307_v19 = vpop.f32.mrf.mxu0 }
 0x58f   : > { %v5308_v29 = vadd.f32 %v5307_v19, %v14547_v39  ;;  %v5453_v57 = vadd.f32 %v5452_v20, %v5404_v40  ;;  %5899 = vmatpush.bf16.msrb.mxu1 %v10373_v31  ;;  %v12370_v20 = vld [vmem:[%s13226_s10 + $0xaac] sm:$0xf] }
 0x590   : > { %v10818_v19 = vld [vmem:[%s13226_s10 + $0xae8] sm:$0xf0] }
 0x591   : > { %v5357_v17 = vadd.f32 %v5356_v6, %v5308_v29  ;;  %v7061_v63 = vmax.f32 %v5453_v57, 0.0  ;;  %v10821_v18 = vor.u32 %v12370_v20, %v10818_v19  ;;  %v9794_v29 = vld [vmem:[%s13226_s10 + $0x2e8] sm:$0xf0] }
 0x592   : > { %v12498_v6 = vld [vmem:[%s13226_s10 + $0xeac] sm:$0xf]  ;;  %v9797_v57 = vor.u32 %v12114_v0, %v9794_v29 }
 0x593   : > { %5949 = vmatpush.bf16.msrb.mxu2 %v10821_v18  ;;  %v12242_v20 = vld [vmem:[%s13226_s10 + $0x6ac] sm:$0xf] }
 0x594   : > { %v5405_v32 = vpop.f32.mrf.mxu2  ;;  %v5515_v38 = vpop.f32.mrf.mxu1  ;;  %5851 = vmatpush.bf16.msrb.mxu0 %v9797_v57  ;;  %v10306_v19 = vld [vmem:[%s13226_s10 + $0x6e8] sm:$0xf0] }
 0x595   : > { %v5406_v36 = vadd.f32 %v5405_v32, %v5357_v17  ;;  %v11330_v17 = vld [vmem:[%s13226_s10 + $0xee8] sm:$0xf0]  ;;  %v10309_v59 = vor.u32 %v12242_v20, %v10306_v19 }
 0x596   : > { %v5454_v61 = vpop.f32.mrf.mxu3  ;;  %v5466_v39 = vpop.f32.mrf.mxu0  ;;  %v11333_v31 = vor.u32 %v12498_v6, %v11330_v17 }
 0x597   : > { %v5467_v33 = vadd.f32 %v5466_v39, %v14678_v35  ;;  %v5455_v30 = vadd.f32 %v5454_v61, %v5406_v36  ;;  %5710 = vmatmul.bf16.vlgmr.msra.gmra.mxu1 %v13321_v54 }
 0x598   : > { %5998 = vmatpush.bf16.msrb.mxu3 %v11333_v31  ;;  %5900 = vmatpush.bf16.msrb.mxu1 %v10309_v59  ;;  %v12354_v59 = vld [vmem:[%s13226_s10 + $0xa2c] sm:$0xf] }
 0x599   : > { %v5516_v60 = vadd.f32 %v5515_v38, %v5467_v33  ;;  %5661 = vmatmul.bf16.vlgmr.msra.gmra.mxu0 %v13316_v49  ;;  %v7077_v40 = vmax.f32 %v5455_v30, 0.0  ;;  %5759 = vmatmul.bf16.vlgmr.msra.gmra.mxu2 %v13323_v55  ;;  %v10754_v31 = vld [vmem:[%s13226_s10 + $0xa68] sm:$0xf0] }
 0x59b   : > { %5808 = vmatmul.bf16.vlgmr.msra.gmra.mxu3 %v13327_v58  ;;  %v14691_v4 = vpack.c.bf16 %v7077_v40, %v7061_v63 }
 0x59c   : > { %v5564_v1 = vpop.f32.mrf.mxu2  ;;  %v5517_v33 = vpop.f32.mrf.mxu1 }
 0x59d   : > { %15939 = vst [vmem:[#allocation83_spill] sm:$0xff] %v14691_v4  ;;  %v5565_v32 = vadd.f32 %v5564_v1, %v5516_v60  ;;  %v10178_v4 = vld [vmem:[%s13226_s10 + $0x5e8] sm:$0xf0] }
 0x59e   : > { %v5613_v36 = vpop.f32.mrf.mxu3  ;;  %v5468_v61 = vpop.f32.mrf.mxu0 }
 0x59f   : > { %v5469_v39 = vadd.f32 %v5468_v61, %v14678_v35  ;;  %v5614_v38 = vadd.f32 %v5613_v36, %v5565_v32  ;;  %v12098_v32 = vld [vmem:[%s13226_s10 + $0x22c] sm:$0xf]  ;;  %v10757_v61 = vor.u32 %v12354_v59, %v10754_v31 }
 0x5a1   : > { %v5518_v30 = vadd.f32 %v5517_v33, %v5469_v39  ;;  %v6838_v1 = vmax.f32 %v5614_v38, 0.0  ;;  %v9730_v39 = vld [vmem:[%s13226_s10 + $0x268] sm:$0xf0]  ;;  %5950 = vmatpush.bf16.msrb.mxu2 %v10757_v61 }
 0x5a2   : > { %v12482_v33 = vld [vmem:[%s13226_s10 + $0xe2c] sm:$0xf]  ;;  %v9733_v38 = vor.u32 %v12098_v32, %v9730_v39 }
 0x5a4   : > { %v5566_v63 = vpop.f32.mrf.mxu2  ;;  %v5520_v29 = vpop.f32.mrf.mxu1  ;;  %5852 = vmatpush.bf16.msrb.mxu0 %v9733_v38 }
 0x5a5   : > { %v5567_v40 = vadd.f32 %v5566_v63, %v5518_v30  ;;  %v11266_v30 = vld [vmem:[%s13226_s10 + $0xe68] sm:$0xf0] }
 0x5a6   : > { %v5615_v60 = vpop.f32.mrf.mxu3  ;;  %v5471_v0 = vpop.f32.mrf.mxu0  ;;  %v11269_v19 = vor.u32 %v12482_v33, %v11266_v30 }
 0x5a7   : > { %v5472_v18 = vadd.f32 %v5471_v0, %v14678_v35  ;;  %v5616_v6 = vadd.f32 %v5615_v60, %v5567_v40  ;;  %5715 = vmatmul.bf16.gmra.mxu1 %v13347_v26 }
 0x5a8   : > { %5999 = vmatpush.bf16.msrb.mxu3 %v11269_v19 }
 0x5a9   : > { %v5521_v17 = vadd.f32 %v5520_v29, %v5472_v18  ;;  %5666 = vmatmul.bf16.gmra.mxu0 %v13345_v25  ;;  %v6854_v57 = vmax.f32 %v5616_v6, 0.0  ;;  %5764 = vmatmul.bf16.gmra.mxu2 %v13349_v27 }
 0x5ab   : > { %5813 = vmatmul.bf16.gmra.mxu3 %v13351_v28  ;;  %v14704_v36 = vpack.c.bf16 %v6854_v57, %v6838_v1  ;;  %v12226_v1 = vld [vmem:[%s13226_s10 + $0x62c] sm:$0xf] }
 0x5ac   : > { %v5569_v20 = vpop.f32.mrf.mxu2  ;;  %v5522_v18 = vpop.f32.mrf.mxu1  ;;  %v10242_v57 = vld [vmem:[%s13226_s10 + $0x668] sm:$0xf0] }
 0x5ad   : > { %15940 = vst [vmem:[#allocation84_spill] sm:$0xff] %v14704_v36  ;;  %v5570_v63 = vadd.f32 %v5569_v20, %v5521_v17  ;;  %v10245_v59 = vor.u32 %v12226_v1, %v10242_v57  ;;  %v11202_v1 = vld [vmem:[%s13226_s10 + $0xde8] sm:$0xf0] }
 0x5ae   : > { %v5618_v40 = vpop.f32.mrf.mxu3  ;;  %v5473_v60 = vpop.f32.mrf.mxu0 }
 0x5af   : > { %v5474_v0 = vadd.f32 %v5473_v60, %v14678_v35  ;;  %v5619_v29 = vadd.f32 %v5618_v40, %v5570_v63  ;;  %5901 = vmatpush.bf16.msrb.mxu1 %v10245_v59  ;;  %v12338_v63 = vld [vmem:[%s13226_s10 + $0x9ac] sm:$0xf] }
 0x5b0   : > { %v10690_v40 = vld [vmem:[%s13226_s10 + $0x9e8] sm:$0xf0] }
 0x5b1   : > { %v5523_v6 = vadd.f32 %v5522_v18, %v5474_v0  ;;  %v6870_v38 = vmax.f32 %v5619_v29, 0.0  ;;  %v12082_v60 = vld [vmem:[%s13226_s10 + $0x1ac] sm:$0xf]  ;;  %v10693_v0 = vor.u32 %v12338_v63, %v10690_v40 }
 0x5b2   : > { %v9666_v18 = vld [vmem:[%s13226_s10 + $0x1e8] sm:$0xf0] }
 0x5b3   : > { %v9669_v29 = vor.u32 %v12082_v60, %v9666_v18  ;;  %5951 = vmatpush.bf16.msrb.mxu2 %v10693_v0  ;;  %v12210_v40 = vld [vmem:[%s13226_s10 + $0x5ac] sm:$0xf] }
 0x5b4   : > { %v5571_v31 = vpop.f32.mrf.mxu2  ;;  %v5525_v33 = vpop.f32.mrf.mxu1  ;;  %v10181_v56 = vor.u32 %v12210_v40, %v10178_v4 }
 0x5b5   : > { %v5572_v32 = vadd.f32 %v5571_v31, %v5523_v6  ;;  %v12466_v6 = vld [vmem:[%s13226_s10 + $0xdac] sm:$0xf]  ;;  %5853 = vmatpush.bf16.msrb.mxu0 %v9669_v29 }
 0x5b6   : > { %v5620_v17 = vpop.f32.mrf.mxu3  ;;  %v5476_v39 = vpop.f32.mrf.mxu0  ;;  %v11205_v31 = vor.u32 %v12466_v6, %v11202_v1  ;;  %5902 = vmatpush.bf16.msrb.mxu1 %v10181_v56  ;;  %v12322_v56 = vld [vmem:[%s13226_s10 + $0x92c] sm:$0xf] }
 0x5b7   : > { %v5477_v61 = vadd.f32 %v5476_v39, %v14678_v35  ;;  %v5621_v30 = vadd.f32 %v5620_v17, %v5572_v32  ;;  %5720 = vmatmul.bf16.gmra.mxu1 %v13367_v51  ;;  %v10626_v29 = vld [vmem:[%s13226_s10 + $0x968] sm:$0xf0] }
 0x5b8   : > { %6000 = vmatpush.bf16.msrb.mxu3 %v11205_v31  ;;  %v12066_v31 = vld [vmem:[%s13226_s10 + $0x12c] sm:$0xf] }
 0x5b9   : > { %v5526_v20 = vadd.f32 %v5525_v33, %v5477_v61  ;;  %5671 = vmatmul.bf16.gmra.mxu0 %v13365_v50  ;;  %v6886_v19 = vmax.f32 %v5621_v30, 0.0  ;;  %5769 = vmatmul.bf16.gmra.mxu2 %v13369_v52 }
 0x5bb   : > { %5818 = vmatmul.bf16.gmra.mxu3 %v13371_v53  ;;  %v14723_v57 = vpack.c.bf16 %v6886_v19, %v6870_v38 }
 0x5bc   : > { %v5574_v59 = vpop.f32.mrf.mxu2  ;;  %v5527_v33 = vpop.f32.mrf.mxu1 }
 0x5bd   : > { %15941 = vst [vmem:[#allocation85_spill] sm:$0xff] %v14723_v57  ;;  %v5575_v32 = vadd.f32 %v5574_v59, %v5526_v20 }
 0x5be   : > { %v5623_v17 = vpop.f32.mrf.mxu3  ;;  %v5478_v39 = vpop.f32.mrf.mxu0 }
 0x5bf   : > { %v5479_v61 = vadd.f32 %v5478_v39, %v14678_v35  ;;  %v5624_v30 = vadd.f32 %v5623_v17, %v5575_v32  ;;  %v10629_v32 = vor.u32 %v12322_v56, %v10626_v29  ;;  %v9602_v17 = vld [vmem:[%s13226_s10 + $0x168] sm:$0xf0] }
 0x5c0   : > { %v12450_v39 = vld [vmem:[%s13226_s10 + $0xd2c] sm:$0xf] }
 0x5c1   : > { %v5528_v63 = vadd.f32 %v5527_v33, %v5479_v61  ;;  %v6902_v59 = vmax.f32 %v5624_v30, 0.0  ;;  %v11138_v61 = vld [vmem:[%s13226_s10 + $0xd68] sm:$0xf0]  ;;  %v9605_v30 = vor.u32 %v12066_v31, %v9602_v17  ;;  %5952 = vmatpush.bf16.msrb.mxu2 %v10629_v32 }
 0x5c2   : > { %v11141_v40 = vor.u32 %v12450_v39, %v11138_v61  ;;  %v12194_v56 = vld [vmem:[%s13226_s10 + $0x52c] sm:$0xf] }
 0x5c3   : > { %5854 = vmatpush.bf16.msrb.mxu0 %v9605_v30  ;;  %v10114_v29 = vld [vmem:[%s13226_s10 + $0x568] sm:$0xf0] }
 0x5c4   : > { %v5576_v38 = vpop.f32.mrf.mxu2  ;;  %v5530_v18 = vpop.f32.mrf.mxu1  ;;  %6001 = vmatpush.bf16.msrb.mxu3 %v11141_v40  ;;  %v10117_v57 = vor.u32 %v12194_v56, %v10114_v29  ;;  %v10562_v40 = vld [vmem:[%s13226_s10 + $0x8e8] sm:$0xf0] }
 0x5c5   : > { %v5577_v19 = vadd.f32 %v5576_v38, %v5528_v63 }
 0x5c6   : > { %v5625_v20 = vpop.f32.mrf.mxu3  ;;  %v5481_v60 = vpop.f32.mrf.mxu0  ;;  %5903 = vmatpush.bf16.msrb.mxu1 %v10117_v57  ;;  %v12306_v57 = vld [vmem:[%s13226_s10 + $0x8ac] sm:$0xf] }
 0x5c7   : > { %v5482_v0 = vadd.f32 %v5481_v60, %v14678_v35  ;;  %v5626_v6 = vadd.f32 %v5625_v20, %v5577_v19  ;;  %5725 = vmatmul.bf16.gmra.mxu1 %v13387_v14 }
 0x5c9   : > { %v5531_v1 = vadd.f32 %v5530_v18, %v5482_v0  ;;  %5676 = vmatmul.bf16.gmra.mxu0 %v13385_v13  ;;  %v6918_v4 = vmax.f32 %v5626_v6, 0.0  ;;  %5774 = vmatmul.bf16.gmra.mxu2 %v13389_v15 }
 0x5cb   : > { %5823 = vmatmul.bf16.gmra.mxu3 %v13391_v16  ;;  %v14739_v33 = vpack.c.bf16 %v6918_v4, %v6902_v59 }
 0x5cc   : > { %v5579_v63 = vpop.f32.mrf.mxu2  ;;  %v5532_v0 = vpop.f32.mrf.mxu1 }
 0x5cd   : > { %15942 = vst [vmem:[#allocation86_spill] sm:$0xff] %v14739_v33  ;;  %v5580_v38 = vadd.f32 %v5579_v63, %v5531_v1 }
 0x5ce   : > { %v5628_v19 = vpop.f32.mrf.mxu3  ;;  %v5483_v20 = vpop.f32.mrf.mxu0 }
 0x5cf   : > { %v5484_v60 = vadd.f32 %v5483_v20, %v14678_v35  ;;  %v5629_v18 = vadd.f32 %v5628_v19, %v5580_v38  ;;  %v12050_v38 = vld [vmem:[%s13226_s10 + $0xac] sm:$0xf]  ;;  %v10565_v19 = vor.u32 %v12306_v57, %v10562_v40 }
 0x5d0   : > { %v9538_v20 = vld [vmem:[%s13226_s10 + $0xe8] sm:$0xf0] }
 0x5d1   : > { %v5533_v6 = vadd.f32 %v5532_v0, %v5484_v60  ;;  %v6934_v63 = vmax.f32 %v5629_v18, 0.0  ;;  %v12434_v60 = vld [vmem:[%s13226_s10 + $0xcac] sm:$0xf]  ;;  %v9541_v18 = vor.u32 %v12050_v38, %v9538_v20  ;;  %5953 = vmatpush.bf16.msrb.mxu2 %v10565_v19 }
 0x5d2   : > { %v11074_v0 = vld [vmem:[%s13226_s10 + $0xce8] sm:$0xf0] }
 0x5d3   : > { %v11077_v29 = vor.u32 %v12434_v60, %v11074_v0  ;;  %5855 = vmatpush.bf16.msrb.mxu0 %v9541_v18  ;;  %v12178_v57 = vld [vmem:[%s13226_s10 + $0x4ac] sm:$0xf] }
 0x5d4   : > { %v5581_v59 = vpop.f32.mrf.mxu2  ;;  %v5535_v17 = vpop.f32.mrf.mxu1  ;;  %v10050_v40 = vld [vmem:[%s13226_s10 + $0x4e8] sm:$0xf0] }
 0x5d5   : > { %v5582_v4 = vadd.f32 %v5581_v59, %v5533_v6  ;;  %6002 = vmatpush.bf16.msrb.mxu3 %v11077_v29  ;;  %v10053_v33 = vor.u32 %v12178_v57, %v10050_v40  ;;  %v10498_v29 = vld [vmem:[%s13226_s10 + $0x868] sm:$0xf0] }
 0x5d6   : > { %v5630_v1 = vpop.f32.mrf.mxu3  ;;  %v5486_v31 = vpop.f32.mrf.mxu0 }
 0x5d7   : > { %v5487_v32 = vadd.f32 %v5486_v31, %v14678_v35  ;;  %v5631_v39 = vadd.f32 %v5630_v1, %v5582_v4  ;;  %5730 = vmatmul.bf16.gmra.mxu1 %v13407_v42 }
 0x5d8   : > { %5904 = vmatpush.bf16.msrb.mxu1 %v10053_v33  ;;  %v12290_v33 = vld [vmem:[%s13226_s10 + $0x82c] sm:$0xf] }
 0x5d9   : > { %v5536_v61 = vadd.f32 %v5535_v17, %v5487_v32  ;;  %5681 = vmatmul.bf16.gmra.mxu0 %v13405_v41  ;;  %v6950_v30 = vmax.f32 %v5631_v39, 0.0  ;;  %5779 = vmatmul.bf16.gmra.mxu2 %v13409_v43 }
 0x5db   : > { %5828 = vmatmul.bf16.gmra.mxu3 %v13411_v44  ;;  %v14755_v6 = vpack.c.bf16 %v6950_v30, %v6934_v63 }
 0x5dc   : > { %v5584_v56 = vpop.f32.mrf.mxu2  ;;  %v5537_v32 = vpop.f32.mrf.mxu1 }
 0x5dd   : > { %15943 = vst [vmem:[#allocation87_spill] sm:$0xff] %v14755_v6  ;;  %v5585_v59 = vadd.f32 %v5584_v56, %v5536_v61 }
 0x5de   : > { %v5633_v4 = vpop.f32.mrf.mxu3  ;;  %v5488_v1 = vpop.f32.mrf.mxu0 }
 0x5df   : > { %v5489_v31 = vadd.f32 %v5488_v1, %v14678_v35  ;;  %v5634_v17 = vadd.f32 %v5633_v4, %v5585_v59  ;;  %v12034_v59 = vld [vmem:[%s13226_s10 + $0x2c] sm:$0xf]  ;;  %v10501_v4 = vor.u32 %v12290_v33, %v10498_v29 }
 0x5e0   : > { %v9474_v1 = vld [vmem:[%s13226_s10 + $0x68] sm:$0xf0] }
 0x5e1   : > { %v5538_v39 = vadd.f32 %v5537_v32, %v5489_v31  ;;  %v6966_v56 = vmax.f32 %v5634_v17, 0.0  ;;  %v12418_v31 = vld [vmem:[%s13226_s10 + $0xc2c] sm:$0xf]  ;;  %v9477_v17 = vor.u32 %v12034_v59, %v9474_v1  ;;  %5954 = vmatpush.bf16.msrb.mxu2 %v10501_v4 }
 0x5e2   : > { %v11010_v32 = vld [vmem:[%s13226_s10 + $0xc68] sm:$0xf0] }
 0x5e3   : > { %v11013_v40 = vor.u32 %v12418_v31, %v11010_v32  ;;  %5856 = vmatpush.bf16.msrb.mxu0 %v9477_v17  ;;  %v12162_v33 = vld [vmem:[%s13226_s10 + $0x42c] sm:$0xf] }
 0x5e4   : > { %v5586_v63 = vpop.f32.mrf.mxu2  ;;  %v5540_v20 = vpop.f32.mrf.mxu1  ;;  %v9986_v29 = vld [vmem:[%s13226_s10 + $0x468] sm:$0xf0] }
 0x5e5   : > { %v5587_v30 = vadd.f32 %v5586_v63, %v5538_v39  ;;  %6003 = vmatpush.bf16.msrb.mxu3 %v11013_v40  ;;  %v9989_v6 = vor.u32 %v12162_v33, %v9986_v29  ;;  %v12411_v40 = vld [vmem:[%s13226_s10 + $0xbec] sm:$0xf0] }
 0x5e6   : > { %v5635_v61 = vpop.f32.mrf.mxu3  ;;  %v5491_v38 = vpop.f32.mrf.mxu0 }
 0x5e7   : > { %v5492_v19 = vadd.f32 %v5491_v38, %v14678_v35  ;;  %v5636_v60 = vadd.f32 %v5635_v61, %v5587_v30  ;;  %5735 = vmatmul.bf16.gmra.mxu1 %v13427_v10 }
 0x5e8   : > { %5905 = vmatpush.bf16.msrb.mxu1 %v9989_v6  ;;  %v10952_v6 = vld [vmem:[%s13226_s10 + $0xbb0] sm:$0xf] }
 0x5e9   : > { %v5541_v0 = vadd.f32 %v5540_v20, %v5492_v19  ;;  %5686 = vmatmul.bf16.gmra.mxu0 %v13425_v9  ;;  %v6982_v18 = vmax.f32 %v5636_v60, 0.0  ;;  %5784 = vmatmul.bf16.gmra.mxu2 %v13429_v11 }
 0x5eb   : > { %5833 = vmatmul.bf16.gmra.mxu3 %v13431_v12  ;;  %v14771_v39 = vpack.c.bf16 %v6982_v18, %v6966_v56 }
 0x5ec   : > { %v5589_v57 = vpop.f32.mrf.mxu2  ;;  %v5542_v19 = vpop.f32.mrf.mxu1 }
 0x5ed   : > { %15944 = vst [vmem:[#allocation88_spill] sm:$0xff] %v14771_v39  ;;  %v5590_v63 = vadd.f32 %v5589_v57, %v5541_v0 }
 0x5ee   : > { %v5638_v30 = vpop.f32.mrf.mxu3  ;;  %v5493_v61 = vpop.f32.mrf.mxu0 }
 0x5ef   : > { %v5494_v38 = vadd.f32 %v5493_v61, %v14678_v35  ;;  %v5639_v20 = vadd.f32 %v5638_v30, %v5590_v63  ;;  %v9928_v63 = vld [vmem:[%s13226_s10 + $0x3b0] sm:$0xf]  ;;  %v10953_v30 = vor.u32 %v12411_v40, %v10952_v6 }
 0x5f0   : > { %v12155_v61 = vld [vmem:[%s13226_s10 + $0x3ec] sm:$0xf0] }
 0x5f1   : > { %v5543_v60 = vadd.f32 %v5542_v19, %v5494_v38  ;;  %v6998_v57 = vmax.f32 %v5639_v20, 0.0  ;;  %v11464_v38 = vld [vmem:[%s13226_s10 + $0xfb0] sm:$0xf]  ;;  %v9929_v20 = vor.u32 %v12155_v61, %v9928_v63  ;;  %6143 = vmatpush.bf16.msra.mxu2 %v10953_v30 }
 0x5f2   : > { %v12539_v19 = vld [vmem:[%s13226_s10 + $0xfec] sm:$0xf0] }
 0x5f3   : > { %v11465_v29 = vor.u32 %v12539_v19, %v11464_v38  ;;  %6045 = vmatpush.bf16.msra.mxu0 %v9929_v20  ;;  %v10440_v6 = vld [vmem:[%s13226_s10 + $0x7b0] sm:$0xf] }
 0x5f4   : > { %v5591_v56 = vpop.f32.mrf.mxu2  ;;  %v5545_v1 = vpop.f32.mrf.mxu1  ;;  %v12283_v40 = vld [vmem:[%s13226_s10 + $0x7ec] sm:$0xf0] }
 0x5f5   : > { %v5592_v18 = vadd.f32 %v5591_v56, %v5543_v60  ;;  %6192 = vmatpush.bf16.msra.mxu3 %v11465_v29  ;;  %v10441_v39 = vor.u32 %v12283_v40, %v10440_v6  ;;  %v12395_v29 = vld [vmem:[%s13226_s10 + $0xb6c] sm:$0xf0] }
 0x5f6   : > { %v5640_v0 = vpop.f32.mrf.mxu3  ;;  %v5496_v59 = vpop.f32.mrf.mxu0 }
 0x5f7   : > { %v5497_v4 = vadd.f32 %v5496_v59, %v14678_v35  ;;  %v5641_v31 = vadd.f32 %v5640_v0, %v5592_v18  ;;  %5740 = vmatmul.bf16.gmra.mxu1 %v13447_v46 }
 0x5f8   : > { %6094 = vmatpush.bf16.msra.mxu1 %v10441_v39  ;;  %v10888_v39 = vld [vmem:[%s13226_s10 + $0xb30] sm:$0xf] }
 0x5f9   : > { %v5546_v32 = vadd.f32 %v5545_v1, %v5497_v4  ;;  %5691 = vmatmul.bf16.gmra.mxu0 %v13445_v45  ;;  %v7014_v17 = vmax.f32 %v5641_v31, 0.0  ;;  %5789 = vmatmul.bf16.gmra.mxu2 %v13449_v47 }
 0x5fb   : > { %5838 = vmatmul.bf16.gmra.mxu3 %v13451_v48  ;;  %v14787_v60 = vpack.c.bf16 %v7014_v17, %v6998_v57 }
 0x5fc   : > { %v5594_v33 = vpop.f32.mrf.mxu2  ;;  %v5547_v4 = vpop.f32.mrf.mxu1 }
 0x5fd   : > { %15945 = vst [vmem:[#allocation89_spill] sm:$0xff] %v14787_v60  ;;  %v5595_v56 = vadd.f32 %v5594_v33, %v5546_v32  ;;  %v12251_v60 = vld [vmem:[%s13226_s10 + $0x6ec] sm:$0xf0] }
 0x5fe   : > { %v5643_v18 = vpop.f32.mrf.mxu3  ;;  %v5498_v0 = vpop.f32.mrf.mxu0 }
 0x5ff   : > { %v5499_v59 = vadd.f32 %v5498_v0, %v14678_v35  ;;  %v5644_v1 = vadd.f32 %v5643_v18, %v5595_v56  ;;  %v9864_v56 = vld [vmem:[%s13226_s10 + $0x330] sm:$0xf] }
 0x601   : > { %v5548_v31 = vadd.f32 %v5547_v4, %v5499_v59  ;;  %v7030_v33 = vmax.f32 %v5644_v1, 0.0  ;;  %v10889_v59 = vor.u32 %v12395_v29, %v10888_v39  ;;  %v12139_v4 = vld [vmem:[%s13226_s10 + $0x36c] sm:$0xf0]  ;;  %v14809_v39 = vld [vmem:[%s13232_s29 + $0x8] sm:$0xff] }
 0x602   : > { %v12523_v1 = vld [vmem:[%s13226_s10 + $0xf6c] sm:$0xf0]  ;;  %v14812_v29 = vperm.slane %v14809_v39, 2 }
 0x603   : > { %6144 = vmatpush.bf16.msra.mxu2 %v10889_v59 }
 0x604   : > { %v5596_v57 = vpop.f32.mrf.mxu2  ;;  %v5550_v61 = vpop.f32.mrf.mxu1 }
 0x605   : > { %v5597_v17 = vadd.f32 %v5596_v57, %v5548_v31  ;;  %v11400_v31 = vld [vmem:[%s13226_s10 + $0xf30] sm:$0xf] }
 0x606   : > { %v5645_v32 = vpop.f32.mrf.mxu3  ;;  %v5501_v63 = vpop.f32.mrf.mxu0 }
 0x607   : > { %v5502_v30 = vadd.f32 %v5501_v63, %v14678_v35  ;;  %v5646_v38 = vadd.f32 %v5645_v32, %v5597_v17  ;;  %5745 = vmatmul.bf16.gmra.mxu1 %v13467_v22  ;;  %v9865_v17 = vor.u32 %v12139_v4, %v9864_v56  ;;  %v11401_v32 = vor.u32 %v12523_v1, %v11400_v31 }
 0x609   : > { %v5551_v19 = vadd.f32 %v5550_v61, %v5502_v30  ;;  %5696 = vmatmul.bf16.gmra.mxu0 %v13465_v21  ;;  %v7046_v20 = vmax.f32 %v5646_v38, 0.0  ;;  %5794 = vmatmul.bf16.gmra.mxu2 %v13469_v23 }
 0x60a   : > { %6046 = vmatpush.bf16.msra.mxu0 %v9865_v17  ;;  %6193 = vmatpush.bf16.msra.mxu3 %v11401_v32  ;;  %v10824_v17 = vld [vmem:[%s13226_s10 + $0xab0] sm:$0xf] }
 0x60b   : > { %5843 = vmatmul.bf16.gmra.mxu3 %v13471_v24  ;;  %v14800_v18 = vpack.c.bf16 %v7046_v20, %v7030_v33  ;;  %v10376_v33 = vld [vmem:[%s13226_s10 + $0x730] sm:$0xf] }
 0x60c   : > { %v5599_v0 = vpop.f32.mrf.mxu2  ;;  %v5552_v30 = vpop.f32.mrf.mxu1  ;;  %v12267_v20 = vld [vmem:[%s13226_s10 + $0x76c] sm:$0xf0] }
 0x60d   : > { %15946 = vst [vmem:[#allocation90_spill] sm:$0xff] %v14800_v18  ;;  %v5600_v6 = vadd.f32 %v5599_v0, %v5551_v19  ;;  %v10377_v19 = vor.u32 %v12267_v20, %v10376_v33  ;;  %v12379_v32 = vld [vmem:[%s13226_s10 + $0xaec] sm:$0xf0] }
 0x60e   : > { %v5648_v40 = vpop.f32.mrf.mxu3  ;;  %v5503_v57 = vpop.f32.mrf.mxu0  ;;  %v11336_v33 = vld [vmem:[%s13226_s10 + $0xeb0] sm:$0xf] }
 0x60f   : > { %v5504_v63 = vadd.f32 %v5503_v57, %v14678_v35  ;;  %v5649_v61 = vadd.f32 %v5648_v40, %v5600_v6  ;;  %6095 = vmatpush.bf16.msra.mxu1 %v10377_v19  ;;  %v12507_v20 = vld [vmem:[%s13226_s10 + $0xeec] sm:$0xf0] }
 0x610   : > { %v10312_v18 = vld [vmem:[%s13226_s10 + $0x6b0] sm:$0xf] }
 0x611   : > { %v5553_v38 = vadd.f32 %v5552_v30, %v5504_v63  ;;  %v7062_v40 = vmax.f32 %v5649_v61, 0.0  ;;  %v9800_v63 = vld [vmem:[%s13226_s10 + $0x2b0] sm:$0xf]  ;;  %v10825_v30 = vor.u32 %v12379_v32, %v10824_v17  ;;  %v10313_v36 = vor.u32 %v12251_v60, %v10312_v18 }
 0x612   : > { %v12363_v18 = vld [vmem:[%s13226_s10 + $0xa6c] sm:$0xf0] }
 0x613   : > { %6145 = vmatpush.bf16.msra.mxu2 %v10825_v30  ;;  %6096 = vmatpush.bf16.msra.mxu1 %v10313_v36  ;;  %v10760_v36 = vld [vmem:[%s13226_s10 + $0xa30] sm:$0xf] }
 0x614   : > { %v5601_v0 = vpop.f32.mrf.mxu2  ;;  %v5711_v31 = vpop.f32.mrf.mxu1 }
 0x615   : > { %v5602_v35 = vadd.f32 %v5601_v0, %v5553_v38  ;;  %v12123_v38 = vld [vmem:[%s13226_s10 + $0x2ec] sm:$0xf0] }
 0x616   : > { %v5650_v56 = vpop.f32.mrf.mxu3  ;;  %v5662_v59 = vpop.f32.mrf.mxu0  ;;  %v9801_v61 = vor.u32 %v12123_v38, %v9800_v63 }
 0x617   : > { %v5663_v4 = vadd.f32 %v5662_v59, %v14812_v29  ;;  %v5651_v1 = vadd.f32 %v5650_v56, %v5602_v35  ;;  %5906 = vmatmul.bf16.vlgmr.msrb.gmra.mxu1 %v13321_v54  ;;  %v11337_v35 = vor.u32 %v12507_v20, %v11336_v33 }
 0x618   : > { %6047 = vmatpush.bf16.msra.mxu0 %v9801_v61  ;;  %v9736_v61 = vld [vmem:[%s13226_s10 + $0x230] sm:$0xf] }
 0x619   : > { %v5712_v6 = vadd.f32 %v5711_v31, %v5663_v4  ;;  %5857 = vmatmul.bf16.vlgmr.msrb.gmra.mxu0 %v13316_v49  ;;  %v7078_v57 = vmax.f32 %v5651_v1, 0.0  ;;  %5955 = vmatmul.bf16.vlgmr.msrb.gmra.mxu2 %v13323_v55 }
 0x61a   : > { %6194 = vmatpush.bf16.msra.mxu3 %v11337_v35 }
 0x61b   : > { %6004 = vmatmul.bf16.vlgmr.msrb.gmra.mxu3 %v13327_v58  ;;  %v14825_v19 = vpack.c.bf16 %v7078_v57, %v7062_v40 }
 0x61c   : > { %v5760_v0 = vpop.f32.mrf.mxu2  ;;  %v5713_v1 = vpop.f32.mrf.mxu1 }
 0x61d   : > { %15947 = vst [vmem:[#allocation91_spill] sm:$0xff] %v14825_v19  ;;  %v5761_v56 = vadd.f32 %v5760_v0, %v5712_v6  ;;  %v12219_v19 = vld [vmem:[%s13226_s10 + $0x5ec] sm:$0xf0] }
 0x61e   : > { %v5809_v59 = vpop.f32.mrf.mxu3  ;;  %v5664_v4 = vpop.f32.mrf.mxu0 }
 0x61f   : > { %v5665_v31 = vadd.f32 %v5664_v4, %v14812_v29  ;;  %v5810_v17 = vadd.f32 %v5809_v59, %v5761_v56  ;;  %v10761_v56 = vor.u32 %v12363_v18, %v10760_v36  ;;  %v12107_v59 = vld [vmem:[%s13226_s10 + $0x26c] sm:$0xf0] }
 0x620   : > { %v11272_v4 = vld [vmem:[%s13226_s10 + $0xe30] sm:$0xf] }
 0x621   : > { %v5714_v32 = vadd.f32 %v5713_v1, %v5665_v31  ;;  %v6839_v0 = vmax.f32 %v5810_v17, 0.0  ;;  %v12491_v31 = vld [vmem:[%s13226_s10 + $0xe6c] sm:$0xf0]  ;;  %v9737_v17 = vor.u32 %v12107_v59, %v9736_v61  ;;  %6146 = vmatpush.bf16.msra.mxu2 %v10761_v56 }
 0x623   : > { %6048 = vmatpush.bf16.msra.mxu0 %v9737_v17 }
 0x624   : > { %v5762_v40 = vpop.f32.mrf.mxu2  ;;  %v5716_v38 = vpop.f32.mrf.mxu1 }
 0x625   : > { %v5763_v57 = vadd.f32 %v5762_v40, %v5714_v32  ;;  %v11273_v32 = vor.u32 %v12491_v31, %v11272_v4 }
 0x626   : > { %v5811_v6 = vpop.f32.mrf.mxu3  ;;  %v5667_v63 = vpop.f32.mrf.mxu0 }
 0x627   : > { %v5668_v30 = vadd.f32 %v5667_v63, %v14812_v29  ;;  %v5812_v33 = vadd.f32 %v5811_v6, %v5763_v57  ;;  %5911 = vmatmul.bf16.gmra.mxu1 %v13347_v26  ;;  %6195 = vmatpush.bf16.msra.mxu3 %v11273_v32 }
 0x629   : > { %v5717_v20 = vadd.f32 %v5716_v38, %v5668_v30  ;;  %5862 = vmatmul.bf16.gmra.mxu0 %v13345_v25  ;;  %v6855_v60 = vmax.f32 %v5812_v33, 0.0  ;;  %5960 = vmatmul.bf16.gmra.mxu2 %v13349_v27 }
 0x62b   : > { %6009 = vmatmul.bf16.gmra.mxu3 %v13351_v28  ;;  %v14838_v35 = vpack.c.bf16 %v6855_v60, %v6839_v0  ;;  %v10248_v0 = vld [vmem:[%s13226_s10 + $0x630] sm:$0xf] }
 0x62c   : > { %v5765_v1 = vpop.f32.mrf.mxu2  ;;  %v5718_v30 = vpop.f32.mrf.mxu1  ;;  %v12235_v60 = vld [vmem:[%s13226_s10 + $0x66c] sm:$0xf0] }
 0x62d   : > { %15948 = vst [vmem:[#allocation92_spill] sm:$0xff] %v14838_v35  ;;  %v5766_v40 = vadd.f32 %v5765_v1, %v5717_v20  ;;  %v10249_v36 = vor.u32 %v12235_v60, %v10248_v0  ;;  %v12475_v0 = vld [vmem:[%s13226_s10 + $0xdec] sm:$0xf0] }
 0x62e   : > { %v5814_v57 = vpop.f32.mrf.mxu3  ;;  %v5669_v6 = vpop.f32.mrf.mxu0 }
 0x62f   : > { %v5670_v63 = vadd.f32 %v5669_v6, %v14812_v29  ;;  %v5815_v38 = vadd.f32 %v5814_v57, %v5766_v40  ;;  %6097 = vmatpush.bf16.msra.mxu1 %v10249_v36  ;;  %v10696_v40 = vld [vmem:[%s13226_s10 + $0x9b0] sm:$0xf] }
 0x630   : > { %v12347_v57 = vld [vmem:[%s13226_s10 + $0x9ec] sm:$0xf0] }
 0x631   : > { %v5719_v33 = vadd.f32 %v5718_v30, %v5670_v63  ;;  %v6871_v17 = vmax.f32 %v5815_v38, 0.0  ;;  %v9672_v6 = vld [vmem:[%s13226_s10 + $0x1b0] sm:$0xf]  ;;  %v10697_v63 = vor.u32 %v12347_v57, %v10696_v40 }
 0x632   : > { %v12091_v30 = vld [vmem:[%s13226_s10 + $0x1ec] sm:$0xf0] }
 0x633   : > { %v9673_v38 = vor.u32 %v12091_v30, %v9672_v6  ;;  %6147 = vmatpush.bf16.msra.mxu2 %v10697_v63  ;;  %v10184_v57 = vld [vmem:[%s13226_s10 + $0x5b0] sm:$0xf] }
 0x634   : > { %v5767_v18 = vpop.f32.mrf.mxu2  ;;  %v5721_v4 = vpop.f32.mrf.mxu1  ;;  %v10185_v35 = vor.u32 %v12219_v19, %v10184_v57 }
 0x635   : > { %v5768_v61 = vadd.f32 %v5767_v18, %v5719_v33  ;;  %v11208_v33 = vld [vmem:[%s13226_s10 + $0xdb0] sm:$0xf]  ;;  %6049 = vmatpush.bf16.msra.mxu0 %v9673_v38 }
 0x636   : > { %v5816_v20 = vpop.f32.mrf.mxu3  ;;  %v5672_v59 = vpop.f32.mrf.mxu0  ;;  %v11209_v18 = vor.u32 %v12475_v0, %v11208_v33  ;;  %6098 = vmatpush.bf16.msra.mxu1 %v10185_v35  ;;  %v10632_v35 = vld [vmem:[%s13226_s10 + $0x930] sm:$0xf] }
 0x637   : > { %v5673_v56 = vadd.f32 %v5672_v59, %v14812_v29  ;;  %v5817_v31 = vadd.f32 %v5816_v20, %v5768_v61  ;;  %5916 = vmatmul.bf16.gmra.mxu1 %v13367_v51  ;;  %v12331_v38 = vld [vmem:[%s13226_s10 + $0x96c] sm:$0xf0] }
 0x638   : > { %6196 = vmatpush.bf16.msra.mxu3 %v11209_v18  ;;  %v9608_v18 = vld [vmem:[%s13226_s10 + $0x130] sm:$0xf] }
 0x639   : > { %v5722_v1 = vadd.f32 %v5721_v4, %v5673_v56  ;;  %5867 = vmatmul.bf16.gmra.mxu0 %v13365_v50  ;;  %v6887_v32 = vmax.f32 %v5817_v31, 0.0  ;;  %5965 = vmatmul.bf16.gmra.mxu2 %v13369_v52 }
 0x63b   : > { %6014 = vmatmul.bf16.gmra.mxu3 %v13371_v53  ;;  %v14857_v60 = vpack.c.bf16 %v6887_v32, %v6871_v17 }
 0x63c   : > { %v5770_v36 = vpop.f32.mrf.mxu2  ;;  %v5723_v4 = vpop.f32.mrf.mxu1 }
 0x63d   : > { %15949 = vst [vmem:[#allocation93_spill] sm:$0xff] %v14857_v60  ;;  %v5771_v61 = vadd.f32 %v5770_v36, %v5722_v1 }
 0x63e   : > { %v5819_v20 = vpop.f32.mrf.mxu3  ;;  %v5674_v59 = vpop.f32.mrf.mxu0 }
 0x63f   : > { %v5675_v56 = vadd.f32 %v5674_v59, %v14812_v29  ;;  %v5820_v31 = vadd.f32 %v5819_v20, %v5771_v61  ;;  %v10633_v61 = vor.u32 %v12331_v38, %v10632_v35  ;;  %v12075_v20 = vld [vmem:[%s13226_s10 + $0x16c] sm:$0xf0] }
 0x640   : > { %v11144_v59 = vld [vmem:[%s13226_s10 + $0xd30] sm:$0xf] }
 0x641   : > { %v5724_v40 = vadd.f32 %v5723_v4, %v5675_v56  ;;  %v6903_v36 = vmax.f32 %v5820_v31, 0.0  ;;  %v12459_v56 = vld [vmem:[%s13226_s10 + $0xd6c] sm:$0xf0]  ;;  %v9609_v31 = vor.u32 %v12075_v20, %v9608_v18  ;;  %6148 = vmatpush.bf16.msra.mxu2 %v10633_v61 }
 0x642   : > { %v11145_v57 = vor.u32 %v12459_v56, %v11144_v59  ;;  %v10120_v35 = vld [vmem:[%s13226_s10 + $0x530] sm:$0xf] }
 0x643   : > { %6050 = vmatpush.bf16.msra.mxu0 %v9609_v31  ;;  %v12203_v38 = vld [vmem:[%s13226_s10 + $0x56c] sm:$0xf0] }
 0x644   : > { %v5772_v17 = vpop.f32.mrf.mxu2  ;;  %v5726_v30 = vpop.f32.mrf.mxu1  ;;  %6197 = vmatpush.bf16.msra.mxu3 %v11145_v57  ;;  %v10121_v60 = vor.u32 %v12203_v38, %v10120_v35  ;;  %v12315_v57 = vld [vmem:[%s13226_s10 + $0x8ec] sm:$0xf0] }
 0x645   : > { %v5773_v32 = vadd.f32 %v5772_v17, %v5724_v40 }
 0x646   : > { %v5821_v1 = vpop.f32.mrf.mxu3  ;;  %v5677_v6 = vpop.f32.mrf.mxu0  ;;  %6099 = vmatpush.bf16.msra.mxu1 %v10121_v60  ;;  %v10568_v60 = vld [vmem:[%s13226_s10 + $0x8b0] sm:$0xf] }
 0x647   : > { %v5678_v63 = vadd.f32 %v5677_v6, %v14812_v29  ;;  %v5822_v33 = vadd.f32 %v5821_v1, %v5773_v32  ;;  %5921 = vmatmul.bf16.gmra.mxu1 %v13387_v14 }
 0x649   : > { %v5727_v0 = vadd.f32 %v5726_v30, %v5678_v63  ;;  %5872 = vmatmul.bf16.gmra.mxu0 %v13385_v13  ;;  %v6919_v19 = vmax.f32 %v5822_v33, 0.0  ;;  %5970 = vmatmul.bf16.gmra.mxu2 %v13389_v15 }
 0x64b   : > { %6019 = vmatmul.bf16.gmra.mxu3 %v13391_v16  ;;  %v14873_v4 = vpack.c.bf16 %v6919_v19, %v6903_v36 }
 0x64c   : > { %v5775_v40 = vpop.f32.mrf.mxu2  ;;  %v5728_v63 = vpop.f32.mrf.mxu1 }
 0x64d   : > { %15950 = vst [vmem:[#allocation94_spill] sm:$0xff] %v14873_v4  ;;  %v5776_v17 = vadd.f32 %v5775_v40, %v5727_v0 }
 0x64e   : > { %v5824_v32 = vpop.f32.mrf.mxu3  ;;  %v5679_v1 = vpop.f32.mrf.mxu0 }
 0x64f   : > { %v5680_v6 = vadd.f32 %v5679_v1, %v14812_v29  ;;  %v5825_v30 = vadd.f32 %v5824_v32, %v5776_v17  ;;  %v9544_v17 = vld [vmem:[%s13226_s10 + $0xb0] sm:$0xf]  ;;  %v10569_v32 = vor.u32 %v12315_v57, %v10568_v60 }
 0x650   : > { %v12059_v1 = vld [vmem:[%s13226_s10 + $0xec] sm:$0xf0] }
 0x651   : > { %v5729_v33 = vadd.f32 %v5728_v63, %v5680_v6  ;;  %v6935_v40 = vmax.f32 %v5825_v30, 0.0  ;;  %v11080_v6 = vld [vmem:[%s13226_s10 + $0xcb0] sm:$0xf]  ;;  %v9545_v30 = vor.u32 %v12059_v1, %v9544_v17  ;;  %6149 = vmatpush.bf16.msra.mxu2 %v10569_v32 }
 0x652   : > { %v12443_v63 = vld [vmem:[%s13226_s10 + $0xcec] sm:$0xf0] }
 0x653   : > { %v11081_v38 = vor.u32 %v12443_v63, %v11080_v6  ;;  %6051 = vmatpush.bf16.msra.mxu0 %v9545_v30  ;;  %v10056_v60 = vld [vmem:[%s13226_s10 + $0x4b0] sm:$0xf] }
 0x654   : > { %v5777_v36 = vpop.f32.mrf.mxu2  ;;  %v5731_v20 = vpop.f32.mrf.mxu1  ;;  %v12187_v57 = vld [vmem:[%s13226_s10 + $0x4ec] sm:$0xf0] }
 0x655   : > { %v5778_v19 = vadd.f32 %v5777_v36, %v5729_v33  ;;  %6198 = vmatpush.bf16.msra.mxu3 %v11081_v38  ;;  %v10057_v4 = vor.u32 %v12187_v57, %v10056_v60  ;;  %v12299_v38 = vld [vmem:[%s13226_s10 + $0x86c] sm:$0xf0] }
 0x656   : > { %v5826_v0 = vpop.f32.mrf.mxu3  ;;  %v5682_v18 = vpop.f32.mrf.mxu0 }
 0x657   : > { %v5683_v61 = vadd.f32 %v5682_v18, %v14812_v29  ;;  %v5827_v59 = vadd.f32 %v5826_v0, %v5778_v19  ;;  %5926 = vmatmul.bf16.gmra.mxu1 %v13407_v42 }
 0x658   : > { %6100 = vmatpush.bf16.msra.mxu1 %v10057_v4  ;;  %v10504_v4 = vld [vmem:[%s13226_s10 + $0x830] sm:$0xf] }
 0x659   : > { %v5732_v56 = vadd.f32 %v5731_v20, %v5683_v61  ;;  %5877 = vmatmul.bf16.gmra.mxu0 %v13405_v41  ;;  %v6951_v31 = vmax.f32 %v5827_v59, 0.0  ;;  %5975 = vmatmul.bf16.gmra.mxu2 %v13409_v43 }
 0x65b   : > { %6024 = vmatmul.bf16.gmra.mxu3 %v13411_v44  ;;  %v14889_v33 = vpack.c.bf16 %v6951_v31, %v6935_v40 }
 0x65c   : > { %v5780_v35 = vpop.f32.mrf.mxu2  ;;  %v5733_v61 = vpop.f32.mrf.mxu1 }
 0x65d   : > { %15951 = vst [vmem:[#allocation95_spill] sm:$0xff] %v14889_v33  ;;  %v5781_v36 = vadd.f32 %v5780_v35, %v5732_v56 }
 0x65e   : > { %v5829_v19 = vpop.f32.mrf.mxu3  ;;  %v5684_v0 = vpop.f32.mrf.mxu0 }
 0x65f   : > { %v5685_v18 = vadd.f32 %v5684_v0, %v14812_v29  ;;  %v5830_v20 = vadd.f32 %v5829_v19, %v5781_v36  ;;  %v9480_v36 = vld [vmem:[%s13226_s10 + $0x30] sm:$0xf]  ;;  %v10505_v19 = vor.u32 %v12299_v38, %v10504_v4 }
 0x660   : > { %v12043_v0 = vld [vmem:[%s13226_s10 + $0x6c] sm:$0xf0] }
 0x661   : > { %v5734_v59 = vadd.f32 %v5733_v61, %v5685_v18  ;;  %v6967_v35 = vmax.f32 %v5830_v20, 0.0  ;;  %v11016_v18 = vld [vmem:[%s13226_s10 + $0xc30] sm:$0xf]  ;;  %v9481_v20 = vor.u32 %v12043_v0, %v9480_v36  ;;  %6150 = vmatpush.bf16.msra.mxu2 %v10505_v19 }
 0x662   : > { %v12427_v61 = vld [vmem:[%s13226_s10 + $0xc6c] sm:$0xf0] }
 0x663   : > { %v11017_v57 = vor.u32 %v12427_v61, %v11016_v18  ;;  %6052 = vmatpush.bf16.msra.mxu0 %v9481_v20  ;;  %v9992_v4 = vld [vmem:[%s13226_s10 + $0x430] sm:$0xf] }
 0x664   : > { %v5782_v40 = vpop.f32.mrf.mxu2  ;;  %v5736_v1 = vpop.f32.mrf.mxu1  ;;  %v12171_v38 = vld [vmem:[%s13226_s10 + $0x46c] sm:$0xf0] }
 0x665   : > { %v5783_v31 = vadd.f32 %v5782_v40, %v5734_v59  ;;  %6199 = vmatpush.bf16.msra.mxu3 %v11017_v57  ;;  %v9993_v33 = vor.u32 %v12171_v38, %v9992_v4  ;;  %v10954_v57 = vld [vmem:[%s13226_s10 + $0xbf0] sm:$0xf0] }
 0x666   : > { %v5831_v56 = vpop.f32.mrf.mxu3  ;;  %v5687_v17 = vpop.f32.mrf.mxu0 }
 0x667   : > { %v5688_v32 = vadd.f32 %v5687_v17, %v14812_v29  ;;  %v5832_v6 = vadd.f32 %v5831_v56, %v5783_v31  ;;  %5931 = vmatmul.bf16.gmra.mxu1 %v13427_v10 }
 0x668   : > { %6101 = vmatpush.bf16.msra.mxu1 %v9993_v33  ;;  %v12403_v33 = vld [vmem:[%s13226_s10 + $0xbb4] sm:$0xf] }
 0x669   : > { %v5737_v63 = vadd.f32 %v5736_v1, %v5688_v32  ;;  %5882 = vmatmul.bf16.gmra.mxu0 %v13425_v9  ;;  %v6983_v30 = vmax.f32 %v5832_v6, 0.0  ;;  %5980 = vmatmul.bf16.gmra.mxu2 %v13429_v11 }
 0x66b   : > { %6029 = vmatmul.bf16.gmra.mxu3 %v13431_v12  ;;  %v14905_v59 = vpack.c.bf16 %v6983_v30, %v6967_v35 }
 0x66c   : > { %v5785_v60 = vpop.f32.mrf.mxu2  ;;  %v5738_v32 = vpop.f32.mrf.mxu1 }
 0x66d   : > { %15952 = vst [vmem:[#allocation96_spill] sm:$0xff] %v14905_v59  ;;  %v5786_v40 = vadd.f32 %v5785_v60, %v5737_v63 }
 0x66e   : > { %v5834_v31 = vpop.f32.mrf.mxu3  ;;  %v5689_v56 = vpop.f32.mrf.mxu0 }
 0x66f   : > { %v5690_v17 = vadd.f32 %v5689_v56, %v14812_v29  ;;  %v5835_v1 = vadd.f32 %v5834_v31, %v5786_v40  ;;  %v12147_v40 = vld [vmem:[%s13226_s10 + $0x3b4] sm:$0xf]  ;;  %v10957_v31 = vor.u32 %v12403_v33, %v10954_v57 }
 0x670   : > { %v9930_v56 = vld [vmem:[%s13226_s10 + $0x3f0] sm:$0xf0] }
 0x671   : > { %v5739_v6 = vadd.f32 %v5738_v32, %v5690_v17  ;;  %v6999_v60 = vmax.f32 %v5835_v1, 0.0  ;;  %v12531_v17 = vld [vmem:[%s13226_s10 + $0xfb4] sm:$0xf]  ;;  %v9933_v1 = vor.u32 %v12147_v40, %v9930_v56  ;;  %6339 = vmatpush.bf16.msrb.mxu2 %v10957_v31 }
 0x672   : > { %v11466_v32 = vld [vmem:[%s13226_s10 + $0xff0] sm:$0xf0] }
 0x673   : > { %v11469_v38 = vor.u32 %v12531_v17, %v11466_v32  ;;  %6241 = vmatpush.bf16.msrb.mxu0 %v9933_v1  ;;  %v12275_v33 = vld [vmem:[%s13226_s10 + $0x7b4] sm:$0xf] }
 0x674   : > { %v5787_v35 = vpop.f32.mrf.mxu2  ;;  %v5741_v0 = vpop.f32.mrf.mxu1  ;;  %v10442_v57 = vld [vmem:[%s13226_s10 + $0x7f0] sm:$0xf0] }
 0x675   : > { %v5788_v30 = vadd.f32 %v5787_v35, %v5739_v6  ;;  %6388 = vmatpush.bf16.msrb.mxu3 %v11469_v38  ;;  %v10445_v59 = vor.u32 %v12275_v33, %v10442_v57  ;;  %v10890_v38 = vld [vmem:[%s13226_s10 + $0xb70] sm:$0xf0] }
 0x676   : > { %v5836_v63 = vpop.f32.mrf.mxu3  ;;  %v5692_v36 = vpop.f32.mrf.mxu0  ;;  %v11402_v33 = vld [vmem:[%s13226_s10 + $0xf70] sm:$0xf0] }
 0x677   : > { %v5693_v19 = vadd.f32 %v5692_v36, %v14812_v29  ;;  %v5837_v18 = vadd.f32 %v5836_v63, %v5788_v30  ;;  %5936 = vmatmul.bf16.gmra.mxu1 %v13447_v46 }
 0x678   : > { %6290 = vmatpush.bf16.msrb.mxu1 %v10445_v59  ;;  %v12387_v59 = vld [vmem:[%s13226_s10 + $0xb34] sm:$0xf] }
 0x679   : > { %v5742_v61 = vadd.f32 %v5741_v0, %v5693_v19  ;;  %5887 = vmatmul.bf16.gmra.mxu0 %v13445_v45  ;;  %v7015_v20 = vmax.f32 %v5837_v18, 0.0  ;;  %5985 = vmatmul.bf16.gmra.mxu2 %v13449_v47 }
 0x67b   : > { %6034 = vmatmul.bf16.gmra.mxu3 %v13451_v48  ;;  %v14921_v6 = vpack.c.bf16 %v7015_v20, %v6999_v60 }
 0x67c   : > { %v5790_v4 = vpop.f32.mrf.mxu2  ;;  %v5743_v19 = vpop.f32.mrf.mxu1 }
 0x67d   : > { %15953 = vst [vmem:[#allocation97_spill] sm:$0xff] %v14921_v6  ;;  %v5791_v35 = vadd.f32 %v5790_v4, %v5742_v61 }
 0x67e   : > { %v5839_v30 = vpop.f32.mrf.mxu3  ;;  %v5694_v63 = vpop.f32.mrf.mxu0 }
 0x67f   : > { %v5695_v36 = vadd.f32 %v5694_v63, %v14812_v29  ;;  %v5840_v0 = vadd.f32 %v5839_v30, %v5791_v35  ;;  %v12131_v35 = vld [vmem:[%s13226_s10 + $0x334] sm:$0xf] }
 0x681   : > { %v5744_v18 = vadd.f32 %v5743_v19, %v5695_v36  ;;  %v7031_v4 = vmax.f32 %v5840_v0, 0.0  ;;  %v10893_v36 = vor.u32 %v12387_v59, %v10890_v38  ;;  %v9866_v19 = vld [vmem:[%s13226_s10 + $0x370] sm:$0xf0]  ;;  %v14943_v59 = vperm.slane %v14809_v39, 3 }
 0x683   : > { %6340 = vmatpush.bf16.msrb.mxu2 %v10893_v36 }
 0x684   : > { %v5792_v60 = vpop.f32.mrf.mxu2  ;;  %v5746_v56 = vpop.f32.mrf.mxu1 }
 0x685   : > { %v5793_v20 = vadd.f32 %v5792_v60, %v5744_v18  ;;  %v12515_v18 = vld [vmem:[%s13226_s10 + $0xf34] sm:$0xf] }
 0x686   : > { %v5841_v61 = vpop.f32.mrf.mxu3  ;;  %v5697_v40 = vpop.f32.mrf.mxu0 }
 0x687   : > { %v5698_v31 = vadd.f32 %v5697_v40, %v14812_v29  ;;  %v5842_v17 = vadd.f32 %v5841_v61, %v5793_v20  ;;  %5941 = vmatmul.bf16.gmra.mxu1 %v13467_v22  ;;  %v9869_v20 = vor.u32 %v12131_v35, %v9866_v19  ;;  %v11405_v61 = vor.u32 %v12515_v18, %v11402_v33 }
 0x689   : > { %v5747_v32 = vadd.f32 %v5746_v56, %v5698_v31  ;;  %5892 = vmatmul.bf16.gmra.mxu0 %v13465_v21  ;;  %v7047_v1 = vmax.f32 %v5842_v17, 0.0  ;;  %5990 = vmatmul.bf16.gmra.mxu2 %v13469_v23 }
 0x68a   : > { %6242 = vmatpush.bf16.msrb.mxu0 %v9869_v20  ;;  %6389 = vmatpush.bf16.msrb.mxu3 %v11405_v61  ;;  %v12115_v20 = vld [vmem:[%s13226_s10 + $0x2b4] sm:$0xf] }
 0x68b   : > { %6039 = vmatmul.bf16.gmra.mxu3 %v13471_v24  ;;  %v14934_v30 = vpack.c.bf16 %v7047_v1, %v7031_v4  ;;  %v12259_v4 = vld [vmem:[%s13226_s10 + $0x734] sm:$0xf] }
 0x68c   : > { %v5795_v63 = vpop.f32.mrf.mxu2  ;;  %v5748_v31 = vpop.f32.mrf.mxu1  ;;  %v10378_v1 = vld [vmem:[%s13226_s10 + $0x770] sm:$0xf0] }
 0x68d   : > { %15954 = vst [vmem:[#allocation98_spill] sm:$0xff] %v14934_v30  ;;  %v5796_v0 = vadd.f32 %v5795_v63, %v5747_v32  ;;  %v10381_v38 = vor.u32 %v12259_v4, %v10378_v1 }
 0x68e   : > { %v5844_v57 = vpop.f32.mrf.mxu3  ;;  %v5699_v60 = vpop.f32.mrf.mxu0 }
 0x68f   : > { %v5700_v40 = vadd.f32 %v5699_v60, %v14812_v29  ;;  %v5845_v56 = vadd.f32 %v5844_v57, %v5796_v0  ;;  %6291 = vmatpush.bf16.msrb.mxu1 %v10381_v38  ;;  %v12371_v57 = vld [vmem:[%s13226_s10 + $0xab4] sm:$0xf] }
 0x690   : > { %v10826_v60 = vld [vmem:[%s13226_s10 + $0xaf0] sm:$0xf0] }
 0x691   : > { %v5749_v17 = vadd.f32 %v5748_v31, %v5700_v40  ;;  %v7063_v39 = vmax.f32 %v5845_v56, 0.0  ;;  %v10829_v61 = vor.u32 %v12371_v57, %v10826_v60  ;;  %v9802_v40 = vld [vmem:[%s13226_s10 + $0x2f0] sm:$0xf0] }
 0x692   : > { %v12499_v31 = vld [vmem:[%s13226_s10 + $0xeb4] sm:$0xf]  ;;  %v9805_v56 = vor.u32 %v12115_v20, %v9802_v40 }
 0x693   : > { %6341 = vmatpush.bf16.msrb.mxu2 %v10829_v61  ;;  %v12243_v57 = vld [vmem:[%s13226_s10 + $0x6b4] sm:$0xf] }
 0x694   : > { %v5797_v32 = vpop.f32.mrf.mxu2  ;;  %v5907_v19 = vpop.f32.mrf.mxu1  ;;  %6243 = vmatpush.bf16.msrb.mxu0 %v9805_v56  ;;  %v10314_v60 = vld [vmem:[%s13226_s10 + $0x6f0] sm:$0xf0] }
 0x695   : > { %v5798_v35 = vadd.f32 %v5797_v32, %v5749_v17  ;;  %v11338_v17 = vld [vmem:[%s13226_s10 + $0xef0] sm:$0xf0]  ;;  %v10317_v30 = vor.u32 %v12243_v57, %v10314_v60 }
 0x696   : > { %v5846_v63 = vpop.f32.mrf.mxu3  ;;  %v5858_v29 = vpop.f32.mrf.mxu0  ;;  %v11341_v38 = vor.u32 %v12499_v31, %v11338_v17 }
 0x697   : > { %v5859_v36 = vadd.f32 %v5858_v29, %v14943_v59  ;;  %v5847_v18 = vadd.f32 %v5846_v63, %v5798_v35  ;;  %6102 = vmatmul.bf16.vlgmr.msra.gmra.mxu1 %v13321_v54 }
 0x698   : > { %6390 = vmatpush.bf16.msrb.mxu3 %v11341_v38  ;;  %6292 = vmatpush.bf16.msrb.mxu1 %v10317_v30  ;;  %v12355_v30 = vld [vmem:[%s13226_s10 + $0xa34] sm:$0xf] }
 0x699   : > { %v5908_v33 = vadd.f32 %v5907_v19, %v5859_v36  ;;  %6053 = vmatmul.bf16.vlgmr.msra.gmra.mxu0 %v13316_v49  ;;  %v7079_v0 = vmax.f32 %v5847_v18, 0.0  ;;  %6151 = vmatmul.bf16.vlgmr.msra.gmra.mxu2 %v13323_v55  ;;  %v10762_v38 = vld [vmem:[%s13226_s10 + $0xa70] sm:$0xf0] }
 0x69b   : > { %6200 = vmatmul.bf16.vlgmr.msra.gmra.mxu3 %v13327_v58  ;;  %v14956_v4 = vpack.c.bf16 %v7079_v0, %v7063_v39 }
 0x69c   : > { %v5956_v1 = vpop.f32.mrf.mxu2  ;;  %v5909_v36 = vpop.f32.mrf.mxu1 }
 0x69d   : > { %15955 = vst [vmem:[#allocation99_spill] sm:$0xff] %v14956_v4  ;;  %v5957_v32 = vadd.f32 %v5956_v1, %v5908_v33  ;;  %v10186_v4 = vld [vmem:[%s13226_s10 + $0x5f0] sm:$0xf0] }
 0x69e   : > { %v6005_v35 = vpop.f32.mrf.mxu3  ;;  %v5860_v63 = vpop.f32.mrf.mxu0 }
 0x69f   : > { %v5861_v29 = vadd.f32 %v5860_v63, %v14943_v59  ;;  %v6006_v19 = vadd.f32 %v6005_v35, %v5957_v32  ;;  %v12099_v32 = vld [vmem:[%s13226_s10 + $0x234] sm:$0xf]  ;;  %v10765_v63 = vor.u32 %v12355_v30, %v10762_v38 }
 0x6a1   : > { %v5910_v18 = vadd.f32 %v5909_v36, %v5861_v29  ;;  %v6840_v1 = vmax.f32 %v6006_v19, 0.0  ;;  %v9738_v29 = vld [vmem:[%s13226_s10 + $0x270] sm:$0xf0]  ;;  %6342 = vmatpush.bf16.msrb.mxu2 %v10765_v63 }
 0x6a2   : > { %v12483_v36 = vld [vmem:[%s13226_s10 + $0xe34] sm:$0xf]  ;;  %v9741_v19 = vor.u32 %v12099_v32, %v9738_v29 }
 0x6a4   : > { %v5958_v39 = vpop.f32.mrf.mxu2  ;;  %v5912_v40 = vpop.f32.mrf.mxu1  ;;  %6244 = vmatpush.bf16.msrb.mxu0 %v9741_v19 }
 0x6a5   : > { %v5959_v0 = vadd.f32 %v5958_v39, %v5910_v18  ;;  %v11274_v18 = vld [vmem:[%s13226_s10 + $0xe70] sm:$0xf0] }
 0x6a6   : > { %v6007_v33 = vpop.f32.mrf.mxu3  ;;  %v5863_v20 = vpop.f32.mrf.mxu0  ;;  %v11277_v60 = vor.u32 %v12483_v36, %v11274_v18 }
 0x6a7   : > { %v5864_v61 = vadd.f32 %v5863_v20, %v14943_v59  ;;  %v6008_v31 = vadd.f32 %v6007_v33, %v5959_v0  ;;  %6107 = vmatmul.bf16.gmra.mxu1 %v13347_v26 }
 0x6a8   : > { %6391 = vmatpush.bf16.msrb.mxu3 %v11277_v60 }
 0x6a9   : > { %v5913_v17 = vadd.f32 %v5912_v40, %v5864_v61  ;;  %6058 = vmatmul.bf16.gmra.mxu0 %v13345_v25  ;;  %v6856_v56 = vmax.f32 %v6008_v31, 0.0  ;;  %6156 = vmatmul.bf16.gmra.mxu2 %v13349_v27 }
 0x6ab   : > { %6205 = vmatmul.bf16.gmra.mxu3 %v13351_v28  ;;  %v14969_v35 = vpack.c.bf16 %v6856_v56, %v6840_v1  ;;  %v12227_v1 = vld [vmem:[%s13226_s10 + $0x634] sm:$0xf] }
 0x6ac   : > { %v5961_v57 = vpop.f32.mrf.mxu2  ;;  %v5914_v61 = vpop.f32.mrf.mxu1  ;;  %v10250_v56 = vld [vmem:[%s13226_s10 + $0x670] sm:$0xf0] }
 0x6ad   : > { %15956 = vst [vmem:[#allocation100_spill] sm:$0xff] %v14969_v35  ;;  %v5962_v39 = vadd.f32 %v5961_v57, %v5913_v17  ;;  %v10253_v30 = vor.u32 %v12227_v1, %v10250_v56  ;;  %v11210_v1 = vld [vmem:[%s13226_s10 + $0xdf0] sm:$0xf0] }
 0x6ae   : > { %v6010_v0 = vpop.f32.mrf.mxu3  ;;  %v5865_v33 = vpop.f32.mrf.mxu0 }
 0x6af   : > { %v5866_v20 = vadd.f32 %v5865_v33, %v14943_v59  ;;  %v6011_v40 = vadd.f32 %v6010_v0, %v5962_v39  ;;  %6293 = vmatpush.bf16.msrb.mxu1 %v10253_v30  ;;  %v12339_v39 = vld [vmem:[%s13226_s10 + $0x9b4] sm:$0xf] }
 0x6b0   : > { %v10698_v0 = vld [vmem:[%s13226_s10 + $0x9f0] sm:$0xf0] }
 0x6b1   : > { %v5915_v31 = vadd.f32 %v5914_v61, %v5866_v20  ;;  %v6872_v19 = vmax.f32 %v6011_v40, 0.0  ;;  %v12083_v33 = vld [vmem:[%s13226_s10 + $0x1b4] sm:$0xf]  ;;  %v10701_v20 = vor.u32 %v12339_v39, %v10698_v0 }
 0x6b2   : > { %v9674_v61 = vld [vmem:[%s13226_s10 + $0x1f0] sm:$0xf0] }
 0x6b3   : > { %v9677_v40 = vor.u32 %v12083_v33, %v9674_v61  ;;  %6343 = vmatpush.bf16.msrb.mxu2 %v10701_v20  ;;  %v12211_v0 = vld [vmem:[%s13226_s10 + $0x5b4] sm:$0xf] }
 0x6b4   : > { %v5963_v38 = vpop.f32.mrf.mxu2  ;;  %v5917_v36 = vpop.f32.mrf.mxu1  ;;  %v10189_v6 = vor.u32 %v12211_v0, %v10186_v4 }
 0x6b5   : > { %v5964_v32 = vadd.f32 %v5963_v38, %v5915_v31  ;;  %v12467_v31 = vld [vmem:[%s13226_s10 + $0xdb4] sm:$0xf]  ;;  %6245 = vmatpush.bf16.msrb.mxu0 %v9677_v40 }
 0x6b6   : > { %v6012_v17 = vpop.f32.mrf.mxu3  ;;  %v5868_v29 = vpop.f32.mrf.mxu0  ;;  %v11213_v38 = vor.u32 %v12467_v31, %v11210_v1  ;;  %6294 = vmatpush.bf16.msrb.mxu1 %v10189_v6  ;;  %v12323_v6 = vld [vmem:[%s13226_s10 + $0x934] sm:$0xf] }
 0x6b7   : > { %v5869_v63 = vadd.f32 %v5868_v29, %v14943_v59  ;;  %v6013_v18 = vadd.f32 %v6012_v17, %v5964_v32  ;;  %6112 = vmatmul.bf16.gmra.mxu1 %v13367_v51  ;;  %v10634_v40 = vld [vmem:[%s13226_s10 + $0x970] sm:$0xf0] }
 0x6b8   : > { %6392 = vmatpush.bf16.msrb.mxu3 %v11213_v38  ;;  %v12067_v38 = vld [vmem:[%s13226_s10 + $0x134] sm:$0xf] }
 0x6b9   : > { %v5918_v57 = vadd.f32 %v5917_v36, %v5869_v63  ;;  %6063 = vmatmul.bf16.gmra.mxu0 %v13365_v50  ;;  %v6888_v60 = vmax.f32 %v6013_v18, 0.0  ;;  %6161 = vmatmul.bf16.gmra.mxu2 %v13369_v52 }
 0x6bb   : > { %6210 = vmatmul.bf16.gmra.mxu3 %v13371_v53  ;;  %v14988_v56 = vpack.c.bf16 %v6888_v60, %v6872_v19 }
 0x6bc   : > { %v5966_v30 = vpop.f32.mrf.mxu2  ;;  %v5919_v36 = vpop.f32.mrf.mxu1 }
 0x6bd   : > { %15957 = vst [vmem:[#allocation101_spill] sm:$0xff] %v14988_v56  ;;  %v5967_v32 = vadd.f32 %v5966_v30, %v5918_v57 }
 0x6be   : > { %v6015_v17 = vpop.f32.mrf.mxu3  ;;  %v5870_v29 = vpop.f32.mrf.mxu0 }
 0x6bf   : > { %v5871_v63 = vadd.f32 %v5870_v29, %v14943_v59  ;;  %v6016_v18 = vadd.f32 %v6015_v17, %v5967_v32  ;;  %v10637_v32 = vor.u32 %v12323_v6, %v10634_v40  ;;  %v9610_v17 = vld [vmem:[%s13226_s10 + $0x170] sm:$0xf0] }
 0x6c0   : > { %v12451_v29 = vld [vmem:[%s13226_s10 + $0xd34] sm:$0xf] }
 0x6c1   : > { %v5920_v39 = vadd.f32 %v5919_v36, %v5871_v63  ;;  %v6904_v30 = vmax.f32 %v6016_v18, 0.0  ;;  %v11146_v63 = vld [vmem:[%s13226_s10 + $0xd70] sm:$0xf0]  ;;  %v9613_v18 = vor.u32 %v12067_v38, %v9610_v17  ;;  %6344 = vmatpush.bf16.msrb.mxu2 %v10637_v32 }
 0x6c2   : > { %v11149_v0 = vor.u32 %v12451_v29, %v11146_v63  ;;  %v12195_v6 = vld [vmem:[%s13226_s10 + $0x534] sm:$0xf] }
 0x6c3   : > { %6246 = vmatpush.bf16.msrb.mxu0 %v9613_v18  ;;  %v10122_v40 = vld [vmem:[%s13226_s10 + $0x570] sm:$0xf0] }
 0x6c4   : > { %v5968_v19 = vpop.f32.mrf.mxu2  ;;  %v5922_v61 = vpop.f32.mrf.mxu1  ;;  %6393 = vmatpush.bf16.msrb.mxu3 %v11149_v0  ;;  %v10125_v56 = vor.u32 %v12195_v6, %v10122_v40  ;;  %v10570_v0 = vld [vmem:[%s13226_s10 + $0x8f0] sm:$0xf0] }
 0x6c5   : > { %v5969_v60 = vadd.f32 %v5968_v19, %v5920_v39 }
 0x6c6   : > { %v6017_v57 = vpop.f32.mrf.mxu3  ;;  %v5873_v33 = vpop.f32.mrf.mxu0  ;;  %6295 = vmatpush.bf16.msrb.mxu1 %v10125_v56  ;;  %v12307_v56 = vld [vmem:[%s13226_s10 + $0x8b4] sm:$0xf] }
 0x6c7   : > { %v5874_v20 = vadd.f32 %v5873_v33, %v14943_v59  ;;  %v6018_v31 = vadd.f32 %v6017_v57, %v5969_v60  ;;  %6117 = vmatmul.bf16.gmra.mxu1 %v13387_v14 }
 0x6c9   : > { %v5923_v1 = vadd.f32 %v5922_v61, %v5874_v20  ;;  %6068 = vmatmul.bf16.gmra.mxu0 %v13385_v13  ;;  %v6920_v4 = vmax.f32 %v6018_v31, 0.0  ;;  %6166 = vmatmul.bf16.gmra.mxu2 %v13389_v15 }
 0x6cb   : > { %6215 = vmatmul.bf16.gmra.mxu3 %v13391_v16  ;;  %v15004_v36 = vpack.c.bf16 %v6920_v4, %v6904_v30 }
 0x6cc   : > { %v5971_v39 = vpop.f32.mrf.mxu2  ;;  %v5924_v20 = vpop.f32.mrf.mxu1 }
 0x6cd   : > { %15958 = vst [vmem:[#allocation102_spill] sm:$0xff] %v15004_v36  ;;  %v5972_v19 = vadd.f32 %v5971_v39, %v5923_v1 }
 0x6ce   : > { %v6020_v60 = vpop.f32.mrf.mxu3  ;;  %v5875_v57 = vpop.f32.mrf.mxu0 }
 0x6cf   : > { %v5876_v33 = vadd.f32 %v5875_v57, %v14943_v59  ;;  %v6021_v61 = vadd.f32 %v6020_v60, %v5972_v19  ;;  %v12051_v19 = vld [vmem:[%s13226_s10 + $0xb4] sm:$0xf]  ;;  %v10573_v60 = vor.u32 %v12307_v56, %v10570_v0 }
 0x6d0   : > { %v9546_v57 = vld [vmem:[%s13226_s10 + $0xf0] sm:$0xf0] }
 0x6d1   : > { %v5925_v31 = vadd.f32 %v5924_v20, %v5876_v33  ;;  %v6936_v39 = vmax.f32 %v6021_v61, 0.0  ;;  %v12435_v33 = vld [vmem:[%s13226_s10 + $0xcb4] sm:$0xf]  ;;  %v9549_v61 = vor.u32 %v12051_v19, %v9546_v57  ;;  %6345 = vmatpush.bf16.msrb.mxu2 %v10573_v60 }
 0x6d2   : > { %v11082_v20 = vld [vmem:[%s13226_s10 + $0xcf0] sm:$0xf0] }
 0x6d3   : > { %v11085_v40 = vor.u32 %v12435_v33, %v11082_v20  ;;  %6247 = vmatpush.bf16.msrb.mxu0 %v9549_v61  ;;  %v12179_v56 = vld [vmem:[%s13226_s10 + $0x4b4] sm:$0xf] }
 0x6d4   : > { %v5973_v30 = vpop.f32.mrf.mxu2  ;;  %v5927_v17 = vpop.f32.mrf.mxu1  ;;  %v10058_v0 = vld [vmem:[%s13226_s10 + $0x4f0] sm:$0xf0] }
 0x6d5   : > { %v5974_v4 = vadd.f32 %v5973_v30, %v5925_v31  ;;  %6394 = vmatpush.bf16.msrb.mxu3 %v11085_v40  ;;  %v10061_v36 = vor.u32 %v12179_v56, %v10058_v0  ;;  %v10506_v40 = vld [vmem:[%s13226_s10 + $0x870] sm:$0xf0] }
 0x6d6   : > { %v6022_v1 = vpop.f32.mrf.mxu3  ;;  %v5878_v38 = vpop.f32.mrf.mxu0 }
 0x6d7   : > { %v5879_v32 = vadd.f32 %v5878_v38, %v14943_v59  ;;  %v6023_v29 = vadd.f32 %v6022_v1, %v5974_v4  ;;  %6122 = vmatmul.bf16.gmra.mxu1 %v13407_v42 }
 0x6d8   : > { %6296 = vmatpush.bf16.msrb.mxu1 %v10061_v36  ;;  %v12291_v36 = vld [vmem:[%s13226_s10 + $0x834] sm:$0xf] }
 0x6d9   : > { %v5928_v63 = vadd.f32 %v5927_v17, %v5879_v32  ;;  %6073 = vmatmul.bf16.gmra.mxu0 %v13405_v41  ;;  %v6952_v18 = vmax.f32 %v6023_v29, 0.0  ;;  %6171 = vmatmul.bf16.gmra.mxu2 %v13409_v43 }
 0x6db   : > { %6220 = vmatmul.bf16.gmra.mxu3 %v13411_v44  ;;  %v15020_v31 = vpack.c.bf16 %v6952_v18, %v6936_v39 }
 0x6dc   : > { %v5976_v6 = vpop.f32.mrf.mxu2  ;;  %v5929_v32 = vpop.f32.mrf.mxu1 }
 0x6dd   : > { %15959 = vst [vmem:[#allocation103_spill] sm:$0xff] %v15020_v31  ;;  %v5977_v30 = vadd.f32 %v5976_v6, %v5928_v63 }
 0x6de   : > { %v6025_v4 = vpop.f32.mrf.mxu3  ;;  %v5880_v1 = vpop.f32.mrf.mxu0 }
 0x6df   : > { %v5881_v38 = vadd.f32 %v5880_v1, %v14943_v59  ;;  %v6026_v17 = vadd.f32 %v6025_v4, %v5977_v30  ;;  %v12035_v30 = vld [vmem:[%s13226_s10 + $0x34] sm:$0xf]  ;;  %v10509_v4 = vor.u32 %v12291_v36, %v10506_v40 }
 0x6e0   : > { %v9482_v1 = vld [vmem:[%s13226_s10 + $0x70] sm:$0xf0] }
 0x6e1   : > { %v5930_v29 = vadd.f32 %v5929_v32, %v5881_v38  ;;  %v6968_v6 = vmax.f32 %v6026_v17, 0.0  ;;  %v12419_v38 = vld [vmem:[%s13226_s10 + $0xc34] sm:$0xf]  ;;  %v9485_v17 = vor.u32 %v12035_v30, %v9482_v1  ;;  %6346 = vmatpush.bf16.msrb.mxu2 %v10509_v4 }
 0x6e2   : > { %v11018_v32 = vld [vmem:[%s13226_s10 + $0xc70] sm:$0xf0] }
 0x6e3   : > { %v11021_v0 = vor.u32 %v12419_v38, %v11018_v32  ;;  %6248 = vmatpush.bf16.msrb.mxu0 %v9485_v17  ;;  %v12163_v36 = vld [vmem:[%s13226_s10 + $0x434] sm:$0xf] }
 0x6e4   : > { %v5978_v39 = vpop.f32.mrf.mxu2  ;;  %v5932_v57 = vpop.f32.mrf.mxu1  ;;  %v9994_v40 = vld [vmem:[%s13226_s10 + $0x470] sm:$0xf0] }
 0x6e5   : > { %v5979_v18 = vadd.f32 %v5978_v39, %v5930_v29  ;;  %6395 = vmatpush.bf16.msrb.mxu3 %v11021_v0  ;;  %v9997_v31 = vor.u32 %v12163_v36, %v9994_v40  ;;  %v12412_v0 = vld [vmem:[%s13226_s10 + $0xbf4] sm:$0xf0] }
 0x6e6   : > { %v6027_v63 = vpop.f32.mrf.mxu3  ;;  %v5883_v19 = vpop.f32.mrf.mxu0 }
 0x6e7   : > { %v5884_v60 = vadd.f32 %v5883_v19, %v14943_v59  ;;  %v6028_v33 = vadd.f32 %v6027_v63, %v5979_v18  ;;  %6127 = vmatmul.bf16.gmra.mxu1 %v13427_v10 }
 0x6e8   : > { %6297 = vmatpush.bf16.msrb.mxu1 %v9997_v31  ;;  %v10960_v31 = vld [vmem:[%s13226_s10 + $0xbb8] sm:$0xf] }
 0x6e9   : > { %v5933_v20 = vadd.f32 %v5932_v57, %v5884_v60  ;;  %6078 = vmatmul.bf16.gmra.mxu0 %v13425_v9  ;;  %v6984_v61 = vmax.f32 %v6028_v33, 0.0  ;;  %6176 = vmatmul.bf16.gmra.mxu2 %v13429_v11 }
 0x6eb   : > { %6225 = vmatmul.bf16.gmra.mxu3 %v13431_v12  ;;  %v15036_v29 = vpack.c.bf16 %v6984_v61, %v6968_v6 }
 0x6ec   : > { %v5981_v56 = vpop.f32.mrf.mxu2  ;;  %v5934_v60 = vpop.f32.mrf.mxu1 }
 0x6ed   : > { %15960 = vst [vmem:[#allocation104_spill] sm:$0xff] %v15036_v29  ;;  %v5982_v39 = vadd.f32 %v5981_v56, %v5933_v20 }
 0x6ee   : > { %v6030_v18 = vpop.f32.mrf.mxu3  ;;  %v5885_v63 = vpop.f32.mrf.mxu0 }
 0x6ef   : > { %v5886_v19 = vadd.f32 %v5885_v63, %v14943_v59  ;;  %v6031_v57 = vadd.f32 %v6030_v18, %v5982_v39  ;;  %v9936_v39 = vld [vmem:[%s13226_s10 + $0x3b8] sm:$0xf]  ;;  %v10961_v18 = vor.u32 %v12412_v0, %v10960_v31 }
 0x6f0   : > { %v12156_v63 = vld [vmem:[%s13226_s10 + $0x3f4] sm:$0xf0] }
 0x6f1   : > { %v5935_v33 = vadd.f32 %v5934_v60, %v5886_v19  ;;  %v7000_v56 = vmax.f32 %v6031_v57, 0.0  ;;  %v11472_v19 = vld [vmem:[%s13226_s10 + $0xfb8] sm:$0xf]  ;;  %v9937_v57 = vor.u32 %v12156_v63, %v9936_v39  ;;  %6535 = vmatpush.bf16.msra.mxu2 %v10961_v18 }
 0x6f2   : > { %v12540_v60 = vld [vmem:[%s13226_s10 + $0xff4] sm:$0xf0] }
 0x6f3   : > { %v11473_v40 = vor.u32 %v12540_v60, %v11472_v19  ;;  %6437 = vmatpush.bf16.msra.mxu0 %v9937_v57  ;;  %v10448_v31 = vld [vmem:[%s13226_s10 + $0x7b8] sm:$0xf] }
 0x6f4   : > { %v5983_v6 = vpop.f32.mrf.mxu2  ;;  %v5937_v1 = vpop.f32.mrf.mxu1  ;;  %v12284_v0 = vld [vmem:[%s13226_s10 + $0x7f4] sm:$0xf0] }
 0x6f5   : > { %v5984_v61 = vadd.f32 %v5983_v6, %v5935_v33  ;;  %6584 = vmatpush.bf16.msra.mxu3 %v11473_v40  ;;  %v10449_v29 = vor.u32 %v12284_v0, %v10448_v31  ;;  %v12396_v40 = vld [vmem:[%s13226_s10 + $0xb74] sm:$0xf0] }
 0x6f6   : > { %v6032_v20 = vpop.f32.mrf.mxu3  ;;  %v5888_v30 = vpop.f32.mrf.mxu0 }
 0x6f7   : > { %v5889_v4 = vadd.f32 %v5888_v30, %v14943_v59  ;;  %v6033_v38 = vadd.f32 %v6032_v20, %v5984_v61  ;;  %6132 = vmatmul.bf16.gmra.mxu1 %v13447_v46 }
 0x6f8   : > { %6486 = vmatpush.bf16.msra.mxu1 %v10449_v29  ;;  %v10896_v29 = vld [vmem:[%s13226_s10 + $0xb38] sm:$0xf] }
 0x6f9   : > { %v5938_v32 = vadd.f32 %v5937_v1, %v5889_v4  ;;  %6083 = vmatmul.bf16.gmra.mxu0 %v13445_v45  ;;  %v7016_v17 = vmax.f32 %v6033_v38, 0.0  ;;  %6181 = vmatmul.bf16.gmra.mxu2 %v13449_v47 }
 0x6fb   : > { %6230 = vmatmul.bf16.gmra.mxu3 %v13451_v48  ;;  %v15052_v33 = vpack.c.bf16 %v7016_v17, %v7000_v56 }
 0x6fc   : > { %v5986_v36 = vpop.f32.mrf.mxu2  ;;  %v5939_v4 = vpop.f32.mrf.mxu1 }
 0x6fd   : > { %15961 = vst [vmem:[#allocation105_spill] sm:$0xff] %v15052_v33  ;;  %v5987_v6 = vadd.f32 %v5986_v36, %v5938_v32  ;;  %v12252_v33 = vld [vmem:[%s13226_s10 + $0x6f4] sm:$0xf0] }
 0x6fe   : > { %v6035_v61 = vpop.f32.mrf.mxu3  ;;  %v5890_v20 = vpop.f32.mrf.mxu0 }
 0x6ff   : > { %v5891_v30 = vadd.f32 %v5890_v20, %v14943_v59  ;;  %v6036_v1 = vadd.f32 %v6035_v61, %v5987_v6  ;;  %v9872_v6 = vld [vmem:[%s13226_s10 + $0x338] sm:$0xf] }
 0x701   : > { %v5940_v38 = vadd.f32 %v5939_v4, %v5891_v30  ;;  %v7032_v36 = vmax.f32 %v6036_v1, 0.0  ;;  %v10897_v30 = vor.u32 %v12396_v40, %v10896_v29  ;;  %v12140_v4 = vld [vmem:[%s13226_s10 + $0x374] sm:$0xf0] }
 0x702   : > { %v12524_v1 = vld [vmem:[%s13226_s10 + $0xf74] sm:$0xf0] }
 0x703   : > { %6536 = vmatpush.bf16.msra.mxu2 %v10897_v30  ;;  %v15074_v29 = vld [vmem:[%s13232_s29 + $0x8] sm:$0xff] }
 0x704   : > { %v5988_v56 = vpop.f32.mrf.mxu2  ;;  %v5942_v63 = vpop.f32.mrf.mxu1  ;;  %v15077_v40 = vperm.slane %v15074_v29, 4 }
 0x705   : > { %v5989_v17 = vadd.f32 %v5988_v56, %v5940_v38  ;;  %v11408_v38 = vld [vmem:[%s13226_s10 + $0xf38] sm:$0xf] }
 0x706   : > { %v6037_v32 = vpop.f32.mrf.mxu3  ;;  %v5893_v39 = vpop.f32.mrf.mxu0 }
 0x707   : > { %v5894_v18 = vadd.f32 %v5893_v39, %v14943_v59  ;;  %v6038_v19 = vadd.f32 %v6037_v32, %v5989_v17  ;;  %6137 = vmatmul.bf16.gmra.mxu1 %v13467_v22  ;;  %v9873_v17 = vor.u32 %v12140_v4, %v9872_v6  ;;  %v11409_v32 = vor.u32 %v12524_v1, %v11408_v38 }
 0x709   : > { %v5943_v60 = vadd.f32 %v5942_v63, %v5894_v18  ;;  %6088 = vmatmul.bf16.gmra.mxu0 %v13465_v21  ;;  %v7048_v57 = vmax.f32 %v6038_v19, 0.0  ;;  %6186 = vmatmul.bf16.gmra.mxu2 %v13469_v23 }
 0x70a   : > { %6438 = vmatpush.bf16.msra.mxu0 %v9873_v17  ;;  %6585 = vmatpush.bf16.msra.mxu3 %v11409_v32  ;;  %v10832_v17 = vld [vmem:[%s13226_s10 + $0xab8] sm:$0xf] }
 0x70b   : > { %6235 = vmatmul.bf16.gmra.mxu3 %v13471_v24  ;;  %v15065_v61 = vpack.c.bf16 %v7048_v57, %v7032_v36  ;;  %v10384_v36 = vld [vmem:[%s13226_s10 + $0x738] sm:$0xf] }
 0x70c   : > { %v5991_v20 = vpop.f32.mrf.mxu2  ;;  %v5944_v18 = vpop.f32.mrf.mxu1  ;;  %v12268_v57 = vld [vmem:[%s13226_s10 + $0x774] sm:$0xf0] }
 0x70d   : > { %15962 = vst [vmem:[#allocation106_spill] sm:$0xff] %v15065_v61  ;;  %v5992_v31 = vadd.f32 %v5991_v20, %v5943_v60  ;;  %v10385_v60 = vor.u32 %v12268_v57, %v10384_v36  ;;  %v12380_v32 = vld [vmem:[%s13226_s10 + $0xaf4] sm:$0xf0] }
 0x70e   : > { %v6040_v0 = vpop.f32.mrf.mxu3  ;;  %v5895_v56 = vpop.f32.mrf.mxu0  ;;  %v11344_v36 = vld [vmem:[%s13226_s10 + $0xeb8] sm:$0xf] }
 0x70f   : > { %v5896_v39 = vadd.f32 %v5895_v56, %v14943_v59  ;;  %v6041_v63 = vadd.f32 %v6040_v0, %v5992_v31  ;;  %6487 = vmatpush.bf16.msra.mxu1 %v10385_v60  ;;  %v12508_v57 = vld [vmem:[%s13226_s10 + $0xef4] sm:$0xf0] }
 0x710   : > { %v10320_v61 = vld [vmem:[%s13226_s10 + $0x6b8] sm:$0xf] }
 0x711   : > { %v5945_v19 = vadd.f32 %v5944_v18, %v5896_v39  ;;  %v7064_v0 = vmax.f32 %v6041_v63, 0.0  ;;  %v9808_v39 = vld [vmem:[%s13226_s10 + $0x2b8] sm:$0xf]  ;;  %v10833_v18 = vor.u32 %v12380_v32, %v10832_v17  ;;  %v10321_v35 = vor.u32 %v12252_v33, %v10320_v61 }
 0x712   : > { %v12364_v61 = vld [vmem:[%s13226_s10 + $0xa74] sm:$0xf0] }
 0x713   : > { %6537 = vmatpush.bf16.msra.mxu2 %v10833_v18  ;;  %6488 = vmatpush.bf16.msra.mxu1 %v10321_v35  ;;  %v10768_v35 = vld [vmem:[%s13226_s10 + $0xa38] sm:$0xf] }
 0x714   : > { %v5993_v20 = vpop.f32.mrf.mxu2  ;;  %v6103_v38 = vpop.f32.mrf.mxu1 }
 0x715   : > { %v5994_v59 = vadd.f32 %v5993_v20, %v5945_v19  ;;  %v12124_v19 = vld [vmem:[%s13226_s10 + $0x2f4] sm:$0xf0] }
 0x716   : > { %v6042_v6 = vpop.f32.mrf.mxu3  ;;  %v6054_v30 = vpop.f32.mrf.mxu0  ;;  %v9809_v63 = vor.u32 %v12124_v19, %v9808_v39 }
 0x717   : > { %v6055_v4 = vadd.f32 %v6054_v30, %v15077_v40  ;;  %v6043_v1 = vadd.f32 %v6042_v6, %v5994_v59  ;;  %6298 = vmatmul.bf16.vlgmr.msrb.gmra.mxu1 %v13321_v54  ;;  %v11345_v59 = vor.u32 %v12508_v57, %v11344_v36 }
 0x718   : > { %6439 = vmatpush.bf16.msra.mxu0 %v9809_v63  ;;  %v9744_v63 = vld [vmem:[%s13226_s10 + $0x238] sm:$0xf] }
 0x719   : > { %v6104_v31 = vadd.f32 %v6103_v38, %v6055_v4  ;;  %6249 = vmatmul.bf16.vlgmr.msrb.gmra.mxu0 %v13316_v49  ;;  %v7080_v56 = vmax.f32 %v6043_v1, 0.0  ;;  %6347 = vmatmul.bf16.vlgmr.msrb.gmra.mxu2 %v13323_v55 }
 0x71a   : > { %6586 = vmatpush.bf16.msra.mxu3 %v11345_v59 }
 0x71b   : > { %6396 = vmatmul.bf16.vlgmr.msrb.gmra.mxu3 %v13327_v58  ;;  %v15090_v60 = vpack.c.bf16 %v7080_v56, %v7064_v0 }
 0x71c   : > { %v6152_v20 = vpop.f32.mrf.mxu2  ;;  %v6105_v1 = vpop.f32.mrf.mxu1 }
 0x71d   : > { %15963 = vst [vmem:[#allocation107_spill] sm:$0xff] %v15090_v60  ;;  %v6153_v6 = vadd.f32 %v6152_v20, %v6104_v31 }
 0x71e   : > { %v6201_v30 = vpop.f32.mrf.mxu3  ;;  %v6056_v4 = vpop.f32.mrf.mxu0 }
 0x71f   : > { %v6057_v38 = vadd.f32 %v6056_v4, %v15077_v40  ;;  %v6202_v17 = vadd.f32 %v6201_v30, %v6153_v6  ;;  %v10769_v6 = vor.u32 %v12364_v61, %v10768_v35  ;;  %v12108_v30 = vld [vmem:[%s13226_s10 + $0x274] sm:$0xf0] }
 0x720   : > { %v11280_v4 = vld [vmem:[%s13226_s10 + $0xe38] sm:$0xf] }
 0x721   : > { %v6106_v32 = vadd.f32 %v6105_v1, %v6057_v38  ;;  %v6841_v20 = vmax.f32 %v6202_v17, 0.0  ;;  %v12492_v38 = vld [vmem:[%s13226_s10 + $0xe74] sm:$0xf0]  ;;  %v9745_v17 = vor.u32 %v12108_v30, %v9744_v63  ;;  %6538 = vmatpush.bf16.msra.mxu2 %v10769_v6 }
 0x723   : > { %6440 = vmatpush.bf16.msra.mxu0 %v9745_v17 }
 0x724   : > { %v6154_v0 = vpop.f32.mrf.mxu2  ;;  %v6108_v19 = vpop.f32.mrf.mxu1 }
 0x725   : > { %v6155_v56 = vadd.f32 %v6154_v0, %v6106_v32  ;;  %v11281_v32 = vor.u32 %v12492_v38, %v11280_v4 }
 0x726   : > { %v6203_v31 = vpop.f32.mrf.mxu3  ;;  %v6059_v39 = vpop.f32.mrf.mxu0 }
 0x727   : > { %v6060_v18 = vadd.f32 %v6059_v39, %v15077_v40  ;;  %v6204_v36 = vadd.f32 %v6203_v31, %v6155_v56  ;;  %6303 = vmatmul.bf16.gmra.mxu1 %v13347_v26  ;;  %6587 = vmatpush.bf16.msra.mxu3 %v11281_v32 }
 0x729   : > { %v6109_v57 = vadd.f32 %v6108_v19, %v6060_v18  ;;  %6254 = vmatmul.bf16.gmra.mxu0 %v13345_v25  ;;  %v6857_v33 = vmax.f32 %v6204_v36, 0.0  ;;  %6352 = vmatmul.bf16.gmra.mxu2 %v13349_v27 }
 0x72b   : > { %6401 = vmatmul.bf16.gmra.mxu3 %v13351_v28  ;;  %v15103_v59 = vpack.c.bf16 %v6857_v33, %v6841_v20  ;;  %v10256_v20 = vld [vmem:[%s13226_s10 + $0x638] sm:$0xf] }
 0x72c   : > { %v6157_v1 = vpop.f32.mrf.mxu2  ;;  %v6110_v18 = vpop.f32.mrf.mxu1  ;;  %v12236_v33 = vld [vmem:[%s13226_s10 + $0x674] sm:$0xf0] }
 0x72d   : > { %15964 = vst [vmem:[#allocation108_spill] sm:$0xff] %v15103_v59  ;;  %v6158_v0 = vadd.f32 %v6157_v1, %v6109_v57  ;;  %v10257_v35 = vor.u32 %v12236_v33, %v10256_v20  ;;  %v12476_v20 = vld [vmem:[%s13226_s10 + $0xdf4] sm:$0xf0] }
 0x72e   : > { %v6206_v56 = vpop.f32.mrf.mxu3  ;;  %v6061_v31 = vpop.f32.mrf.mxu0  ;;  %v12220_v59 = vld [vmem:[%s13226_s10 + $0x5f4] sm:$0xf0] }
 0x72f   : > { %v6062_v39 = vadd.f32 %v6061_v31, %v15077_v40  ;;  %v6207_v19 = vadd.f32 %v6206_v56, %v6158_v0  ;;  %6489 = vmatpush.bf16.msra.mxu1 %v10257_v35  ;;  %v10704_v0 = vld [vmem:[%s13226_s10 + $0x9b8] sm:$0xf] }
 0x730   : > { %v12348_v56 = vld [vmem:[%s13226_s10 + $0x9f4] sm:$0xf0] }
 0x731   : > { %v6111_v36 = vadd.f32 %v6110_v18, %v6062_v39  ;;  %v6873_v17 = vmax.f32 %v6207_v19, 0.0  ;;  %v9680_v31 = vld [vmem:[%s13226_s10 + $0x1b8] sm:$0xf]  ;;  %v10705_v39 = vor.u32 %v12348_v56, %v10704_v0 }
 0x732   : > { %v12092_v18 = vld [vmem:[%s13226_s10 + $0x1f4] sm:$0xf0] }
 0x733   : > { %v9681_v19 = vor.u32 %v12092_v18, %v9680_v31  ;;  %6539 = vmatpush.bf16.msra.mxu2 %v10705_v39  ;;  %v10192_v56 = vld [vmem:[%s13226_s10 + $0x5b8] sm:$0xf] }
 0x734   : > { %v6159_v61 = vpop.f32.mrf.mxu2  ;;  %v6113_v4 = vpop.f32.mrf.mxu1  ;;  %v10193_v60 = vor.u32 %v12220_v59, %v10192_v56 }
 0x735   : > { %v6160_v63 = vadd.f32 %v6159_v61, %v6111_v36  ;;  %v11216_v36 = vld [vmem:[%s13226_s10 + $0xdb8] sm:$0xf]  ;;  %6441 = vmatpush.bf16.msra.mxu0 %v9681_v19 }
 0x736   : > { %v6208_v57 = vpop.f32.mrf.mxu3  ;;  %v6064_v30 = vpop.f32.mrf.mxu0  ;;  %v11217_v61 = vor.u32 %v12476_v20, %v11216_v36  ;;  %6490 = vmatpush.bf16.msra.mxu1 %v10193_v60  ;;  %v10640_v60 = vld [vmem:[%s13226_s10 + $0x938] sm:$0xf] }
 0x737   : > { %v6065_v6 = vadd.f32 %v6064_v30, %v15077_v40  ;;  %v6209_v38 = vadd.f32 %v6208_v57, %v6160_v63  ;;  %6308 = vmatmul.bf16.gmra.mxu1 %v13367_v51  ;;  %v12332_v19 = vld [vmem:[%s13226_s10 + $0x974] sm:$0xf0] }
 0x738   : > { %6588 = vmatpush.bf16.msra.mxu3 %v11217_v61  ;;  %v9616_v61 = vld [vmem:[%s13226_s10 + $0x138] sm:$0xf] }
 0x739   : > { %v6114_v1 = vadd.f32 %v6113_v4, %v6065_v6  ;;  %6259 = vmatmul.bf16.gmra.mxu0 %v13365_v50  ;;  %v6889_v32 = vmax.f32 %v6209_v38, 0.0  ;;  %6357 = vmatmul.bf16.gmra.mxu2 %v13369_v52 }
 0x73b   : > { %6406 = vmatmul.bf16.gmra.mxu3 %v13371_v53  ;;  %v15122_v33 = vpack.c.bf16 %v6889_v32, %v6873_v17 }
 0x73c   : > { %v6162_v35 = vpop.f32.mrf.mxu2  ;;  %v6115_v4 = vpop.f32.mrf.mxu1 }
 0x73d   : > { %15965 = vst [vmem:[#allocation109_spill] sm:$0xff] %v15122_v33  ;;  %v6163_v63 = vadd.f32 %v6162_v35, %v6114_v1 }
 0x73e   : > { %v6211_v57 = vpop.f32.mrf.mxu3  ;;  %v6066_v30 = vpop.f32.mrf.mxu0 }
 0x73f   : > { %v6067_v6 = vadd.f32 %v6066_v30, %v15077_v40  ;;  %v6212_v38 = vadd.f32 %v6211_v57, %v6163_v63  ;;  %v10641_v63 = vor.u32 %v12332_v19, %v10640_v60  ;;  %v12076_v57 = vld [vmem:[%s13226_s10 + $0x174] sm:$0xf0] }
 0x740   : > { %v11152_v30 = vld [vmem:[%s13226_s10 + $0xd38] sm:$0xf] }
 0x741   : > { %v6116_v0 = vadd.f32 %v6115_v4, %v6067_v6  ;;  %v6905_v35 = vmax.f32 %v6212_v38, 0.0  ;;  %v12460_v6 = vld [vmem:[%s13226_s10 + $0xd74] sm:$0xf0]  ;;  %v9617_v38 = vor.u32 %v12076_v57, %v9616_v61  ;;  %6540 = vmatpush.bf16.msra.mxu2 %v10641_v63 }
 0x742   : > { %v11153_v56 = vor.u32 %v12460_v6, %v11152_v30  ;;  %v10128_v60 = vld [vmem:[%s13226_s10 + $0x538] sm:$0xf] }
 0x743   : > { %6442 = vmatpush.bf16.msra.mxu0 %v9617_v38  ;;  %v12204_v19 = vld [vmem:[%s13226_s10 + $0x574] sm:$0xf0] }
 0x744   : > { %v6164_v17 = vpop.f32.mrf.mxu2  ;;  %v6118_v18 = vpop.f32.mrf.mxu1  ;;  %6589 = vmatpush.bf16.msra.mxu3 %v11153_v56  ;;  %v10129_v33 = vor.u32 %v12204_v19, %v10128_v60  ;;  %v12316_v56 = vld [vmem:[%s13226_s10 + $0x8f4] sm:$0xf0] }
 0x745   : > { %v6165_v32 = vadd.f32 %v6164_v17, %v6116_v0 }
 0x746   : > { %v6213_v1 = vpop.f32.mrf.mxu3  ;;  %v6069_v31 = vpop.f32.mrf.mxu0  ;;  %6491 = vmatpush.bf16.msra.mxu1 %v10129_v33  ;;  %v10576_v33 = vld [vmem:[%s13226_s10 + $0x8b8] sm:$0xf] }
 0x747   : > { %v6070_v39 = vadd.f32 %v6069_v31, %v15077_v40  ;;  %v6214_v36 = vadd.f32 %v6213_v1, %v6165_v32  ;;  %6313 = vmatmul.bf16.gmra.mxu1 %v13387_v14 }
 0x749   : > { %v6119_v20 = vadd.f32 %v6118_v18, %v6070_v39  ;;  %6264 = vmatmul.bf16.gmra.mxu0 %v13385_v13  ;;  %v6921_v59 = vmax.f32 %v6214_v36, 0.0  ;;  %6362 = vmatmul.bf16.gmra.mxu2 %v13389_v15 }
 0x74b   : > { %6411 = vmatmul.bf16.gmra.mxu3 %v13391_v16  ;;  %v15138_v4 = vpack.c.bf16 %v6921_v59, %v6905_v35 }
 0x74c   : > { %v6167_v0 = vpop.f32.mrf.mxu2  ;;  %v6120_v39 = vpop.f32.mrf.mxu1 }
 0x74d   : > { %15966 = vst [vmem:[#allocation110_spill] sm:$0xff] %v15138_v4  ;;  %v6168_v17 = vadd.f32 %v6167_v0, %v6119_v20 }
 0x74e   : > { %v6216_v32 = vpop.f32.mrf.mxu3  ;;  %v6071_v1 = vpop.f32.mrf.mxu0 }
 0x74f   : > { %v6072_v31 = vadd.f32 %v6071_v1, %v15077_v40  ;;  %v6217_v18 = vadd.f32 %v6216_v32, %v6168_v17  ;;  %v9552_v17 = vld [vmem:[%s13226_s10 + $0xb8] sm:$0xf]  ;;  %v10577_v32 = vor.u32 %v12316_v56, %v10576_v33 }
 0x750   : > { %v12060_v1 = vld [vmem:[%s13226_s10 + $0xf4] sm:$0xf0] }
 0x751   : > { %v6121_v36 = vadd.f32 %v6120_v39, %v6072_v31  ;;  %v6937_v0 = vmax.f32 %v6217_v18, 0.0  ;;  %v11088_v31 = vld [vmem:[%s13226_s10 + $0xcb8] sm:$0xf]  ;;  %v9553_v18 = vor.u32 %v12060_v1, %v9552_v17  ;;  %6541 = vmatpush.bf16.msra.mxu2 %v10577_v32 }
 0x752   : > { %v12444_v39 = vld [vmem:[%s13226_s10 + $0xcf4] sm:$0xf0] }
 0x753   : > { %v11089_v19 = vor.u32 %v12444_v39, %v11088_v31  ;;  %6443 = vmatpush.bf16.msra.mxu0 %v9553_v18  ;;  %v10064_v33 = vld [vmem:[%s13226_s10 + $0x4b8] sm:$0xf] }
 0x754   : > { %v6169_v35 = vpop.f32.mrf.mxu2  ;;  %v6123_v57 = vpop.f32.mrf.mxu1  ;;  %v12188_v56 = vld [vmem:[%s13226_s10 + $0x4f4] sm:$0xf0] }
 0x755   : > { %v6170_v59 = vadd.f32 %v6169_v35, %v6121_v36  ;;  %6590 = vmatpush.bf16.msra.mxu3 %v11089_v19  ;;  %v10065_v4 = vor.u32 %v12188_v56, %v10064_v33  ;;  %v12300_v19 = vld [vmem:[%s13226_s10 + $0x874] sm:$0xf0] }
 0x756   : > { %v6218_v20 = vpop.f32.mrf.mxu3  ;;  %v6074_v61 = vpop.f32.mrf.mxu0 }
 0x757   : > { %v6075_v63 = vadd.f32 %v6074_v61, %v15077_v40  ;;  %v6219_v30 = vadd.f32 %v6218_v20, %v6170_v59  ;;  %6318 = vmatmul.bf16.gmra.mxu1 %v13407_v42 }
 0x758   : > { %6492 = vmatpush.bf16.msra.mxu1 %v10065_v4  ;;  %v10512_v4 = vld [vmem:[%s13226_s10 + $0x838] sm:$0xf] }
 0x759   : > { %v6124_v6 = vadd.f32 %v6123_v57, %v6075_v63  ;;  %6269 = vmatmul.bf16.gmra.mxu0 %v13405_v41  ;;  %v6953_v38 = vmax.f32 %v6219_v30, 0.0  ;;  %6367 = vmatmul.bf16.gmra.mxu2 %v13409_v43 }
 0x75b   : > { %6416 = vmatmul.bf16.gmra.mxu3 %v13411_v44  ;;  %v15154_v36 = vpack.c.bf16 %v6953_v38, %v6937_v0 }
 0x75c   : > { %v6172_v60 = vpop.f32.mrf.mxu2  ;;  %v6125_v63 = vpop.f32.mrf.mxu1 }
 0x75d   : > { %15967 = vst [vmem:[#allocation111_spill] sm:$0xff] %v15154_v36  ;;  %v6173_v35 = vadd.f32 %v6172_v60, %v6124_v6 }
 0x75e   : > { %v6221_v59 = vpop.f32.mrf.mxu3  ;;  %v6076_v20 = vpop.f32.mrf.mxu0 }
 0x75f   : > { %v6077_v61 = vadd.f32 %v6076_v20, %v15077_v40  ;;  %v6222_v57 = vadd.f32 %v6221_v59, %v6173_v35  ;;  %v9488_v35 = vld [vmem:[%s13226_s10 + $0x38] sm:$0xf]  ;;  %v10513_v59 = vor.u32 %v12300_v19, %v10512_v4 }
 0x760   : > { %v12044_v20 = vld [vmem:[%s13226_s10 + $0x74] sm:$0xf0] }
 0x761   : > { %v6126_v30 = vadd.f32 %v6125_v63, %v6077_v61  ;;  %v6969_v60 = vmax.f32 %v6222_v57, 0.0  ;;  %v11024_v61 = vld [vmem:[%s13226_s10 + $0xc38] sm:$0xf]  ;;  %v9489_v57 = vor.u32 %v12044_v20, %v9488_v35  ;;  %6542 = vmatpush.bf16.msra.mxu2 %v10513_v59 }
 0x762   : > { %v12428_v63 = vld [vmem:[%s13226_s10 + $0xc74] sm:$0xf0] }
 0x763   : > { %v11025_v56 = vor.u32 %v12428_v63, %v11024_v61  ;;  %6444 = vmatpush.bf16.msra.mxu0 %v9489_v57  ;;  %v10000_v4 = vld [vmem:[%s13226_s10 + $0x438] sm:$0xf] }
 0x764   : > { %v6174_v0 = vpop.f32.mrf.mxu2  ;;  %v6128_v1 = vpop.f32.mrf.mxu1  ;;  %v12172_v19 = vld [vmem:[%s13226_s10 + $0x474] sm:$0xf0] }
 0x765   : > { %v6175_v38 = vadd.f32 %v6174_v0, %v6126_v30  ;;  %6591 = vmatpush.bf16.msra.mxu3 %v11025_v56  ;;  %v10001_v36 = vor.u32 %v12172_v19, %v10000_v4  ;;  %v10962_v56 = vld [vmem:[%s13226_s10 + $0xbf8] sm:$0xf0] }
 0x766   : > { %v6223_v6 = vpop.f32.mrf.mxu3  ;;  %v6079_v17 = vpop.f32.mrf.mxu0 }
 0x767   : > { %v6080_v32 = vadd.f32 %v6079_v17, %v15077_v40  ;;  %v6224_v31 = vadd.f32 %v6223_v6, %v6175_v38  ;;  %6323 = vmatmul.bf16.gmra.mxu1 %v13427_v10 }
 0x768   : > { %6493 = vmatpush.bf16.msra.mxu1 %v10001_v36  ;;  %v12404_v36 = vld [vmem:[%s13226_s10 + $0xbbc] sm:$0xf] }
 0x769   : > { %v6129_v39 = vadd.f32 %v6128_v1, %v6080_v32  ;;  %6274 = vmatmul.bf16.gmra.mxu0 %v13425_v9  ;;  %v6985_v18 = vmax.f32 %v6224_v31, 0.0  ;;  %6372 = vmatmul.bf16.gmra.mxu2 %v13429_v11 }
 0x76b   : > { %6421 = vmatmul.bf16.gmra.mxu3 %v13431_v12  ;;  %v15170_v30 = vpack.c.bf16 %v6985_v18, %v6969_v60 }
 0x76c   : > { %v6177_v33 = vpop.f32.mrf.mxu2  ;;  %v6130_v32 = vpop.f32.mrf.mxu1 }
 0x76d   : > { %15968 = vst [vmem:[#allocation112_spill] sm:$0xff] %v15170_v30  ;;  %v6178_v0 = vadd.f32 %v6177_v33, %v6129_v39 }
 0x76e   : > { %v6226_v38 = vpop.f32.mrf.mxu3  ;;  %v6081_v6 = vpop.f32.mrf.mxu0 }
 0x76f   : > { %v6082_v17 = vadd.f32 %v6081_v6, %v15077_v40  ;;  %v6227_v1 = vadd.f32 %v6226_v38, %v6178_v0  ;;  %v12148_v0 = vld [vmem:[%s13226_s10 + $0x3bc] sm:$0xf]  ;;  %v10965_v38 = vor.u32 %v12404_v36, %v10962_v56 }
 0x770   : > { %v9938_v6 = vld [vmem:[%s13226_s10 + $0x3f8] sm:$0xf0] }
 0x771   : > { %v6131_v31 = vadd.f32 %v6130_v32, %v6082_v17  ;;  %v7001_v33 = vmax.f32 %v6227_v1, 0.0  ;;  %v12532_v17 = vld [vmem:[%s13226_s10 + $0xfbc] sm:$0xf]  ;;  %v9941_v1 = vor.u32 %v12148_v0, %v9938_v6  ;;  %6731 = vmatpush.bf16.msrb.mxu2 %v10965_v38 }
 0x772   : > { %v11474_v32 = vld [vmem:[%s13226_s10 + $0xff8] sm:$0xf0] }
 0x773   : > { %v11477_v19 = vor.u32 %v12532_v17, %v11474_v32  ;;  %6633 = vmatpush.bf16.msrb.mxu0 %v9941_v1  ;;  %v12276_v36 = vld [vmem:[%s13226_s10 + $0x7bc] sm:$0xf] }
 0x774   : > { %v6179_v60 = vpop.f32.mrf.mxu2  ;;  %v6133_v20 = vpop.f32.mrf.mxu1  ;;  %v10450_v56 = vld [vmem:[%s13226_s10 + $0x7f8] sm:$0xf0] }
 0x775   : > { %v6180_v18 = vadd.f32 %v6179_v60, %v6131_v31  ;;  %6780 = vmatpush.bf16.msrb.mxu3 %v11477_v19  ;;  %v10453_v30 = vor.u32 %v12276_v36, %v10450_v56  ;;  %v10898_v19 = vld [vmem:[%s13226_s10 + $0xb78] sm:$0xf0] }
 0x776   : > { %v6228_v39 = vpop.f32.mrf.mxu3  ;;  %v6084_v35 = vpop.f32.mrf.mxu0  ;;  %v11410_v36 = vld [vmem:[%s13226_s10 + $0xf78] sm:$0xf0] }
 0x777   : > { %v6085_v59 = vadd.f32 %v6084_v35, %v15077_v40  ;;  %v6229_v61 = vadd.f32 %v6228_v39, %v6180_v18  ;;  %6328 = vmatmul.bf16.gmra.mxu1 %v13447_v46 }
 0x778   : > { %6682 = vmatpush.bf16.msrb.mxu1 %v10453_v30  ;;  %v12388_v30 = vld [vmem:[%s13226_s10 + $0xb3c] sm:$0xf] }
 0x779   : > { %v6134_v63 = vadd.f32 %v6133_v20, %v6085_v59  ;;  %6279 = vmatmul.bf16.gmra.mxu0 %v13445_v45  ;;  %v7017_v57 = vmax.f32 %v6229_v61, 0.0  ;;  %6377 = vmatmul.bf16.gmra.mxu2 %v13449_v47 }
 0x77b   : > { %6426 = vmatmul.bf16.gmra.mxu3 %v13451_v48  ;;  %v15186_v31 = vpack.c.bf16 %v7017_v57, %v7001_v33 }
 0x77c   : > { %v6182_v4 = vpop.f32.mrf.mxu2  ;;  %v6135_v59 = vpop.f32.mrf.mxu1 }
 0x77d   : > { %15969 = vst [vmem:[#allocation113_spill] sm:$0xff] %v15186_v31  ;;  %v6183_v60 = vadd.f32 %v6182_v4, %v6134_v63 }
 0x77e   : > { %v6231_v18 = vpop.f32.mrf.mxu3  ;;  %v6086_v39 = vpop.f32.mrf.mxu0 }
 0x77f   : > { %v6087_v35 = vadd.f32 %v6086_v39, %v15077_v40  ;;  %v6232_v20 = vadd.f32 %v6231_v18, %v6183_v60  ;;  %v12132_v60 = vld [vmem:[%s13226_s10 + $0x33c] sm:$0xf] }
 0x781   : > { %v6136_v61 = vadd.f32 %v6135_v59, %v6087_v35  ;;  %v7033_v4 = vmax.f32 %v6232_v20, 0.0  ;;  %v10901_v35 = vor.u32 %v12388_v30, %v10898_v19  ;;  %v9874_v59 = vld [vmem:[%s13226_s10 + $0x378] sm:$0xf0]  ;;  %v15208_v30 = vperm.slane %v15074_v29, 5 }
 0x783   : > { %6732 = vmatpush.bf16.msrb.mxu2 %v10901_v35 }
 0x784   : > { %v6184_v33 = vpop.f32.mrf.mxu2  ;;  %v6138_v6 = vpop.f32.mrf.mxu1 }
 0x785   : > { %v6185_v57 = vadd.f32 %v6184_v33, %v6136_v61  ;;  %v12516_v61 = vld [vmem:[%s13226_s10 + $0xf3c] sm:$0xf] }
 0x786   : > { %v6233_v63 = vpop.f32.mrf.mxu3  ;;  %v6089_v0 = vpop.f32.mrf.mxu0 }
 0x787   : > { %v6090_v38 = vadd.f32 %v6089_v0, %v15077_v40  ;;  %v6234_v17 = vadd.f32 %v6233_v63, %v6185_v57  ;;  %6333 = vmatmul.bf16.gmra.mxu1 %v13467_v22  ;;  %v9877_v57 = vor.u32 %v12132_v60, %v9874_v59  ;;  %v11413_v63 = vor.u32 %v12516_v61, %v11410_v36 }
 0x789   : > { %v6139_v32 = vadd.f32 %v6138_v6, %v6090_v38  ;;  %6284 = vmatmul.bf16.gmra.mxu0 %v13465_v21  ;;  %v7049_v1 = vmax.f32 %v6234_v17, 0.0  ;;  %6382 = vmatmul.bf16.gmra.mxu2 %v13469_v23 }
 0x78a   : > { %6634 = vmatpush.bf16.msrb.mxu0 %v9877_v57  ;;  %6781 = vmatpush.bf16.msrb.mxu3 %v11413_v63  ;;  %v12116_v57 = vld [vmem:[%s13226_s10 + $0x2bc] sm:$0xf] }
 0x78b   : > { %6431 = vmatmul.bf16.gmra.mxu3 %v13471_v24  ;;  %v15199_v18 = vpack.c.bf16 %v7049_v1, %v7033_v4  ;;  %v12260_v4 = vld [vmem:[%s13226_s10 + $0x73c] sm:$0xf] }
 0x78c   : > { %v6187_v39 = vpop.f32.mrf.mxu2  ;;  %v6140_v38 = vpop.f32.mrf.mxu1  ;;  %v10386_v1 = vld [vmem:[%s13226_s10 + $0x778] sm:$0xf0] }
 0x78d   : > { %15970 = vst [vmem:[#allocation114_spill] sm:$0xff] %v15199_v18  ;;  %v6188_v20 = vadd.f32 %v6187_v39, %v6139_v32  ;;  %v10389_v19 = vor.u32 %v12260_v4, %v10386_v1 }
 0x78e   : > { %v6236_v56 = vpop.f32.mrf.mxu3  ;;  %v6091_v33 = vpop.f32.mrf.mxu0 }
 0x78f   : > { %v6092_v0 = vadd.f32 %v6091_v33, %v15077_v40  ;;  %v6237_v6 = vadd.f32 %v6236_v56, %v6188_v20  ;;  %6683 = vmatpush.bf16.msrb.mxu1 %v10389_v19  ;;  %v12372_v56 = vld [vmem:[%s13226_s10 + $0xabc] sm:$0xf] }
 0x790   : > { %v10834_v33 = vld [vmem:[%s13226_s10 + $0xaf8] sm:$0xf0] }
 0x791   : > { %v6141_v17 = vadd.f32 %v6140_v38, %v6092_v0  ;;  %v7065_v29 = vmax.f32 %v6237_v6, 0.0  ;;  %v10837_v63 = vor.u32 %v12372_v56, %v10834_v33  ;;  %v9810_v0 = vld [vmem:[%s13226_s10 + $0x2f8] sm:$0xf0] }
 0x792   : > { %v12500_v38 = vld [vmem:[%s13226_s10 + $0xebc] sm:$0xf]  ;;  %v9813_v6 = vor.u32 %v12116_v57, %v9810_v0 }
 0x793   : > { %6733 = vmatpush.bf16.msrb.mxu2 %v10837_v63  ;;  %v12244_v56 = vld [vmem:[%s13226_s10 + $0x6bc] sm:$0xf] }
 0x794   : > { %v6189_v32 = vpop.f32.mrf.mxu2  ;;  %v6299_v59 = vpop.f32.mrf.mxu1  ;;  %6635 = vmatpush.bf16.msrb.mxu0 %v9813_v6  ;;  %v10322_v33 = vld [vmem:[%s13226_s10 + $0x6f8] sm:$0xf0] }
 0x795   : > { %v6190_v60 = vadd.f32 %v6189_v32, %v6141_v17  ;;  %v11346_v17 = vld [vmem:[%s13226_s10 + $0xef8] sm:$0xf0]  ;;  %v10325_v18 = vor.u32 %v12244_v56, %v10322_v33 }
 0x796   : > { %v6238_v39 = vpop.f32.mrf.mxu3  ;;  %v6250_v40 = vpop.f32.mrf.mxu0  ;;  %v11349_v19 = vor.u32 %v12500_v38, %v11346_v17 }
 0x797   : > { %v6251_v35 = vadd.f32 %v6250_v40, %v15208_v30  ;;  %v6239_v61 = vadd.f32 %v6238_v39, %v6190_v60  ;;  %6494 = vmatmul.bf16.vlgmr.msra.gmra.mxu1 %v13321_v54 }
 0x798   : > { %6782 = vmatpush.bf16.msrb.mxu3 %v11349_v19  ;;  %6684 = vmatpush.bf16.msrb.mxu1 %v10325_v18  ;;  %v12356_v18 = vld [vmem:[%s13226_s10 + $0xa3c] sm:$0xf] }
 0x799   : > { %v6300_v36 = vadd.f32 %v6299_v59, %v6251_v35  ;;  %6445 = vmatmul.bf16.vlgmr.msra.gmra.mxu0 %v13316_v49  ;;  %v7081_v20 = vmax.f32 %v6239_v61, 0.0  ;;  %6543 = vmatmul.bf16.vlgmr.msra.gmra.mxu2 %v13323_v55  ;;  %v10770_v19 = vld [vmem:[%s13226_s10 + $0xa78] sm:$0xf0] }
 0x79b   : > { %6592 = vmatmul.bf16.vlgmr.msra.gmra.mxu3 %v13327_v58  ;;  %v15221_v4 = vpack.c.bf16 %v7081_v20, %v7065_v29 }
 0x79c   : > { %v6348_v1 = vpop.f32.mrf.mxu2  ;;  %v6301_v35 = vpop.f32.mrf.mxu1 }
 0x79d   : > { %15971 = vst [vmem:[#allocation115_spill] sm:$0xff] %v15221_v4  ;;  %v6349_v32 = vadd.f32 %v6348_v1, %v6300_v36  ;;  %v10194_v4 = vld [vmem:[%s13226_s10 + $0x5f8] sm:$0xf0] }
 0x79e   : > { %v6397_v60 = vpop.f32.mrf.mxu3  ;;  %v6252_v39 = vpop.f32.mrf.mxu0 }
 0x79f   : > { %v6253_v40 = vadd.f32 %v6252_v39, %v15208_v30  ;;  %v6398_v59 = vadd.f32 %v6397_v60, %v6349_v32  ;;  %v12100_v32 = vld [vmem:[%s13226_s10 + $0x23c] sm:$0xf]  ;;  %v10773_v39 = vor.u32 %v12356_v18, %v10770_v19 }
 0x7a1   : > { %v6302_v61 = vadd.f32 %v6301_v35, %v6253_v40  ;;  %v6842_v1 = vmax.f32 %v6398_v59, 0.0  ;;  %v9746_v40 = vld [vmem:[%s13226_s10 + $0x278] sm:$0xf0]  ;;  %6734 = vmatpush.bf16.msrb.mxu2 %v10773_v39 }
 0x7a2   : > { %v12484_v35 = vld [vmem:[%s13226_s10 + $0xe3c] sm:$0xf]  ;;  %v9749_v59 = vor.u32 %v12100_v32, %v9746_v40 }
 0x7a4   : > { %v6350_v29 = vpop.f32.mrf.mxu2  ;;  %v6304_v0 = vpop.f32.mrf.mxu1  ;;  %6636 = vmatpush.bf16.msrb.mxu0 %v9749_v59 }
 0x7a5   : > { %v6351_v20 = vadd.f32 %v6350_v29, %v6302_v61  ;;  %v11282_v61 = vld [vmem:[%s13226_s10 + $0xe78] sm:$0xf0] }
 0x7a6   : > { %v6399_v36 = vpop.f32.mrf.mxu3  ;;  %v6255_v57 = vpop.f32.mrf.mxu0  ;;  %v11285_v33 = vor.u32 %v12484_v35, %v11282_v61 }
 0x7a7   : > { %v6256_v63 = vadd.f32 %v6255_v57, %v15208_v30  ;;  %v6400_v38 = vadd.f32 %v6399_v36, %v6351_v20  ;;  %6499 = vmatmul.bf16.gmra.mxu1 %v13347_v26 }
 0x7a8   : > { %6783 = vmatpush.bf16.msrb.mxu3 %v11285_v33 }
 0x7a9   : > { %v6305_v17 = vadd.f32 %v6304_v0, %v6256_v63  ;;  %6450 = vmatmul.bf16.gmra.mxu0 %v13345_v25  ;;  %v6858_v6 = vmax.f32 %v6400_v38, 0.0  ;;  %6548 = vmatmul.bf16.gmra.mxu2 %v13349_v27 }
 0x7ab   : > { %6597 = vmatmul.bf16.gmra.mxu3 %v13351_v28  ;;  %v15234_v60 = vpack.c.bf16 %v6858_v6, %v6842_v1  ;;  %v12228_v1 = vld [vmem:[%s13226_s10 + $0x63c] sm:$0xf] }
 0x7ac   : > { %v6353_v56 = vpop.f32.mrf.mxu2  ;;  %v6306_v63 = vpop.f32.mrf.mxu1  ;;  %v10258_v6 = vld [vmem:[%s13226_s10 + $0x678] sm:$0xf0] }
 0x7ad   : > { %v6354_v29 = vadd.f32 %v6353_v56, %v6305_v17  ;;  %v10261_v18 = vor.u32 %v12228_v1, %v10258_v6  ;;  %v11218_v1 = vld [vmem:[%s13226_s10 + $0xdf8] sm:$0xf0] }
 0x7ae   : > { %v6402_v20 = vpop.f32.mrf.mxu3  ;;  %v6257_v36 = vpop.f32.mrf.mxu0 }
 0x7af   : > { %v6258_v57 = vadd.f32 %v6257_v36, %v15208_v30  ;;  %v6403_v0 = vadd.f32 %v6402_v20, %v6354_v29  ;;  %6685 = vmatpush.bf16.msrb.mxu1 %v10261_v18  ;;  %v12340_v29 = vld [vmem:[%s13226_s10 + $0x9bc] sm:$0xf] }
 0x7b0   : > { %v10706_v20 = vld [vmem:[%s13226_s10 + $0x9f8] sm:$0xf0] }
 0x7b1   : > { %v6307_v38 = vadd.f32 %v6306_v63, %v6258_v57  ;;  %v6874_v59 = vmax.f32 %v6403_v0, 0.0  ;;  %v12084_v36 = vld [vmem:[%s13226_s10 + $0x1bc] sm:$0xf]  ;;  %v10709_v57 = vor.u32 %v12340_v29, %v10706_v20 }
 0x7b2   : > { %v9682_v63 = vld [vmem:[%s13226_s10 + $0x1f8] sm:$0xf0] }
 0x7b3   : > { %v9685_v0 = vor.u32 %v12084_v36, %v9682_v63  ;;  %6735 = vmatpush.bf16.msrb.mxu2 %v10709_v57  ;;  %v12212_v20 = vld [vmem:[%s13226_s10 + $0x5bc] sm:$0xf] }
 0x7b4   : > { %v6355_v19 = vpop.f32.mrf.mxu2  ;;  %v6309_v35 = vpop.f32.mrf.mxu1  ;;  %v10197_v31 = vor.u32 %v12212_v20, %v10194_v4 }
 0x7b5   : > { %v6356_v32 = vadd.f32 %v6355_v19, %v6307_v38  ;;  %v12468_v38 = vld [vmem:[%s13226_s10 + $0xdbc] sm:$0xf]  ;;  %6637 = vmatpush.bf16.msrb.mxu0 %v9685_v0 }
 0x7b6   : > { %v6404_v17 = vpop.f32.mrf.mxu3  ;;  %v6260_v40 = vpop.f32.mrf.mxu0  ;;  %v11221_v19 = vor.u32 %v12468_v38, %v11218_v1  ;;  %6686 = vmatpush.bf16.msrb.mxu1 %v10197_v31  ;;  %v12324_v31 = vld [vmem:[%s13226_s10 + $0x93c] sm:$0xf] }
 0x7b7   : > { %v6261_v39 = vadd.f32 %v6260_v40, %v15208_v30  ;;  %v6405_v61 = vadd.f32 %v6404_v17, %v6356_v32  ;;  %6504 = vmatmul.bf16.gmra.mxu1 %v13367_v51  ;;  %v10642_v0 = vld [vmem:[%s13226_s10 + $0x978] sm:$0xf0] }
 0x7b8   : > { %6784 = vmatpush.bf16.msrb.mxu3 %v11221_v19  ;;  %v12068_v19 = vld [vmem:[%s13226_s10 + $0x13c] sm:$0xf] }
 0x7b9   : > { %v6310_v56 = vadd.f32 %v6309_v35, %v6261_v39  ;;  %6455 = vmatmul.bf16.gmra.mxu0 %v13365_v50  ;;  %v6890_v33 = vmax.f32 %v6405_v61, 0.0  ;;  %6553 = vmatmul.bf16.gmra.mxu2 %v13369_v52 }
 0x7bb   : > { %6602 = vmatmul.bf16.gmra.mxu3 %v13371_v53  ;;  %v15253_v6 = vpack.c.bf16 %v6890_v33, %v6874_v59 }
 0x7bc   : > { %v6358_v18 = vpop.f32.mrf.mxu2  ;;  %v6311_v35 = vpop.f32.mrf.mxu1 }
 0x7bd   : > { %15972 = vst [vmem:[#allocation116_spill] sm:$0xff] %v15253_v6  ;;  %v6359_v32 = vadd.f32 %v6358_v18, %v6310_v56 }
 0x7be   : > { %v6407_v17 = vpop.f32.mrf.mxu3  ;;  %v6262_v40 = vpop.f32.mrf.mxu0 }
 0x7bf   : > { %v6263_v39 = vadd.f32 %v6262_v40, %v15208_v30  ;;  %v6408_v61 = vadd.f32 %v6407_v17, %v6359_v32  ;;  %v10645_v32 = vor.u32 %v12324_v31, %v10642_v0  ;;  %v9618_v17 = vld [vmem:[%s13226_s10 + $0x178] sm:$0xf0] }
 0x7c0   : > { %v12452_v40 = vld [vmem:[%s13226_s10 + $0xd3c] sm:$0xf] }
 0x7c1   : > { %v6312_v29 = vadd.f32 %v6311_v35, %v6263_v39  ;;  %v6906_v18 = vmax.f32 %v6408_v61, 0.0  ;;  %v11154_v39 = vld [vmem:[%s13226_s10 + $0xd78] sm:$0xf0]  ;;  %v9621_v61 = vor.u32 %v12068_v19, %v9618_v17  ;;  %6736 = vmatpush.bf16.msrb.mxu2 %v10645_v32 }
 0x7c2   : > { %v11157_v20 = vor.u32 %v12452_v40, %v11154_v39  ;;  %v12196_v31 = vld [vmem:[%s13226_s10 + $0x53c] sm:$0xf] }
 0x7c3   : > { %6638 = vmatpush.bf16.msrb.mxu0 %v9621_v61  ;;  %v10130_v0 = vld [vmem:[%s13226_s10 + $0x578] sm:$0xf0] }
 0x7c4   : > { %v6360_v59 = vpop.f32.mrf.mxu2  ;;  %v6314_v63 = vpop.f32.mrf.mxu1  ;;  %6785 = vmatpush.bf16.msrb.mxu3 %v11157_v20  ;;  %v10133_v6 = vor.u32 %v12196_v31, %v10130_v0  ;;  %v10578_v20 = vld [vmem:[%s13226_s10 + $0x8f8] sm:$0xf0] }
 0x7c5   : > { %v6361_v33 = vadd.f32 %v6360_v59, %v6312_v29 }
 0x7c6   : > { %v6409_v56 = vpop.f32.mrf.mxu3  ;;  %v6265_v36 = vpop.f32.mrf.mxu0  ;;  %6687 = vmatpush.bf16.msrb.mxu1 %v10133_v6  ;;  %v12308_v6 = vld [vmem:[%s13226_s10 + $0x8bc] sm:$0xf] }
 0x7c7   : > { %v6266_v57 = vadd.f32 %v6265_v36, %v15208_v30  ;;  %v6410_v38 = vadd.f32 %v6409_v56, %v6361_v33  ;;  %6509 = vmatmul.bf16.gmra.mxu1 %v13387_v14 }
 0x7c9   : > { %v6315_v1 = vadd.f32 %v6314_v63, %v6266_v57  ;;  %6460 = vmatmul.bf16.gmra.mxu0 %v13385_v13  ;;  %v6922_v4 = vmax.f32 %v6410_v38, 0.0  ;;  %6558 = vmatmul.bf16.gmra.mxu2 %v13389_v15 }
 0x7cb   : > { %6607 = vmatmul.bf16.gmra.mxu3 %v13391_v16  ;;  %v15269_v35 = vpack.c.bf16 %v6922_v4, %v6906_v18 }
 0x7cc   : > { %v6363_v29 = vpop.f32.mrf.mxu2  ;;  %v6316_v57 = vpop.f32.mrf.mxu1 }
 0x7cd   : > { %15973 = vst [vmem:[#allocation117_spill] sm:$0xff] %v15269_v35  ;;  %v6364_v59 = vadd.f32 %v6363_v29, %v6315_v1 }
 0x7ce   : > { %v6412_v33 = vpop.f32.mrf.mxu3  ;;  %v6267_v56 = vpop.f32.mrf.mxu0 }
 0x7cf   : > { %v6268_v36 = vadd.f32 %v6267_v56, %v15208_v30  ;;  %v6413_v63 = vadd.f32 %v6412_v33, %v6364_v59  ;;  %v12052_v59 = vld [vmem:[%s13226_s10 + $0xbc] sm:$0xf]  ;;  %v10581_v33 = vor.u32 %v12308_v6, %v10578_v20 }
 0x7d0   : > { %v9554_v56 = vld [vmem:[%s13226_s10 + $0xf8] sm:$0xf0] }
 0x7d1   : > { %v6317_v38 = vadd.f32 %v6316_v57, %v6268_v36  ;;  %v6938_v29 = vmax.f32 %v6413_v63, 0.0  ;;  %v12436_v36 = vld [vmem:[%s13226_s10 + $0xcbc] sm:$0xf]  ;;  %v9557_v63 = vor.u32 %v12052_v59, %v9554_v56  ;;  %6737 = vmatpush.bf16.msrb.mxu2 %v10581_v33 }
 0x7d2   : > { %v11090_v57 = vld [vmem:[%s13226_s10 + $0xcf8] sm:$0xf0] }
 0x7d3   : > { %v11093_v0 = vor.u32 %v12436_v36, %v11090_v57  ;;  %6639 = vmatpush.bf16.msrb.mxu0 %v9557_v63  ;;  %v12180_v6 = vld [vmem:[%s13226_s10 + $0x4bc] sm:$0xf] }
 0x7d4   : > { %v6365_v18 = vpop.f32.mrf.mxu2  ;;  %v6319_v17 = vpop.f32.mrf.mxu1  ;;  %v10066_v20 = vld [vmem:[%s13226_s10 + $0x4f8] sm:$0xf0] }
 0x7d5   : > { %v6366_v4 = vadd.f32 %v6365_v18, %v6317_v38  ;;  %6786 = vmatpush.bf16.msrb.mxu3 %v11093_v0  ;;  %v10069_v35 = vor.u32 %v12180_v6, %v10066_v20  ;;  %v10514_v0 = vld [vmem:[%s13226_s10 + $0x878] sm:$0xf0] }
 0x7d6   : > { %v6414_v1 = vpop.f32.mrf.mxu3  ;;  %v6270_v19 = vpop.f32.mrf.mxu0 }
 0x7d7   : > { %v6271_v32 = vadd.f32 %v6270_v19, %v15208_v30  ;;  %v6415_v40 = vadd.f32 %v6414_v1, %v6366_v4  ;;  %6514 = vmatmul.bf16.gmra.mxu1 %v13407_v42 }
 0x7d8   : > { %6688 = vmatpush.bf16.msrb.mxu1 %v10069_v35  ;;  %v12292_v35 = vld [vmem:[%s13226_s10 + $0x83c] sm:$0xf] }
 0x7d9   : > { %v6320_v39 = vadd.f32 %v6319_v17, %v6271_v32  ;;  %6465 = vmatmul.bf16.gmra.mxu0 %v13405_v41  ;;  %v6954_v61 = vmax.f32 %v6415_v40, 0.0  ;;  %6563 = vmatmul.bf16.gmra.mxu2 %v13409_v43 }
 0x7db   : > { %6612 = vmatmul.bf16.gmra.mxu3 %v13411_v44  ;;  %v15285_v38 = vpack.c.bf16 %v6954_v61, %v6938_v29 }
 0x7dc   : > { %v6368_v31 = vpop.f32.mrf.mxu2  ;;  %v6321_v32 = vpop.f32.mrf.mxu1 }
 0x7dd   : > { %15974 = vst [vmem:[#allocation118_spill] sm:$0xff] %v15285_v38  ;;  %v6369_v18 = vadd.f32 %v6368_v31, %v6320_v39 }
 0x7de   : > { %v6417_v4 = vpop.f32.mrf.mxu3  ;;  %v6272_v1 = vpop.f32.mrf.mxu0 }
 0x7df   : > { %v6273_v19 = vadd.f32 %v6272_v1, %v15208_v30  ;;  %v6418_v17 = vadd.f32 %v6417_v4, %v6369_v18  ;;  %v12036_v18 = vld [vmem:[%s13226_s10 + $0x3c] sm:$0xf]  ;;  %v10517_v4 = vor.u32 %v12292_v35, %v10514_v0 }
 0x7e0   : > { %v9490_v1 = vld [vmem:[%s13226_s10 + $0x78] sm:$0xf0] }
 0x7e1   : > { %v6322_v40 = vadd.f32 %v6321_v32, %v6273_v19  ;;  %v6970_v31 = vmax.f32 %v6418_v17, 0.0  ;;  %v12420_v19 = vld [vmem:[%s13226_s10 + $0xc3c] sm:$0xf]  ;;  %v9493_v17 = vor.u32 %v12036_v18, %v9490_v1  ;;  %6738 = vmatpush.bf16.msrb.mxu2 %v10517_v4 }
 0x7e2   : > { %v11026_v32 = vld [vmem:[%s13226_s10 + $0xc78] sm:$0xf0] }
 0x7e3   : > { %v11029_v20 = vor.u32 %v12420_v19, %v11026_v32  ;;  %6640 = vmatpush.bf16.msrb.mxu0 %v9493_v17  ;;  %v12164_v35 = vld [vmem:[%s13226_s10 + $0x43c] sm:$0xf] }
 0x7e4   : > { %v6370_v29 = vpop.f32.mrf.mxu2  ;;  %v6324_v56 = vpop.f32.mrf.mxu1  ;;  %v10002_v0 = vld [vmem:[%s13226_s10 + $0x478] sm:$0xf0] }
 0x7e5   : > { %v6371_v61 = vadd.f32 %v6370_v29, %v6322_v40  ;;  %6787 = vmatpush.bf16.msrb.mxu3 %v11029_v20  ;;  %v10005_v38 = vor.u32 %v12164_v35, %v10002_v0  ;;  %v12548_v20 = vld [vmem:[%s13234_s15 + $0x38] sm:$0xff] }
 0x7e6   : > { %v6419_v39 = vpop.f32.mrf.mxu3  ;;  %v6275_v59 = vpop.f32.mrf.mxu0 }
 0x7e7   : > { %v6276_v33 = vadd.f32 %v6275_v59, %v15208_v30  ;;  %v6420_v36 = vadd.f32 %v6419_v39, %v6371_v61  ;;  %6519 = vmatmul.bf16.gmra.mxu1 %v13427_v10  ;;  %8253 = vmatpush.bf16.msra.mxu0 %v12548_v20 }
 0x7e8   : > { %6689 = vmatpush.bf16.msrb.mxu1 %v10005_v38  ;;  %v12564_v38 = vld [vmem:[%s13234_s15 + $0xb8] sm:$0xff] }
 0x7e9   : > { %v6325_v57 = vadd.f32 %v6324_v56, %v6276_v33  ;;  %6470 = vmatmul.bf16.gmra.mxu0 %v13425_v9  ;;  %v6986_v63 = vmax.f32 %v6420_v36, 0.0  ;;  %6568 = vmatmul.bf16.gmra.mxu2 %v13429_v11 }
 0x7ea   : > { %8351 = vmatpush.bf16.msra.mxu2 %v12564_v38 }
 0x7eb   : > { %6617 = vmatmul.bf16.gmra.mxu3 %v13431_v12  ;;  %v15301_v40 = vpack.c.bf16 %v6986_v63, %v6970_v31 }
 0x7ec   : > { %v6373_v6 = vpop.f32.mrf.mxu2  ;;  %v6326_v33 = vpop.f32.mrf.mxu1 }
 0x7ed   : > { %v6374_v29 = vadd.f32 %v6373_v6, %v6325_v57 }
 0x7ee   : > { %v6422_v61 = vpop.f32.mrf.mxu3  ;;  %v6277_v39 = vpop.f32.mrf.mxu0 }
 0x7ef   : > { %v6278_v59 = vadd.f32 %v6277_v39, %v15208_v30  ;;  %v6423_v56 = vadd.f32 %v6422_v61, %v6374_v29  ;;  %v12572_v29 = vld [vmem:[%s13234_s15 + $0xf8] sm:$0xff] }
 0x7f0   : > { %8400 = vmatpush.bf16.msra.mxu3 %v12572_v29  ;;  %v12563_v29 = vld [vmem:[%s13234_s15 + $0xb0] sm:$0xff] }
 0x7f1   : > { %v6327_v36 = vadd.f32 %v6326_v33, %v6278_v59  ;;  %v7002_v6 = vmax.f32 %v6423_v56, 0.0  ;;  %8352 = vmatpush.bf16.msra.mxu2 %v12563_v29 }
 0x7f4   : > { %v6375_v31 = vpop.f32.mrf.mxu2  ;;  %v6329_v1 = vpop.f32.mrf.mxu1 }
 0x7f5   : > { %v6376_v63 = vadd.f32 %v6375_v31, %v6327_v36 }
 0x7f6   : > { %v6424_v57 = vpop.f32.mrf.mxu3  ;;  %v6280_v18 = vpop.f32.mrf.mxu0 }
 0x7f7   : > { %v6281_v4 = vadd.f32 %v6280_v18, %v15208_v30  ;;  %v6425_v19 = vadd.f32 %v6424_v57, %v6376_v63  ;;  %6524 = vmatmul.bf16.gmra.mxu1 %v13447_v46  ;;  %v12556_v63 = vld [vmem:[%s13234_s15 + $0x78] sm:$0xff] }
 0x7f8   : > { %8302 = vmatpush.bf16.msra.mxu1 %v12556_v63 }
 0x7f9   : > { %v6330_v32 = vadd.f32 %v6329_v1, %v6281_v4  ;;  %6475 = vmatmul.bf16.gmra.mxu0 %v13445_v45  ;;  %v7018_v17 = vmax.f32 %v6425_v19, 0.0  ;;  %6573 = vmatmul.bf16.gmra.mxu2 %v13449_v47 }
 0x7fb   : > { %6622 = vmatmul.bf16.gmra.mxu3 %v13451_v48  ;;  %v15314_v61 = vpack.c.bf16 %v7018_v17, %v7002_v6 }
 0x7fc   : > { %v6378_v39 = vpop.f32.mrf.mxu2  ;;  %v6331_v35 = vpop.f32.mrf.mxu1 }
 0x7fd   : > { %v6379_v59 = vadd.f32 %v6378_v39, %v6330_v32  ;;  %v12547_v39 = vld [vmem:[%s13234_s15 + $0x30] sm:$0xff] }
 0x7fe   : > { %v6427_v33 = vpop.f32.mrf.mxu3  ;;  %v6282_v36 = vpop.f32.mrf.mxu0  ;;  %8254 = vmatpush.bf16.msra.mxu0 %v12547_v39 }
 0x7ff   : > { %v6283_v56 = vadd.f32 %v6282_v36, %v15208_v30  ;;  %v6428_v0 = vadd.f32 %v6427_v33, %v6379_v59  ;;  %v12571_v59 = vld [vmem:[%s13234_s15 + $0xf0] sm:$0xff] }
 0x800   : > { %8401 = vmatpush.bf16.msra.mxu3 %v12571_v59 }
 0x801   : > { %v6332_v31 = vadd.f32 %v6331_v35, %v6283_v56  ;;  %v7034_v38 = vmax.f32 %v6428_v0, 0.0 }
 0x804   : > { %v6380_v57 = vpop.f32.mrf.mxu2  ;;  %v6334_v32 = vpop.f32.mrf.mxu1 }
 0x805   : > { %v6381_v18 = vadd.f32 %v6380_v57, %v6332_v31 }
 0x806   : > { %v6429_v4 = vpop.f32.mrf.mxu3  ;;  %v6285_v1 = vpop.f32.mrf.mxu0 }
 0x807   : > { %v6286_v19 = vadd.f32 %v6285_v1, %v15208_v30  ;;  %v6430_v6 = vadd.f32 %v6429_v4, %v6381_v18  ;;  %6529 = vmatmul.bf16.gmra.mxu1 %v13467_v22  ;;  %v12555_v4 = vld [vmem:[%s13234_s15 + $0x70] sm:$0xff]  ;;  %v15331_v1 = vld [vmem:[%s13232_s29 + $0x8] sm:$0xff] }
 0x808   : > { %8303 = vmatpush.bf16.msra.mxu1 %v12555_v4 }
 0x809   : > { %v6335_v17 = vadd.f32 %v6334_v32, %v6286_v19  ;;  %6480 = vmatmul.bf16.gmra.mxu0 %v13465_v21  ;;  %v7050_v20 = vmax.f32 %v6430_v6, 0.0  ;;  %6578 = vmatmul.bf16.gmra.mxu2 %v13469_v23  ;;  %v15334_v19 = vperm.slane %v15331_v1, 6 }
 0x80b   : > { %6627 = vmatmul.bf16.gmra.mxu3 %v13471_v24  ;;  %v15326_v33 = vpack.c.bf16 %v7050_v20, %v7034_v38 }
 0x80c   : > { %v6383_v36 = vpop.f32.mrf.mxu2  ;;  %v6336_v63 = vpop.f32.mrf.mxu1 }
 0x80d   : > { %v6384_v56 = vadd.f32 %v6383_v36, %v6335_v17 }
 0x80e   : > { %v6432_v35 = vpop.f32.mrf.mxu3  ;;  %v6287_v31 = vpop.f32.mrf.mxu0 }
 0x80f   : > { %v6288_v0 = vadd.f32 %v6287_v31, %v15208_v30  ;;  %v6433_v57 = vadd.f32 %v6432_v35, %v6384_v56  ;;  %v12562_v56 = vld [vmem:[%s13234_s15 + $0xa8] sm:$0xff] }
 0x810   : > { %v12546_v35 = vld [vmem:[%s13234_s15 + $0x28] sm:$0xff]  ;;  %8353 = vmatpush.bf16.msra.mxu2 %v12562_v56 }
 0x811   : > { %v6337_v18 = vadd.f32 %v6336_v63, %v6288_v0  ;;  %v7066_v59 = vmax.f32 %v6433_v57, 0.0  ;;  %v12570_v31 = vld [vmem:[%s13234_s15 + $0xe8] sm:$0xff]  ;;  %8255 = vmatpush.bf16.msra.mxu0 %v12546_v35  ;;  %v12561_v35 = vld [vmem:[%s13234_s15 + $0xa0] sm:$0xff] }
 0x812   : > { %8402 = vmatpush.bf16.msra.mxu3 %v12570_v31  ;;  %v12545_v31 = vld [vmem:[%s13234_s15 + $0x20] sm:$0xff] }
 0x814   : > { %v6385_v32 = vpop.f32.mrf.mxu2  ;;  %v6495_v20 = vpop.f32.mrf.mxu1  ;;  %8354 = vmatpush.bf16.msra.mxu2 %v12561_v35  ;;  %v12568_v35 = vld [vmem:[%s13234_s15 + $0xd8] sm:$0xff] }
 0x815   : > { %v6386_v6 = vadd.f32 %v6385_v32, %v6337_v18  ;;  %8256 = vmatpush.bf16.msra.mxu0 %v12545_v31 }
 0x816   : > { %v6434_v17 = vpop.f32.mrf.mxu3  ;;  %v6446_v38 = vpop.f32.mrf.mxu0 }
 0x817   : > { %v6447_v30 = vadd.f32 %v6446_v38, %v15334_v19  ;;  %v6435_v29 = vadd.f32 %v6434_v17, %v6386_v6  ;;  %6690 = vmatmul.bf16.vlgmr.msrb.gmra.mxu1 %v13321_v54  ;;  %v12554_v6 = vld [vmem:[%s13234_s15 + $0x68] sm:$0xff] }
 0x818   : > { %8304 = vmatpush.bf16.msra.mxu1 %v12554_v6 }
 0x819   : > { %v6496_v39 = vadd.f32 %v6495_v20, %v6447_v30  ;;  %6641 = vmatmul.bf16.vlgmr.msrb.gmra.mxu0 %v13316_v49  ;;  %v7082_v36 = vmax.f32 %v6435_v29, 0.0  ;;  %6739 = vmatmul.bf16.vlgmr.msrb.gmra.mxu2 %v13323_v55 }
 0x81b   : > { %6788 = vmatmul.bf16.vlgmr.msrb.gmra.mxu3 %v13327_v58  ;;  %v15344_v0 = vpack.c.bf16 %v7082_v36, %v7066_v59 }
 0x81c   : > { %v6544_v63 = vpop.f32.mrf.mxu2  ;;  %v6497_v54 = vpop.f32.mrf.mxu1 }
 0x81d   : > { %v6545_v18 = vadd.f32 %v6544_v63, %v6496_v39  ;;  %v12569_v63 = vld [vmem:[%s13234_s15 + $0xe0] sm:$0xff] }
 0x81e   : > { %v6593_v4 = vpop.f32.mrf.mxu3  ;;  %v6448_v49 = vpop.f32.mrf.mxu0  ;;  %8403 = vmatpush.bf16.msra.mxu3 %v12569_v63 }
 0x81f   : > { %v6449_v57 = vadd.f32 %v6448_v49, %v15334_v19  ;;  %v6594_v32 = vadd.f32 %v6593_v4, %v6545_v18 }
 0x821   : > { %v6498_v55 = vadd.f32 %v6497_v54, %v6449_v57  ;;  %v6843_v36 = vmax.f32 %v6594_v32, 0.0 }
 0x822   : > { %8404 = vmatpush.bf16.msra.mxu3 %v12568_v35 }
 0x824   : > { %v6546_v58 = vpop.f32.mrf.mxu2  ;;  %v6500_v29 = vpop.f32.mrf.mxu1 }
 0x825   : > { %v6547_v17 = vadd.f32 %v6546_v58, %v6498_v55  ;;  %v12553_v55 = vld [vmem:[%s13234_s15 + $0x60] sm:$0xff] }
 0x826   : > { %v6595_v38 = vpop.f32.mrf.mxu3  ;;  %v6451_v30 = vpop.f32.mrf.mxu0  ;;  %8305 = vmatpush.bf16.msra.mxu1 %v12553_v55 }
 0x827   : > { %v6452_v20 = vadd.f32 %v6451_v30, %v15334_v19  ;;  %v6596_v39 = vadd.f32 %v6595_v38, %v6547_v17  ;;  %6695 = vmatmul.bf16.gmra.mxu1 %v13347_v26 }
 0x829   : > { %v6501_v59 = vadd.f32 %v6500_v29, %v6452_v20  ;;  %6646 = vmatmul.bf16.gmra.mxu0 %v13345_v25  ;;  %v6859_v56 = vmax.f32 %v6596_v39, 0.0  ;;  %6744 = vmatmul.bf16.gmra.mxu2 %v13349_v27 }
 0x82b   : > { %6793 = vmatmul.bf16.gmra.mxu3 %v13351_v28  ;;  %v15356_v18 = vpack.c.bf16 %v6859_v56, %v6843_v36  ;;  %v12560_v36 = vld [vmem:[%s13234_s15 + $0x98] sm:$0xff] }
 0x82c   : > { %v6549_v4 = vpop.f32.mrf.mxu2  ;;  %v6502_v26 = vpop.f32.mrf.mxu1  ;;  %v12544_v56 = vld [vmem:[%s13234_s15 + $0x18] sm:$0xff]  ;;  %8355 = vmatpush.bf16.msra.mxu2 %v12560_v36 }
 0x82d   : > { %v6550_v49 = vadd.f32 %v6549_v4, %v6501_v59  ;;  %8257 = vmatpush.bf16.msra.mxu0 %v12544_v56 }
 0x82e   : > { %v6598_v57 = vpop.f32.mrf.mxu3  ;;  %v6453_v25 = vpop.f32.mrf.mxu0 }
 0x82f   : > { %v6454_v54 = vadd.f32 %v6453_v25, %v15334_v19  ;;  %v6599_v32 = vadd.f32 %v6598_v57, %v6550_v49 }
 0x831   : > { %v6503_v27 = vadd.f32 %v6502_v26, %v6454_v54  ;;  %v6875_v39 = vmax.f32 %v6599_v32, 0.0  ;;  %v12552_v54 = vld [vmem:[%s13234_s15 + $0x58] sm:$0xff] }
 0x832   : > { %8306 = vmatpush.bf16.msra.mxu1 %v12552_v54 }
 0x834   : > { %v6551_v28 = vpop.f32.mrf.mxu2  ;;  %v6505_v30 = vpop.f32.mrf.mxu1 }
 0x835   : > { %v6552_v6 = vadd.f32 %v6551_v28, %v6503_v27 }
 0x836   : > { %v6600_v58 = vpop.f32.mrf.mxu3  ;;  %v6456_v17 = vpop.f32.mrf.mxu0 }
 0x837   : > { %v6457_v38 = vadd.f32 %v6456_v17, %v15334_v19  ;;  %v6601_v20 = vadd.f32 %v6600_v58, %v6552_v6  ;;  %6700 = vmatmul.bf16.gmra.mxu1 %v13367_v51 }
 0x839   : > { %v6506_v29 = vadd.f32 %v6505_v30, %v6457_v38  ;;  %6651 = vmatmul.bf16.gmra.mxu0 %v13365_v50  ;;  %v6891_v59 = vmax.f32 %v6601_v20, 0.0  ;;  %6749 = vmatmul.bf16.gmra.mxu2 %v13369_v52  ;;  %v12559_v30 = vld [vmem:[%s13234_s15 + $0x90] sm:$0xff] }
 0x83a   : > { %v12543_v20 = vld [vmem:[%s13234_s15 + $0x10] sm:$0xff]  ;;  %8356 = vmatpush.bf16.msra.mxu2 %v12559_v30 }
 0x83b   : > { %6798 = vmatmul.bf16.gmra.mxu3 %v13371_v53  ;;  %v15368_v31 = vpack.c.bf16 %v6891_v59, %v6875_v39  ;;  %8258 = vmatpush.bf16.msra.mxu0 %v12543_v20  ;;  %v12550_v20 = vld [vmem:[%s13234_s15 + $0x48] sm:$0xff] }
 0x83c   : > { %v6554_v63 = vpop.f32.mrf.mxu2  ;;  %v6507_v51 = vpop.f32.mrf.mxu1 }
 0x83d   : > { %v6555_v4 = vadd.f32 %v6554_v63, %v6506_v29  ;;  %v12567_v29 = vld [vmem:[%s13234_s15 + $0xd0] sm:$0xff] }
 0x83e   : > { %v6603_v49 = vpop.f32.mrf.mxu3  ;;  %v6458_v50 = vpop.f32.mrf.mxu0  ;;  %8405 = vmatpush.bf16.msra.mxu3 %v12567_v29 }
 0x83f   : > { %v6459_v57 = vadd.f32 %v6458_v50, %v15334_v19  ;;  %v6604_v25 = vadd.f32 %v6603_v49, %v6555_v4  ;;  %v12551_v4 = vld [vmem:[%s13234_s15 + $0x50] sm:$0xff] }
 0x840   : > { %8307 = vmatpush.bf16.msra.mxu1 %v12551_v4  ;;  %v12557_v4 = vld [vmem:[%s13234_s15 + $0x80] sm:$0xff] }
 0x841   : > { %v6508_v52 = vadd.f32 %v6507_v51, %v6459_v57  ;;  %v6907_v17 = vmax.f32 %v6604_v25, 0.0 }
 0x844   : > { %v6556_v53 = vpop.f32.mrf.mxu2  ;;  %v6510_v28 = vpop.f32.mrf.mxu1  ;;  %8308 = vmatpush.bf16.msra.mxu1 %v12550_v20 }
 0x845   : > { %v6557_v26 = vadd.f32 %v6556_v53, %v6508_v52 }
 0x846   : > { %v6605_v32 = vpop.f32.mrf.mxu3  ;;  %v6461_v27 = vpop.f32.mrf.mxu0 }
 0x847   : > { %v6462_v55 = vadd.f32 %v6461_v27, %v15334_v19  ;;  %v6606_v6 = vadd.f32 %v6605_v32, %v6557_v26  ;;  %6705 = vmatmul.bf16.gmra.mxu1 %v13387_v14  ;;  %v12558_v32 = vld [vmem:[%s13234_s15 + $0x88] sm:$0xff] }
 0x848   : > { %v12542_v27 = vld [vmem:[%s13234_s15 + $0x8] sm:$0xff]  ;;  %8357 = vmatpush.bf16.msra.mxu2 %v12558_v32 }
 0x849   : > { %v6511_v58 = vadd.f32 %v6510_v28, %v6462_v55  ;;  %6656 = vmatmul.bf16.gmra.mxu0 %v13385_v13  ;;  %v6923_v38 = vmax.f32 %v6606_v6, 0.0  ;;  %6754 = vmatmul.bf16.gmra.mxu2 %v13389_v15  ;;  %v12566_v55 = vld [vmem:[%s13234_s15 + $0xc8] sm:$0xff] }
 0x84a   : > { %8259 = vmatpush.bf16.msra.mxu0 %v12542_v27  ;;  %8406 = vmatpush.bf16.msra.mxu3 %v12566_v55 }
 0x84b   : > { %6803 = vmatmul.bf16.gmra.mxu3 %v13391_v16  ;;  %v15380_v39 = vpack.c.bf16 %v6923_v38, %v6907_v17 }
 0x84c   : > { %v6559_v59 = vpop.f32.mrf.mxu2  ;;  %v6512_v14 = vpop.f32.mrf.mxu1  ;;  %8358 = vmatpush.bf16.msra.mxu2 %v12557_v4 }
 0x84d   : > { %v6560_v36 = vadd.f32 %v6559_v59, %v6511_v58 }
 0x84e   : > { %v6608_v56 = vpop.f32.mrf.mxu3  ;;  %v6463_v13 = vpop.f32.mrf.mxu0 }
 0x84f   : > { %v6464_v35 = vadd.f32 %v6463_v13, %v15334_v19  ;;  %v6609_v63 = vadd.f32 %v6608_v56, %v6560_v36 }
 0x851   : > { %v6513_v15 = vadd.f32 %v6512_v14, %v6464_v35  ;;  %v6939_v53 = vmax.f32 %v6609_v63, 0.0 }
 0x854   : > { %v6561_v16 = vpop.f32.mrf.mxu2  ;;  %v6515_v25 = vpop.f32.mrf.mxu1 }
 0x855   : > { %v6562_v49 = vadd.f32 %v6561_v16, %v6513_v15  ;;  %v12541_v16 = vld [vmem:[%s13234_s15] sm:$0xff] }
 0x856   : > { %v6610_v50 = vpop.f32.mrf.mxu3  ;;  %v6466_v57 = vpop.f32.mrf.mxu0  ;;  %8260 = vmatpush.bf16.msra.mxu0 %v12541_v16 }
 0x857   : > { %v6467_v51 = vadd.f32 %v6466_v57, %v15334_v19  ;;  %v6611_v52 = vadd.f32 %v6610_v50, %v6562_v49  ;;  %6710 = vmatmul.bf16.gmra.mxu1 %v13407_v42  ;;  %v12565_v49 = vld [vmem:[%s13234_s15 + $0xc0] sm:$0xff] }
 0x858   : > { %8407 = vmatpush.bf16.msra.mxu3 %v12565_v49 }
 0x859   : > { %v6516_v54 = vadd.f32 %v6515_v25, %v6467_v51  ;;  %6661 = vmatmul.bf16.gmra.mxu0 %v13405_v41  ;;  %v6955_v26 = vmax.f32 %v6611_v52, 0.0  ;;  %6759 = vmatmul.bf16.gmra.mxu2 %v13409_v43 }
 0x85b   : > { %6808 = vmatmul.bf16.gmra.mxu3 %v13411_v44  ;;  %v15392_v28 = vpack.c.bf16 %v6955_v26, %v6939_v53  ;;  %v12549_v53 = vld [vmem:[%s13234_s15 + $0x40] sm:$0xff] }
 0x85c   : > { %v6564_v6 = vpop.f32.mrf.mxu2  ;;  %v6517_v42 = vpop.f32.mrf.mxu1  ;;  %8309 = vmatpush.bf16.msra.mxu1 %v12549_v53 }
 0x85d   : > { %v6565_v58 = vadd.f32 %v6564_v6, %v6516_v54 }
 0x85e   : > { %v6613_v17 = vpop.f32.mrf.mxu3  ;;  %v6468_v41 = vpop.f32.mrf.mxu0 }
 0x85f   : > { %v6469_v38 = vadd.f32 %v6468_v41, %v15334_v19  ;;  %v6614_v30 = vadd.f32 %v6613_v17, %v6565_v58 }
 0x861   : > { %v6518_v43 = vadd.f32 %v6517_v42, %v6469_v38  ;;  %v6971_v63 = vmax.f32 %v6614_v30, 0.0  ;;  %v12596_v42 = vld [vmem:[%s13234_s15 + $0x1b8] sm:$0xff] }
 0x862   : > { %v12580_v30 = vld [vmem:[%s13234_s15 + $0x138] sm:$0xff]  ;;  %8547 = vmatpush.bf16.msrb.mxu2 %v12596_v42 }
 0x863   : > { %8449 = vmatpush.bf16.msrb.mxu0 %v12580_v30 }
 0x864   : > { %v6566_v44 = vpop.f32.mrf.mxu2  ;;  %v6520_v13 = vpop.f32.mrf.mxu1 }
 0x865   : > { %v6567_v29 = vadd.f32 %v6566_v44, %v6518_v43  ;;  %v12604_v43 = vld [vmem:[%s13234_s15 + $0x1f8] sm:$0xff] }
 0x866   : > { %v6615_v59 = vpop.f32.mrf.mxu3  ;;  %v6471_v36 = vpop.f32.mrf.mxu0  ;;  %8596 = vmatpush.bf16.msrb.mxu3 %v12604_v43  ;;  %v12578_v43 = vld [vmem:[%s13234_s15 + $0x128] sm:$0xff] }
 0x867   : > { %v6472_v56 = vadd.f32 %v6471_v36, %v15334_v19  ;;  %v6616_v35 = vadd.f32 %v6615_v59, %v6567_v29  ;;  %6715 = vmatmul.bf16.gmra.mxu1 %v13427_v10 }
 0x869   : > { %v6521_v14 = vadd.f32 %v6520_v13, %v6472_v56  ;;  %6666 = vmatmul.bf16.gmra.mxu0 %v13425_v9  ;;  %v6987_v15 = vmax.f32 %v6616_v35, 0.0  ;;  %6764 = vmatmul.bf16.gmra.mxu2 %v13429_v11  ;;  %v12588_v13 = vld [vmem:[%s13234_s15 + $0x178] sm:$0xff] }
 0x86a   : > { %8498 = vmatpush.bf16.msrb.mxu1 %v12588_v13 }
 0x86b   : > { %6813 = vmatmul.bf16.gmra.mxu3 %v13431_v12  ;;  %v15404_v50 = vpack.c.bf16 %v6987_v15, %v6971_v63 }
 0x86c   : > { %v6569_v57 = vpop.f32.mrf.mxu2  ;;  %v6522_v10 = vpop.f32.mrf.mxu1 }
 0x86d   : > { %v6570_v51 = vadd.f32 %v6569_v57, %v6521_v14 }
 0x86e   : > { %v6618_v25 = vpop.f32.mrf.mxu3  ;;  %v6473_v9 = vpop.f32.mrf.mxu0 }
 0x86f   : > { %v6474_v52 = vadd.f32 %v6473_v9, %v15334_v19  ;;  %v6619_v54 = vadd.f32 %v6618_v25, %v6570_v51  ;;  %v12595_v25 = vld [vmem:[%s13234_s15 + $0x1b0] sm:$0xff] }
 0x870   : > { %v12579_v9 = vld [vmem:[%s13234_s15 + $0x130] sm:$0xff]  ;;  %8548 = vmatpush.bf16.msrb.mxu2 %v12595_v25  ;;  %v12601_v25 = vld [vmem:[%s13234_s15 + $0x1e0] sm:$0xff] }
 0x871   : > { %v6523_v11 = vadd.f32 %v6522_v10, %v6474_v52  ;;  %v7003_v41 = vmax.f32 %v6619_v54, 0.0  ;;  %v12603_v52 = vld [vmem:[%s13234_s15 + $0x1f0] sm:$0xff]  ;;  %8450 = vmatpush.bf16.msrb.mxu0 %v12579_v9 }
 0x872   : > { %8597 = vmatpush.bf16.msrb.mxu3 %v12603_v52 }
 0x874   : > { %v6571_v12 = vpop.f32.mrf.mxu2  ;;  %v6525_v6 = vpop.f32.mrf.mxu1 }
 0x875   : > { %v6572_v26 = vadd.f32 %v6571_v12, %v6523_v11  ;;  %8451 = vmatpush.bf16.msrb.mxu0 %v12578_v43  ;;  %v12600_v43 = vld [vmem:[%s13234_s15 + $0x1d8] sm:$0xff] }
 0x876   : > { %v6620_v32 = vpop.f32.mrf.mxu3  ;;  %v6476_v27 = vpop.f32.mrf.mxu0 }
 0x877   : > { %v6477_v55 = vadd.f32 %v6476_v27, %v15334_v19  ;;  %v6621_v58 = vadd.f32 %v6620_v32, %v6572_v26  ;;  %6720 = vmatmul.bf16.gmra.mxu1 %v13447_v46  ;;  %v12587_v32 = vld [vmem:[%s13234_s15 + $0x170] sm:$0xff] }
 0x878   : > { %8499 = vmatpush.bf16.msrb.mxu1 %v12587_v32 }
 0x879   : > { %v6526_v17 = vadd.f32 %v6525_v6, %v6477_v55  ;;  %6671 = vmatmul.bf16.gmra.mxu0 %v13445_v45  ;;  %v7019_v38 = vmax.f32 %v6621_v58, 0.0  ;;  %6769 = vmatmul.bf16.gmra.mxu2 %v13449_v47 }
 0x87b   : > { %6818 = vmatmul.bf16.gmra.mxu3 %v13451_v48  ;;  %v15416_v20 = vpack.c.bf16 %v7019_v38, %v7003_v41 }
 0x87c   : > { %v6574_v44 = vpop.f32.mrf.mxu2  ;;  %v6527_v46 = vpop.f32.mrf.mxu1 }
 0x87d   : > { %v6575_v29 = vadd.f32 %v6574_v44, %v6526_v17  ;;  %v12602_v44 = vld [vmem:[%s13234_s15 + $0x1e8] sm:$0xff] }
 0x87e   : > { %v6623_v59 = vpop.f32.mrf.mxu3  ;;  %v6478_v45 = vpop.f32.mrf.mxu0  ;;  %8598 = vmatpush.bf16.msrb.mxu3 %v12602_v44 }
 0x87f   : > { %v6479_v36 = vadd.f32 %v6478_v45, %v15334_v19  ;;  %v6624_v56 = vadd.f32 %v6623_v59, %v6575_v29 }
 0x881   : > { %v6528_v47 = vadd.f32 %v6527_v46, %v6479_v36  ;;  %v7035_v57 = vmax.f32 %v6624_v56, 0.0 }
 0x882   : > { %8599 = vmatpush.bf16.msrb.mxu3 %v12601_v25  ;;  %v15981_v25 = vld [vmem:[#allocation33_spill] sm:$0xff] }
 0x884   : > { %v6576_v48 = vpop.f32.mrf.mxu2  ;;  %v6530_v4 = vpop.f32.mrf.mxu1 }
 0x885   : > { %v6577_v35 = vadd.f32 %v6576_v48, %v6528_v47  ;;  %v12586_v47 = vld [vmem:[%s13234_s15 + $0x168] sm:$0xff] }
 0x886   : > { %v6625_v14 = vpop.f32.mrf.mxu3  ;;  %v6481_v63 = vpop.f32.mrf.mxu0  ;;  %8500 = vmatpush.bf16.msrb.mxu1 %v12586_v47  ;;  %8600 = vmatpush.bf16.msrb.mxu3 %v12600_v43  ;;  %v12584_v47 = vld [vmem:[%s13234_s15 + $0x158] sm:$0xff]  ;;  %v15984_v43 = vld [vmem:[#allocation28_spill] sm:$0xff] }
 0x887   : > { %v6482_v15 = vadd.f32 %v6481_v63, %v15334_v19  ;;  %v6626_v16 = vadd.f32 %v6625_v14, %v6577_v35  ;;  %6725 = vmatmul.bf16.gmra.mxu1 %v13467_v22 }
 0x889   : > { %v6531_v49 = vadd.f32 %v6530_v4, %v6482_v15  ;;  %6676 = vmatmul.bf16.gmra.mxu0 %v13465_v21  ;;  %v7051_v51 = vmax.f32 %v6626_v16, 0.0  ;;  %6774 = vmatmul.bf16.gmra.mxu2 %v13469_v23 }
 0x88b   : > { %6823 = vmatmul.bf16.gmra.mxu3 %v13471_v24  ;;  %v15428_v10 = vpack.c.bf16 %v7051_v51, %v7035_v57  ;;  %v15433_v24 = vperm.slane %v15331_v1, 7  ;;  %v12594_v1 = vld [vmem:[%s13234_s15 + $0x1a8] sm:$0xff]  ;;  %v12593_v57 = vld [vmem:[%s13234_s15 + $0x1a0] sm:$0xff] }
 0x88c   : > { %v6579_v54 = vpop.f32.mrf.mxu2  ;;  %v6532_v26 = vpop.f32.mrf.mxu1  ;;  %8549 = vmatpush.bf16.msrb.mxu2 %v12594_v1  ;;  %v12577_v51 = vld [vmem:[%s13234_s15 + $0x120] sm:$0xff]  ;;  %v12576_v1 = vld [vmem:[%s13234_s15 + $0x118] sm:$0xff] }
 0x88d   : > { %v6580_v11 = vadd.f32 %v6579_v54, %v6531_v49  ;;  %8452 = vmatpush.bf16.msrb.mxu0 %v12577_v51  ;;  %v15980_v51 = vld [vmem:[#allocation27_spill] sm:$0xff] }
 0x88e   : > { %v6628_v53 = vpop.f32.mrf.mxu3  ;;  %v6483_v12 = vpop.f32.mrf.mxu0 }
 0x88f   : > { %v6484_v21 = vadd.f32 %v6483_v12, %v15334_v19  ;;  %v6629_v22 = vadd.f32 %v6628_v53, %v6580_v11 }
 0x890   : > { %8550 = vmatpush.bf16.msrb.mxu2 %v12593_v57 }
 0x891   : > { %v6533_v23 = vadd.f32 %v6532_v26, %v6484_v21  ;;  %v7067_v42 = vmax.f32 %v6629_v22, 0.0  ;;  %v12585_v21 = vld [vmem:[%s13234_s15 + $0x160] sm:$0xff]  ;;  %8453 = vmatpush.bf16.msrb.mxu0 %v12576_v1 }
 0x892   : > { %8501 = vmatpush.bf16.msrb.mxu1 %v12585_v21 }
 0x894   : > { %v6581_v27 = vpop.f32.mrf.mxu2  ;;  %v6691_v41 = vpop.f32.mrf.mxu1 }
 0x895   : > { %v6582_v55 = vadd.f32 %v6581_v27, %v6533_v23 }
 0x896   : > { %v6630_v6 = vpop.f32.mrf.mxu3  ;;  %v6642_v58 = vpop.f32.mrf.mxu0  ;;  %8502 = vmatpush.bf16.msrb.mxu1 %v12584_v47 }
 0x897   : > { %v6643_v17 = vadd.f32 %v6642_v58, %v15433_v24  ;;  %v6631_v19 = vadd.f32 %v6630_v6, %v6582_v55  ;;  %8310 = vmatmul.bf16.vlgmr.msra.gmra.mxu1 %v13644_v34  ;;  %v15975_v58 = vld [vmem:[#allocation20_spill] sm:$0xff] }
 0x899   : > { %v6692_v38 = vadd.f32 %v6691_v41, %v6643_v17  ;;  %8261 = vmatmul.bf16.vlgmr.msra.gmra.mxu0 %v13513_v2  ;;  %v7083_v30 = vmax.f32 %v6631_v19, 0.0  ;;  %8359 = vmatmul.bf16.vlgmr.msra.gmra.mxu2 %v13778_v37  ;;  %v15976_v19 = vld [vmem:[#allocation26_spill] sm:$0xff] }
 0x89b   : > { %8408 = vmatmul.bf16.vlgmr.msra.gmra.mxu3 %v13909_v3  ;;  %v15443_v29 = vpack.c.bf16 %v7083_v30, %v7067_v42  ;;  %v15978_v42 = vld [vmem:[#allocation38_spill] sm:$0xff] }
 0x89c   : > { %v6740_v59 = vpop.f32.mrf.mxu2  ;;  %v6693_v34 = vpop.f32.mrf.mxu1  ;;  %v12592_v30 = vld [vmem:[%s13234_s15 + $0x198] sm:$0xff] }
 0x89d   : > { %v6741_v45 = vadd.f32 %v6740_v59, %v6692_v38  ;;  %v15977_v38 = vld [vmem:[#allocation32_spill] sm:$0xff]  ;;  %8551 = vmatpush.bf16.msrb.mxu2 %v12592_v30 }
 0x89e   : > { %v6789_v36 = vpop.f32.mrf.mxu3  ;;  %v6644_v2 = vpop.f32.mrf.mxu0 }
 0x89f   : > { %v6645_v46 = vadd.f32 %v6644_v2, %v15433_v24  ;;  %v6790_v56 = vadd.f32 %v6789_v36, %v6741_v45 }
 0x8a1   : > { %v6694_v37 = vadd.f32 %v6693_v34, %v6645_v46  ;;  %v6844_v16 = vmax.f32 %v6790_v56, 0.0 }
 0x8a4   : > { %v6742_v3 = vpop.f32.mrf.mxu2  ;;  %v6696_v63 = vpop.f32.mrf.mxu1 }
 0x8a5   : > { %v6743_v13 = vadd.f32 %v6742_v3, %v6694_v37 }
 0x8a6   : > { %v6791_v48 = vpop.f32.mrf.mxu3  ;;  %v6647_v35 = vpop.f32.mrf.mxu0 }
 0x8a7   : > { %v6648_v14 = vadd.f32 %v6647_v35, %v15433_v24  ;;  %v6792_v15 = vadd.f32 %v6791_v48, %v6743_v13  ;;  %8315 = vmatmul.bf16.gmra.mxu1 %v13663_v5 }
 0x8a9   : > { %v6697_v4 = vadd.f32 %v6696_v63, %v6648_v14  ;;  %8266 = vmatmul.bf16.gmra.mxu0 %v13532_v8  ;;  %v6860_v49 = vmax.f32 %v6792_v15, 0.0  ;;  %8364 = vmatmul.bf16.gmra.mxu2 %v13797_v62 }
 0x8ab   : > { %8413 = vmatmul.bf16.gmra.mxu3 %v13928_v7  ;;  %v15455_v9 = vpack.c.bf16 %v6860_v49, %v6844_v16  ;;  %v15979_v16 = vld [vmem:[#allocation21_spill] sm:$0xff] }
 0x8ac   : > { %v6745_v52 = vpop.f32.mrf.mxu2  ;;  %v6698_v5 = vpop.f32.mrf.mxu1 }
 0x8ad   : > { %v6746_v54 = vadd.f32 %v6745_v52, %v6697_v4  ;;  %v15982_v52 = vld [vmem:[#allocation39_spill] sm:$0xff] }
 0x8ae   : > { %v6794_v11 = vpop.f32.mrf.mxu3  ;;  %v6649_v8 = vpop.f32.mrf.mxu0 }
 0x8af   : > { %v6650_v53 = vadd.f32 %v6649_v8, %v15433_v24  ;;  %v6795_v12 = vadd.f32 %v6794_v11, %v6746_v54  ;;  %v12591_v54 = vld [vmem:[%s13234_s15 + $0x190] sm:$0xff] }
 0x8b0   : > { %v12575_v11 = vld [vmem:[%s13234_s15 + $0x110] sm:$0xff]  ;;  %8552 = vmatpush.bf16.msrb.mxu2 %v12591_v54  ;;  %v15987_v54 = vld [vmem:[#allocation23_spill] sm:$0xff] }
 0x8b1   : > { %v6699_v62 = vadd.f32 %v6698_v5, %v6650_v53  ;;  %v6876_v17 = vmax.f32 %v6795_v12, 0.0  ;;  %v12599_v8 = vld [vmem:[%s13234_s15 + $0x1d0] sm:$0xff]  ;;  %8454 = vmatpush.bf16.msrb.mxu0 %v12575_v11 }
 0x8b2   : > { %8601 = vmatpush.bf16.msrb.mxu3 %v12599_v8 }
 0x8b4   : > { %v6747_v7 = vpop.f32.mrf.mxu2  ;;  %v6701_v27 = vpop.f32.mrf.mxu1 }
 0x8b5   : > { %v6748_v26 = vadd.f32 %v6747_v7, %v6699_v62 }
 0x8b6   : > { %v6796_v22 = vpop.f32.mrf.mxu3  ;;  %v6652_v23 = vpop.f32.mrf.mxu0 }
 0x8b7   : > { %v6653_v32 = vadd.f32 %v6652_v23, %v15433_v24  ;;  %v6797_v55 = vadd.f32 %v6796_v22, %v6748_v26  ;;  %8320 = vmatmul.bf16.gmra.mxu1 %v15976_v19 }
 0x8b9   : > { %v6702_v6 = vadd.f32 %v6701_v27, %v6653_v32  ;;  %8271 = vmatmul.bf16.gmra.mxu0 %v15975_v58  ;;  %v6892_v41 = vmax.f32 %v6797_v55, 0.0  ;;  %8369 = vmatmul.bf16.gmra.mxu2 %v15977_v38  ;;  %v12583_v32 = vld [vmem:[%s13234_s15 + $0x150] sm:$0xff] }
 0x8ba   : > { %8503 = vmatpush.bf16.msrb.mxu1 %v12583_v32 }
 0x8bb   : > { %8418 = vmatmul.bf16.gmra.mxu3 %v15978_v42  ;;  %v15467_v44 = vpack.c.bf16 %v6892_v41, %v6876_v17  ;;  %v15983_v42 = vld [vmem:[#allocation22_spill] sm:$0xff] }
 0x8bc   : > { %v6750_v59 = vpop.f32.mrf.mxu2  ;;  %v6703_v34 = vpop.f32.mrf.mxu1 }
 0x8bd   : > { %v6751_v45 = vadd.f32 %v6750_v59, %v6702_v6  ;;  %v15985_v59 = vld [vmem:[#allocation34_spill] sm:$0xff] }
 0x8be   : > { %v6799_v36 = vpop.f32.mrf.mxu3  ;;  %v6654_v2 = vpop.f32.mrf.mxu0 }
 0x8bf   : > { %v6655_v46 = vadd.f32 %v6654_v2, %v15433_v24  ;;  %v6800_v56 = vadd.f32 %v6799_v36, %v6751_v45  ;;  %v15986_v45 = vld [vmem:[#allocation40_spill] sm:$0xff] }
 0x8c0   : > { %v12590_v36 = vld [vmem:[%s13234_s15 + $0x188] sm:$0xff] }
 0x8c1   : > { %v6704_v37 = vadd.f32 %v6703_v34, %v6655_v46  ;;  %v6908_v49 = vmax.f32 %v6800_v56, 0.0  ;;  %v12574_v2 = vld [vmem:[%s13234_s15 + $0x108] sm:$0xff]  ;;  %8553 = vmatpush.bf16.msrb.mxu2 %v12590_v36 }
 0x8c2   : > { %v12598_v46 = vld [vmem:[%s13234_s15 + $0x1c8] sm:$0xff]  ;;  %8455 = vmatpush.bf16.msrb.mxu0 %v12574_v2 }
 0x8c3   : > { %8602 = vmatpush.bf16.msrb.mxu3 %v12598_v46  ;;  %v15991_v2 = vld [vmem:[#allocation24_spill] sm:$0xff] }
 0x8c4   : > { %v6752_v3 = vpop.f32.mrf.mxu2  ;;  %v6706_v63 = vpop.f32.mrf.mxu1 }
 0x8c5   : > { %v6753_v13 = vadd.f32 %v6752_v3, %v6704_v37 }
 0x8c6   : > { %v6801_v48 = vpop.f32.mrf.mxu3  ;;  %v6657_v35 = vpop.f32.mrf.mxu0 }
 0x8c7   : > { %v6658_v14 = vadd.f32 %v6657_v35, %v15433_v24  ;;  %v6802_v15 = vadd.f32 %v6801_v48, %v6753_v13  ;;  %8325 = vmatmul.bf16.gmra.mxu1 %v15980_v51 }
 0x8c9   : > { %v6707_v4 = vadd.f32 %v6706_v63, %v6658_v14  ;;  %8276 = vmatmul.bf16.gmra.mxu0 %v15979_v16  ;;  %v6924_v57 = vmax.f32 %v6802_v15, 0.0  ;;  %8374 = vmatmul.bf16.gmra.mxu2 %v15981_v25  ;;  %v12582_v63 = vld [vmem:[%s13234_s15 + $0x148] sm:$0xff] }
 0x8ca   : > { %8504 = vmatpush.bf16.msrb.mxu1 %v12582_v63 }
 0x8cb   : > { %8423 = vmatmul.bf16.gmra.mxu3 %v15982_v52  ;;  %v15479_v53 = vpack.c.bf16 %v6924_v57, %v6908_v49 }
 0x8cc   : > { %v6755_v5 = vpop.f32.mrf.mxu2  ;;  %v6708_v26 = vpop.f32.mrf.mxu1 }
 0x8cd   : > { %v6756_v12 = vadd.f32 %v6755_v5, %v6707_v4  ;;  %v15988_v5 = vld [vmem:[#allocation29_spill] sm:$0xff] }
 0x8ce   : > { %v6804_v62 = vpop.f32.mrf.mxu3  ;;  %v6659_v21 = vpop.f32.mrf.mxu0 }
 0x8cf   : > { %v6660_v7 = vadd.f32 %v6659_v21, %v15433_v24  ;;  %v6805_v22 = vadd.f32 %v6804_v62, %v6756_v12  ;;  %v15989_v12 = vld [vmem:[#allocation35_spill] sm:$0xff]  ;;  %v15990_v62 = vld [vmem:[#allocation41_spill] sm:$0xff] }
 0x8d0   : > { %v12589_v21 = vld [vmem:[%s13234_s15 + $0x180] sm:$0xff] }
 0x8d1   : > { %v6709_v23 = vadd.f32 %v6708_v26, %v6660_v7  ;;  %v6940_v30 = vmax.f32 %v6805_v22, 0.0  ;;  %v12573_v7 = vld [vmem:[%s13234_s15 + $0x100] sm:$0xff]  ;;  %8554 = vmatpush.bf16.msrb.mxu2 %v12589_v21 }
 0x8d2   : > { %v12597_v26 = vld [vmem:[%s13234_s15 + $0x1c0] sm:$0xff]  ;;  %8456 = vmatpush.bf16.msrb.mxu0 %v12573_v7 }
 0x8d3   : > { %8603 = vmatpush.bf16.msrb.mxu3 %v12597_v26  ;;  %v15995_v26 = vld [vmem:[#allocation25_spill] sm:$0xff] }
 0x8d4   : > { %v6757_v27 = vpop.f32.mrf.mxu2  ;;  %v6711_v41 = vpop.f32.mrf.mxu1 }
 0x8d5   : > { %v6758_v55 = vadd.f32 %v6757_v27, %v6709_v23 }
 0x8d6   : > { %v6806_v6 = vpop.f32.mrf.mxu3  ;;  %v6662_v58 = vpop.f32.mrf.mxu0 }
 0x8d7   : > { %v6663_v17 = vadd.f32 %v6662_v58, %v15433_v24  ;;  %v6807_v19 = vadd.f32 %v6806_v6, %v6758_v55  ;;  %8330 = vmatmul.bf16.gmra.mxu1 %v15984_v43 }
 0x8d9   : > { %v6712_v38 = vadd.f32 %v6711_v41, %v6663_v17  ;;  %8281 = vmatmul.bf16.gmra.mxu0 %v15983_v42  ;;  %v6956_v1 = vmax.f32 %v6807_v19, 0.0  ;;  %8379 = vmatmul.bf16.gmra.mxu2 %v15985_v59  ;;  %v12581_v19 = vld [vmem:[%s13234_s15 + $0x140] sm:$0xff] }
 0x8da   : > { %8505 = vmatpush.bf16.msrb.mxu1 %v12581_v19 }
 0x8db   : > { %8428 = vmatmul.bf16.gmra.mxu3 %v15986_v45  ;;  %v15491_v34 = vpack.c.bf16 %v6956_v1, %v6940_v30 }
 0x8dc   : > { %v6760_v56 = vpop.f32.mrf.mxu2  ;;  %v6713_v48 = vpop.f32.mrf.mxu1 }
 0x8dd   : > { %v6761_v37 = vadd.f32 %v6760_v56, %v6712_v38 }
 0x8de   : > { %v6809_v47 = vpop.f32.mrf.mxu3  ;;  %v6664_v3 = vpop.f32.mrf.mxu0 }
 0x8df   : > { %v6665_v13 = vadd.f32 %v6664_v3, %v15433_v24  ;;  %v6810_v35 = vadd.f32 %v6809_v47, %v6761_v37  ;;  %v15992_v37 = vld [vmem:[#allocation30_spill] sm:$0xff]  ;;  %v15993_v47 = vld [vmem:[#allocation36_spill] sm:$0xff] }
 0x8e0   : > { %v15994_v3 = vld [vmem:[#allocation42_spill] sm:$0xff] }
 0x8e1   : > { %v6714_v14 = vadd.f32 %v6713_v48, %v6665_v13  ;;  %v6972_v11 = vmax.f32 %v6810_v35, 0.0  ;;  %v12628_v13 = vld [vmem:[%s13234_s15 + $0x2b8] sm:$0xff] }
 0x8e2   : > { %v12612_v48 = vld [vmem:[%s13234_s15 + $0x238] sm:$0xff]  ;;  %8743 = vmatpush.bf16.msra.mxu2 %v12628_v13 }
 0x8e3   : > { %v12636_v35 = vld [vmem:[%s13234_s15 + $0x2f8] sm:$0xff]  ;;  %8645 = vmatpush.bf16.msra.mxu0 %v12612_v48 }
 0x8e4   : > { %v6762_v15 = vpop.f32.mrf.mxu2  ;;  %v6716_v51 = vpop.f32.mrf.mxu1  ;;  %8792 = vmatpush.bf16.msra.mxu3 %v12636_v35  ;;  %v15999_v35 = vld [vmem:[#allocation44_spill] sm:$0xff] }
 0x8e5   : > { %v6763_v4 = vadd.f32 %v6762_v15, %v6714_v14 }
 0x8e6   : > { %v6811_v16 = vpop.f32.mrf.mxu3  ;;  %v6667_v49 = vpop.f32.mrf.mxu0 }
 0x8e7   : > { %v6668_v57 = vadd.f32 %v6667_v49, %v15433_v24  ;;  %v6812_v25 = vadd.f32 %v6811_v16, %v6763_v4  ;;  %8335 = vmatmul.bf16.gmra.mxu1 %v15988_v5 }
 0x8e9   : > { %v6717_v52 = vadd.f32 %v6716_v51, %v6668_v57  ;;  %8286 = vmatmul.bf16.gmra.mxu0 %v15987_v54  ;;  %v6988_v8 = vmax.f32 %v6812_v25, 0.0  ;;  %8384 = vmatmul.bf16.gmra.mxu2 %v15989_v12  ;;  %v12620_v25 = vld [vmem:[%s13234_s15 + $0x278] sm:$0xff] }
 0x8ea   : > { %8694 = vmatpush.bf16.msra.mxu1 %v12620_v25 }
 0x8eb   : > { %8433 = vmatmul.bf16.gmra.mxu3 %v15990_v62  ;;  %v15503_v22 = vpack.c.bf16 %v6988_v8, %v6972_v11 }
 0x8ec   : > { %v6765_v23 = vpop.f32.mrf.mxu2  ;;  %v6718_v58 = vpop.f32.mrf.mxu1 }
 0x8ed   : > { %v6766_v32 = vadd.f32 %v6765_v23, %v6717_v52 }
 0x8ee   : > { %v6814_v27 = vpop.f32.mrf.mxu3  ;;  %v6669_v55 = vpop.f32.mrf.mxu0 }
 0x8ef   : > { %v6670_v6 = vadd.f32 %v6669_v55, %v15433_v24  ;;  %v6815_v17 = vadd.f32 %v6814_v27, %v6766_v32  ;;  %v15996_v27 = vld [vmem:[#allocation31_spill] sm:$0xff]  ;;  %v15997_v55 = vld [vmem:[#allocation37_spill] sm:$0xff] }
 0x8f1   : > { %v6719_v41 = vadd.f32 %v6718_v58, %v6670_v6  ;;  %v7004_v46 = vmax.f32 %v6815_v17, 0.0  ;;  %v15998_v6 = vld [vmem:[#allocation43_spill] sm:$0xff]  ;;  %v12627_v58 = vld [vmem:[%s13234_s15 + $0x2b0] sm:$0xff] }
 0x8f2   : > { %v12611_v17 = vld [vmem:[%s13234_s15 + $0x230] sm:$0xff]  ;;  %8744 = vmatpush.bf16.msra.mxu2 %v12627_v58 }
 0x8f3   : > { %8646 = vmatpush.bf16.msra.mxu0 %v12611_v17  ;;  %v16003_v58 = vld [vmem:[#allocation45_spill] sm:$0xff] }
 0x8f4   : > { %v6767_v38 = vpop.f32.mrf.mxu2  ;;  %v6721_v59 = vpop.f32.mrf.mxu1  ;;  %v16004_v17 = vld [vmem:[#allocation53_spill] sm:$0xff] }
 0x8f5   : > { %v6768_v42 = vadd.f32 %v6767_v38, %v6719_v41  ;;  %v12635_v41 = vld [vmem:[%s13234_s15 + $0x2f0] sm:$0xff] }
 0x8f6   : > { %v6816_v30 = vpop.f32.mrf.mxu3  ;;  %v6672_v1 = vpop.f32.mrf.mxu0  ;;  %8793 = vmatpush.bf16.msra.mxu3 %v12635_v41  ;;  %v16005_v41 = vld [vmem:[#allocation61_spill] sm:$0xff] }
 0x8f7   : > { %v6673_v43 = vadd.f32 %v6672_v1, %v15433_v24  ;;  %v6817_v45 = vadd.f32 %v6816_v30, %v6768_v42  ;;  %8340 = vmatmul.bf16.gmra.mxu1 %v15992_v37 }
 0x8f9   : > { %v6722_v36 = vadd.f32 %v6721_v59, %v6673_v43  ;;  %8291 = vmatmul.bf16.gmra.mxu0 %v15991_v2  ;;  %v7020_v56 = vmax.f32 %v6817_v45, 0.0  ;;  %8389 = vmatmul.bf16.gmra.mxu2 %v15993_v47 }
 0x8fb   : > { %8438 = vmatmul.bf16.gmra.mxu3 %v15994_v3  ;;  %v15515_v14 = vpack.c.bf16 %v7020_v56, %v7004_v46 }
 0x8fc   : > { %v6770_v63 = vpop.f32.mrf.mxu2  ;;  %v6723_v57 = vpop.f32.mrf.mxu1 }
 0x8fd   : > { %v6771_v15 = vadd.f32 %v6770_v63, %v6722_v36  ;;  %v12619_v36 = vld [vmem:[%s13234_s15 + $0x270] sm:$0xff] }
 0x8fe   : > { %v6819_v4 = vpop.f32.mrf.mxu3  ;;  %v6674_v16 = vpop.f32.mrf.mxu0  ;;  %8695 = vmatpush.bf16.msra.mxu1 %v12619_v36 }
 0x8ff   : > { %v6675_v49 = vadd.f32 %v6674_v16, %v15433_v24  ;;  %v6820_v51 = vadd.f32 %v6819_v4, %v6771_v15  ;;  %v16001_v4 = vld [vmem:[#allocation60_spill] sm:$0xff] }
 0x900   : > { %v16002_v16 = vld [vmem:[#allocation68_spill] sm:$0xff] }
 0x901   : > { %v6724_v52 = vadd.f32 %v6723_v57, %v6675_v49  ;;  %v7036_v23 = vmax.f32 %v6820_v51, 0.0  ;;  %v12626_v49 = vld [vmem:[%s13234_s15 + $0x2a8] sm:$0xff] }
 0x902   : > { %v12610_v57 = vld [vmem:[%s13234_s15 + $0x228] sm:$0xff]  ;;  %8745 = vmatpush.bf16.msra.mxu2 %v12626_v49  ;;  %v16010_v49 = vld [vmem:[#allocation70_spill] sm:$0xff] }
 0x903   : > { %v12634_v51 = vld [vmem:[%s13234_s15 + $0x2e8] sm:$0xff]  ;;  %8647 = vmatpush.bf16.msra.mxu0 %v12610_v57  ;;  %v12624_v57 = vld [vmem:[%s13234_s15 + $0x298] sm:$0xff] }
 0x904   : > { %v6772_v54 = vpop.f32.mrf.mxu2  ;;  %v6726_v62 = vpop.f32.mrf.mxu1  ;;  %8794 = vmatpush.bf16.msra.mxu3 %v12634_v51  ;;  %v12608_v51 = vld [vmem:[%s13234_s15 + $0x218] sm:$0xff] }
 0x905   : > { %v6773_v11 = vadd.f32 %v6772_v54, %v6724_v52 }
 0x906   : > { %v6821_v8 = vpop.f32.mrf.mxu3  ;;  %v6677_v5 = vpop.f32.mrf.mxu0 }
 0x907   : > { %v6678_v12 = vadd.f32 %v6677_v5, %v15433_v24  ;;  %v6822_v21 = vadd.f32 %v6821_v8, %v6773_v11  ;;  %8345 = vmatmul.bf16.gmra.mxu1 %v15996_v27 }
 0x909   : > { %v6727_v7 = vadd.f32 %v6726_v62, %v6678_v12  ;;  %8296 = vmatmul.bf16.gmra.mxu0 %v15995_v26  ;;  %v7052_v32 = vmax.f32 %v6822_v21, 0.0  ;;  %8394 = vmatmul.bf16.gmra.mxu2 %v15997_v55  ;;  %v12618_v21 = vld [vmem:[%s13234_s15 + $0x268] sm:$0xff] }
 0x90a   : > { %8696 = vmatpush.bf16.msra.mxu1 %v12618_v21 }
 0x90b   : > { %8443 = vmatmul.bf16.gmra.mxu3 %v15998_v6  ;;  %v15527_v19 = vpack.c.bf16 %v7052_v32, %v7036_v23 }
 0x90c   : > { %v6775_v38 = vpop.f32.mrf.mxu2  ;;  %v6728_v59 = vpop.f32.mrf.mxu1 }
 0x90d   : > { %v6776_v42 = vadd.f32 %v6775_v38, %v6727_v7  ;;  %v16006_v38 = vld [vmem:[#allocation69_spill] sm:$0xff] }
 0x90e   : > { %v6824_v30 = vpop.f32.mrf.mxu3  ;;  %v6679_v1 = vpop.f32.mrf.mxu0 }
 0x90f   : > { %v6680_v43 = vadd.f32 %v6679_v1, %v15433_v24  ;;  %v6825_v45 = vadd.f32 %v6824_v30, %v6776_v42  ;;  %v16000_v24 = vld [vmem:[#allocation52_spill] sm:$0xff] }
 0x910   : > { %v12625_v42 = vld [vmem:[%s13234_s15 + $0x2a0] sm:$0xff] }
 0x911   : > { %v6729_v2 = vadd.f32 %v6728_v59, %v6680_v43  ;;  %v7068_v63 = vmax.f32 %v6825_v45, 0.0  ;;  %v12609_v30 = vld [vmem:[%s13234_s15 + $0x220] sm:$0xff]  ;;  %8746 = vmatpush.bf16.msra.mxu2 %v12625_v42 }
 0x912   : > { %v12633_v1 = vld [vmem:[%s13234_s15 + $0x2e0] sm:$0xff]  ;;  %8648 = vmatpush.bf16.msra.mxu0 %v12609_v30 }
 0x913   : > { %8795 = vmatpush.bf16.msra.mxu3 %v12633_v1  ;;  %v16012_v42 = vld [vmem:[#allocation55_spill] sm:$0xff] }
 0x914   : > { %v6777_v46 = vpop.f32.mrf.mxu2  ;;  %v8311_v3 = vpop.f32.mrf.mxu1  ;;  %v16013_v30 = vld [vmem:[#allocation63_spill] sm:$0xff] }
 0x915   : > { %v6778_v56 = vadd.f32 %v6777_v46, %v6729_v2  ;;  %8747 = vmatpush.bf16.msra.mxu2 %v12624_v57  ;;  %v16014_v1 = vld [vmem:[#allocation71_spill] sm:$0xff] }
 0x916   : > { %v6826_v37 = vpop.f32.mrf.mxu3  ;;  %v8262_v47 = vpop.f32.mrf.mxu0  ;;  %8649 = vmatpush.bf16.msra.mxu0 %v12608_v51  ;;  %v16015_v51 = vld [vmem:[#allocation48_spill] sm:$0xff] }
 0x917   : > { %v6827_v13 = vadd.f32 %v6826_v37, %v6778_v56  ;;  %v8312_v48 = vadd.f32 %v8311_v3, %v8262_v47  ;;  %8506 = vmatmul.bf16.vlgmr.msrb.gmra.mxu1 %v16000_v24  ;;  %v12617_v37 = vld [vmem:[%s13234_s15 + $0x260] sm:$0xff]  ;;  %v16007_v24 = vld [vmem:[#allocation46_spill] sm:$0xff] }
 0x918   : > { %8697 = vmatpush.bf16.msra.mxu1 %v12617_v37 }
 0x919   : > { %8457 = vmatmul.bf16.vlgmr.msrb.gmra.mxu0 %v15999_v35  ;;  %v7084_v15 = vmax.f32 %v6827_v13, 0.0  ;;  %8555 = vmatmul.bf16.vlgmr.msrb.gmra.mxu2 %v16001_v4  ;;  %v16008_v4 = vld [vmem:[#allocation54_spill] sm:$0xff] }
 0x91b   : > { %8604 = vmatmul.bf16.vlgmr.msrb.gmra.mxu3 %v16002_v16  ;;  %v15538_v25 = vpack.c.bf16 %v7084_v15, %v7068_v63  ;;  %v16009_v16 = vld [vmem:[#allocation62_spill] sm:$0xff] }
 0x91c   : > { %v8360_v52 = vpop.f32.mrf.mxu2  ;;  %v8313_v5 = vpop.f32.mrf.mxu1 }
 0x91d   : > { %v8361_v54 = vadd.f32 %v8360_v52, %v8312_v48  ;;  %v12632_v52 = vld [vmem:[%s13234_s15 + $0x2d8] sm:$0xff] }
 0x91e   : > { %v8409_v11 = vpop.f32.mrf.mxu3  ;;  %v8264_v8 = vpop.f32.mrf.mxu0  ;;  %8796 = vmatpush.bf16.msra.mxu3 %v12632_v52  ;;  %v16016_v52 = vld [vmem:[#allocation56_spill] sm:$0xff] }
 0x91f   : > { %v15540_v12 = vadd.f32 %v8409_v11, %v8361_v54  ;;  %v8314_v62 = vadd.f32 %v8313_v5, %v8264_v8 }
 0x924   : > { %v8362_v7 = vpop.f32.mrf.mxu2  ;;  %v8316_v27 = vpop.f32.mrf.mxu1 }
 0x925   : > { %v8363_v26 = vadd.f32 %v8362_v7, %v8314_v62 }
 0x926   : > { %v8411_v23 = vpop.f32.mrf.mxu3  ;;  %v8267_v32 = vpop.f32.mrf.mxu0 }
 0x927   : > { %v15543_v55 = vadd.f32 %v8411_v23, %v8363_v26  ;;  %v8317_v6 = vadd.f32 %v8316_v27, %v8267_v32  ;;  %8511 = vmatmul.bf16.gmra.mxu1 %v16004_v17  ;;  %v12616_v26 = vld [vmem:[%s13234_s15 + $0x258] sm:$0xff] }
 0x928   : > { %8698 = vmatpush.bf16.msra.mxu1 %v12616_v26 }
 0x929   : > { %8462 = vmatmul.bf16.gmra.mxu0 %v16003_v58  ;;  %8560 = vmatmul.bf16.gmra.mxu2 %v16005_v41 }
 0x92b   : > { %8609 = vmatmul.bf16.gmra.mxu3 %v16006_v38  ;;  %v16011_v38 = vld [vmem:[#allocation47_spill] sm:$0xff] }
 0x92c   : > { %v8365_v43 = vpop.f32.mrf.mxu2  ;;  %v8318_v2 = vpop.f32.mrf.mxu1 }
 0x92d   : > { %v8366_v59 = vadd.f32 %v8365_v43, %v8317_v6  ;;  %v12623_v43 = vld [vmem:[%s13234_s15 + $0x290] sm:$0xff] }
 0x92e   : > { %v8414_v45 = vpop.f32.mrf.mxu3  ;;  %v8269_v36 = vpop.f32.mrf.mxu0  ;;  %8748 = vmatpush.bf16.msra.mxu2 %v12623_v43 }
 0x92f   : > { %v15552_v46 = vadd.f32 %v8414_v45, %v8366_v59  ;;  %v8319_v56 = vadd.f32 %v8318_v2, %v8269_v36  ;;  %v12607_v59 = vld [vmem:[%s13234_s15 + $0x210] sm:$0xff] }
 0x930   : > { %v12631_v45 = vld [vmem:[%s13234_s15 + $0x2d0] sm:$0xff]  ;;  %8650 = vmatpush.bf16.msra.mxu0 %v12607_v59 }
 0x931   : > { %8797 = vmatpush.bf16.msra.mxu3 %v12631_v45 }
 0x934   : > { %v8367_v47 = vpop.f32.mrf.mxu2  ;;  %v8321_v35 = vpop.f32.mrf.mxu1 }
 0x935   : > { %v8368_v3 = vadd.f32 %v8367_v47, %v8319_v56 }
 0x936   : > { %v8416_v13 = vpop.f32.mrf.mxu3  ;;  %v8272_v48 = vpop.f32.mrf.mxu0 }
 0x937   : > { %v15555_v63 = vadd.f32 %v8416_v13, %v8368_v3  ;;  %v8322_v15 = vadd.f32 %v8321_v35, %v8272_v48  ;;  %8516 = vmatmul.bf16.gmra.mxu1 %v16008_v4  ;;  %v12615_v48 = vld [vmem:[%s13234_s15 + $0x250] sm:$0xff] }
 0x938   : > { %8699 = vmatpush.bf16.msra.mxu1 %v12615_v48  ;;  %v12629_v48 = vld [vmem:[%s13234_s15 + $0x2c0] sm:$0xff] }
 0x939   : > { %8467 = vmatmul.bf16.gmra.mxu0 %v16007_v24  ;;  %8565 = vmatmul.bf16.gmra.mxu2 %v16009_v16 }
 0x93b   : > { %8614 = vmatmul.bf16.gmra.mxu3 %v16010_v49 }
 0x93c   : > { %v8370_v54 = vpop.f32.mrf.mxu2  ;;  %v8323_v62 = vpop.f32.mrf.mxu1 }
 0x93d   : > { %v8371_v11 = vadd.f32 %v8370_v54, %v8322_v15  ;;  %v16017_v54 = vld [vmem:[#allocation64_spill] sm:$0xff] }
 0x93e   : > { %v8419_v8 = vpop.f32.mrf.mxu3  ;;  %v8274_v5 = vpop.f32.mrf.mxu0 }
 0x93f   : > { %v15564_v21 = vadd.f32 %v8419_v8, %v8371_v11  ;;  %v8324_v7 = vadd.f32 %v8323_v62, %v8274_v5  ;;  %v16018_v11 = vld [vmem:[#allocation72_spill] sm:$0xff] }
 0x940   : > { %v12622_v8 = vld [vmem:[%s13234_s15 + $0x288] sm:$0xff] }
 0x941   : > { %v12606_v5 = vld [vmem:[%s13234_s15 + $0x208] sm:$0xff]  ;;  %8749 = vmatpush.bf16.msra.mxu2 %v12622_v8 }
 0x942   : > { %v12630_v62 = vld [vmem:[%s13234_s15 + $0x2c8] sm:$0xff]  ;;  %8651 = vmatpush.bf16.msra.mxu0 %v12606_v5 }
 0x943   : > { %8798 = vmatpush.bf16.msra.mxu3 %v12630_v62 }
 0x944   : > { %v8372_v23 = vpop.f32.mrf.mxu2  ;;  %v8326_v58 = vpop.f32.mrf.mxu1 }
 0x945   : > { %v8373_v32 = vadd.f32 %v8372_v23, %v8324_v7 }
 0x946   : > { %v8421_v27 = vpop.f32.mrf.mxu3  ;;  %v8277_v6 = vpop.f32.mrf.mxu0 }
 0x947   : > { %v15567_v17 = vadd.f32 %v8421_v27, %v8373_v32  ;;  %v8327_v41 = vadd.f32 %v8326_v58, %v8277_v6  ;;  %8521 = vmatmul.bf16.gmra.mxu1 %v16012_v42  ;;  %8799 = vmatpush.bf16.msra.mxu3 %v12629_v48 }
 0x949   : > { %8472 = vmatmul.bf16.gmra.mxu0 %v16011_v38  ;;  %8570 = vmatmul.bf16.gmra.mxu2 %v16013_v30 }
 0x94b   : > { %8619 = vmatmul.bf16.gmra.mxu3 %v16014_v1 }
 0x94c   : > { %v8375_v36 = vpop.f32.mrf.mxu2  ;;  %v8328_v47 = vpop.f32.mrf.mxu1 }
 0x94d   : > { %v8376_v2 = vadd.f32 %v8375_v36, %v8327_v41  ;;  %v12614_v41 = vld [vmem:[%s13234_s15 + $0x248] sm:$0xff] }
 0x94e   : > { %v8424_v56 = vpop.f32.mrf.mxu3  ;;  %v8279_v37 = vpop.f32.mrf.mxu0  ;;  %8700 = vmatpush.bf16.msra.mxu1 %v12614_v41  ;;  %v16019_v36 = vld [vmem:[#allocation49_spill] sm:$0xff]  ;;  %v12660_v41 = vld [vmem:[%s13234_s15 + $0x3b8] sm:$0xff] }
 0x94f   : > { %v15576_v3 = vadd.f32 %v8424_v56, %v8376_v2  ;;  %v8329_v13 = vadd.f32 %v8328_v47, %v8279_v37  ;;  %v16020_v2 = vld [vmem:[#allocation57_spill] sm:$0xff]  ;;  %v12621_v47 = vld [vmem:[%s13234_s15 + $0x280] sm:$0xff] }
 0x950   : > { %v16021_v56 = vld [vmem:[#allocation65_spill] sm:$0xff]  ;;  %8750 = vmatpush.bf16.msra.mxu2 %v12621_v47 }
 0x951   : > { %v16022_v37 = vld [vmem:[#allocation73_spill] sm:$0xff] }
 0x954   : > { %v8377_v35 = vpop.f32.mrf.mxu2  ;;  %v8331_v16 = vpop.f32.mrf.mxu1  ;;  %8939 = vmatpush.bf16.msrb.mxu2 %v12660_v41 }
 0x955   : > { %v8378_v15 = vadd.f32 %v8377_v35, %v8329_v13  ;;  %v12605_v13 = vld [vmem:[%s13234_s15 + $0x200] sm:$0xff] }
 0x956   : > { %v8426_v24 = vpop.f32.mrf.mxu3  ;;  %v8282_v4 = vpop.f32.mrf.mxu0  ;;  %8652 = vmatpush.bf16.msra.mxu0 %v12605_v13 }
 0x957   : > { %v15579_v49 = vadd.f32 %v8426_v24, %v8378_v15  ;;  %v8332_v57 = vadd.f32 %v8331_v16, %v8282_v4  ;;  %8526 = vmatmul.bf16.gmra.mxu1 %v16016_v52  ;;  %v12613_v52 = vld [vmem:[%s13234_s15 + $0x240] sm:$0xff] }
 0x958   : > { %8701 = vmatpush.bf16.msra.mxu1 %v12613_v52  ;;  %v16029_v52 = vld [vmem:[#allocation67_spill] sm:$0xff] }
 0x959   : > { %8477 = vmatmul.bf16.gmra.mxu0 %v16015_v51  ;;  %8575 = vmatmul.bf16.gmra.mxu2 %v16017_v54 }
 0x95b   : > { %8624 = vmatmul.bf16.gmra.mxu3 %v16018_v11 }
 0x95c   : > { %v8380_v7 = vpop.f32.mrf.mxu2  ;;  %v8333_v27 = vpop.f32.mrf.mxu1 }
 0x95d   : > { %v8381_v26 = vadd.f32 %v8380_v7, %v8332_v57 }
 0x95e   : > { %v8429_v23 = vpop.f32.mrf.mxu3  ;;  %v8284_v32 = vpop.f32.mrf.mxu0 }
 0x95f   : > { %v15588_v6 = vadd.f32 %v8429_v23, %v8381_v26  ;;  %v8334_v58 = vadd.f32 %v8333_v27, %v8284_v32  ;;  %v16023_v23 = vld [vmem:[#allocation50_spill] sm:$0xff] }
 0x960   : > { %v16024_v32 = vld [vmem:[#allocation58_spill] sm:$0xff] }
 0x961   : > { %v16025_v27 = vld [vmem:[#allocation66_spill] sm:$0xff] }
 0x964   : > { %v8382_v38 = vpop.f32.mrf.mxu2  ;;  %v8336_v43 = vpop.f32.mrf.mxu1 }
 0x965   : > { %v8383_v42 = vadd.f32 %v8382_v38, %v8334_v58  ;;  %v16026_v58 = vld [vmem:[#allocation74_spill] sm:$0xff] }
 0x966   : > { %v8431_v30 = vpop.f32.mrf.mxu3  ;;  %v8287_v1 = vpop.f32.mrf.mxu0  ;;  %v12644_v38 = vld [vmem:[%s13234_s15 + $0x338] sm:$0xff] }
 0x967   : > { %v15591_v59 = vadd.f32 %v8431_v30, %v8383_v42  ;;  %v8337_v45 = vadd.f32 %v8336_v43, %v8287_v1  ;;  %8531 = vmatmul.bf16.gmra.mxu1 %v16020_v2  ;;  %v12668_v42 = vld [vmem:[%s13234_s15 + $0x3f8] sm:$0xff]  ;;  %8841 = vmatpush.bf16.msrb.mxu0 %v12644_v38  ;;  %v12651_v38 = vld [vmem:[%s13234_s15 + $0x370] sm:$0xff] }
 0x968   : > { %8988 = vmatpush.bf16.msrb.mxu3 %v12668_v42 }
 0x969   : > { %8482 = vmatmul.bf16.gmra.mxu0 %v16019_v36  ;;  %8580 = vmatmul.bf16.gmra.mxu2 %v16021_v56 }
 0x96b   : > { %8629 = vmatmul.bf16.gmra.mxu3 %v16022_v37  ;;  %v12652_v37 = vld [vmem:[%s13234_s15 + $0x378] sm:$0xff] }
 0x96c   : > { %v8385_v35 = vpop.f32.mrf.mxu2  ;;  %v8338_v16 = vpop.f32.mrf.mxu1  ;;  %8890 = vmatpush.bf16.msrb.mxu1 %v12652_v37 }
 0x96d   : > { %v8386_v15 = vadd.f32 %v8385_v35, %v8337_v45 }
 0x96e   : > { %v8434_v24 = vpop.f32.mrf.mxu3  ;;  %v8289_v4 = vpop.f32.mrf.mxu0 }
 0x96f   : > { %v15600_v57 = vadd.f32 %v8434_v24, %v8386_v15  ;;  %v8339_v51 = vadd.f32 %v8338_v16, %v8289_v4  ;;  %v16027_v16 = vld [vmem:[#allocation51_spill] sm:$0xff] }
 0x970   : > { %8891 = vmatpush.bf16.msrb.mxu1 %v12651_v38 }
 0x974   : > { %v8387_v54 = vpop.f32.mrf.mxu2  ;;  %v8341_v62 = vpop.f32.mrf.mxu1 }
 0x975   : > { %v8388_v11 = vadd.f32 %v8387_v54, %v8339_v51  ;;  %v16028_v51 = vld [vmem:[#allocation59_spill] sm:$0xff] }
 0x976   : > { %v8436_v8 = vpop.f32.mrf.mxu3  ;;  %v8292_v5 = vpop.f32.mrf.mxu0  ;;  %v16030_v54 = vld [vmem:[#allocation75_spill] sm:$0xff] }
 0x977   : > { %v15603_v7 = vadd.f32 %v8436_v8, %v8388_v11  ;;  %v8342_v26 = vadd.f32 %v8341_v62, %v8292_v5  ;;  %8536 = vmatmul.bf16.gmra.mxu1 %v16024_v32  ;;  %v12659_v11 = vld [vmem:[%s13234_s15 + $0x3b0] sm:$0xff] }
 0x978   : > { %v12643_v8 = vld [vmem:[%s13234_s15 + $0x330] sm:$0xff]  ;;  %8940 = vmatpush.bf16.msrb.mxu2 %v12659_v11 }
 0x979   : > { %8487 = vmatmul.bf16.gmra.mxu0 %v16023_v23  ;;  %8585 = vmatmul.bf16.gmra.mxu2 %v16025_v27  ;;  %v12667_v5 = vld [vmem:[%s13234_s15 + $0x3f0] sm:$0xff] }
 0x97a   : > { %8842 = vmatpush.bf16.msrb.mxu0 %v12643_v8  ;;  %8989 = vmatpush.bf16.msrb.mxu3 %v12667_v5 }
 0x97b   : > { %8634 = vmatmul.bf16.gmra.mxu3 %v16026_v58 }
 0x97c   : > { %v8390_v30 = vpop.f32.mrf.mxu2  ;;  %v8343_v36 = vpop.f32.mrf.mxu1 }
 0x97d   : > { %v8391_v1 = vadd.f32 %v8390_v30, %v8342_v26 }
 0x97e   : > { %v8439_v43 = vpop.f32.mrf.mxu3  ;;  %v8294_v45 = vpop.f32.mrf.mxu0 }
 0x97f   : > { %v15612_v2 = vadd.f32 %v8439_v43, %v8391_v1  ;;  %v8344_v56 = vadd.f32 %v8343_v36, %v8294_v45 }
 0x984   : > { %v8392_v47 = vpop.f32.mrf.mxu2  ;;  %v8346_v15 = vpop.f32.mrf.mxu1 }
 0x985   : > { %v8393_v13 = vadd.f32 %v8392_v47, %v8344_v56  ;;  %v16031_v47 = vld [vmem:[#allocation76_spill] sm:$0xff] }
 0x986   : > { %v8441_v48 = vpop.f32.mrf.mxu3  ;;  %v8297_v35 = vpop.f32.mrf.mxu0 }
 0x987   : > { %v15615_v24 = vadd.f32 %v8441_v48, %v8393_v13  ;;  %v8347_v4 = vadd.f32 %v8346_v15, %v8297_v35  ;;  %8541 = vmatmul.bf16.gmra.mxu1 %v16028_v51  ;;  %v16032_v13 = vld [vmem:[#allocation84_spill] sm:$0xff] }
 0x988   : > { %v16033_v48 = vld [vmem:[#allocation92_spill] sm:$0xff] }
 0x989   : > { %8492 = vmatmul.bf16.gmra.mxu0 %v16027_v16  ;;  %8590 = vmatmul.bf16.gmra.mxu2 %v16029_v52  ;;  %v16034_v35 = vld [vmem:[#allocation100_spill] sm:$0xff] }
 0x98a   : > { %v12658_v15 = vld [vmem:[%s13234_s15 + $0x3a8] sm:$0xff] }
 0x98b   : > { %8639 = vmatmul.bf16.gmra.mxu3 %v16030_v54  ;;  %v12666_v16 = vld [vmem:[%s13234_s15 + $0x3e8] sm:$0xff]  ;;  %8941 = vmatpush.bf16.msrb.mxu2 %v12658_v15 }
 0x98c   : > { %v8395_v62 = vpop.f32.mrf.mxu2  ;;  %v8348_v27 = vpop.f32.mrf.mxu1  ;;  %8990 = vmatpush.bf16.msrb.mxu3 %v12666_v16 }
 0x98d   : > { %v8396_v26 = vadd.f32 %v8395_v62, %v8347_v4  ;;  %v12642_v4 = vld [vmem:[%s13234_s15 + $0x328] sm:$0xff] }
 0x98e   : > { %v8444_v23 = vpop.f32.mrf.mxu3  ;;  %v8299_v32 = vpop.f32.mrf.mxu0  ;;  %8843 = vmatpush.bf16.msrb.mxu0 %v12642_v4  ;;  %v12650_v62 = vld [vmem:[%s13234_s15 + $0x368] sm:$0xff] }
 0x98f   : > { %v15624_v58 = vadd.f32 %v8444_v23, %v8396_v26  ;;  %v8349_v41 = vadd.f32 %v8348_v27, %v8299_v32  ;;  %8892 = vmatpush.bf16.msrb.mxu1 %v12650_v62 }
 0x994   : > { %v8397_v42 = vpop.f32.mrf.mxu2  ;;  %v8507_v36 = vpop.f32.mrf.mxu1 }
 0x995   : > { %v8398_v30 = vadd.f32 %v8397_v42, %v8349_v41 }
 0x996   : > { %v8446_v1 = vpop.f32.mrf.mxu3  ;;  %v8458_v43 = vpop.f32.mrf.mxu0 }
 0x997   : > { %v8459_v45 = vadd.f32 %v8458_v43, %v15540_v12  ;;  %v15628_v56 = vadd.f32 %v8446_v1, %v8398_v30  ;;  %8702 = vmatmul.bf16.vlgmr.msra.gmra.mxu1 %v16032_v13  ;;  %v16036_v43 = vld [vmem:[#allocation85_spill] sm:$0xff]  ;;  %v12665_v13 = vld [vmem:[%s13234_s15 + $0x3e0] sm:$0xff] }
 0x998   : > { %8991 = vmatpush.bf16.msrb.mxu3 %v12665_v13 }
 0x999   : > { %v8508_v37 = vadd.f32 %v8507_v36, %v8459_v45  ;;  %8653 = vmatmul.bf16.vlgmr.msra.gmra.mxu0 %v16031_v47  ;;  %8751 = vmatmul.bf16.vlgmr.msra.gmra.mxu2 %v16033_v48  ;;  %v16037_v45 = vld [vmem:[#allocation93_spill] sm:$0xff]  ;;  %v12641_v47 = vld [vmem:[%s13234_s15 + $0x320] sm:$0xff] }
 0x99a   : > { %v16038_v36 = vld [vmem:[#allocation101_spill] sm:$0xff]  ;;  %8844 = vmatpush.bf16.msrb.mxu0 %v12641_v47 }
 0x99b   : > { %8800 = vmatmul.bf16.vlgmr.msra.gmra.mxu3 %v16034_v35 }
 0x99c   : > { %v8556_v51 = vpop.f32.mrf.mxu2  ;;  %v8509_v8 = vpop.f32.mrf.mxu1 }
 0x99d   : > { %v8557_v12 = vadd.f32 %v8556_v51, %v8508_v37  ;;  %v12657_v37 = vld [vmem:[%s13234_s15 + $0x3a0] sm:$0xff] }
 0x99e   : > { %v8605_v52 = vpop.f32.mrf.mxu3  ;;  %v8460_v54 = vpop.f32.mrf.mxu0  ;;  %8942 = vmatpush.bf16.msrb.mxu2 %v12657_v37 }
 0x99f   : > { %v8461_v11 = vadd.f32 %v8460_v54, %v15543_v55  ;;  %v15638_v5 = vadd.f32 %v8605_v52, %v8557_v12  ;;  %v16035_v55 = vld [vmem:[#allocation77_spill] sm:$0xff]  ;;  %v12649_v12 = vld [vmem:[%s13234_s15 + $0x360] sm:$0xff] }
 0x9a0   : > { %8893 = vmatpush.bf16.msrb.mxu1 %v12649_v12 }
 0x9a1   : > { %v8510_v26 = vadd.f32 %v8509_v8, %v8461_v11 }
 0x9a4   : > { %v8558_v23 = vpop.f32.mrf.mxu2  ;;  %v8512_v42 = vpop.f32.mrf.mxu1 }
 0x9a5   : > { %v8559_v32 = vadd.f32 %v8558_v23, %v8510_v26 }
 0x9a6   : > { %v8607_v27 = vpop.f32.mrf.mxu3  ;;  %v8463_v41 = vpop.f32.mrf.mxu0 }
 0x9a7   : > { %v8464_v38 = vadd.f32 %v8463_v41, %v15552_v46  ;;  %v15642_v30 = vadd.f32 %v8607_v27, %v8559_v32  ;;  %8707 = vmatmul.bf16.gmra.mxu1 %v16036_v43  ;;  %v16040_v41 = vld [vmem:[#allocation86_spill] sm:$0xff] }
 0x9a8   : > { %v12664_v43 = vld [vmem:[%s13234_s15 + $0x3d8] sm:$0xff] }
 0x9a9   : > { %v8513_v1 = vadd.f32 %v8512_v42, %v8464_v38  ;;  %8658 = vmatmul.bf16.gmra.mxu0 %v16035_v55  ;;  %8756 = vmatmul.bf16.gmra.mxu2 %v16037_v45  ;;  %v16041_v38 = vld [vmem:[#allocation94_spill] sm:$0xff] }
 0x9aa   : > { %v16042_v42 = vld [vmem:[#allocation102_spill] sm:$0xff]  ;;  %8992 = vmatpush.bf16.msrb.mxu3 %v12664_v43 }
 0x9ab   : > { %8805 = vmatmul.bf16.gmra.mxu3 %v16038_v36  ;;  %v12640_v55 = vld [vmem:[%s13234_s15 + $0x318] sm:$0xff] }
 0x9ac   : > { %v8561_v48 = vpop.f32.mrf.mxu2  ;;  %v8514_v16 = vpop.f32.mrf.mxu1  ;;  %8845 = vmatpush.bf16.msrb.mxu0 %v12640_v55 }
 0x9ad   : > { %v8562_v46 = vadd.f32 %v8561_v48, %v8513_v1  ;;  %v12656_v1 = vld [vmem:[%s13234_s15 + $0x398] sm:$0xff] }
 0x9ae   : > { %v8610_v35 = vpop.f32.mrf.mxu3  ;;  %v8465_v15 = vpop.f32.mrf.mxu0  ;;  %8943 = vmatpush.bf16.msrb.mxu2 %v12656_v1 }
 0x9af   : > { %v8466_v4 = vadd.f32 %v8465_v15, %v15555_v63  ;;  %v15652_v51 = vadd.f32 %v8610_v35, %v8562_v46  ;;  %v16039_v63 = vld [vmem:[#allocation78_spill] sm:$0xff] }
 0x9b0   : > { %v12648_v46 = vld [vmem:[%s13234_s15 + $0x358] sm:$0xff] }
 0x9b1   : > { %v8515_v52 = vadd.f32 %v8514_v16, %v8466_v4  ;;  %8894 = vmatpush.bf16.msrb.mxu1 %v12648_v46 }
 0x9b4   : > { %v8563_v54 = vpop.f32.mrf.mxu2  ;;  %v8517_v23 = vpop.f32.mrf.mxu1 }
 0x9b5   : > { %v8564_v11 = vadd.f32 %v8563_v54, %v8515_v52 }
 0x9b6   : > { %v8612_v8 = vpop.f32.mrf.mxu3  ;;  %v8468_v62 = vpop.f32.mrf.mxu0 }
 0x9b7   : > { %v8469_v26 = vadd.f32 %v8468_v62, %v15564_v21  ;;  %v15656_v32 = vadd.f32 %v8612_v8, %v8564_v11  ;;  %8712 = vmatmul.bf16.gmra.mxu1 %v16040_v41  ;;  %v16044_v62 = vld [vmem:[#allocation87_spill] sm:$0xff]  ;;  %v12663_v41 = vld [vmem:[%s13234_s15 + $0x3d0] sm:$0xff] }
 0x9b8   : > { %8993 = vmatpush.bf16.msrb.mxu3 %v12663_v41 }
 0x9b9   : > { %v8518_v27 = vadd.f32 %v8517_v23, %v8469_v26  ;;  %8663 = vmatmul.bf16.gmra.mxu0 %v16039_v63  ;;  %8761 = vmatmul.bf16.gmra.mxu2 %v16041_v38  ;;  %v16045_v26 = vld [vmem:[#allocation95_spill] sm:$0xff]  ;;  %v12639_v63 = vld [vmem:[%s13234_s15 + $0x310] sm:$0xff] }
 0x9ba   : > { %v16046_v23 = vld [vmem:[#allocation103_spill] sm:$0xff]  ;;  %8846 = vmatpush.bf16.msrb.mxu0 %v12639_v63 }
 0x9bb   : > { %8810 = vmatmul.bf16.gmra.mxu3 %v16042_v42 }
 0x9bc   : > { %v8566_v45 = vpop.f32.mrf.mxu2  ;;  %v8519_v13 = vpop.f32.mrf.mxu1 }
 0x9bd   : > { %v8567_v21 = vadd.f32 %v8566_v45, %v8518_v27  ;;  %v12655_v27 = vld [vmem:[%s13234_s15 + $0x390] sm:$0xff] }
 0x9be   : > { %v8615_v36 = vpop.f32.mrf.mxu3  ;;  %v8470_v37 = vpop.f32.mrf.mxu0  ;;  %8944 = vmatpush.bf16.msrb.mxu2 %v12655_v27 }
 0x9bf   : > { %v8471_v47 = vadd.f32 %v8470_v37, %v15567_v17  ;;  %v15666_v48 = vadd.f32 %v8615_v36, %v8567_v21  ;;  %v16043_v17 = vld [vmem:[#allocation79_spill] sm:$0xff]  ;;  %v12647_v21 = vld [vmem:[%s13234_s15 + $0x350] sm:$0xff] }
 0x9c0   : > { %8895 = vmatpush.bf16.msrb.mxu1 %v12647_v21 }
 0x9c1   : > { %v8520_v35 = vadd.f32 %v8519_v13, %v8471_v47 }
 0x9c4   : > { %v8568_v15 = vpop.f32.mrf.mxu2  ;;  %v8522_v54 = vpop.f32.mrf.mxu1 }
 0x9c5   : > { %v8569_v4 = vadd.f32 %v8568_v15, %v8520_v35 }
 0x9c6   : > { %v8617_v16 = vpop.f32.mrf.mxu3  ;;  %v8473_v12 = vpop.f32.mrf.mxu0 }
 0x9c7   : > { %v8474_v52 = vadd.f32 %v8473_v12, %v15576_v3  ;;  %v15670_v11 = vadd.f32 %v8617_v16, %v8569_v4  ;;  %8717 = vmatmul.bf16.gmra.mxu1 %v16044_v62  ;;  %v16048_v12 = vld [vmem:[#allocation88_spill] sm:$0xff] }
 0x9c8   : > { %v12662_v62 = vld [vmem:[%s13234_s15 + $0x3c8] sm:$0xff] }
 0x9c9   : > { %v8523_v8 = vadd.f32 %v8522_v54, %v8474_v52  ;;  %8668 = vmatmul.bf16.gmra.mxu0 %v16043_v17  ;;  %8766 = vmatmul.bf16.gmra.mxu2 %v16045_v26  ;;  %v16049_v52 = vld [vmem:[#allocation96_spill] sm:$0xff] }
 0x9ca   : > { %v16050_v54 = vld [vmem:[#allocation104_spill] sm:$0xff]  ;;  %8994 = vmatpush.bf16.msrb.mxu3 %v12662_v62 }
 0x9cb   : > { %8815 = vmatmul.bf16.gmra.mxu3 %v16046_v23  ;;  %v12638_v17 = vld [vmem:[%s13234_s15 + $0x308] sm:$0xff] }
 0x9cc   : > { %v8571_v38 = vpop.f32.mrf.mxu2  ;;  %v8524_v43 = vpop.f32.mrf.mxu1  ;;  %8847 = vmatpush.bf16.msrb.mxu0 %v12638_v17 }
 0x9cd   : > { %v8572_v3 = vadd.f32 %v8571_v38, %v8523_v8  ;;  %v12654_v8 = vld [vmem:[%s13234_s15 + $0x388] sm:$0xff] }
 0x9ce   : > { %v8620_v42 = vpop.f32.mrf.mxu3  ;;  %v8475_v1 = vpop.f32.mrf.mxu0  ;;  %8945 = vmatpush.bf16.msrb.mxu2 %v12654_v8 }
 0x9cf   : > { %v8476_v55 = vadd.f32 %v8475_v1, %v15579_v49  ;;  %v15680_v45 = vadd.f32 %v8620_v42, %v8572_v3  ;;  %v16047_v49 = vld [vmem:[#allocation80_spill] sm:$0xff] }
 0x9d0   : > { %v12646_v3 = vld [vmem:[%s13234_s15 + $0x348] sm:$0xff] }
 0x9d1   : > { %v8525_v36 = vadd.f32 %v8524_v43, %v8476_v55  ;;  %8896 = vmatpush.bf16.msrb.mxu1 %v12646_v3 }
 0x9d4   : > { %v8573_v37 = vpop.f32.mrf.mxu2  ;;  %v8527_v15 = vpop.f32.mrf.mxu1 }
 0x9d5   : > { %v8574_v47 = vadd.f32 %v8573_v37, %v8525_v36 }
 0x9d6   : > { %v8622_v13 = vpop.f32.mrf.mxu3  ;;  %v8478_v46 = vpop.f32.mrf.mxu0 }
 0x9d7   : > { %v8479_v35 = vadd.f32 %v8478_v46, %v15588_v6  ;;  %v15684_v4 = vadd.f32 %v8622_v13, %v8574_v47  ;;  %8722 = vmatmul.bf16.gmra.mxu1 %v16048_v12  ;;  %v16052_v46 = vld [vmem:[#allocation89_spill] sm:$0xff]  ;;  %v12661_v12 = vld [vmem:[%s13234_s15 + $0x3c0] sm:$0xff] }
 0x9d8   : > { %8995 = vmatpush.bf16.msrb.mxu3 %v12661_v12 }
 0x9d9   : > { %v8528_v16 = vadd.f32 %v8527_v15, %v8479_v35  ;;  %8673 = vmatmul.bf16.gmra.mxu0 %v16047_v49  ;;  %8771 = vmatmul.bf16.gmra.mxu2 %v16049_v52  ;;  %v16053_v35 = vld [vmem:[#allocation97_spill] sm:$0xff]  ;;  %v12637_v49 = vld [vmem:[%s13234_s15 + $0x300] sm:$0xff] }
 0x9da   : > { %v16054_v15 = vld [vmem:[#allocation105_spill] sm:$0xff]  ;;  %8848 = vmatpush.bf16.msrb.mxu0 %v12637_v49 }
 0x9db   : > { %8820 = vmatmul.bf16.gmra.mxu3 %v16050_v54 }
 0x9dc   : > { %v8576_v26 = vpop.f32.mrf.mxu2  ;;  %v8529_v41 = vpop.f32.mrf.mxu1 }
 0x9dd   : > { %v8577_v6 = vadd.f32 %v8576_v26, %v8528_v16  ;;  %v12653_v16 = vld [vmem:[%s13234_s15 + $0x380] sm:$0xff] }
 0x9de   : > { %v8625_v23 = vpop.f32.mrf.mxu3  ;;  %v8480_v27 = vpop.f32.mrf.mxu0  ;;  %8946 = vmatpush.bf16.msrb.mxu2 %v12653_v16 }
 0x9df   : > { %v8481_v63 = vadd.f32 %v8480_v27, %v15591_v59  ;;  %v15694_v38 = vadd.f32 %v8625_v23, %v8577_v6  ;;  %v16051_v59 = vld [vmem:[#allocation81_spill] sm:$0xff]  ;;  %v12645_v6 = vld [vmem:[%s13234_s15 + $0x340] sm:$0xff] }
 0x9e0   : > { %8897 = vmatpush.bf16.msrb.mxu1 %v12645_v6 }
 0x9e1   : > { %v8530_v42 = vadd.f32 %v8529_v41, %v8481_v63 }
 0x9e4   : > { %v8578_v1 = vpop.f32.mrf.mxu2  ;;  %v8532_v37 = vpop.f32.mrf.mxu1 }
 0x9e5   : > { %v8579_v55 = vadd.f32 %v8578_v1, %v8530_v42 }
 0x9e6   : > { %v8627_v43 = vpop.f32.mrf.mxu3  ;;  %v8483_v21 = vpop.f32.mrf.mxu0 }
 0x9e7   : > { %v8484_v36 = vadd.f32 %v8483_v21, %v15600_v57  ;;  %v15698_v47 = vadd.f32 %v8627_v43, %v8579_v55  ;;  %8727 = vmatmul.bf16.gmra.mxu1 %v16052_v46  ;;  %v16055_v21 = vld [vmem:[#allocation82_spill] sm:$0xff] }
 0x9e9   : > { %v8533_v13 = vadd.f32 %v8532_v37, %v8484_v36  ;;  %8678 = vmatmul.bf16.gmra.mxu0 %v16051_v59  ;;  %8776 = vmatmul.bf16.gmra.mxu2 %v16053_v35  ;;  %v16056_v36 = vld [vmem:[#allocation90_spill] sm:$0xff] }
 0x9ea   : > { %v16058_v37 = vld [vmem:[#allocation106_spill] sm:$0xff] }
 0x9eb   : > { %8825 = vmatmul.bf16.gmra.mxu3 %v16054_v15 }
 0x9ec   : > { %v8581_v52 = vpop.f32.mrf.mxu2  ;;  %v8534_v62 = vpop.f32.mrf.mxu1 }
 0x9ed   : > { %v8582_v57 = vadd.f32 %v8581_v52, %v8533_v13 }
 0x9ee   : > { %v8630_v54 = vpop.f32.mrf.mxu3  ;;  %v8485_v8 = vpop.f32.mrf.mxu0 }
 0x9ef   : > { %v8486_v17 = vadd.f32 %v8485_v8, %v15603_v7  ;;  %v15708_v26 = vadd.f32 %v8630_v54, %v8582_v57  ;;  %v16057_v7 = vld [vmem:[#allocation98_spill] sm:$0xff] }
 0x9f1   : > { %v8535_v23 = vadd.f32 %v8534_v62, %v8486_v17 }
 0x9f4   : > { %v8583_v27 = vpop.f32.mrf.mxu2  ;;  %v8537_v1 = vpop.f32.mrf.mxu1 }
 0x9f5   : > { %v8584_v63 = vadd.f32 %v8583_v27, %v8535_v23  ;;  %v16059_v23 = vld [vmem:[#allocation83_spill] sm:$0xff] }
 0x9f6   : > { %v8632_v41 = vpop.f32.mrf.mxu3  ;;  %v8488_v3 = vpop.f32.mrf.mxu0  ;;  %v16060_v27 = vld [vmem:[#allocation91_spill] sm:$0xff] }
 0x9f7   : > { %v8489_v42 = vadd.f32 %v8488_v3, %v15612_v2  ;;  %v15712_v55 = vadd.f32 %v8632_v41, %v8584_v63  ;;  %8732 = vmatmul.bf16.gmra.mxu1 %v16056_v36  ;;  %v16061_v63 = vld [vmem:[#allocation99_spill] sm:$0xff] }
 0x9f9   : > { %v8538_v43 = vadd.f32 %v8537_v1, %v8489_v42  ;;  %8683 = vmatmul.bf16.gmra.mxu0 %v16055_v21  ;;  %8781 = vmatmul.bf16.gmra.mxu2 %v16057_v7 }
 0x9fb   : > { %8830 = vmatmul.bf16.gmra.mxu3 %v16058_v37 }
 0x9fc   : > { %v8586_v13 = vpop.f32.mrf.mxu2  ;;  %v8539_v16 = vpop.f32.mrf.mxu1 }
 0x9fd   : > { %v8587_v59 = vadd.f32 %v8586_v13, %v8538_v43 }
 0x9fe   : > { %v8635_v46 = vpop.f32.mrf.mxu3  ;;  %v8490_v35 = vpop.f32.mrf.mxu0 }
 0x9ff   : > { %v8491_v15 = vadd.f32 %v8490_v35, %v15615_v24  ;;  %v15719_v2 = vadd.f32 %v8635_v46, %v8587_v59  ;;  %v16062_v24 = vld [vmem:[#allocation107_spill] sm:$0xff] }
 0xa01   : > { %v8540_v49 = vadd.f32 %v8539_v16, %v8491_v15 }
 0xa04   : > { %v8588_v12 = vpop.f32.mrf.mxu2  ;;  %v8542_v17 = vpop.f32.mrf.mxu1 }
 0xa05   : > { %v8589_v52 = vadd.f32 %v8588_v12, %v8540_v49  ;;  %v16063_v49 = vld [vmem:[#allocation108_spill] sm:$0xff] }
 0xa06   : > { %v8637_v57 = vpop.f32.mrf.mxu3  ;;  %v8493_v54 = vpop.f32.mrf.mxu0 }
 0xa07   : > { %v8494_v8 = vadd.f32 %v8493_v54, %v15624_v58  ;;  %v15722_v62 = vadd.f32 %v8637_v57, %v8589_v52  ;;  %8737 = vmatmul.bf16.gmra.mxu1 %v16060_v27 }
 0xa09   : > { %v8543_v6 = vadd.f32 %v8542_v17, %v8494_v8  ;;  %8688 = vmatmul.bf16.gmra.mxu0 %v16059_v23  ;;  %8786 = vmatmul.bf16.gmra.mxu2 %v16061_v63 }
 0xa0b   : > { %8835 = vmatmul.bf16.gmra.mxu3 %v16062_v24 }
 0xa0c   : > { %v8591_v41 = vpop.f32.mrf.mxu2  ;;  %v8544_v21 = vpop.f32.mrf.mxu1 }
 0xa0d   : > { %v8592_v3 = vadd.f32 %v8591_v41, %v8543_v6  ;;  %v16064_v41 = vld [vmem:[#allocation109_spill] sm:$0xff] }
 0xa0e   : > { %v8640_v42 = vpop.f32.mrf.mxu3  ;;  %v8495_v1 = vpop.f32.mrf.mxu0 }
 0xa0f   : > { %v8496_v43 = vadd.f32 %v8495_v1, %v15628_v56  ;;  %v15729_v58 = vadd.f32 %v8640_v42, %v8592_v3  ;;  %v16065_v3 = vld [vmem:[#allocation116_spill] sm:$0xff] }
 0xa11   : > { %v8545_v36 = vadd.f32 %v8544_v21, %v8496_v43 }
 0xa14   : > { %v8593_v7 = vpop.f32.mrf.mxu2  ;;  %v8703_v35 = vpop.f32.mrf.mxu1 }
 0xa15   : > { %v8594_v37 = vadd.f32 %v8593_v7, %v8545_v36 }
 0xa16   : > { %v8642_v13 = vpop.f32.mrf.mxu3  ;;  %v8654_v59 = vpop.f32.mrf.mxu0 }
 0xa17   : > { %v8655_v46 = vadd.f32 %v8654_v59, %v15638_v5  ;;  %v15732_v15 = vadd.f32 %v8642_v13, %v8594_v37  ;;  %8898 = vmatmul.bf16.vlgmr.msrb.gmra.mxu1 %v15234_v60 }
 0xa19   : > { %v8704_v16 = vadd.f32 %v8703_v35, %v8655_v46  ;;  %8849 = vmatmul.bf16.vlgmr.msrb.gmra.mxu0 %v16063_v49  ;;  %8947 = vmatmul.bf16.vlgmr.msrb.gmra.mxu2 %v15356_v18  ;;  %v16066_v49 = vld [vmem:[#allocation110_spill] sm:$0xff] }
 0xa1b   : > { %8996 = vmatmul.bf16.vlgmr.msrb.gmra.mxu3 %v15455_v9 }
 0xa1c   : > { %v8752_v56 = vpop.f32.mrf.mxu2  ;;  %v8705_v8 = vpop.f32.mrf.mxu1 }
 0xa1d   : > { %v8753_v12 = vadd.f32 %v8752_v56, %v8704_v16  ;;  %v16067_v56 = vld [vmem:[#allocation117_spill] sm:$0xff] }
 0xa1e   : > { %v8801_v52 = vpop.f32.mrf.mxu3  ;;  %v8656_v57 = vpop.f32.mrf.mxu0 }
 0xa1f   : > { %v8657_v54 = vadd.f32 %v8656_v57, %v15642_v30  ;;  %v15739_v5 = vadd.f32 %v8801_v52, %v8753_v12 }
 0xa21   : > { %v8706_v17 = vadd.f32 %v8705_v8, %v8657_v54 }
 0xa24   : > { %v8754_v6 = vpop.f32.mrf.mxu2  ;;  %v8708_v24 = vpop.f32.mrf.mxu1 }
 0xa25   : > { %v8755_v23 = vadd.f32 %v8754_v6, %v8706_v17 }
 0xa26   : > { %v8803_v27 = vpop.f32.mrf.mxu3  ;;  %v8659_v63 = vpop.f32.mrf.mxu0 }
 0xa27   : > { %v8660_v60 = vadd.f32 %v8659_v63, %v15652_v51  ;;  %v15742_v18 = vadd.f32 %v8803_v27, %v8755_v23  ;;  %8903 = vmatmul.bf16.gmra.mxu1 %v16065_v3 }
 0xa29   : > { %v8709_v9 = vadd.f32 %v8708_v24, %v8660_v60  ;;  %8854 = vmatmul.bf16.gmra.mxu0 %v16064_v41  ;;  %8952 = vmatmul.bf16.gmra.mxu2 %v15368_v31  ;;  %v16069_v41 = vld [vmem:[#allocation118_spill] sm:$0xff] }
 0xa2b   : > { %9001 = vmatmul.bf16.gmra.mxu3 %v15467_v44 }
 0xa2c   : > { %v8757_v30 = vpop.f32.mrf.mxu2  ;;  %v8710_v36 = vpop.f32.mrf.mxu1 }
 0xa2d   : > { %v8758_v42 = vadd.f32 %v8757_v30, %v8709_v9  ;;  %v16068_v9 = vld [vmem:[#allocation111_spill] sm:$0xff] }
 0xa2e   : > { %v8806_v1 = vpop.f32.mrf.mxu3  ;;  %v8661_v43 = vpop.f32.mrf.mxu0 }
 0xa2f   : > { %v8662_v21 = vadd.f32 %v8661_v43, %v15656_v32  ;;  %v15749_v51 = vadd.f32 %v8806_v1, %v8758_v42 }
 0xa31   : > { %v8711_v7 = vadd.f32 %v8710_v36, %v8662_v21 }
 0xa34   : > { %v8759_v37 = vpop.f32.mrf.mxu2  ;;  %v8713_v16 = vpop.f32.mrf.mxu1 }
 0xa35   : > { %v8760_v13 = vadd.f32 %v8759_v37, %v8711_v7 }
 0xa36   : > { %v8808_v59 = vpop.f32.mrf.mxu3  ;;  %v8664_v46 = vpop.f32.mrf.mxu0 }
 0xa37   : > { %v8665_v35 = vadd.f32 %v8664_v46, %v15666_v48  ;;  %v15752_v31 = vadd.f32 %v8808_v59, %v8760_v13  ;;  %8908 = vmatmul.bf16.gmra.mxu1 %v16067_v56 }
 0xa39   : > { %v8714_v44 = vadd.f32 %v8713_v16, %v8665_v35  ;;  %8859 = vmatmul.bf16.gmra.mxu0 %v16066_v49  ;;  %8957 = vmatmul.bf16.gmra.mxu2 %v15380_v39  ;;  %v16070_v35 = vld [vmem:[#allocation112_spill] sm:$0xff] }
 0xa3b   : > { %9006 = vmatmul.bf16.gmra.mxu3 %v15479_v53 }
 0xa3c   : > { %v8762_v32 = vpop.f32.mrf.mxu2  ;;  %v8715_v8 = vpop.f32.mrf.mxu1 }
 0xa3d   : > { %v8763_v12 = vadd.f32 %v8762_v32, %v8714_v44 }
 0xa3e   : > { %v8811_v52 = vpop.f32.mrf.mxu3  ;;  %v8666_v57 = vpop.f32.mrf.mxu0 }
 0xa3f   : > { %v8667_v54 = vadd.f32 %v8666_v57, %v15670_v11  ;;  %v15759_v48 = vadd.f32 %v8811_v52, %v8763_v12 }
 0xa41   : > { %v8716_v17 = vadd.f32 %v8715_v8, %v8667_v54 }
 0xa44   : > { %v8764_v6 = vpop.f32.mrf.mxu2  ;;  %v8718_v24 = vpop.f32.mrf.mxu1 }
 0xa45   : > { %v8765_v23 = vadd.f32 %v8764_v6, %v8716_v17  ;;  %v16071_v6 = vld [vmem:[#allocation113_spill] sm:$0xff] }
 0xa46   : > { %v8813_v27 = vpop.f32.mrf.mxu3  ;;  %v8669_v63 = vpop.f32.mrf.mxu0 }
 0xa47   : > { %v8670_v60 = vadd.f32 %v8669_v63, %v15680_v45  ;;  %v15762_v39 = vadd.f32 %v8813_v27, %v8765_v23  ;;  %8913 = vmatmul.bf16.gmra.mxu1 %v16069_v41 }
 0xa49   : > { %v8719_v53 = vadd.f32 %v8718_v24, %v8670_v60  ;;  %8864 = vmatmul.bf16.gmra.mxu0 %v16068_v9  ;;  %8962 = vmatmul.bf16.gmra.mxu2 %v15392_v28 }
 0xa4b   : > { %9011 = vmatmul.bf16.gmra.mxu3 %v15491_v34 }
 0xa4c   : > { %v8767_v11 = vpop.f32.mrf.mxu2  ;;  %v8720_v43 = vpop.f32.mrf.mxu1 }
 0xa4d   : > { %v8768_v3 = vadd.f32 %v8767_v11, %v8719_v53 }
 0xa4e   : > { %v8816_v30 = vpop.f32.mrf.mxu3  ;;  %v8671_v42 = vpop.f32.mrf.mxu0 }
 0xa4f   : > { %v8672_v1 = vadd.f32 %v8671_v42, %v15684_v4  ;;  %v15769_v45 = vadd.f32 %v8816_v30, %v8768_v3  ;;  %v16072_v42 = vld [vmem:[#allocation114_spill] sm:$0xff] }
 0xa51   : > { %v8721_v21 = vadd.f32 %v8720_v43, %v8672_v1 }
 0xa54   : > { %v8769_v36 = vpop.f32.mrf.mxu2  ;;  %v8723_v46 = vpop.f32.mrf.mxu1 }
 0xa55   : > { %v8770_v7 = vadd.f32 %v8769_v36, %v8721_v21 }
 0xa56   : > { %v8818_v37 = vpop.f32.mrf.mxu3  ;;  %v8674_v13 = vpop.f32.mrf.mxu0 }
 0xa57   : > { %v8675_v59 = vadd.f32 %v8674_v13, %v15694_v38  ;;  %v15772_v28 = vadd.f32 %v8818_v37, %v8770_v7  ;;  %8918 = vmatmul.bf16.gmra.mxu1 %v15301_v40 }
 0xa59   : > { %v8724_v34 = vadd.f32 %v8723_v46, %v8675_v59  ;;  %8869 = vmatmul.bf16.gmra.mxu0 %v16070_v35  ;;  %8967 = vmatmul.bf16.gmra.mxu2 %v15404_v50 }
 0xa5b   : > { %9016 = vmatmul.bf16.gmra.mxu3 %v15503_v22 }
 0xa5c   : > { %v8772_v4 = vpop.f32.mrf.mxu2  ;;  %v8725_v32 = vpop.f32.mrf.mxu1 }
 0xa5d   : > { %v8773_v16 = vadd.f32 %v8772_v4, %v8724_v34  ;;  %v16073_v4 = vld [vmem:[#allocation115_spill] sm:$0xff] }
 0xa5e   : > { %v8821_v44 = vpop.f32.mrf.mxu3  ;;  %v8676_v49 = vpop.f32.mrf.mxu0 }
 0xa5f   : > { %v8677_v56 = vadd.f32 %v8676_v49, %v15698_v47  ;;  %v15779_v38 = vadd.f32 %v8821_v44, %v8773_v16 }
 0xa61   : > { %v8726_v12 = vadd.f32 %v8725_v32, %v8677_v56 }
 0xa64   : > { %v8774_v52 = vpop.f32.mrf.mxu2  ;;  %v8728_v17 = vpop.f32.mrf.mxu1 }
 0xa65   : > { %v8775_v57 = vadd.f32 %v8774_v52, %v8726_v12 }
 0xa66   : > { %v8823_v54 = vpop.f32.mrf.mxu3  ;;  %v8679_v8 = vpop.f32.mrf.mxu0 }
 0xa67   : > { %v8680_v40 = vadd.f32 %v8679_v8, %v15708_v26  ;;  %v15782_v50 = vadd.f32 %v8823_v54, %v8775_v57  ;;  %8923 = vmatmul.bf16.gmra.mxu1 %v15314_v61 }
 0xa69   : > { %v8729_v22 = vadd.f32 %v8728_v17, %v8680_v40  ;;  %8874 = vmatmul.bf16.gmra.mxu0 %v16071_v6  ;;  %8972 = vmatmul.bf16.gmra.mxu2 %v15416_v20 }
 0xa6b   : > { %9021 = vmatmul.bf16.gmra.mxu3 %v15515_v14 }
 0xa6c   : > { %v8777_v47 = vpop.f32.mrf.mxu2  ;;  %v8730_v24 = vpop.f32.mrf.mxu1 }
 0xa6d   : > { %v8778_v23 = vadd.f32 %v8777_v47, %v8729_v22 }
 0xa6e   : > { %v8826_v27 = vpop.f32.mrf.mxu3  ;;  %v8681_v63 = vpop.f32.mrf.mxu0 }
 0xa6f   : > { %v8682_v60 = vadd.f32 %v8681_v63, %v15712_v55  ;;  %v15789_v26 = vadd.f32 %v8826_v27, %v8778_v23  ;;  %v7213_v23 = vld [vmem:[#allocation11] sm:$0xff] }
 0xa71   : > { %v8731_v53 = vadd.f32 %v8730_v24, %v8682_v60 }
 0xa74   : > { %v8779_v9 = vpop.f32.mrf.mxu2  ;;  %v8733_v30 = vpop.f32.mrf.mxu1 }
 0xa75   : > { %v8780_v41 = vadd.f32 %v8779_v9, %v8731_v53 }
 0xa76   : > { %v8828_v11 = vpop.f32.mrf.mxu3  ;;  %v8684_v3 = vpop.f32.mrf.mxu0 }
 0xa77   : > { %v8685_v61 = vadd.f32 %v8684_v3, %v15719_v2  ;;  %v15792_v20 = vadd.f32 %v8828_v11, %v8780_v41  ;;  %8928 = vmatmul.bf16.gmra.mxu1 %v15326_v33  ;;  %v7214_v3 = vld [vmem:[#allocation11 + $0x8] sm:$0xff] }
 0xa79   : > { %v8734_v14 = vadd.f32 %v8733_v30, %v8685_v61  ;;  %8879 = vmatmul.bf16.gmra.mxu0 %v16072_v42  ;;  %8977 = vmatmul.bf16.gmra.mxu2 %v15428_v10 }
 0xa7b   : > { %9026 = vmatmul.bf16.gmra.mxu3 %v15527_v19 }
 0xa7c   : > { %v8782_v55 = vpop.f32.mrf.mxu2  ;;  %v8735_v7 = vpop.f32.mrf.mxu1 }
 0xa7d   : > { %v8783_v1 = vadd.f32 %v8782_v55, %v8734_v14 }
 0xa7e   : > { %v8831_v43 = vpop.f32.mrf.mxu3  ;;  %v8686_v21 = vpop.f32.mrf.mxu0 }
 0xa7f   : > { %v8687_v36 = vadd.f32 %v8686_v21, %v15722_v62  ;;  %v15799_v2 = vadd.f32 %v8831_v43, %v8783_v1 }
 0xa81   : > { %v8736_v37 = vadd.f32 %v8735_v7, %v8687_v36 }
 0xa84   : > { %v8784_v13 = vpop.f32.mrf.mxu2  ;;  %v8738_v35 = vpop.f32.mrf.mxu1 }
 0xa85   : > { %v8785_v59 = vadd.f32 %v8784_v13, %v8736_v37 }
 0xa86   : > { %v8833_v46 = vpop.f32.mrf.mxu3  ;;  %v8689_v34 = vpop.f32.mrf.mxu0 }
 0xa87   : > { %v8690_v33 = vadd.f32 %v8689_v34, %v15729_v58  ;;  %v15802_v10 = vadd.f32 %v8833_v46, %v8785_v59  ;;  %8933 = vmatmul.bf16.gmra.mxu1 %v15344_v0 }
 0xa89   : > { %v8739_v19 = vadd.f32 %v8738_v35, %v8690_v33  ;;  %8884 = vmatmul.bf16.gmra.mxu0 %v16073_v4  ;;  %8982 = vmatmul.bf16.gmra.mxu2 %v15443_v29 }
 0xa8b   : > { %9031 = vmatmul.bf16.gmra.mxu3 %v15538_v25 }
 0xa8c   : > { %v8787_v62 = vpop.f32.mrf.mxu2  ;;  %v8740_v32 = vpop.f32.mrf.mxu1 }
 0xa8d   : > { %v8788_v16 = vadd.f32 %v8787_v62, %v8739_v19 }
 0xa8e   : > { %v8836_v44 = vpop.f32.mrf.mxu3  ;;  %v8691_v49 = vpop.f32.mrf.mxu0 }
 0xa8f   : > { %v8692_v56 = vadd.f32 %v8691_v49, %v15732_v15  ;;  %v15809_v58 = vadd.f32 %v8836_v44, %v8788_v16 }
 0xa91   : > { %v8741_v12 = vadd.f32 %v8740_v32, %v8692_v56 }
 0xa94   : > { %v8789_v52 = vpop.f32.mrf.mxu2  ;;  %v8899_v40 = vpop.f32.mrf.mxu1 }
 0xa95   : > { %v8790_v57 = vadd.f32 %v8789_v52, %v8741_v12 }
 0xa96   : > { %v8838_v54 = vpop.f32.mrf.mxu3  ;;  %v8850_v8 = vpop.f32.mrf.mxu0 }
 0xa97   : > { %v15811_v0 = vadd.f32 %v8838_v54, %v8790_v57  ;;  %v8851_v29 = vadd.f32 %v8850_v8, %v15739_v5 }
 0xa99   : > { %v8900_v25 = vadd.f32 %v8899_v40, %v8851_v29 }
 0xa9c   : > { %v8948_v17 = vpop.f32.mrf.mxu2  ;;  %v8901_v15 = vpop.f32.mrf.mxu1 }
 0xa9d   : > { %v8949_v22 = vadd.f32 %v8948_v17, %v8900_v25 }
 0xa9e   : > { %v8997_v6 = vpop.f32.mrf.mxu3  ;;  %v8852_v47 = vpop.f32.mrf.mxu0 }
 0xa9f   : > { %v8998_v27 = vadd.f32 %v8997_v6, %v8949_v22  ;;  %v8853_v63 = vadd.f32 %v8852_v47, %v15742_v18  ;;  %v7215_v18 = vld [vmem:[#allocation11 + $0x10] sm:$0xff] }
 0xaa1   : > { %v9037_v60 = vadd.f32 %v8998_v27, %v7213_v23  ;;  %v8902_v24 = vadd.f32 %v8901_v15, %v8853_v63 }
 0xaa3   : > { %9053 = vst [vmem:[#allocation11] sm:$0xff] %v9037_v60 }
 0xaa4   : > { %v8950_v53 = vpop.f32.mrf.mxu2  ;;  %v8904_v61 = vpop.f32.mrf.mxu1 }
 0xaa5   : > { %v8951_v9 = vadd.f32 %v8950_v53, %v8902_v24 }
 0xaa6   : > { %v8999_v41 = vpop.f32.mrf.mxu3  ;;  %v8855_v11 = vpop.f32.mrf.mxu0 }
 0xaa7   : > { %v9000_v5 = vadd.f32 %v8999_v41, %v8951_v9  ;;  %v8856_v30 = vadd.f32 %v8855_v11, %v15749_v51  ;;  %v7216_v51 = vld [vmem:[#allocation11 + $0x18] sm:$0xff] }
 0xaa9   : > { %v9038_v14 = vadd.f32 %v9000_v5, %v7214_v3  ;;  %v8905_v42 = vadd.f32 %v8904_v61, %v8856_v30 }
 0xaab   : > { %9054 = vst [vmem:[#allocation11 + $0x8] sm:$0xff] %v9038_v14 }
 0xaac   : > { %v8953_v55 = vpop.f32.mrf.mxu2  ;;  %v8906_v36 = vpop.f32.mrf.mxu1 }
 0xaad   : > { %v8954_v1 = vadd.f32 %v8953_v55, %v8905_v42 }
 0xaae   : > { %v9002_v43 = vpop.f32.mrf.mxu3  ;;  %v8857_v21 = vpop.f32.mrf.mxu0 }
 0xaaf   : > { %v9003_v7 = vadd.f32 %v9002_v43, %v8954_v1  ;;  %v8858_v37 = vadd.f32 %v8857_v21, %v15752_v31  ;;  %v7217_v31 = vld [vmem:[#allocation11 + $0x20] sm:$0xff] }
 0xab1   : > { %v9039_v13 = vadd.f32 %v9003_v7, %v7215_v18  ;;  %v8907_v59 = vadd.f32 %v8906_v36, %v8858_v37 }
 0xab3   : > { %9055 = vst [vmem:[#allocation11 + $0x10] sm:$0xff] %v9039_v13 }
 0xab4   : > { %v8955_v46 = vpop.f32.mrf.mxu2  ;;  %v8909_v19 = vpop.f32.mrf.mxu1 }
 0xab5   : > { %v8956_v34 = vadd.f32 %v8955_v46, %v8907_v59 }
 0xab6   : > { %v9004_v33 = vpop.f32.mrf.mxu3  ;;  %v8860_v35 = vpop.f32.mrf.mxu0 }
 0xab7   : > { %v9005_v4 = vadd.f32 %v9004_v33, %v8956_v34  ;;  %v8861_v62 = vadd.f32 %v8860_v35, %v15759_v48  ;;  %v7218_v48 = vld [vmem:[#allocation11 + $0x28] sm:$0xff] }
 0xab9   : > { %v9040_v16 = vadd.f32 %v9005_v4, %v7216_v51  ;;  %v8910_v44 = vadd.f32 %v8909_v19, %v8861_v62 }
 0xabb   : > { %9056 = vst [vmem:[#allocation11 + $0x18] sm:$0xff] %v9040_v16 }
 0xabc   : > { %v8958_v49 = vpop.f32.mrf.mxu2  ;;  %v8911_v52 = vpop.f32.mrf.mxu1 }
 0xabd   : > { %v8959_v56 = vadd.f32 %v8958_v49, %v8910_v44 }
 0xabe   : > { %v9007_v32 = vpop.f32.mrf.mxu3  ;;  %v8862_v12 = vpop.f32.mrf.mxu0 }
 0xabf   : > { %v9008_v57 = vadd.f32 %v9007_v32, %v8959_v56  ;;  %v8863_v54 = vadd.f32 %v8862_v12, %v15762_v39  ;;  %v7219_v39 = vld [vmem:[#allocation11 + $0x30] sm:$0xff] }
 0xac1   : > { %v9041_v8 = vadd.f32 %v9008_v57, %v7217_v31  ;;  %v8912_v40 = vadd.f32 %v8911_v52, %v8863_v54 }
 0xac3   : > { %9057 = vst [vmem:[#allocation11 + $0x20] sm:$0xff] %v9041_v8 }
 0xac4   : > { %v8960_v29 = vpop.f32.mrf.mxu2  ;;  %v8914_v6 = vpop.f32.mrf.mxu1 }
 0xac5   : > { %v8961_v25 = vadd.f32 %v8960_v29, %v8912_v40 }
 0xac6   : > { %v9009_v17 = vpop.f32.mrf.mxu3  ;;  %v8865_v22 = vpop.f32.mrf.mxu0 }
 0xac7   : > { %v9010_v47 = vadd.f32 %v9009_v17, %v8961_v25  ;;  %v8866_v23 = vadd.f32 %v8865_v22, %v15769_v45  ;;  %v7220_v45 = vld [vmem:[#allocation11 + $0x38] sm:$0xff] }
 0xac9   : > { %v9042_v15 = vadd.f32 %v9010_v47, %v7218_v48  ;;  %v8915_v27 = vadd.f32 %v8914_v6, %v8866_v23 }
 0xacb   : > { %9058 = vst [vmem:[#allocation11 + $0x28] sm:$0xff] %v9042_v15 }
 0xacc   : > { %v8963_v63 = vpop.f32.mrf.mxu2  ;;  %v8916_v9 = vpop.f32.mrf.mxu1 }
 0xacd   : > { %v8964_v60 = vadd.f32 %v8963_v63, %v8915_v27 }
 0xace   : > { %v9012_v24 = vpop.f32.mrf.mxu3  ;;  %v8867_v53 = vpop.f32.mrf.mxu0 }
 0xacf   : > { %v9013_v41 = vadd.f32 %v9012_v24, %v8964_v60  ;;  %v8868_v11 = vadd.f32 %v8867_v53, %v15772_v28  ;;  %v7221_v28 = vld [vmem:[#allocation11 + $0x40] sm:$0xff] }
 0xad1   : > { %v9043_v3 = vadd.f32 %v9013_v41, %v7219_v39  ;;  %v8917_v61 = vadd.f32 %v8916_v9, %v8868_v11 }
 0xad3   : > { %9059 = vst [vmem:[#allocation11 + $0x30] sm:$0xff] %v9043_v3 }
 0xad4   : > { %v8965_v5 = vpop.f32.mrf.mxu2  ;;  %v8919_v55 = vpop.f32.mrf.mxu1 }
 0xad5   : > { %v8966_v30 = vadd.f32 %v8965_v5, %v8917_v61 }
 0xad6   : > { %v9014_v14 = vpop.f32.mrf.mxu3  ;;  %v8870_v42 = vpop.f32.mrf.mxu0 }
 0xad7   : > { %v9015_v1 = vadd.f32 %v9014_v14, %v8966_v30  ;;  %v8871_v43 = vadd.f32 %v8870_v42, %v15779_v38  ;;  %v7222_v38 = vld [vmem:[#allocation11 + $0x48] sm:$0xff] }
 0xad9   : > { %v9044_v21 = vadd.f32 %v9015_v1, %v7220_v45  ;;  %v8920_v18 = vadd.f32 %v8919_v55, %v8871_v43 }
 0xadb   : > { %9060 = vst [vmem:[#allocation11 + $0x38] sm:$0xff] %v9044_v21 }
 0xadc   : > { %v8968_v36 = vpop.f32.mrf.mxu2  ;;  %v8921_v59 = vpop.f32.mrf.mxu1 }
 0xadd   : > { %v8969_v7 = vadd.f32 %v8968_v36, %v8920_v18 }
 0xade   : > { %v9017_v37 = vpop.f32.mrf.mxu3  ;;  %v8872_v13 = vpop.f32.mrf.mxu0 }
 0xadf   : > { %v9018_v46 = vadd.f32 %v9017_v37, %v8969_v7  ;;  %v8873_v34 = vadd.f32 %v8872_v13, %v15782_v50  ;;  %v7223_v50 = vld [vmem:[#allocation11 + $0x50] sm:$0xff] }
 0xae1   : > { %v9045_v33 = vadd.f32 %v9018_v46, %v7221_v28  ;;  %v8922_v35 = vadd.f32 %v8921_v59, %v8873_v34 }
 0xae3   : > { %9061 = vst [vmem:[#allocation11 + $0x40] sm:$0xff] %v9045_v33 }
 0xae4   : > { %v8970_v51 = vpop.f32.mrf.mxu2  ;;  %v8924_v16 = vpop.f32.mrf.mxu1 }
 0xae5   : > { %v8971_v19 = vadd.f32 %v8970_v51, %v8922_v35  ;;  %v7228_v51 = vld [vmem:[#allocation11 + $0x78] sm:$0xff] }
 0xae6   : > { %v9019_v4 = vpop.f32.mrf.mxu3  ;;  %v8875_v62 = vpop.f32.mrf.mxu0 }
 0xae7   : > { %v9020_v44 = vadd.f32 %v9019_v4, %v8971_v19  ;;  %v8876_v49 = vadd.f32 %v8875_v62, %v15789_v26  ;;  %v7224_v26 = vld [vmem:[#allocation11 + $0x58] sm:$0xff] }
 0xae9   : > { %v9046_v56 = vadd.f32 %v9020_v44, %v7222_v38  ;;  %v8925_v32 = vadd.f32 %v8924_v16, %v8876_v49 }
 0xaeb   : > { %9062 = vst [vmem:[#allocation11 + $0x48] sm:$0xff] %v9046_v56 }
 0xaec   : > { %v8973_v12 = vpop.f32.mrf.mxu2  ;;  %v8926_v54 = vpop.f32.mrf.mxu1 }
 0xaed   : > { %v8974_v31 = vadd.f32 %v8973_v12, %v8925_v32 }
 0xaee   : > { %v9022_v52 = vpop.f32.mrf.mxu3  ;;  %v8877_v57 = vpop.f32.mrf.mxu0 }
 0xaef   : > { %v9023_v8 = vadd.f32 %v9022_v52, %v8974_v31  ;;  %v8878_v40 = vadd.f32 %v8877_v57, %v15792_v20  ;;  %v7225_v20 = vld [vmem:[#allocation11 + $0x60] sm:$0xff] }
 0xaf1   : > { %v9047_v29 = vadd.f32 %v9023_v8, %v7223_v50  ;;  %v8927_v25 = vadd.f32 %v8926_v54, %v8878_v40 }
 0xaf3   : > { %9063 = vst [vmem:[#allocation11 + $0x50] sm:$0xff] %v9047_v29 }
 0xaf4   : > { %v8975_v17 = vpop.f32.mrf.mxu2  ;;  %v8929_v47 = vpop.f32.mrf.mxu1 }
 0xaf5   : > { %v8976_v22 = vadd.f32 %v8975_v17, %v8927_v25 }
 0xaf6   : > { %v9024_v48 = vpop.f32.mrf.mxu3  ;;  %v8880_v6 = vpop.f32.mrf.mxu0 }
 0xaf7   : > { %v9025_v23 = vadd.f32 %v9024_v48, %v8976_v22  ;;  %v8881_v15 = vadd.f32 %v8880_v6, %v15799_v2  ;;  %v7226_v2 = vld [vmem:[#allocation11 + $0x68] sm:$0xff] }
 0xaf9   : > { %v9048_v27 = vadd.f32 %v9025_v23, %v7224_v26  ;;  %v8930_v63 = vadd.f32 %v8929_v47, %v8881_v15 }
 0xafb   : > { %9064 = vst [vmem:[#allocation11 + $0x58] sm:$0xff] %v9048_v27 }
 0xafc   : > { %v8978_v60 = vpop.f32.mrf.mxu2  ;;  %v8931_v9 = vpop.f32.mrf.mxu1 }
 0xafd   : > { %v8979_v24 = vadd.f32 %v8978_v60, %v8930_v63 }
 0xafe   : > { %v9027_v53 = vpop.f32.mrf.mxu3  ;;  %v8882_v39 = vpop.f32.mrf.mxu0 }
 0xaff   : > { %v9028_v41 = vadd.f32 %v9027_v53, %v8979_v24  ;;  %v8883_v11 = vadd.f32 %v8882_v39, %v15802_v10  ;;  %v7227_v10 = vld [vmem:[#allocation11 + $0x70] sm:$0xff] }
 0xb01   : > { %v9049_v3 = vadd.f32 %v9028_v41, %v7225_v20  ;;  %v8932_v61 = vadd.f32 %v8931_v9, %v8883_v11 }
 0xb03   : > { %9065 = vst [vmem:[#allocation11 + $0x60] sm:$0xff] %v9049_v3 }
 0xb04   : > { %v8980_v5 = vpop.f32.mrf.mxu2  ;;  %v8934_v1 = vpop.f32.mrf.mxu1 }
 0xb05   : > { %v8981_v30 = vadd.f32 %v8980_v5, %v8932_v61 }
 0xb06   : > { %v9029_v14 = vpop.f32.mrf.mxu3  ;;  %v8885_v42 = vpop.f32.mrf.mxu0 }
 0xb07   : > { %v9030_v45 = vadd.f32 %v9029_v14, %v8981_v30  ;;  %v8886_v55 = vadd.f32 %v8885_v42, %v15809_v58 }
 0xb09   : > { %v9050_v43 = vadd.f32 %v9030_v45, %v7226_v2  ;;  %v8935_v21 = vadd.f32 %v8934_v1, %v8886_v55 }
 0xb0b   : > { %9066 = vst [vmem:[#allocation11 + $0x68] sm:$0xff] %v9050_v43 }
 0xb0c   : > { %v8983_v18 = vpop.f32.mrf.mxu2  ;;  %v8936_v46 = vpop.f32.mrf.mxu1 }
 0xb0d   : > { %v8984_v36 = vadd.f32 %v8983_v18, %v8935_v21 }
 0xb0e   : > { %v9032_v7 = vpop.f32.mrf.mxu3  ;;  %v8887_v37 = vpop.f32.mrf.mxu0 }
 0xb0f   : > { %v9033_v13 = vadd.f32 %v9032_v7, %v8984_v36  ;;  %v8888_v28 = vadd.f32 %v8887_v37, %v15811_v0 }
 0xb11   : > { %v9051_v59 = vadd.f32 %v9033_v13, %v7227_v10  ;;  %v8937_v34 = vadd.f32 %v8936_v46, %v8888_v28 }
 0xb13   : > { %9067 = vst [vmem:[#allocation11 + $0x70] sm:$0xff] %v9051_v59 }
 0xb14   : > { %v8985_v33 = vpop.f32.mrf.mxu2 }
 0xb15   : > { %v8986_v35 = vadd.f32 %v8985_v33, %v8937_v34 }
 0xb16   : > { %v9034_v58 = vpop.f32.mrf.mxu3 }
 0xb17   : > { %v9035_v19 = vadd.f32 %v9034_v58, %v8986_v35  ;;  %9072 = sbr.rel (%p11990_p2) target bundleno = 2870 (0xb36), region = 68 }
 0xb19   : > { %v9052_v4 = vadd.f32 %v9035_v19, %v7228_v51 }
 0xb1b   : > { %9068 = vst [vmem:[#allocation11 + $0x78] sm:$0xff] %v9052_v4 }
 0xb1c   : > { %v9073_v62 = vld [vmem:[#allocation11] sm:$0xff]  ;;  %v12777_v38 = vld [vmem:[#allocation10] ss:$0 sm:$0xff]  ;;  %v9074_v16 = vld [vmem:[#allocation11 + $0x8] sm:$0xff] }
 0xb1d   : > { %v9075_v44 = vld [vmem:[#allocation11 + $0x10] sm:$0xff]  ;;  %v9076_v49 = vld [vmem:[#allocation11 + $0x18] sm:$0xff]  ;;  %v9093_v0 = vadd.f32 %v12777_v38, %v9073_v62  ;;  %v9094_v56 = vadd.f32 %v12777_v38, %v9074_v16  ;;  %v9077_v12 = vld [vmem:[#allocation11 + $0x20] sm:$0xff] }
 0xb1e   : > { %v9095_v32 = vadd.f32 %v12777_v38, %v9075_v44  ;;  %v9078_v31 = vld [vmem:[#allocation11 + $0x28] sm:$0xff]  ;;  %v9096_v52 = vadd.f32 %v12777_v38, %v9076_v49  ;;  %v9079_v57 = vld [vmem:[#allocation11 + $0x30] sm:$0xff]  ;;  %v9097_v50 = vadd.f32 %v12777_v38, %v9077_v12  ;;  %v9080_v54 = vld [vmem:[#allocation11 + $0x38] sm:$0xff] }
 0xb1f   : > { %12778 = vtanh.f32 %v9093_v0  ;;  %v9098_v8 = vadd.f32 %v12777_v38, %v9078_v31  ;;  %v9081_v40 = vld [vmem:[#allocation11 + $0x40] sm:$0xff]  ;;  %v9099_v29 = vadd.f32 %v12777_v38, %v9079_v57  ;;  %v9082_v25 = vld [vmem:[#allocation11 + $0x48] sm:$0xff]  ;;  %v9100_v17 = vadd.f32 %v12777_v38, %v9080_v54  ;;  %v9083_v22 = vld [vmem:[#allocation11 + $0x50] sm:$0xff] }
 0xb20   : > { %12780 = vtanh.f32 %v9094_v56  ;;  %v9101_v48 = vadd.f32 %v12777_v38, %v9081_v40  ;;  %v9084_v6 = vld [vmem:[#allocation11 + $0x58] sm:$0xff]  ;;  %v9102_v26 = vadd.f32 %v12777_v38, %v9082_v25  ;;  %v9085_v47 = vld [vmem:[#allocation11 + $0x60] sm:$0xff]  ;;  %v9103_v15 = vadd.f32 %v12777_v38, %v9083_v22  ;;  %v9086_v27 = vld [vmem:[#allocation11 + $0x68] sm:$0xff] }
 0xb21   : > { %12782 = vtanh.f32 %v9095_v32  ;;  %v9104_v60 = vadd.f32 %v12777_v38, %v9084_v6  ;;  %v9087_v24 = vld [vmem:[#allocation11 + $0x70] sm:$0xff]  ;;  %v9105_v39 = vadd.f32 %v12777_v38, %v9085_v47  ;;  %v9106_v41 = vadd.f32 %v12777_v38, %v9086_v27 }
 0xb22   : > { %12784 = vtanh.f32 %v9096_v52  ;;  %v9088_v20 = vld [vmem:[#allocation11 + $0x78] sm:$0xff]  ;;  %v9107_v3 = vadd.f32 %v12777_v38, %v9087_v24 }
 0xb23   : > { %12786 = vtanh.f32 %v9097_v50  ;;  %v9108_v5 = vadd.f32 %v12777_v38, %v9088_v20 }
 0xb24   : > { %12788 = vtanh.f32 %v9098_v8 }
 0xb25   : > { %v12779_v23 = vpop.eup %12778  ;;  %12790 = vtanh.f32 %v9099_v29 }
 0xb26   : > { %v12781_v63 = vpop.eup %12780  ;;  %9125 = vst [vmem:[#allocation11] sm:$0xff] %v12779_v23  ;;  %12792 = vtanh.f32 %v9100_v17 }
 0xb27   : > { %v12783_v53 = vpop.eup %12782  ;;  %9126 = vst [vmem:[#allocation11 + $0x8] sm:$0xff] %v12781_v63  ;;  %12794 = vtanh.f32 %v9101_v48 }
 0xb28   : > { %v12785_v9 = vpop.eup %12784  ;;  %9127 = vst [vmem:[#allocation11 + $0x10] sm:$0xff] %v12783_v53  ;;  %12796 = vtanh.f32 %v9102_v26 }
 0xb29   : > { %v12787_v11 = vpop.eup %12786  ;;  %9128 = vst [vmem:[#allocation11 + $0x18] sm:$0xff] %v12785_v9  ;;  %12798 = vtanh.f32 %v9103_v15 }
 0xb2a   : > { %v12789_v61 = vpop.eup %12788  ;;  %9129 = vst [vmem:[#allocation11 + $0x20] sm:$0xff] %v12787_v11  ;;  %12800 = vtanh.f32 %v9104_v60 }
 0xb2b   : > { %v12791_v30 = vpop.eup %12790  ;;  %9130 = vst [vmem:[#allocation11 + $0x28] sm:$0xff] %v12789_v61  ;;  %12802 = vtanh.f32 %v9105_v39 }
 0xb2c   : > { %v12793_v14 = vpop.eup %12792  ;;  %9131 = vst [vmem:[#allocation11 + $0x30] sm:$0xff] %v12791_v30  ;;  %12804 = vtanh.f32 %v9106_v41 }
 0xb2d   : > { %v12795_v42 = vpop.eup %12794  ;;  %9132 = vst [vmem:[#allocation11 + $0x38] sm:$0xff] %v12793_v14  ;;  %12806 = vtanh.f32 %v9107_v3 }
 0xb2e   : > { %v12797_v2 = vpop.eup %12796  ;;  %9133 = vst [vmem:[#allocation11 + $0x40] sm:$0xff] %v12795_v42  ;;  %12808 = vtanh.f32 %v9108_v5 }
 0xb2f   : > { %v12799_v45 = vpop.eup %12798  ;;  %9134 = vst [vmem:[#allocation11 + $0x48] sm:$0xff] %v12797_v2 }
 0xb30   : > { %v12801_v55 = vpop.eup %12800  ;;  %9135 = vst [vmem:[#allocation11 + $0x50] sm:$0xff] %v12799_v45 }
 0xb31   : > { %v12803_v1 = vpop.eup %12802  ;;  %9136 = vst [vmem:[#allocation11 + $0x58] sm:$0xff] %v12801_v55 }
 0xb32   : > { %v12805_v43 = vpop.eup %12804  ;;  %9137 = vst [vmem:[#allocation11 + $0x60] sm:$0xff] %v12803_v1 }
 0xb33   : > { %v12807_v21 = vpop.eup %12806  ;;  %9138 = vst [vmem:[#allocation11 + $0x68] sm:$0xff] %v12805_v43 }
 0xb34   : > { %v12809_v18 = vpop.eup %12808  ;;  %9139 = vst [vmem:[#allocation11 + $0x70] sm:$0xff] %v12807_v21 }
 0xb35   : > { %9140 = vst [vmem:[#allocation11 + $0x78] sm:$0xff] %v12809_v18 }
 0xb36 PF: > { %p12709_p3 = scmp.eq.s32.totalorder %s13127_s24, 1  ;;  %s9151_s16 = sshll.u32 %s15857_s5, 4  ;;  %s9152_s16 = int_to_ptr.hbm [resolvable:$true] %s9151_s16 }
 0xb37   : > { %s13065_s14 = smov [#allocation11]   ;;  %s13066_s9 = smov 128  }
 0xb38   : > { %s9149_s25 = sshll.u32 %s13065_s14, 4  ;;  %s13067_s12 = smov 8   ;;  %s9150_s25 = int_to_ptr.vmem [resolvable:$true] %s9149_s25 }
 0xb39   : > { %12684 = dma.vmem_to_hbm [thread:$0]  (%p12709_p3), %s9150_s25, 2048, %s9152_s16, [#allocation4], %s13066_s9, %s13066_s9, %s13067_s12  }
 0xb3a   : > { %13029 = dma.done.wait (%p12709_p3), [#allocation4], 2048  }
 0xb3b   : > { %13031 = vsyncadd (%p12709_p3), [#allocation4], 4294965248 }
 0xb3c PF: > { %s23_s23 = sadd.s32 1, %s13054_s23   ;;  %s16074_s17 = sld [smem:[#allocation17_spill]] }
 0xb3d   : > { %p20_p4 = scmp.ge.s32.totalorder %s23_s23, 4   ;;  %s16075_s20 = sld [smem:[#allocation19_spill]] }
 0xb3e   : > { %s16076_s24 = sld [smem:[#allocation18_spill]]  ;;  %s16077_s18 = smov %s13038_s19 }
 0xb3f   : > { %s16079_s21 = smov %s13050_s22 }
 0xb40   :  { %22 = sbr.rel (!%p20_p4) target bundleno = 11 (0xb), region = 120 }
 0xb42   : > { %s16078_s19 = smov %s16074_s17 }
 0xb44   : > { %s16080_s22 = smov %s16076_s24 }
 0xb45   :  { %9168 = vsyncpa [#allocation3], 1 }
 0xb46   :  { %9170 = vsyncpa [#allocation3 + $0x1], 1 }
 0xb47   :  { %9171 = vsyncpa [#allocation6], 1 }
 0xb48   :  { %9173 = vsyncpa [#allocation6 + $0x1], 1 }
 0xb49   :  { %9174 = vsyncpa [#allocation9], 1 }
 0xb4a   :  { %9176 = vsyncpa [#allocation9 + $0x1], 1 }
 0xb4b   :  { %9177 = vsyncpa [#allocation4], 1 }
 0xb4c   :  { %9179 = vsyncpa [#allocation4 + $0x1], 1 }

</bundles_post_ra>
